<compile_context>
chip_gen: v7x
topology: tpu7x:2x2x1
jax: 0.10.0
libtpu: 0.0.40
codegen_flags: <defaults>
</compile_context>

<pallas_src>
import functools

import jax
import jax.numpy as jnp
from jax import lax
from jax.experimental import pallas as pl
from jax.experimental.pallas import tpu as pltpu

EPS = 1e-5        # nn.BatchNorm2d default eps
NEG_SLOPE = 0.2   # nn.LeakyReLU(0.2)

TM_MAX = 512            # GEMM patch-row (M) tile
TN_MAX = 512            # GEMM output-channel (N) tile; Cout padded to a multiple of 128
TK_MAX = 2048           # reduction (K) tile when K is grid-tiled
K_COLLAPSE_MAX = 2048   # collapse the K grid axis (single dot) when K <= this
TM_BN_MAX = 1024        # row tile for the BN+LeakyReLU streaming pass
VMEM_LIMIT_BYTES = 32 * 1024 * 1024   # explicit scoped-VMEM limit (v5e default is only 16 MiB)


def _round_up(a, b):
    return (a + b - 1) // b * b


def _pick_tile(m, tmax):
    """Largest row tile <= tmax that evenly divides m (m itself if it fits, else a
    multiple of 8).  Returns 0 if no clean divisor exists (caller pads)."""
    if m <= tmax:
        return m
    t = (tmax // 8) * 8
    while t >= 8:
        if m % t == 0:
            return t
        t -= 8
    return 0


# ---------------------------------------------------------------------------
# Pallas kernels
# ---------------------------------------------------------------------------
def _gemm_stats_1shot_kernel(p_ref, w_ref, y_ref, s1_ref, s2_ref):
    """K-collapsed bf16 (tm,K)@(K,tn) GEMM: one dot, bf16 conv output, per-tile
    (sum, sum_sq) partials for the BatchNorm reduction.  No conv bias (cancelled
    exactly by the BN mean subtraction)."""
    acc = jnp.dot(p_ref[...], w_ref[...], preferred_element_type=jnp.float32)
    y_ref[...] = acc.astype(y_ref.dtype)
    s1_ref[...] = jnp.sum(acc, axis=0, keepdims=True)
    s2_ref[...] = jnp.sum(acc * acc, axis=0, keepdims=True)


def _gemm_stats_ktiled_kernel(p_ref, w_ref, y_ref, s1_ref, s2_ref, acc_ref):
    """K-tiled bf16 GEMM with f32 VMEM accumulator; emits bf16 conv output and
    BN partials on the last K step."""
    @pl.when(pl.program_id(2) == 0)
    def _():
        acc_ref[...] = jnp.zeros_like(acc_ref)

    acc_ref[...] += jnp.dot(p_ref[...], w_ref[...],
                            preferred_element_type=jnp.float32)

    @pl.when(pl.program_id(2) == pl.num_programs(2) - 1)
    def _():
        acc = acc_ref[...]
        y_ref[...] = acc.astype(y_ref.dtype)
        s1_ref[...] = jnp.sum(acc, axis=0, keepdims=True)
        s2_ref[...] = jnp.sum(acc * acc, axis=0, keepdims=True)


def _gemm_bias_sigmoid_kernel(p_ref, w_ref, b_ref, o_ref, acc_ref):
    """Final layer: K-tiled bf16 GEMM + bias + numerically stable sigmoid (works
    for nk == 1 too; pl.when conditions fold)."""
    @pl.when(pl.program_id(2) == 0)
    def _():
        acc_ref[...] = jnp.zeros_like(acc_ref)

    acc_ref[...] += jnp.dot(p_ref[...], w_ref[...],
                            preferred_element_type=jnp.float32)

    @pl.when(pl.program_id(2) == pl.num_programs(2) - 1)
    def _():
        v = acc_ref[...] + b_ref[...]
        e = jnp.exp(-jnp.abs(v))                    # exponent always <= 0: no overflow
        num = jnp.where(v >= 0.0, 1.0, e)
        o_ref[...] = (num * pl.reciprocal(1.0 + e, approx=True)).astype(o_ref.dtype)


def _bn_lrelu_kernel(y_ref, sc_ref, sh_ref, o_ref):
    """Second BN pass: z = y*scale + shift (gamma*rsqrt(var+eps) folded into scale),
    then LeakyReLU(0.2); bf16 in, f32 math, bf16 out for the next layer's MXU."""
    z = y_ref[...].astype(jnp.float32) * sc_ref[...] + sh_ref[...]
    o_ref[...] = jnp.where(z >= 0.0, z, NEG_SLOPE * z).astype(o_ref.dtype)


# ---------------------------------------------------------------------------
# pallas_call wrappers
# ---------------------------------------------------------------------------
def _conv_gemm_stats(patches, wmat, tm, tk, tn):
    m_pad, k_pad = patches.shape
    _, c_pad = wmat.shape
    nm, nn = m_pad // tm, c_pad // tn
    out_shapes = (jax.ShapeDtypeStruct((m_pad, c_pad), jnp.bfloat16),
                  jax.ShapeDtypeStruct((nm, c_pad), jnp.float32),
                  jax.ShapeDtypeStruct((nm, c_pad), jnp.float32))

    if tk == k_pad:
        # K grid axis collapsed: one straight-through dot per (m, n) tile.
        grid_spec = pltpu.PrefetchScalarGridSpec(
            num_scalar_prefetch=0, grid=(nm, nn),
            in_specs=[pl.BlockSpec((tm, k_pad), lambda m, n: (m, 0)),
                      pl.BlockSpec((k_pad, tn), lambda m, n: (0, n))],
            out_specs=[pl.BlockSpec((tm, tn), lambda m, n: (m, n)),
                       pl.BlockSpec((1, tn), lambda m, n: (m, n)),
                       pl.BlockSpec((1, tn), lambda m, n: (m, n))])
        kernel = _gemm_stats_1shot_kernel
        sem = ("parallel", "parallel")
    else:
        nk = k_pad // tk
        grid_spec = pltpu.PrefetchScalarGridSpec(
            num_scalar_prefetch=0, grid=(nm, nn, nk),
            in_specs=[pl.BlockSpec((tm, tk), lambda m, n, k: (m, k)),
                      pl.BlockSpec((tk, tn), lambda m, n, k: (k, n))],
            out_specs=[pl.BlockSpec((tm, tn), lambda m, n, k: (m, n)),
                       pl.BlockSpec((1, tn), lambda m, n, k: (m, n)),
                       pl.BlockSpec((1, tn), lambda m, n, k: (m, n))],
            scratch_shapes=[pltpu.VMEM((tm, tn), jnp.float32)])
        kernel = _gemm_stats_ktiled_kernel
        sem = ("parallel", "parallel", "arbitrary")

    return pl.pallas_call(
        kernel, out_shape=out_shapes, grid_spec=grid_spec,
        compiler_params=pltpu.CompilerParams(
            dimension_semantics=sem, vmem_limit_bytes=VMEM_LIMIT_BYTES),
    )(patches, wmat)


def _conv_gemm_sigmoid(patches, wmat, bias_pad, tm, tk, tn):
    m_pad, k_pad = patches.shape
    _, c_pad = wmat.shape
    nm, nn, nk = m_pad // tm, c_pad // tn, k_pad // tk
    return pl.pallas_call(
        _gemm_bias_sigmoid_kernel,
        out_shape=jax.ShapeDtypeStruct((m_pad, c_pad), jnp.float32),
        grid_spec=pltpu.PrefetchScalarGridSpec(
            num_scalar_prefetch=0, grid=(nm, nn, nk),
            in_specs=[pl.BlockSpec((tm, tk), lambda m, n, k: (m, k)),
                      pl.BlockSpec((tk, tn), lambda m, n, k: (k, n)),
                      pl.BlockSpec((1, tn), lambda m, n, k: (0, n))],
            out_specs=pl.BlockSpec((tm, tn), lambda m, n, k: (m, n)),
            scratch_shapes=[pltpu.VMEM((tm, tn), jnp.float32)]),
        compiler_params=pltpu.CompilerParams(
            dimension_semantics=("parallel", "parallel", "arbitrary"),
            vmem_limit_bytes=VMEM_LIMIT_BYTES),
    )(patches, wmat, bias_pad.reshape(1, c_pad))


def _bn_lrelu_apply(y, scale, shift):
    m_pad, c_pad = y.shape
    tm = _pick_tile(m_pad, TM_BN_MAX)
    if tm == 0:          # unreachable in practice (m_pad always has a mult-of-8 divisor)
        tm = 8
    nm = m_pad // tm
    return pl.pallas_call(
        _bn_lrelu_kernel,
        out_shape=jax.ShapeDtypeStruct((m_pad, c_pad), jnp.bfloat16),
        grid_spec=pltpu.PrefetchScalarGridSpec(
            num_scalar_prefetch=0, grid=(nm,),
            in_specs=[pl.BlockSpec((tm, c_pad), lambda m: (m, 0)),
                      pl.BlockSpec((1, c_pad), lambda m: (0, 0)),
                      pl.BlockSpec((1, c_pad), lambda m: (0, 0))],
            out_specs=pl.BlockSpec((tm, c_pad), lambda m: (m, 0))),
        compiler_params=pltpu.CompilerParams(dimension_semantics=("parallel",)),
    )(y, scale.reshape(1, c_pad), shift.reshape(1, c_pad))


# ---------------------------------------------------------------------------
# JAX glue: im2col (bf16) + layer wrapper
# ---------------------------------------------------------------------------
def _im2col(x, kh, kw, stride, pad):
    """x: (N,H,W,C) -> patches (N*OH*OW, kh*kw*C), flattened in (i, j, c) order."""
    # TODO(synk): replace with in-kernel implicit-GEMM tap gather to remove the
    # up-to-16x HBM blow-up of the patch matrix (stride-1 layers).
    x = jnp.pad(x, ((0, 0), (pad, pad), (pad, pad), (0, 0)))
    n, h, w, c = x.shape
    oh = (h - kh) // stride + 1
    ow = (w - kw) // stride + 1
    cols = []
    for i in range(kh):
        for j in range(kw):
            cols.append(x[:, i:i + stride * oh:stride, j:j + stride * ow:stride, :])
    p = jnp.stack(cols, axis=3)                    # (N, OH, OW, kh*kw, C)
    return p.reshape(n * oh * ow, kh * kw * c), oh, ow


def _conv_layer(x, lp):
    n = x.shape[0]
    patches, oh, ow = _im2col(x, lp["kh"], lp["kw"], lp["stride"], lp["pad"])
    m, k = patches.shape
    cout, c_pad = lp["cout"], lp["c_pad"]

    tm = _pick_tile(m, TM_MAX)
    if tm == 0:                                    # rare: no clean divisor -> pad M
        tm = TM_MAX
        m_pad = _round_up(m, tm)
    else:
        m_pad = m
    pad_m, pad_k = m_pad - m, lp["k_pad"] - k
    if pad_m or pad_k:
        patches = jnp.pad(patches, ((0, pad_m), (0, pad_k)))
    patches = patches.astype(jnp.bfloat16)

    if lp["final"]:
        y = _conv_gemm_sigmoid(patches, lp["wmat"], lp["bias_pad"],
                               tm, lp["tk"], lp["tn"])
        if m_pad != m or c_pad != cout:
            y = y[:m, :cout]
        return y.reshape(n, oh, ow, cout)

    y, s1p, s2p = _conv_gemm_stats(patches, lp["wmat"], tm, lp["tk"], lp["tn"])
    # Combine per-M-tile partials -> batch statistics (biased variance, train-mode BN).
    # Zero-padded rows contribute nothing to sum/sumsq; divide by the true row count m.
    # TODO(synk): E[x^2]-E[x]^2 in f32 is cancellation-prone when |mean| >> std; switch
    # to a centered / Welford-style merge if that regime ever shows up.
    s1 = jnp.sum(s1p, axis=0)
    s2 = jnp.sum(s2p, axis=0)
    mean = s1 / m
    var = jnp.maximum(s2 / m - mean * mean, 0.0)
    scale = lp["gamma_pad"] * lax.rsqrt(var + EPS)
    shift = lp["beta_pad"] - mean * scale
    act = _bn_lrelu_apply(y, scale, shift)
    if m_pad != m or c_pad != cout:                # no-op (and skipped) when shapes match
        act = act[:m, :cout]
    return act.reshape(n, oh, ow, cout)


def discriminator_up_forward(x_nchw, packed):
    """Forward pass of Discriminator_UP.  Input / output are NCHW (like PyTorch)."""
    x = jnp.transpose(x_nchw, (0, 2, 3, 1)).astype(jnp.bfloat16)   # NCHW -> NHWC
    for lp in packed:
        x = _conv_layer(x, lp)
    return jnp.transpose(x, (0, 3, 1, 2)).astype(jnp.float32)      # NHWC -> NCHW


# ---------------------------------------------------------------------------
# Parameter init (same shapes as the PyTorch __init__) + one-time packing.
# ---------------------------------------------------------------------------
def init_params(key, ndf=64):
    #        (Cin,      Cout,     k, stride, pad)
    specs = [(3,         ndf,      4, 2, 1),
             (ndf,       ndf * 2,  4, 2, 1),
             (ndf * 2,   ndf * 4,  4, 2, 1),
             (ndf * 4,   ndf * 8,  4, 1, 1),
             (ndf * 8,   1,        4, 1, 1)]
    params = []
    for cin, cout, k, s, p in specs:
        key, k1, k2 = jax.random.split(key, 3)
        bound = 1.0 / float(cin * k * k) ** 0.5
        w = jax.random.uniform(k1, (cout, cin, k, k), jnp.float32, -bound, bound)
        b = jax.random.uniform(k2, (cout,), jnp.float32, -bound, bound)
        params.append(dict(w=w, b=b,
                           gamma=jnp.ones((cout,), jnp.float32),
                           beta=jnp.zeros((cout,), jnp.float32),
                           stride=s, pad=p))
    return params


def pack_params(params):
    """One-time packing: weight transpose/reshape, Cout padding to a multiple of 128
    (lane-dense stores), K padding/tiling choice, bf16 cast for the MXU."""
    packed = []
    nl = len(params)
    for idx, lp in enumerate(params):
        w = lp["w"]
        cout, cin, kh, kw = w.shape
        k = kh * kw * cin
        if k <= K_COLLAPSE_MAX:
            tk, k_pad = k, k                    # K grid axis collapsed (nk = 1)
        else:
            tk = TK_MAX
            k_pad = _round_up(k, tk)
        c_pad = _round_up(cout, 128)
        if c_pad <= TN_MAX:
            tn = c_pad
        else:
            tn = TN_MAX
            while c_pad % tn:
                tn -= 128
        wmat = jnp.transpose(w, (2, 3, 1, 0)).reshape(k, cout)     # (i, j, ci) x Cout
        wmat = jnp.pad(wmat, ((0, k_pad - k), (0, c_pad - cout)))
        packed.append(dict(
            wmat=wmat.astype(jnp.bfloat16),
            bias_pad=jnp.pad(lp["b"], (0, c_pad - cout)),
            gamma_pad=jnp.pad(lp["gamma"], (0, c_pad - cout)),
            beta_pad=jnp.pad(lp["beta"], (0, c_pad - cout)),
            kh=kh, kw=kw, stride=lp["stride"], pad=lp["pad"],
            cout=cout, c_pad=c_pad, k_pad=k_pad, tk=tk, tn=tn,
            final=(idx == nl - 1)))
    return packed


# ---------------------------------------------------------------------------
# Pure-JAX f32 reference (lax.conv, bias, train-mode BN, LeakyReLU, Sigmoid).
# ---------------------------------------------------------------------------
def _reference_forward(x, params):
    nl = len(params)
    for i, lp in enumerate(params):
        s, p = lp["stride"], lp["pad"]
        y = lax.conv_general_dilated(
            x, lp["w"], window_strides=(s, s), padding=[(p, p), (p, p)],
            dimension_numbers=("NCHW", "OIHW", "NCHW"))
        y = y + lp["b"].reshape(1, -1, 1, 1)
        if i < nl - 1:
            m = jnp.mean(y, axis=(0, 2, 3), keepdims=True)
            v = jnp.mean(jnp.square(y - m), axis=(0, 2, 3), keepdims=True)
            y = (y - m) * lax.rsqrt(v + EPS)
            y = y * lp["gamma"].reshape(1, -1, 1, 1) + lp["beta"].reshape(1, -1, 1, 1)
            y = jnp.where(y >= 0, y, NEG_SLOPE * y)
        else:
            y = jax.nn.sigmoid(y)
        x = y
    return x


if __name__ == "__main__":
    key = jax.random.PRNGKey(0)
    kx, kp = jax.random.split(key)

    # Smallest valid spatial size (every conv output >= 1 pixel); ndf=64 is the module's
    # default and exercises both the K-collapsed and K-tiled GEMM paths.
    x = jax.random.normal(kx, (2, 3, 32, 32), jnp.float32)
    params = init_params(kp, ndf=64)
    packed = pack_params(params)          # one-time weight packing (not per-call)

    fwd = jax.jit(functools.partial(discriminator_up_forward, packed=packed))
    out = jax.block_until_ready(fwd(x))   # -> (2, 1, 2, 2)

    ref = _reference_forward(x, params)
    assert out.shape == ref.shape, (out.shape, ref.shape)
    err = float(jnp.max(jnp.abs(out - ref)))
    # bf16 MXU operands + bf16 inter-pass y (f32 accumulation / BN / epilogue):
    # loose-but-meaningful tolerance on the sigmoid output.
    assert err < 5e-2, err
    print("KERNEL_OK")
</pallas_src>

<mosaic_0001>
module attributes {stable_mosaic.version = 11 : i64} {
  func.func @_gemm_stats_1shot_kernel(%arg0: i32, %arg1: i32, %arg2: memref<512x48xbf16, #tpu.memory_space<vmem>>, %arg3: memref<48x128xbf16, #tpu.memory_space<vmem>>, %arg4: memref<512x128xbf16, #tpu.memory_space<vmem>>, %arg5: memref<1x128xf32, #tpu.memory_space<vmem>>, %arg6: memref<1x128xf32, #tpu.memory_space<vmem>>) attributes {dimension_semantics = [#tpu.dimension_semantics<parallel>, #tpu.dimension_semantics<parallel>], iteration_bounds = array<i64: 1, 1>, scalar_prefetch = 0 : i64, scratch_operands = 0 : i64, tpu.core_type = #tpu.core_type<tc>, window_params = [{transform_indices = @transform_0, window_bounds = array<i64: 512, 48>}, {transform_indices = @transform_1, window_bounds = array<i64: 48, 128>}, {transform_indices = @transform_2, window_bounds = array<i64: 512, 128>}, {transform_indices = @transform_3, window_bounds = array<i64: 1, 128>}, {transform_indices = @transform_4, window_bounds = array<i64: 1, 128>}]} {
    %c0 = arith.constant 0 : index
    %c0_0 = arith.constant 0 : index
    %0 = vector.load %arg2[%c0, %c0_0] : memref<512x48xbf16, #tpu.memory_space<vmem>>, vector<512x48xbf16>
    %c0_1 = arith.constant 0 : index
    %c0_2 = arith.constant 0 : index
    %1 = vector.load %arg3[%c0_1, %c0_2] : memref<48x128xbf16, #tpu.memory_space<vmem>>, vector<48x128xbf16>
    %cst = arith.constant dense<0.000000e+00> : vector<512x128xf32>
    %2 = tpu.matmul %0, %1, %cst {dimension_numbers = #tpu.dot_dimension_numbers<[1], [0], [0], [1], [0, 0, 1, 1], [], []>} : vector<512x48xbf16>, vector<48x128xbf16>, vector<512x128xf32> -> vector<512x128xf32>
    %3 = arith.truncf %2 : vector<512x128xf32> to vector<512x128xbf16>
    %c0_3 = arith.constant 0 : index
    %c0_4 = arith.constant 0 : index
    %4 = vector.load %arg4[%c0_3, %c0_4] : memref<512x128xbf16, #tpu.memory_space<vmem>>, vector<512x128xbf16>
    tpu.vector_store %arg4[%c0_3, %c0_4], %3 {strides = array<i32>} : memref<512x128xbf16, #tpu.memory_space<vmem>>, vector<512x128xbf16>,
    %cst_5 = arith.constant dense<0.000000e+00> : vector<128xf32>
    %5 = vector.multi_reduction <add>, %2, %cst_5 [0] : vector<512x128xf32> to vector<128xf32>
    %6 = vector.shape_cast %5 : vector<128xf32> to vector<1x128xf32>
    %c0_6 = arith.constant 0 : index
    %c0_7 = arith.constant 0 : index
    %7 = vector.load %arg5[%c0_6, %c0_7] : memref<1x128xf32, #tpu.memory_space<vmem>>, vector<1x128xf32>
    tpu.vector_store %arg5[%c0_6, %c0_7], %6 {strides = array<i32>} : memref<1x128xf32, #tpu.memory_space<vmem>>, vector<1x128xf32>,
    %8 = arith.mulf %2, %2 : vector<512x128xf32>
    %cst_8 = arith.constant dense<0.000000e+00> : vector<128xf32>
    %9 = vector.multi_reduction <add>, %8, %cst_8 [0] : vector<512x128xf32> to vector<128xf32>
    %10 = vector.shape_cast %9 : vector<128xf32> to vector<1x128xf32>
    %c0_9 = arith.constant 0 : index
    %c0_10 = arith.constant 0 : index
    %11 = vector.load %arg6[%c0_9, %c0_10] : memref<1x128xf32, #tpu.memory_space<vmem>>, vector<1x128xf32>
    tpu.vector_store %arg6[%c0_9, %c0_10], %10 {strides = array<i32>} : memref<1x128xf32, #tpu.memory_space<vmem>>, vector<1x128xf32>,
    return
  }
  func.func @transform_0(%arg0: i32, %arg1: i32) -> (i32, i32) {
    %c0_i32 = arith.constant 0 : i32
    %c0_i32_0 = arith.constant 0 : i32
    return %arg0, %c0_i32 : i32, i32
  }
  func.func @transform_1(%arg0: i32, %arg1: i32) -> (i32, i32) {
    %c0_i32 = arith.constant 0 : i32
    %c0_i32_0 = arith.constant 0 : i32
    return %c0_i32, %arg1 : i32, i32
  }
  func.func @transform_2(%arg0: i32, %arg1: i32) -> (i32, i32) {
    %c0_i32 = arith.constant 0 : i32
    return %arg0, %arg1 : i32, i32
  }
  func.func @transform_3(%arg0: i32, %arg1: i32) -> (i32, i32) {
    %c0_i32 = arith.constant 0 : i32
    return %arg0, %arg1 : i32, i32
  }
  func.func @transform_4(%arg0: i32, %arg1: i32) -> (i32, i32) {
    %c0_i32 = arith.constant 0 : i32
    return %arg0, %arg1 : i32, i32
  }
}

module attributes {stable_mosaic.version = 11 : i64} {
  func.func @_bn_lrelu_kernel(%arg0: i32, %arg1: memref<512x128xbf16, #tpu.memory_space<vmem>>, %arg2: memref<1x128xf32, #tpu.memory_space<vmem>>, %arg3: memref<1x128xf32, #tpu.memory_space<vmem>>, %arg4: memref<512x128xbf16, #tpu.memory_space<vmem>>) attributes {dimension_semantics = [#tpu.dimension_semantics<parallel>], iteration_bounds = array<i64: 1>, scalar_prefetch = 0 : i64, scratch_operands = 0 : i64, tpu.core_type = #tpu.core_type<tc>, window_params = [{transform_indices = @transform_0, window_bounds = array<i64: 512, 128>}, {pipeline_mode = #tpu.pipeline_mode<synchronous>, transform_indices = @transform_1, window_bounds = array<i64: 1, 128>}, {pipeline_mode = #tpu.pipeline_mode<synchronous>, transform_indices = @transform_2, window_bounds = array<i64: 1, 128>}, {transform_indices = @transform_3, window_bounds = array<i64: 512, 128>}]} {
    %c0 = arith.constant 0 : index
    %c0_0 = arith.constant 0 : index
    %0 = vector.load %arg1[%c0, %c0_0] : memref<512x128xbf16, #tpu.memory_space<vmem>>, vector<512x128xbf16>
    %1 = arith.extf %0 : vector<512x128xbf16> to vector<512x128xf32>
    %c0_1 = arith.constant 0 : index
    %c0_2 = arith.constant 0 : index
    %2 = vector.load %arg2[%c0_1, %c0_2] : memref<1x128xf32, #tpu.memory_space<vmem>>, vector<1x128xf32>
    %3 = vector.broadcast %2 : vector<1x128xf32> to vector<512x128xf32>
    %4 = arith.mulf %1, %3 : vector<512x128xf32>
    %c0_3 = arith.constant 0 : index
    %c0_4 = arith.constant 0 : index
    %5 = vector.load %arg3[%c0_3, %c0_4] : memref<1x128xf32, #tpu.memory_space<vmem>>, vector<1x128xf32>
    %6 = vector.broadcast %5 : vector<1x128xf32> to vector<512x128xf32>
    %7 = arith.addf %4, %6 : vector<512x128xf32>
    %cst = arith.constant 0.000000e+00 : f32
    %8 = vector.broadcast %cst : f32 to vector<512x128xf32>
    %9 = arith.cmpf oge, %7, %8 : vector<512x128xf32>
    %cst_5 = arith.constant 2.000000e-01 : f32
    %10 = vector.broadcast %cst_5 : f32 to vector<512x128xf32>
    %11 = arith.mulf %10, %7 : vector<512x128xf32>
    %12 = arith.select %9, %7, %11 : vector<512x128xi1>, vector<512x128xf32>
    %13 = arith.truncf %12 : vector<512x128xf32> to vector<512x128xbf16>
    %c0_6 = arith.constant 0 : index
    %c0_7 = arith.constant 0 : index
    %14 = vector.load %arg4[%c0_6, %c0_7] : memref<512x128xbf16, #tpu.memory_space<vmem>>, vector<512x128xbf16>
    tpu.vector_store %arg4[%c0_6, %c0_7], %13 {strides = array<i32>} : memref<512x128xbf16, #tpu.memory_space<vmem>>, vector<512x128xbf16>,
    return
  }
  func.func @transform_0(%arg0: i32) -> (i32, i32) {
    %c0_i32 = arith.constant 0 : i32
    %c0_i32_0 = arith.constant 0 : i32
    return %arg0, %c0_i32 : i32, i32
  }
  func.func @transform_1(%arg0: i32) -> (i32, i32) {
    %c0_i32 = arith.constant 0 : i32
    %c0_i32_0 = arith.constant 0 : i32
    %c0_i32_1 = arith.constant 0 : i32
    return %c0_i32, %c0_i32_0 : i32, i32
  }
  func.func @transform_2(%arg0: i32) -> (i32, i32) {
    %c0_i32 = arith.constant 0 : i32
    %c0_i32_0 = arith.constant 0 : i32
    %c0_i32_1 = arith.constant 0 : i32
    return %c0_i32, %c0_i32_0 : i32, i32
  }
  func.func @transform_3(%arg0: i32) -> (i32, i32) {
    %c0_i32 = arith.constant 0 : i32
    %c0_i32_0 = arith.constant 0 : i32
    return %arg0, %c0_i32 : i32, i32
  }
}

module attributes {stable_mosaic.version = 11 : i64} {
  func.func @_gemm_stats_1shot_kernel(%arg0: i32, %arg1: i32, %arg2: memref<128x1024xbf16, #tpu.memory_space<vmem>>, %arg3: memref<1024x128xbf16, #tpu.memory_space<vmem>>, %arg4: memref<128x128xbf16, #tpu.memory_space<vmem>>, %arg5: memref<1x128xf32, #tpu.memory_space<vmem>>, %arg6: memref<1x128xf32, #tpu.memory_space<vmem>>) attributes {dimension_semantics = [#tpu.dimension_semantics<parallel>, #tpu.dimension_semantics<parallel>], iteration_bounds = array<i64: 1, 1>, scalar_prefetch = 0 : i64, scratch_operands = 0 : i64, tpu.core_type = #tpu.core_type<tc>, window_params = [{transform_indices = @transform_0, window_bounds = array<i64: 128, 1024>}, {transform_indices = @transform_1, window_bounds = array<i64: 1024, 128>}, {transform_indices = @transform_2, window_bounds = array<i64: 128, 128>}, {transform_indices = @transform_3, window_bounds = array<i64: 1, 128>}, {transform_indices = @transform_4, window_bounds = array<i64: 1, 128>}]} {
    %c0 = arith.constant 0 : index
    %c0_0 = arith.constant 0 : index
    %0 = vector.load %arg2[%c0, %c0_0] : memref<128x1024xbf16, #tpu.memory_space<vmem>>, vector<128x1024xbf16>
    %c0_1 = arith.constant 0 : index
    %c0_2 = arith.constant 0 : index
    %1 = vector.load %arg3[%c0_1, %c0_2] : memref<1024x128xbf16, #tpu.memory_space<vmem>>, vector<1024x128xbf16>
    %cst = arith.constant dense<0.000000e+00> : vector<128x128xf32>
    %2 = tpu.matmul %0, %1, %cst {dimension_numbers = #tpu.dot_dimension_numbers<[1], [0], [0], [1], [0, 0, 1, 1], [], []>} : vector<128x1024xbf16>, vector<1024x128xbf16>, vector<128x128xf32> -> vector<128x128xf32>
    %3 = arith.truncf %2 : vector<128x128xf32> to vector<128x128xbf16>
    %c0_3 = arith.constant 0 : index
    %c0_4 = arith.constant 0 : index
    %4 = vector.load %arg4[%c0_3, %c0_4] : memref<128x128xbf16, #tpu.memory_space<vmem>>, vector<128x128xbf16>
    tpu.vector_store %arg4[%c0_3, %c0_4], %3 {strides = array<i32>} : memref<128x128xbf16, #tpu.memory_space<vmem>>, vector<128x128xbf16>,
    %cst_5 = arith.constant dense<0.000000e+00> : vector<128xf32>
    %5 = vector.multi_reduction <add>, %2, %cst_5 [0] : vector<128x128xf32> to vector<128xf32>
    %6 = vector.shape_cast %5 : vector<128xf32> to vector<1x128xf32>
    %c0_6 = arith.constant 0 : index
    %c0_7 = arith.constant 0 : index
    %7 = vector.load %arg5[%c0_6, %c0_7] : memref<1x128xf32, #tpu.memory_space<vmem>>, vector<1x128xf32>
    tpu.vector_store %arg5[%c0_6, %c0_7], %6 {strides = array<i32>} : memref<1x128xf32, #tpu.memory_space<vmem>>, vector<1x128xf32>,
    %8 = arith.mulf %2, %2 : vector<128x128xf32>
    %cst_8 = arith.constant dense<0.000000e+00> : vector<128xf32>
    %9 = vector.multi_reduction <add>, %8, %cst_8 [0] : vector<128x128xf32> to vector<128xf32>
    %10 = vector.shape_cast %9 : vector<128xf32> to vector<1x128xf32>
    %c0_9 = arith.constant 0 : index
    %c0_10 = arith.constant 0 : index
    %11 = vector.load %arg6[%c0_9, %c0_10] : memref<1x128xf32, #tpu.memory_space<vmem>>, vector<1x128xf32>
    tpu.vector_store %arg6[%c0_9, %c0_10], %10 {strides = array<i32>} : memref<1x128xf32, #tpu.memory_space<vmem>>, vector<1x128xf32>,
    return
  }
  func.func @transform_0(%arg0: i32, %arg1: i32) -> (i32, i32) {
    %c0_i32 = arith.constant 0 : i32
    %c0_i32_0 = arith.constant 0 : i32
    return %arg0, %c0_i32 : i32, i32
  }
  func.func @transform_1(%arg0: i32, %arg1: i32) -> (i32, i32) {
    %c0_i32 = arith.constant 0 : i32
    %c0_i32_0 = arith.constant 0 : i32
    return %c0_i32, %arg1 : i32, i32
  }
  func.func @transform_2(%arg0: i32, %arg1: i32) -> (i32, i32) {
    %c0_i32 = arith.constant 0 : i32
    return %arg0, %arg1 : i32, i32
  }
  func.func @transform_3(%arg0: i32, %arg1: i32) -> (i32, i32) {
    %c0_i32 = arith.constant 0 : i32
    return %arg0, %arg1 : i32, i32
  }
  func.func @transform_4(%arg0: i32, %arg1: i32) -> (i32, i32) {
    %c0_i32 = arith.constant 0 : i32
    return %arg0, %arg1 : i32, i32
  }
}

module attributes {stable_mosaic.version = 11 : i64} {
  func.func @_bn_lrelu_kernel(%arg0: i32, %arg1: memref<128x128xbf16, #tpu.memory_space<vmem>>, %arg2: memref<1x128xf32, #tpu.memory_space<vmem>>, %arg3: memref<1x128xf32, #tpu.memory_space<vmem>>, %arg4: memref<128x128xbf16, #tpu.memory_space<vmem>>) attributes {dimension_semantics = [#tpu.dimension_semantics<parallel>], iteration_bounds = array<i64: 1>, scalar_prefetch = 0 : i64, scratch_operands = 0 : i64, tpu.core_type = #tpu.core_type<tc>, window_params = [{transform_indices = @transform_0, window_bounds = array<i64: 128, 128>}, {pipeline_mode = #tpu.pipeline_mode<synchronous>, transform_indices = @transform_1, window_bounds = array<i64: 1, 128>}, {pipeline_mode = #tpu.pipeline_mode<synchronous>, transform_indices = @transform_2, window_bounds = array<i64: 1, 128>}, {transform_indices = @transform_3, window_bounds = array<i64: 128, 128>}]} {
    %c0 = arith.constant 0 : index
    %c0_0 = arith.constant 0 : index
    %0 = vector.load %arg1[%c0, %c0_0] : memref<128x128xbf16, #tpu.memory_space<vmem>>, vector<128x128xbf16>
    %1 = arith.extf %0 : vector<128x128xbf16> to vector<128x128xf32>
    %c0_1 = arith.constant 0 : index
    %c0_2 = arith.constant 0 : index
    %2 = vector.load %arg2[%c0_1, %c0_2] : memref<1x128xf32, #tpu.memory_space<vmem>>, vector<1x128xf32>
    %3 = vector.broadcast %2 : vector<1x128xf32> to vector<128x128xf32>
    %4 = arith.mulf %1, %3 : vector<128x128xf32>
    %c0_3 = arith.constant 0 : index
    %c0_4 = arith.constant 0 : index
    %5 = vector.load %arg3[%c0_3, %c0_4] : memref<1x128xf32, #tpu.memory_space<vmem>>, vector<1x128xf32>
    %6 = vector.broadcast %5 : vector<1x128xf32> to vector<128x128xf32>
    %7 = arith.addf %4, %6 : vector<128x128xf32>
    %cst = arith.constant 0.000000e+00 : f32
    %8 = vector.broadcast %cst : f32 to vector<128x128xf32>
    %9 = arith.cmpf oge, %7, %8 : vector<128x128xf32>
    %cst_5 = arith.constant 2.000000e-01 : f32
    %10 = vector.broadcast %cst_5 : f32 to vector<128x128xf32>
    %11 = arith.mulf %10, %7 : vector<128x128xf32>
    %12 = arith.select %9, %7, %11 : vector<128x128xi1>, vector<128x128xf32>
    %13 = arith.truncf %12 : vector<128x128xf32> to vector<128x128xbf16>
    %c0_6 = arith.constant 0 : index
    %c0_7 = arith.constant 0 : index
    %14 = vector.load %arg4[%c0_6, %c0_7] : memref<128x128xbf16, #tpu.memory_space<vmem>>, vector<128x128xbf16>
    tpu.vector_store %arg4[%c0_6, %c0_7], %13 {strides = array<i32>} : memref<128x128xbf16, #tpu.memory_space<vmem>>, vector<128x128xbf16>,
    return
  }
  func.func @transform_0(%arg0: i32) -> (i32, i32) {
    %c0_i32 = arith.constant 0 : i32
    %c0_i32_0 = arith.constant 0 : i32
    return %arg0, %c0_i32 : i32, i32
  }
  func.func @transform_1(%arg0: i32) -> (i32, i32) {
    %c0_i32 = arith.constant 0 : i32
    %c0_i32_0 = arith.constant 0 : i32
    %c0_i32_1 = arith.constant 0 : i32
    return %c0_i32, %c0_i32_0 : i32, i32
  }
  func.func @transform_2(%arg0: i32) -> (i32, i32) {
    %c0_i32 = arith.constant 0 : i32
    %c0_i32_0 = arith.constant 0 : i32
    %c0_i32_1 = arith.constant 0 : i32
    return %c0_i32, %c0_i32_0 : i32, i32
  }
  func.func @transform_3(%arg0: i32) -> (i32, i32) {
    %c0_i32 = arith.constant 0 : i32
    %c0_i32_0 = arith.constant 0 : i32
    return %arg0, %c0_i32 : i32, i32
  }
}

module attributes {stable_mosaic.version = 11 : i64} {
  func.func @_bn_lrelu_kernel(%arg0: i32, %arg1: memref<32x256xbf16, #tpu.memory_space<vmem>>, %arg2: memref<1x256xf32, #tpu.memory_space<vmem>>, %arg3: memref<1x256xf32, #tpu.memory_space<vmem>>, %arg4: memref<32x256xbf16, #tpu.memory_space<vmem>>) attributes {dimension_semantics = [#tpu.dimension_semantics<parallel>], iteration_bounds = array<i64: 1>, scalar_prefetch = 0 : i64, scratch_operands = 0 : i64, tpu.core_type = #tpu.core_type<tc>, window_params = [{transform_indices = @transform_0, window_bounds = array<i64: 32, 256>}, {pipeline_mode = #tpu.pipeline_mode<synchronous>, transform_indices = @transform_1, window_bounds = array<i64: 1, 256>}, {pipeline_mode = #tpu.pipeline_mode<synchronous>, transform_indices = @transform_2, window_bounds = array<i64: 1, 256>}, {transform_indices = @transform_3, window_bounds = array<i64: 32, 256>}]} {
    %c0 = arith.constant 0 : index
    %c0_0 = arith.constant 0 : index
    %0 = vector.load %arg1[%c0, %c0_0] : memref<32x256xbf16, #tpu.memory_space<vmem>>, vector<32x256xbf16>
    %1 = arith.extf %0 : vector<32x256xbf16> to vector<32x256xf32>
    %c0_1 = arith.constant 0 : index
    %c0_2 = arith.constant 0 : index
    %2 = vector.load %arg2[%c0_1, %c0_2] : memref<1x256xf32, #tpu.memory_space<vmem>>, vector<1x256xf32>
    %3 = vector.broadcast %2 : vector<1x256xf32> to vector<32x256xf32>
    %4 = arith.mulf %1, %3 : vector<32x256xf32>
    %c0_3 = arith.constant 0 : index
    %c0_4 = arith.constant 0 : index
    %5 = vector.load %arg3[%c0_3, %c0_4] : memref<1x256xf32, #tpu.memory_space<vmem>>, vector<1x256xf32>
    %6 = vector.broadcast %5 : vector<1x256xf32> to vector<32x256xf32>
    %7 = arith.addf %4, %6 : vector<32x256xf32>
    %cst = arith.constant 0.000000e+00 : f32
    %8 = vector.broadcast %cst : f32 to vector<32x256xf32>
    %9 = arith.cmpf oge, %7, %8 : vector<32x256xf32>
    %cst_5 = arith.constant 2.000000e-01 : f32
    %10 = vector.broadcast %cst_5 : f32 to vector<32x256xf32>
    %11 = arith.mulf %10, %7 : vector<32x256xf32>
    %12 = arith.select %9, %7, %11 : vector<32x256xi1>, vector<32x256xf32>
    %13 = arith.truncf %12 : vector<32x256xf32> to vector<32x256xbf16>
    %c0_6 = arith.constant 0 : index
    %c0_7 = arith.constant 0 : index
    %14 = vector.load %arg4[%c0_6, %c0_7] : memref<32x256xbf16, #tpu.memory_space<vmem>>, vector<32x256xbf16>
    tpu.vector_store %arg4[%c0_6, %c0_7], %13 {strides = array<i32>} : memref<32x256xbf16, #tpu.memory_space<vmem>>, vector<32x256xbf16>,
    return
  }
  func.func @transform_0(%arg0: i32) -> (i32, i32) {
    %c0_i32 = arith.constant 0 : i32
    %c0_i32_0 = arith.constant 0 : i32
    return %arg0, %c0_i32 : i32, i32
  }
  func.func @transform_1(%arg0: i32) -> (i32, i32) {
    %c0_i32 = arith.constant 0 : i32
    %c0_i32_0 = arith.constant 0 : i32
    %c0_i32_1 = arith.constant 0 : i32
    return %c0_i32, %c0_i32_0 : i32, i32
  }
  func.func @transform_2(%arg0: i32) -> (i32, i32) {
    %c0_i32 = arith.constant 0 : i32
    %c0_i32_0 = arith.constant 0 : i32
    %c0_i32_1 = arith.constant 0 : i32
    return %c0_i32, %c0_i32_0 : i32, i32
  }
  func.func @transform_3(%arg0: i32) -> (i32, i32) {
    %c0_i32 = arith.constant 0 : i32
    %c0_i32_0 = arith.constant 0 : i32
    return %arg0, %c0_i32 : i32, i32
  }
}

module attributes {stable_mosaic.version = 11 : i64} {
  func.func @_gemm_stats_1shot_kernel(%arg0: i32, %arg1: i32, %arg2: memref<32x2048xbf16, #tpu.memory_space<vmem>>, %arg3: memref<2048x256xbf16, #tpu.memory_space<vmem>>, %arg4: memref<32x256xbf16, #tpu.memory_space<vmem>>, %arg5: memref<1x256xf32, #tpu.memory_space<vmem>>, %arg6: memref<1x256xf32, #tpu.memory_space<vmem>>) attributes {dimension_semantics = [#tpu.dimension_semantics<parallel>, #tpu.dimension_semantics<parallel>], iteration_bounds = array<i64: 1, 1>, scalar_prefetch = 0 : i64, scratch_operands = 0 : i64, tpu.core_type = #tpu.core_type<tc>, window_params = [{transform_indices = @transform_0, window_bounds = array<i64: 32, 2048>}, {transform_indices = @transform_1, window_bounds = array<i64: 2048, 256>}, {transform_indices = @transform_2, window_bounds = array<i64: 32, 256>}, {transform_indices = @transform_3, window_bounds = array<i64: 1, 256>}, {transform_indices = @transform_4, window_bounds = array<i64: 1, 256>}]} {
    %c0 = arith.constant 0 : index
    %c0_0 = arith.constant 0 : index
    %0 = vector.load %arg2[%c0, %c0_0] : memref<32x2048xbf16, #tpu.memory_space<vmem>>, vector<32x2048xbf16>
    %c0_1 = arith.constant 0 : index
    %c0_2 = arith.constant 0 : index
    %1 = vector.load %arg3[%c0_1, %c0_2] : memref<2048x256xbf16, #tpu.memory_space<vmem>>, vector<2048x256xbf16>
    %cst = arith.constant dense<0.000000e+00> : vector<32x256xf32>
    %2 = tpu.matmul %0, %1, %cst {dimension_numbers = #tpu.dot_dimension_numbers<[1], [0], [0], [1], [0, 0, 1, 1], [], []>} : vector<32x2048xbf16>, vector<2048x256xbf16>, vector<32x256xf32> -> vector<32x256xf32>
    %3 = arith.truncf %2 : vector<32x256xf32> to vector<32x256xbf16>
    %c0_3 = arith.constant 0 : index
    %c0_4 = arith.constant 0 : index
    %4 = vector.load %arg4[%c0_3, %c0_4] : memref<32x256xbf16, #tpu.memory_space<vmem>>, vector<32x256xbf16>
    tpu.vector_store %arg4[%c0_3, %c0_4], %3 {strides = array<i32>} : memref<32x256xbf16, #tpu.memory_space<vmem>>, vector<32x256xbf16>,
    %cst_5 = arith.constant dense<0.000000e+00> : vector<256xf32>
    %5 = vector.multi_reduction <add>, %2, %cst_5 [0] : vector<32x256xf32> to vector<256xf32>
    %6 = vector.shape_cast %5 : vector<256xf32> to vector<1x256xf32>
    %c0_6 = arith.constant 0 : index
    %c0_7 = arith.constant 0 : index
    %7 = vector.load %arg5[%c0_6, %c0_7] : memref<1x256xf32, #tpu.memory_space<vmem>>, vector<1x256xf32>
    tpu.vector_store %arg5[%c0_6, %c0_7], %6 {strides = array<i32>} : memref<1x256xf32, #tpu.memory_space<vmem>>, vector<1x256xf32>,
    %8 = arith.mulf %2, %2 : vector<32x256xf32>
    %cst_8 = arith.constant dense<0.000000e+00> : vector<256xf32>
    %9 = vector.multi_reduction <add>, %8, %cst_8 [0] : vector<32x256xf32> to vector<256xf32>
    %10 = vector.shape_cast %9 : vector<256xf32> to vector<1x256xf32>
    %c0_9 = arith.constant 0 : index
    %c0_10 = arith.constant 0 : index
    %11 = vector.load %arg6[%c0_9, %c0_10] : memref<1x256xf32, #tpu.memory_space<vmem>>, vector<1x256xf32>
    tpu.vector_store %arg6[%c0_9, %c0_10], %10 {strides = array<i32>} : memref<1x256xf32, #tpu.memory_space<vmem>>, vector<1x256xf32>,
    return
  }
  func.func @transform_0(%arg0: i32, %arg1: i32) -> (i32, i32) {
    %c0_i32 = arith.constant 0 : i32
    %c0_i32_0 = arith.constant 0 : i32
    return %arg0, %c0_i32 : i32, i32
  }
  func.func @transform_1(%arg0: i32, %arg1: i32) -> (i32, i32) {
    %c0_i32 = arith.constant 0 : i32
    %c0_i32_0 = arith.constant 0 : i32
    return %c0_i32, %arg1 : i32, i32
  }
  func.func @transform_2(%arg0: i32, %arg1: i32) -> (i32, i32) {
    %c0_i32 = arith.constant 0 : i32
    return %arg0, %arg1 : i32, i32
  }
  func.func @transform_3(%arg0: i32, %arg1: i32) -> (i32, i32) {
    %c0_i32 = arith.constant 0 : i32
    return %arg0, %arg1 : i32, i32
  }
  func.func @transform_4(%arg0: i32, %arg1: i32) -> (i32, i32) {
    %c0_i32 = arith.constant 0 : i32
    return %arg0, %arg1 : i32, i32
  }
}

module attributes {stable_mosaic.version = 11 : i64} {
  func.func @_gemm_stats_ktiled_kernel(%arg0: i32, %arg1: i32, %arg2: i32, %arg3: memref<18x2048xbf16, #tpu.memory_space<vmem>>, %arg4: memref<2048x512xbf16, #tpu.memory_space<vmem>>, %arg5: memref<18x512xbf16, #tpu.memory_space<vmem>>, %arg6: memref<1x512xf32, #tpu.memory_space<vmem>>, %arg7: memref<1x512xf32, #tpu.memory_space<vmem>>, %arg8: memref<18x512xf32, #tpu.memory_space<vmem>>) attributes {dimension_semantics = [#tpu.dimension_semantics<parallel>, #tpu.dimension_semantics<parallel>, #tpu.dimension_semantics<arbitrary>], iteration_bounds = array<i64: 1, 1, 2>, scalar_prefetch = 0 : i64, scratch_operands = 1 : i64, tpu.core_type = #tpu.core_type<tc>, window_params = [{transform_indices = @transform_0, window_bounds = array<i64: 18, 2048>}, {transform_indices = @transform_1, window_bounds = array<i64: 2048, 512>}, {transform_indices = @transform_2, window_bounds = array<i64: 18, 512>}, {transform_indices = @transform_3, window_bounds = array<i64: 1, 512>}, {transform_indices = @transform_4, window_bounds = array<i64: 1, 512>}]} {
    %c0_i32 = arith.constant 0 : i32
    %0 = arith.cmpi eq, %arg2, %c0_i32 : i32
    %1 = arith.extui %0 : i1 to i32
    %c0_i32_0 = arith.constant 0 : i32
    %2 = arith.cmpi ne, %1, %c0_i32_0 : i32
    scf.if %2 {
      %cst_9 = arith.constant 0.000000e+00 : f32
      %12 = vector.broadcast %cst_9 : f32 to vector<18x512xf32>
      %c0_10 = arith.constant 0 : index
      %c0_11 = arith.constant 0 : index
      %13 = vector.load %arg8[%c0_10, %c0_11] : memref<18x512xf32, #tpu.memory_space<vmem>>, vector<18x512xf32>
      tpu.vector_store %arg8[%c0_10, %c0_11], %12 {strides = array<i32>} : memref<18x512xf32, #tpu.memory_space<vmem>>, vector<18x512xf32>,
    } else {
    }
    %c0 = arith.constant 0 : index
    %c0_1 = arith.constant 0 : index
    %3 = vector.load %arg8[%c0, %c0_1] : memref<18x512xf32, #tpu.memory_space<vmem>>, vector<18x512xf32>
    %c0_2 = arith.constant 0 : index
    %c0_3 = arith.constant 0 : index
    %4 = vector.load %arg3[%c0_2, %c0_3] : memref<18x2048xbf16, #tpu.memory_space<vmem>>, vector<18x2048xbf16>
    %c0_4 = arith.constant 0 : index
    %c0_5 = arith.constant 0 : index
    %5 = vector.load %arg4[%c0_4, %c0_5] : memref<2048x512xbf16, #tpu.memory_space<vmem>>, vector<2048x512xbf16>
    %cst = arith.constant dense<0.000000e+00> : vector<18x512xf32>
    %6 = tpu.matmul %4, %5, %cst {dimension_numbers = #tpu.dot_dimension_numbers<[1], [0], [0], [1], [0, 0, 1, 1], [], []>} : vector<18x2048xbf16>, vector<2048x512xbf16>, vector<18x512xf32> -> vector<18x512xf32>
    %7 = arith.addf %3, %6 : vector<18x512xf32>
    %c0_6 = arith.constant 0 : index
    %c0_7 = arith.constant 0 : index
    %8 = vector.load %arg8[%c0_6, %c0_7] : memref<18x512xf32, #tpu.memory_space<vmem>>, vector<18x512xf32>
    tpu.vector_store %arg8[%c0_6, %c0_7], %7 {strides = array<i32>} : memref<18x512xf32, #tpu.memory_space<vmem>>, vector<18x512xf32>,
    %c1_i32 = arith.constant 1 : i32
    %9 = arith.cmpi eq, %arg2, %c1_i32 : i32
    %10 = arith.extui %9 : i1 to i32
    %c0_i32_8 = arith.constant 0 : i32
    %11 = arith.cmpi ne, %10, %c0_i32_8 : i32
    scf.if %11 {
      %c0_9 = arith.constant 0 : index
      %c0_10 = arith.constant 0 : index
      %12 = vector.load %arg8[%c0_9, %c0_10] : memref<18x512xf32, #tpu.memory_space<vmem>>, vector<18x512xf32>
      %13 = arith.truncf %12 : vector<18x512xf32> to vector<18x512xbf16>
      %c0_11 = arith.constant 0 : index
      %c0_12 = arith.constant 0 : index
      %14 = vector.load %arg5[%c0_11, %c0_12] : memref<18x512xbf16, #tpu.memory_space<vmem>>, vector<18x512xbf16>
      tpu.vector_store %arg5[%c0_11, %c0_12], %13 {strides = array<i32>} : memref<18x512xbf16, #tpu.memory_space<vmem>>, vector<18x512xbf16>,
      %cst_13 = arith.constant dense<0.000000e+00> : vector<512xf32>
      %15 = vector.multi_reduction <add>, %12, %cst_13 [0] : vector<18x512xf32> to vector<512xf32>
      %16 = vector.shape_cast %15 : vector<512xf32> to vector<1x512xf32>
      %c0_14 = arith.constant 0 : index
      %c0_15 = arith.constant 0 : index
      %17 = vector.load %arg6[%c0_14, %c0_15] : memref<1x512xf32, #tpu.memory_space<vmem>>, vector<1x512xf32>
      tpu.vector_store %arg6[%c0_14, %c0_15], %16 {strides = array<i32>} : memref<1x512xf32, #tpu.memory_space<vmem>>, vector<1x512xf32>,
      %18 = arith.mulf %12, %12 : vector<18x512xf32>
      %cst_16 = arith.constant dense<0.000000e+00> : vector<512xf32>
      %19 = vector.multi_reduction <add>, %18, %cst_16 [0] : vector<18x512xf32> to vector<512xf32>
      %20 = vector.shape_cast %19 : vector<512xf32> to vector<1x512xf32>
      %c0_17 = arith.constant 0 : index
      %c0_18 = arith.constant 0 : index
      %21 = vector.load %arg7[%c0_17, %c0_18] : memref<1x512xf32, #tpu.memory_space<vmem>>, vector<1x512xf32>
      tpu.vector_store %arg7[%c0_17, %c0_18], %20 {strides = array<i32>} : memref<1x512xf32, #tpu.memory_space<vmem>>, vector<1x512xf32>,
    } else {
    }
    return
  }
  func.func @transform_0(%arg0: i32, %arg1: i32, %arg2: i32) -> (i32, i32) {
    %c0_i32 = arith.constant 0 : i32
    return %arg0, %arg2 : i32, i32
  }
  func.func @transform_1(%arg0: i32, %arg1: i32, %arg2: i32) -> (i32, i32) {
    %c0_i32 = arith.constant 0 : i32
    return %arg2, %arg1 : i32, i32
  }
  func.func @transform_2(%arg0: i32, %arg1: i32, %arg2: i32) -> (i32, i32) {
    %c0_i32 = arith.constant 0 : i32
    return %arg0, %arg1 : i32, i32
  }
  func.func @transform_3(%arg0: i32, %arg1: i32, %arg2: i32) -> (i32, i32) {
    %c0_i32 = arith.constant 0 : i32
    return %arg0, %arg1 : i32, i32
  }
  func.func @transform_4(%arg0: i32, %arg1: i32, %arg2: i32) -> (i32, i32) {
    %c0_i32 = arith.constant 0 : i32
    return %arg0, %arg1 : i32, i32
  }
}

module attributes {stable_mosaic.version = 11 : i64} {
  func.func @_bn_lrelu_kernel(%arg0: i32, %arg1: memref<18x512xbf16, #tpu.memory_space<vmem>>, %arg2: memref<1x512xf32, #tpu.memory_space<vmem>>, %arg3: memref<1x512xf32, #tpu.memory_space<vmem>>, %arg4: memref<18x512xbf16, #tpu.memory_space<vmem>>) attributes {dimension_semantics = [#tpu.dimension_semantics<parallel>], iteration_bounds = array<i64: 1>, scalar_prefetch = 0 : i64, scratch_operands = 0 : i64, tpu.core_type = #tpu.core_type<tc>, window_params = [{transform_indices = @transform_0, window_bounds = array<i64: 18, 512>}, {pipeline_mode = #tpu.pipeline_mode<synchronous>, transform_indices = @transform_1, window_bounds = array<i64: 1, 512>}, {pipeline_mode = #tpu.pipeline_mode<synchronous>, transform_indices = @transform_2, window_bounds = array<i64: 1, 512>}, {transform_indices = @transform_3, window_bounds = array<i64: 18, 512>}]} {
    %c0 = arith.constant 0 : index
    %c0_0 = arith.constant 0 : index
    %0 = vector.load %arg1[%c0, %c0_0] : memref<18x512xbf16, #tpu.memory_space<vmem>>, vector<18x512xbf16>
    %1 = arith.extf %0 : vector<18x512xbf16> to vector<18x512xf32>
    %c0_1 = arith.constant 0 : index
    %c0_2 = arith.constant 0 : index
    %2 = vector.load %arg2[%c0_1, %c0_2] : memref<1x512xf32, #tpu.memory_space<vmem>>, vector<1x512xf32>
    %3 = vector.broadcast %2 : vector<1x512xf32> to vector<18x512xf32>
    %4 = arith.mulf %1, %3 : vector<18x512xf32>
    %c0_3 = arith.constant 0 : index
    %c0_4 = arith.constant 0 : index
    %5 = vector.load %arg3[%c0_3, %c0_4] : memref<1x512xf32, #tpu.memory_space<vmem>>, vector<1x512xf32>
    %6 = vector.broadcast %5 : vector<1x512xf32> to vector<18x512xf32>
    %7 = arith.addf %4, %6 : vector<18x512xf32>
    %cst = arith.constant 0.000000e+00 : f32
    %8 = vector.broadcast %cst : f32 to vector<18x512xf32>
    %9 = arith.cmpf oge, %7, %8 : vector<18x512xf32>
    %cst_5 = arith.constant 2.000000e-01 : f32
    %10 = vector.broadcast %cst_5 : f32 to vector<18x512xf32>
    %11 = arith.mulf %10, %7 : vector<18x512xf32>
    %12 = arith.select %9, %7, %11 : vector<18x512xi1>, vector<18x512xf32>
    %13 = arith.truncf %12 : vector<18x512xf32> to vector<18x512xbf16>
    %c0_6 = arith.constant 0 : index
    %c0_7 = arith.constant 0 : index
    %14 = vector.load %arg4[%c0_6, %c0_7] : memref<18x512xbf16, #tpu.memory_space<vmem>>, vector<18x512xbf16>
    tpu.vector_store %arg4[%c0_6, %c0_7], %13 {strides = array<i32>} : memref<18x512xbf16, #tpu.memory_space<vmem>>, vector<18x512xbf16>,
    return
  }
  func.func @transform_0(%arg0: i32) -> (i32, i32) {
    %c0_i32 = arith.constant 0 : i32
    %c0_i32_0 = arith.constant 0 : i32
    return %arg0, %c0_i32 : i32, i32
  }
  func.func @transform_1(%arg0: i32) -> (i32, i32) {
    %c0_i32 = arith.constant 0 : i32
    %c0_i32_0 = arith.constant 0 : i32
    %c0_i32_1 = arith.constant 0 : i32
    return %c0_i32, %c0_i32_0 : i32, i32
  }
  func.func @transform_2(%arg0: i32) -> (i32, i32) {
    %c0_i32 = arith.constant 0 : i32
    %c0_i32_0 = arith.constant 0 : i32
    %c0_i32_1 = arith.constant 0 : i32
    return %c0_i32, %c0_i32_0 : i32, i32
  }
  func.func @transform_3(%arg0: i32) -> (i32, i32) {
    %c0_i32 = arith.constant 0 : i32
    %c0_i32_0 = arith.constant 0 : i32
    return %arg0, %c0_i32 : i32, i32
  }
}

module attributes {stable_mosaic.version = 11 : i64} {
  func.func @_gemm_bias_sigmoid_kernel(%arg0: i32, %arg1: i32, %arg2: i32, %arg3: memref<8x2048xbf16, #tpu.memory_space<vmem>>, %arg4: memref<2048x128xbf16, #tpu.memory_space<vmem>>, %arg5: memref<1x128xf32, #tpu.memory_space<vmem>>, %arg6: memref<8x128xf32, #tpu.memory_space<vmem>>, %arg7: memref<8x128xf32, #tpu.memory_space<vmem>>) attributes {dimension_semantics = [#tpu.dimension_semantics<parallel>, #tpu.dimension_semantics<parallel>, #tpu.dimension_semantics<arbitrary>], iteration_bounds = array<i64: 1, 1, 4>, scalar_prefetch = 0 : i64, scratch_operands = 1 : i64, tpu.core_type = #tpu.core_type<tc>, window_params = [{transform_indices = @transform_0, window_bounds = array<i64: 8, 2048>}, {transform_indices = @transform_1, window_bounds = array<i64: 2048, 128>}, {transform_indices = @transform_2, window_bounds = array<i64: 1, 128>}, {transform_indices = @transform_3, window_bounds = array<i64: 8, 128>}]} {
    %c0_i32 = arith.constant 0 : i32
    %0 = arith.cmpi eq, %arg2, %c0_i32 : i32
    %1 = arith.extui %0 : i1 to i32
    %c0_i32_0 = arith.constant 0 : i32
    %2 = arith.cmpi ne, %1, %c0_i32_0 : i32
    scf.if %2 {
      %cst_9 = arith.constant 0.000000e+00 : f32
      %12 = vector.broadcast %cst_9 : f32 to vector<8x128xf32>
      %c0_10 = arith.constant 0 : index
      %c0_11 = arith.constant 0 : index
      %13 = vector.load %arg7[%c0_10, %c0_11] : memref<8x128xf32, #tpu.memory_space<vmem>>, vector<8x128xf32>
      tpu.vector_store %arg7[%c0_10, %c0_11], %12 {strides = array<i32>} : memref<8x128xf32, #tpu.memory_space<vmem>>, vector<8x128xf32>,
    } else {
    }
    %c0 = arith.constant 0 : index
    %c0_1 = arith.constant 0 : index
    %3 = vector.load %arg7[%c0, %c0_1] : memref<8x128xf32, #tpu.memory_space<vmem>>, vector<8x128xf32>
    %c0_2 = arith.constant 0 : index
    %c0_3 = arith.constant 0 : index
    %4 = vector.load %arg3[%c0_2, %c0_3] : memref<8x2048xbf16, #tpu.memory_space<vmem>>, vector<8x2048xbf16>
    %c0_4 = arith.constant 0 : index
    %c0_5 = arith.constant 0 : index
    %5 = vector.load %arg4[%c0_4, %c0_5] : memref<2048x128xbf16, #tpu.memory_space<vmem>>, vector<2048x128xbf16>
    %cst = arith.constant dense<0.000000e+00> : vector<8x128xf32>
    %6 = tpu.matmul %4, %5, %cst {dimension_numbers = #tpu.dot_dimension_numbers<[1], [0], [0], [1], [0, 0, 1, 1], [], []>} : vector<8x2048xbf16>, vector<2048x128xbf16>, vector<8x128xf32> -> vector<8x128xf32>
    %7 = arith.addf %3, %6 : vector<8x128xf32>
    %c0_6 = arith.constant 0 : index
    %c0_7 = arith.constant 0 : index
    %8 = vector.load %arg7[%c0_6, %c0_7] : memref<8x128xf32, #tpu.memory_space<vmem>>, vector<8x128xf32>
    tpu.vector_store %arg7[%c0_6, %c0_7], %7 {strides = array<i32>} : memref<8x128xf32, #tpu.memory_space<vmem>>, vector<8x128xf32>,
    %c3_i32 = arith.constant 3 : i32
    %9 = arith.cmpi eq, %arg2, %c3_i32 : i32
    %10 = arith.extui %9 : i1 to i32
    %c0_i32_8 = arith.constant 0 : i32
    %11 = arith.cmpi ne, %10, %c0_i32_8 : i32
    scf.if %11 {
      %c0_9 = arith.constant 0 : index
      %c0_10 = arith.constant 0 : index
      %12 = vector.load %arg7[%c0_9, %c0_10] : memref<8x128xf32, #tpu.memory_space<vmem>>, vector<8x128xf32>
      %c0_11 = arith.constant 0 : index
      %c0_12 = arith.constant 0 : index
      %13 = vector.load %arg5[%c0_11, %c0_12] : memref<1x128xf32, #tpu.memory_space<vmem>>, vector<1x128xf32>
      %14 = vector.broadcast %13 : vector<1x128xf32> to vector<8x128xf32>
      %15 = arith.addf %12, %14 : vector<8x128xf32>
      %16 = math.absf %15 : vector<8x128xf32>
      %cst_13 = arith.constant 0.000000e+00 : f32
      %17 = vector.broadcast %cst_13 : f32 to vector<8x128xf32>
      %18 = arith.subf %17, %16 : vector<8x128xf32>
      %19 = math.exp %18 : vector<8x128xf32>
      %cst_14 = arith.constant 0.000000e+00 : f32
      %20 = vector.broadcast %cst_14 : f32 to vector<8x128xf32>
      %21 = arith.cmpf oge, %15, %20 : vector<8x128xf32>
      %cst_15 = arith.constant 1.000000e+00 : f32
      %22 = vector.broadcast %cst_15 : f32 to vector<8x128xf32>
      %23 = arith.select %21, %22, %19 : vector<8x128xi1>, vector<8x128xf32>
      %cst_16 = arith.constant 1.000000e+00 : f32
      %24 = vector.broadcast %cst_16 : f32 to vector<8x128xf32>
      %25 = arith.addf %24, %19 : vector<8x128xf32>
      %26 = tpu.reciprocal %25 {approx = true} : vector<8x128xf32> -> vector<8x128xf32>
      %27 = arith.mulf %23, %26 : vector<8x128xf32>
      %c0_17 = arith.constant 0 : index
      %c0_18 = arith.constant 0 : index
      %28 = vector.load %arg6[%c0_17, %c0_18] : memref<8x128xf32, #tpu.memory_space<vmem>>, vector<8x128xf32>
      tpu.vector_store %arg6[%c0_17, %c0_18], %27 {strides = array<i32>} : memref<8x128xf32, #tpu.memory_space<vmem>>, vector<8x128xf32>,
    } else {
    }
    return
  }
  func.func @transform_0(%arg0: i32, %arg1: i32, %arg2: i32) -> (i32, i32) {
    %c0_i32 = arith.constant 0 : i32
    return %arg0, %arg2 : i32, i32
  }
  func.func @transform_1(%arg0: i32, %arg1: i32, %arg2: i32) -> (i32, i32) {
    %c0_i32 = arith.constant 0 : i32
    return %arg2, %arg1 : i32, i32
  }
  func.func @transform_2(%arg0: i32, %arg1: i32, %arg2: i32) -> (i32, i32) {
    %c0_i32 = arith.constant 0 : i32
    %c0_i32_0 = arith.constant 0 : i32
    return %c0_i32, %arg1 : i32, i32
  }
  func.func @transform_3(%arg0: i32, %arg1: i32, %arg2: i32) -> (i32, i32) {
    %c0_i32 = arith.constant 0 : i32
    return %arg0, %arg1 : i32, i32
  }
}

</mosaic_0001>

<bundles_post_ra>
// kernel: discriminator_up_forward.10
= control target key start
LH: loop header
LB: loop body
LE: loop exit
PB: predicated region body
PF: predicated region fallthrough
CT: control target
= control target key end

     0   :  { %s1631_s0 = inlined_call_operand.vmem [shape: bf16[512,128], index: 0, kind: input, shape index: {}]   ;;  %s1632_s1 = inlined_call_operand.vmem [shape: f32[1,128], index: 1, kind: input, shape index: {}]   ;;  %s1633_s2 = inlined_call_operand.vmem [shape: f32[1,128], index: 2, kind: input, shape index: {}]   ;;  %s1634_s3 = inlined_call_operand.vmem [shape: bf16[512,128], index: 3, kind: output, shape index: {}]  }
   0x1   :  { %v931_v0 = vld [vmem:[%s1631_s0] sm:$0xff]   ;;  %v1218_v4 = vld [vmem:[%s1631_s0 + $0x8] sm:$0xff]   ;;  %v1219_v5 = vld [vmem:[%s1631_s0 + $0x10] sm:$0xff]  }
   0x2   :  { %v1306_v1 = vld [vmem:[%s1632_s1] ss:$0 sm:$0xff]  ;;  %v932_v2 = vunpack.c.l.bf16 %v931_v0  ;;  %v933_v3 = vunpack.c.h.bf16 %v931_v0  ;;  %v1220_v6 = vld [vmem:[%s1631_s0 + $0x18] sm:$0xff]   ;;  %v936_v8 = vunpack.c.l.bf16 %v1218_v4  ;;  %v937_v9 = vunpack.c.h.bf16 %v1218_v4  ;;  %v1222_v35 = vld [vmem:[%s1631_s0 + $0x28] sm:$0xff]  }
   0x3   :  { %v1320_v7 = vld [vmem:[%s1633_s2] ss:$0 sm:$0xff]  ;;  %v940_v10 = vunpack.c.l.bf16 %v1219_v5  ;;  %v941_v11 = vunpack.c.h.bf16 %v1219_v5  ;;  %v944_v14 = vunpack.c.l.bf16 %v1220_v6  ;;  %v945_v15 = vunpack.c.h.bf16 %v1220_v6  ;;  %v1223_v48 = vld [vmem:[%s1631_s0 + $0x30] sm:$0xff]   ;;  %v1224_v4 = vld [vmem:[%s1631_s0 + $0x38] sm:$0xff]  }
   0x4   :  { %v149_v12 = vmul.f32 %v932_v2, %v1306_v1  ;;  %v150_v13 = vmul.f32 %v933_v3, %v1306_v1  ;;  %v151_v16 = vmul.f32 %v936_v8, %v1306_v1  ;;  %v152_v17 = vmul.f32 %v937_v9, %v1306_v1  ;;  %v1221_v34 = vld [vmem:[%s1631_s0 + $0x20] sm:$0xff]  }
   0x5   :  { %v153_v18 = vmul.f32 %v940_v10, %v1306_v1  ;;  %v154_v19 = vmul.f32 %v941_v11, %v1306_v1  ;;  %v155_v22 = vmul.f32 %v944_v14, %v1306_v1  ;;  %v156_v23 = vmul.f32 %v945_v15, %v1306_v1  ;;  %v1225_v15 = vld [vmem:[%s1631_s0 + $0x40] sm:$0xff]  }
   0x6   :  { %v220_v20 = vadd.f32 %v1320_v7, %v149_v12  ;;  %v221_v21 = vadd.f32 %v1320_v7, %v150_v13  ;;  %v222_v24 = vadd.f32 %v1320_v7, %v151_v16  ;;  %v223_v25 = vadd.f32 %v1320_v7, %v152_v17 }
   0x7   :  { %v224_v26 = vadd.f32 %v1320_v7, %v153_v18  ;;  %v225_v27 = vadd.f32 %v1320_v7, %v154_v19  ;;  %v226_v42 = vadd.f32 %v1320_v7, %v155_v22  ;;  %v227_v43 = vadd.f32 %v1320_v7, %v156_v23 }
   0x8   :  { %vm284_vm0 = vcmp.ge.f32.partialorder %v220_v20, 0.0  ;;  %vm285_vm1 = vcmp.ge.f32.partialorder %v221_v21, 0.0  ;;  %v348_v28 = vmul.f32 0.2, %v220_v20  ;;  %v349_v29 = vmul.f32 0.2, %v221_v21 }
   0x9   :  { %vm286_vm2 = vcmp.ge.f32.partialorder %v222_v24, 0.0  ;;  %vm287_vm3 = vcmp.ge.f32.partialorder %v223_v25, 0.0  ;;  %v350_v30 = vmul.f32 0.2, %v222_v24  ;;  %v351_v31 = vmul.f32 0.2, %v223_v25 }
   0xa   :  { %v412_v32 = vsel %vm284_vm0, %v220_v20, %v348_v28  ;;  %v413_v33 = vsel %vm285_vm1, %v221_v21, %v349_v29  ;;  %vm288_vm4 = vcmp.ge.f32.partialorder %v224_v26, 0.0  ;;  %vm289_vm5 = vcmp.ge.f32.partialorder %v225_v27, 0.0 }
   0xb   :  { %v1061_v36 = vpack.c.bf16 %v413_v33, %v412_v32  ;;  %v414_v37 = vsel %vm286_vm2, %v222_v24, %v350_v30  ;;  %v415_v38 = vsel %vm287_vm3, %v223_v25, %v351_v31  ;;  %v352_v39 = vmul.f32 0.2, %v224_v26 }
   0xc   :  { %v1066_v40 = vpack.c.bf16 %v415_v38, %v414_v37  ;;  %v353_v41 = vmul.f32 0.2, %v225_v27  ;;  %v948_v45 = vunpack.c.l.bf16 %v1221_v34  ;;  %v949_v46 = vunpack.c.h.bf16 %v1221_v34 }
   0xd   :  { %1062 = vst [vmem:[%s1634_s3] sm:$0xff] %v1061_v36   ;;  %v416_v44 = vsel %vm288_vm4, %v224_v26, %v352_v39  ;;  %v952_v47 = vunpack.c.l.bf16 %v1222_v35  ;;  %vm290_vm6 = vcmp.ge.f32.partialorder %v226_v42, 0.0  ;;  %vm291_vm7 = vcmp.ge.f32.partialorder %v227_v43, 0.0  ;;  %v1226_v26 = vld [vmem:[%s1631_s0 + $0x48] sm:$0xff]  }
   0xe   :  { %1249 = vst [vmem:[%s1634_s3 + $0x8] sm:$0xff] %v1066_v40   ;;  %v417_v49 = vsel %vm289_vm5, %v225_v27, %v353_v41  ;;  %v354_v50 = vmul.f32 0.2, %v226_v42  ;;  %v355_v52 = vmul.f32 0.2, %v227_v43  ;;  %v157_v53 = vmul.f32 %v948_v45, %v1306_v1  ;;  %v1227_v27 = vld [vmem:[%s1631_s0 + $0x50] sm:$0xff]  }
   0xf   :  { %v1071_v51 = vpack.c.bf16 %v417_v49, %v416_v44  ;;  %v158_v54 = vmul.f32 %v949_v46, %v1306_v1  ;;  %v953_v56 = vunpack.c.h.bf16 %v1222_v35  ;;  %v159_v57 = vmul.f32 %v952_v47, %v1306_v1 }
  0x10   :  { %v418_v55 = vsel %vm290_vm6, %v226_v42, %v354_v50  ;;  %v956_v58 = vunpack.c.l.bf16 %v1223_v48  ;;  %v419_v59 = vsel %vm291_vm7, %v227_v43, %v355_v52  ;;  %v228_v60 = vadd.f32 %v1320_v7, %v157_v53 }
  0x11   :  { %1250 = vst [vmem:[%s1634_s3 + $0x10] sm:$0xff] %v1071_v51   ;;  %v229_v61 = vadd.f32 %v1320_v7, %v158_v54  ;;  %v957_v62 = vunpack.c.h.bf16 %v1223_v48  ;;  %v1076_v63 = vpack.c.bf16 %v419_v59, %v418_v55  ;;  %v160_v0 = vmul.f32 %v953_v56, %v1306_v1  ;;  %v1228_v55 = vld [vmem:[%s1631_s0 + $0x58] sm:$0xff]  }
  0x12   :  { %v230_v2 = vadd.f32 %v1320_v7, %v159_v57  ;;  %v161_v3 = vmul.f32 %v956_v58, %v1306_v1  ;;  %vm292_vm8 = vcmp.ge.f32.partialorder %v228_v60, 0.0  ;;  %v356_v5 = vmul.f32 0.2, %v228_v60 }
  0x13   :  { %vm293_vm9 = vcmp.ge.f32.partialorder %v229_v61, 0.0  ;;  %v357_v6 = vmul.f32 0.2, %v229_v61  ;;  %1251 = vst [vmem:[%s1634_s3 + $0x18] sm:$0xff] %v1076_v63   ;;  %v231_v8 = vadd.f32 %v1320_v7, %v160_v0  ;;  %v162_v10 = vmul.f32 %v957_v62, %v1306_v1 }
  0x14   :  { %vm294_vm10 = vcmp.ge.f32.partialorder %v230_v2, 0.0  ;;  %v358_v9 = vmul.f32 0.2, %v230_v2  ;;  %v420_v11 = vsel %vm292_vm8, %v228_v60, %v356_v5  ;;  %v232_v13 = vadd.f32 %v1320_v7, %v161_v3  ;;  %v1229_v60 = vld [vmem:[%s1631_s0 + $0x60] sm:$0xff]  }
  0x15   :  { %v421_v12 = vsel %vm293_vm9, %v229_v61, %v357_v6  ;;  %v960_v14 = vunpack.c.l.bf16 %v1224_v4  ;;  %vm295_vm11 = vcmp.ge.f32.partialorder %v231_v8, 0.0  ;;  %v359_v17 = vmul.f32 0.2, %v231_v8 }
  0x16   :  { %v1081_v16 = vpack.c.bf16 %v421_v12, %v420_v11  ;;  %v422_v18 = vsel %vm294_vm10, %v230_v2, %v358_v9  ;;  %v233_v19 = vadd.f32 %v1320_v7, %v162_v10  ;;  %vm296_vm12 = vcmp.ge.f32.partialorder %v232_v13, 0.0  ;;  %v1230_v9 = vld [vmem:[%s1631_s0 + $0x68] sm:$0xff]  }
  0x17   :  { %v360_v20 = vmul.f32 0.2, %v232_v13  ;;  %v961_v21 = vunpack.c.h.bf16 %v1224_v4  ;;  %v423_v22 = vsel %vm295_vm11, %v231_v8, %v359_v17  ;;  %v163_v23 = vmul.f32 %v960_v14, %v1306_v1 }
  0x18   :  { %1252 = vst [vmem:[%s1634_s3 + $0x20] sm:$0xff] %v1081_v16   ;;  %v964_v24 = vunpack.c.l.bf16 %v1225_v15  ;;  %v965_v25 = vunpack.c.h.bf16 %v1225_v15  ;;  %v1086_v28 = vpack.c.bf16 %v423_v22, %v422_v18  ;;  %vm297_vm13 = vcmp.ge.f32.partialorder %v233_v19, 0.0 }
  0x19   :  { %v361_v29 = vmul.f32 0.2, %v233_v19  ;;  %v424_v30 = vsel %vm296_vm12, %v232_v13, %v360_v20  ;;  %v164_v31 = vmul.f32 %v961_v21, %v1306_v1  ;;  %v234_v32 = vadd.f32 %v1320_v7, %v163_v23 }
  0x1a   :  { %v165_v33 = vmul.f32 %v964_v24, %v1306_v1  ;;  %v166_v34 = vmul.f32 %v965_v25, %v1306_v1  ;;  %1253 = vst [vmem:[%s1634_s3 + $0x28] sm:$0xff] %v1086_v28   ;;  %v968_v36 = vunpack.c.l.bf16 %v1226_v26  ;;  %v969_v37 = vunpack.c.h.bf16 %v1226_v26  ;;  %v1231_v28 = vld [vmem:[%s1631_s0 + $0x70] sm:$0xff]  }
  0x1b   :  { %v425_v35 = vsel %vm297_vm13, %v233_v19, %v361_v29  ;;  %v972_v38 = vunpack.c.l.bf16 %v1227_v27  ;;  %v235_v40 = vadd.f32 %v1320_v7, %v164_v31  ;;  %vm298_vm14 = vcmp.ge.f32.partialorder %v234_v32, 0.0 }
  0x1c   :  { %v1091_v39 = vpack.c.bf16 %v425_v35, %v424_v30  ;;  %v362_v41 = vmul.f32 0.2, %v234_v32  ;;  %v236_v42 = vadd.f32 %v1320_v7, %v165_v33  ;;  %v237_v43 = vadd.f32 %v1320_v7, %v166_v34 }
  0x1d   :  { %v167_v44 = vmul.f32 %v968_v36, %v1306_v1  ;;  %v168_v45 = vmul.f32 %v969_v37, %v1306_v1  ;;  %vm299_vm15 = vcmp.ge.f32.partialorder %v235_v40, 0.0  ;;  %v363_v46 = vmul.f32 0.2, %v235_v40  ;;  %v1232_v37 = vld [vmem:[%s1631_s0 + $0x78] sm:$0xff]  }
  0x1e   :  { %1254 = vst [vmem:[%s1634_s3 + $0x30] sm:$0xff] %v1091_v39   ;;  %v426_v47 = vsel %vm298_vm14, %v234_v32, %v362_v41  ;;  %v973_v48 = vunpack.c.h.bf16 %v1227_v27  ;;  %vm300_vm0 = vcmp.ge.f32.partialorder %v236_v42, 0.0  ;;  %vm301_vm1 = vcmp.ge.f32.partialorder %v237_v43, 0.0 }
  0x1f   :  { %v364_v49 = vmul.f32 0.2, %v236_v42  ;;  %v365_v50 = vmul.f32 0.2, %v237_v43  ;;  %v427_v51 = vsel %vm299_vm15, %v235_v40, %v363_v46  ;;  %v238_v52 = vadd.f32 %v1320_v7, %v167_v44 }
  0x20   :  { %v239_v53 = vadd.f32 %v1320_v7, %v168_v45  ;;  %v169_v54 = vmul.f32 %v972_v38, %v1306_v1  ;;  %v1096_v56 = vpack.c.bf16 %v427_v51, %v426_v47  ;;  %v170_v59 = vmul.f32 %v973_v48, %v1306_v1 }
  0x21   :  { %v428_v57 = vsel %vm300_vm0, %v236_v42, %v364_v49  ;;  %v429_v58 = vsel %vm301_vm1, %v237_v43, %v365_v50  ;;  %vm302_vm2 = vcmp.ge.f32.partialorder %v238_v52, 0.0  ;;  %v366_v62 = vmul.f32 0.2, %v238_v52  ;;  %v1233_v42 = vld [vmem:[%s1631_s0 + $0x80] sm:$0xff]   ;;  %v1234_v50 = vld [vmem:[%s1631_s0 + $0x88] sm:$0xff]  }
  0x22   :  { %v1101_v61 = vpack.c.bf16 %v429_v58, %v428_v57  ;;  %vm303_vm3 = vcmp.ge.f32.partialorder %v239_v53, 0.0  ;;  %1255 = vst [vmem:[%s1634_s3 + $0x38] sm:$0xff] %v1096_v56   ;;  %v367_v63 = vmul.f32 0.2, %v239_v53  ;;  %v240_v0 = vadd.f32 %v1320_v7, %v169_v54 }
  0x23   :  { %v241_v2 = vadd.f32 %v1320_v7, %v170_v59  ;;  %v976_v3 = vunpack.c.l.bf16 %v1228_v55  ;;  %v430_v4 = vsel %vm302_vm2, %v238_v52, %v366_v62  ;;  %v977_v5 = vunpack.c.h.bf16 %v1228_v55 }
  0x24   :  { %1256 = vst [vmem:[%s1634_s3 + $0x40] sm:$0xff] %v1101_v61   ;;  %v980_v6 = vunpack.c.l.bf16 %v1229_v60  ;;  %v981_v8 = vunpack.c.h.bf16 %v1229_v60  ;;  %v431_v10 = vsel %vm303_vm3, %v239_v53, %v367_v63  ;;  %vm304_vm4 = vcmp.ge.f32.partialorder %v240_v0, 0.0 }
  0x25   :  { %vm305_vm5 = vcmp.ge.f32.partialorder %v241_v2, 0.0  ;;  %v368_v11 = vmul.f32 0.2, %v240_v0  ;;  %v1106_v12 = vpack.c.bf16 %v431_v10, %v430_v4  ;;  %v369_v13 = vmul.f32 0.2, %v241_v2 }
  0x26   :  { %v171_v14 = vmul.f32 %v976_v3, %v1306_v1  ;;  %v172_v15 = vmul.f32 %v977_v5, %v1306_v1  ;;  %v173_v17 = vmul.f32 %v980_v6, %v1306_v1  ;;  %v174_v18 = vmul.f32 %v981_v8, %v1306_v1 }
  0x27   :  { %v432_v16 = vsel %vm304_vm4, %v240_v0, %v368_v11  ;;  %v984_v19 = vunpack.c.l.bf16 %v1230_v9  ;;  %1257 = vst [vmem:[%s1634_s3 + $0x48] sm:$0xff] %v1106_v12   ;;  %v433_v20 = vsel %vm305_vm5, %v241_v2, %v369_v13  ;;  %v985_v23 = vunpack.c.h.bf16 %v1230_v9 }
  0x28   :  { %v242_v21 = vadd.f32 %v1320_v7, %v171_v14  ;;  %v243_v22 = vadd.f32 %v1320_v7, %v172_v15  ;;  %v1111_v24 = vpack.c.bf16 %v433_v20, %v432_v16  ;;  %v244_v25 = vadd.f32 %v1320_v7, %v173_v17  ;;  %v1235_v15 = vld [vmem:[%s1631_s0 + $0x90] sm:$0xff]   ;;  %v1236_v20 = vld [vmem:[%s1631_s0 + $0x98] sm:$0xff]  }
  0x29   :  { %v245_v26 = vadd.f32 %v1320_v7, %v174_v18  ;;  %v175_v27 = vmul.f32 %v984_v19, %v1306_v1  ;;  %v176_v35 = vmul.f32 %v985_v23, %v1306_v1  ;;  %v988_v41 = vunpack.c.l.bf16 %v1231_v28 }
  0x2a   :  { %vm306_vm6 = vcmp.ge.f32.partialorder %v242_v21, 0.0  ;;  %vm307_vm7 = vcmp.ge.f32.partialorder %v243_v22, 0.0  ;;  %v370_v29 = vmul.f32 0.2, %v242_v21  ;;  %v371_v30 = vmul.f32 0.2, %v243_v22 }
  0x2b   :  { %1258 = vst [vmem:[%s1634_s3 + $0x50] sm:$0xff] %v1111_v24   ;;  %vm308_vm8 = vcmp.ge.f32.partialorder %v244_v25, 0.0  ;;  %vm309_vm9 = vcmp.ge.f32.partialorder %v245_v26, 0.0  ;;  %v372_v31 = vmul.f32 0.2, %v244_v25  ;;  %v246_v36 = vadd.f32 %v1320_v7, %v175_v27 }
  0x2c   :  { %v373_v32 = vmul.f32 0.2, %v245_v26  ;;  %v434_v33 = vsel %vm306_vm6, %v242_v21, %v370_v29  ;;  %v435_v34 = vsel %vm307_vm7, %v243_v22, %v371_v30  ;;  %v247_v44 = vadd.f32 %v1320_v7, %v176_v35  ;;  %v1237_v21 = vld [vmem:[%s1631_s0 + $0xa0] sm:$0xff]  }
  0x2d   :  { %v1116_v38 = vpack.c.bf16 %v435_v34, %v434_v33  ;;  %v436_v39 = vsel %vm308_vm8, %v244_v25, %v372_v31  ;;  %vm310_vm10 = vcmp.ge.f32.partialorder %v246_v36, 0.0  ;;  %v374_v45 = vmul.f32 0.2, %v246_v36 }
  0x2e   :  { %v437_v40 = vsel %vm309_vm9, %v245_v26, %v373_v32  ;;  %v989_v46 = vunpack.c.h.bf16 %v1231_v28  ;;  %v177_v47 = vmul.f32 %v988_v41, %v1306_v1  ;;  %v992_v48 = vunpack.c.l.bf16 %v1232_v37 }
  0x2f   :  { %v1121_v43 = vpack.c.bf16 %v437_v40, %v436_v39  ;;  %1259 = vst [vmem:[%s1634_s3 + $0x58] sm:$0xff] %v1116_v38   ;;  %v993_v49 = vunpack.c.h.bf16 %v1232_v37  ;;  %vm311_vm11 = vcmp.ge.f32.partialorder %v247_v44, 0.0  ;;  %v375_v51 = vmul.f32 0.2, %v247_v44  ;;  %v1238_v40 = vld [vmem:[%s1631_s0 + $0xa8] sm:$0xff]  }
  0x30   :  { %v438_v52 = vsel %vm310_vm10, %v246_v36, %v374_v45  ;;  %v996_v53 = vunpack.c.l.bf16 %v1233_v42  ;;  %v178_v54 = vmul.f32 %v989_v46, %v1306_v1  ;;  %v248_v55 = vadd.f32 %v1320_v7, %v177_v47 }
  0x31   :  { %1260 = vst [vmem:[%s1634_s3 + $0x60] sm:$0xff] %v1121_v43   ;;  %v179_v56 = vmul.f32 %v992_v48, %v1306_v1  ;;  %v180_v57 = vmul.f32 %v993_v49, %v1306_v1  ;;  %v439_v58 = vsel %vm311_vm11, %v247_v44, %v375_v51  ;;  %v997_v59 = vunpack.c.h.bf16 %v1233_v42 }
  0x32   :  { %v181_v60 = vmul.f32 %v996_v53, %v1306_v1  ;;  %v1000_v61 = vunpack.c.l.bf16 %v1234_v50  ;;  %v1126_v62 = vpack.c.bf16 %v439_v58, %v438_v52  ;;  %v249_v63 = vadd.f32 %v1320_v7, %v178_v54 }
  0x33   :  { %vm312_vm12 = vcmp.ge.f32.partialorder %v248_v55, 0.0  ;;  %v376_v0 = vmul.f32 0.2, %v248_v55  ;;  %v250_v2 = vadd.f32 %v1320_v7, %v179_v56  ;;  %v251_v3 = vadd.f32 %v1320_v7, %v180_v57 }
  0x34   :  { %v182_v4 = vmul.f32 %v997_v59, %v1306_v1  ;;  %v252_v5 = vadd.f32 %v1320_v7, %v181_v60  ;;  %1261 = vst [vmem:[%s1634_s3 + $0x68] sm:$0xff] %v1126_v62   ;;  %vm313_vm13 = vcmp.ge.f32.partialorder %v249_v63, 0.0  ;;  %v377_v6 = vmul.f32 0.2, %v249_v63 }
  0x35   :  { %v440_v8 = vsel %vm312_vm12, %v248_v55, %v376_v0  ;;  %v1001_v9 = vunpack.c.h.bf16 %v1234_v50  ;;  %vm314_vm14 = vcmp.ge.f32.partialorder %v250_v2, 0.0  ;;  %vm315_vm15 = vcmp.ge.f32.partialorder %v251_v3, 0.0  ;;  %v1239_v0 = vld [vmem:[%s1631_s0 + $0xb0] sm:$0xff]  }
  0x36   :  { %v378_v10 = vmul.f32 0.2, %v250_v2  ;;  %v379_v11 = vmul.f32 0.2, %v251_v3  ;;  %v441_v12 = vsel %vm313_vm13, %v249_v63, %v377_v6  ;;  %v253_v13 = vadd.f32 %v1320_v7, %v182_v4 }
  0x37   :  { %vm316_vm0 = vcmp.ge.f32.partialorder %v252_v5, 0.0  ;;  %v380_v14 = vmul.f32 0.2, %v252_v5  ;;  %v1131_v16 = vpack.c.bf16 %v441_v12, %v440_v8  ;;  %v183_v19 = vmul.f32 %v1000_v61, %v1306_v1 }
  0x38   :  { %v442_v17 = vsel %vm314_vm14, %v250_v2, %v378_v10  ;;  %v443_v18 = vsel %vm315_vm15, %v251_v3, %v379_v11  ;;  %vm317_vm1 = vcmp.ge.f32.partialorder %v253_v13, 0.0  ;;  %v381_v23 = vmul.f32 0.2, %v253_v13  ;;  %v1240_v2 = vld [vmem:[%s1631_s0 + $0xb8] sm:$0xff]  }
  0x39   :  { %v1136_v22 = vpack.c.bf16 %v443_v18, %v442_v17  ;;  %v444_v24 = vsel %vm316_vm0, %v252_v5, %v380_v14  ;;  %1262 = vst [vmem:[%s1634_s3 + $0x70] sm:$0xff] %v1131_v16   ;;  %v184_v25 = vmul.f32 %v1001_v9, %v1306_v1  ;;  %v254_v26 = vadd.f32 %v1320_v7, %v183_v19  ;;  %v1241_v18 = vld [vmem:[%s1631_s0 + $0xc0] sm:$0xff]  }
  0x3a   :  { %v1004_v27 = vunpack.c.l.bf16 %v1235_v15  ;;  %v1005_v28 = vunpack.c.h.bf16 %v1235_v15  ;;  %v445_v29 = vsel %vm317_vm1, %v253_v13, %v381_v23  ;;  %v1008_v30 = vunpack.c.l.bf16 %v1236_v20 }
  0x3b   :  { %1263 = vst [vmem:[%s1634_s3 + $0x78] sm:$0xff] %v1136_v22   ;;  %v1009_v31 = vunpack.c.h.bf16 %v1236_v20  ;;  %v1012_v32 = vunpack.c.l.bf16 %v1237_v21  ;;  %v1141_v33 = vpack.c.bf16 %v445_v29, %v444_v24  ;;  %v255_v34 = vadd.f32 %v1320_v7, %v184_v25 }
  0x3c   :  { %vm318_vm2 = vcmp.ge.f32.partialorder %v254_v26, 0.0  ;;  %v382_v35 = vmul.f32 0.2, %v254_v26  ;;  %v185_v36 = vmul.f32 %v1004_v27, %v1306_v1  ;;  %v186_v37 = vmul.f32 %v1005_v28, %v1306_v1 }
  0x3d   :  { %v187_v38 = vmul.f32 %v1008_v30, %v1306_v1  ;;  %v188_v39 = vmul.f32 %v1009_v31, %v1306_v1  ;;  %1264 = vst [vmem:[%s1634_s3 + $0x80] sm:$0xff] %v1141_v33   ;;  %vm319_vm3 = vcmp.ge.f32.partialorder %v255_v34, 0.0  ;;  %v383_v41 = vmul.f32 0.2, %v255_v34 }
  0x3e   :  { %v446_v42 = vsel %vm318_vm2, %v254_v26, %v382_v35  ;;  %v1013_v43 = vunpack.c.h.bf16 %v1237_v21  ;;  %v256_v44 = vadd.f32 %v1320_v7, %v185_v36  ;;  %v257_v45 = vadd.f32 %v1320_v7, %v186_v37  ;;  %v1242_v36 = vld [vmem:[%s1631_s0 + $0xc8] sm:$0xff]  }
  0x3f   :  { %v258_v46 = vadd.f32 %v1320_v7, %v187_v38  ;;  %v259_v47 = vadd.f32 %v1320_v7, %v188_v39  ;;  %v447_v48 = vsel %vm319_vm3, %v255_v34, %v383_v41  ;;  %v189_v49 = vmul.f32 %v1012_v32, %v1306_v1 }
  0x40   :  { %v190_v50 = vmul.f32 %v1013_v43, %v1306_v1  ;;  %v1016_v51 = vunpack.c.l.bf16 %v1238_v40  ;;  %v1146_v52 = vpack.c.bf16 %v447_v48, %v446_v42  ;;  %vm320_vm4 = vcmp.ge.f32.partialorder %v256_v44, 0.0  ;;  %v1243_v42 = vld [vmem:[%s1631_s0 + $0xd0] sm:$0xff]  }
  0x41   :  { %vm321_vm5 = vcmp.ge.f32.partialorder %v257_v45, 0.0  ;;  %v384_v53 = vmul.f32 0.2, %v256_v44  ;;  %v385_v54 = vmul.f32 0.2, %v257_v45  ;;  %vm322_vm6 = vcmp.ge.f32.partialorder %v258_v46, 0.0 }
  0x42   :  { %vm323_vm7 = vcmp.ge.f32.partialorder %v259_v47, 0.0  ;;  %v386_v55 = vmul.f32 0.2, %v258_v46  ;;  %1265 = vst [vmem:[%s1634_s3 + $0x88] sm:$0xff] %v1146_v52   ;;  %v387_v57 = vmul.f32 0.2, %v259_v47  ;;  %v260_v58 = vadd.f32 %v1320_v7, %v189_v49 }
  0x43   :  { %v448_v56 = vsel %vm320_vm4, %v256_v44, %v384_v53  ;;  %v261_v59 = vadd.f32 %v1320_v7, %v190_v50  ;;  %v449_v60 = vsel %vm321_vm5, %v257_v45, %v385_v54  ;;  %v1017_v62 = vunpack.c.h.bf16 %v1238_v40 }
  0x44   :  { %v450_v61 = vsel %vm322_vm6, %v258_v46, %v386_v55  ;;  %v191_v63 = vmul.f32 %v1016_v51, %v1306_v1  ;;  %v1151_v3 = vpack.c.bf16 %v449_v60, %v448_v56  ;;  %v451_v4 = vsel %vm323_vm7, %v259_v47, %v387_v57  ;;  %v1244_v55 = vld [vmem:[%s1631_s0 + $0xd8] sm:$0xff]  }
  0x45   :  { %vm324_vm8 = vcmp.ge.f32.partialorder %v260_v58, 0.0  ;;  %vm325_vm9 = vcmp.ge.f32.partialorder %v261_v59, 0.0  ;;  %v1156_v5 = vpack.c.bf16 %v451_v4, %v450_v61  ;;  %v388_v6 = vmul.f32 0.2, %v260_v58 }
  0x46   :  { %v389_v8 = vmul.f32 0.2, %v261_v59  ;;  %v192_v9 = vmul.f32 %v1017_v62, %v1306_v1  ;;  %1266 = vst [vmem:[%s1634_s3 + $0x90] sm:$0xff] %v1151_v3   ;;  %v262_v10 = vadd.f32 %v1320_v7, %v191_v63  ;;  %v1020_v11 = vunpack.c.l.bf16 %v1239_v0 }
  0x47   :  { %v1021_v12 = vunpack.c.h.bf16 %v1239_v0  ;;  %v1024_v13 = vunpack.c.l.bf16 %v1240_v2  ;;  %1267 = vst [vmem:[%s1634_s3 + $0x98] sm:$0xff] %v1156_v5   ;;  %v452_v14 = vsel %vm324_vm8, %v260_v58, %v388_v6  ;;  %v1025_v17 = vunpack.c.h.bf16 %v1240_v2 }
  0x48   :  { %v453_v15 = vsel %vm325_vm9, %v261_v59, %v389_v8  ;;  %v263_v16 = vadd.f32 %v1320_v7, %v192_v9  ;;  %vm326_vm10 = vcmp.ge.f32.partialorder %v262_v10, 0.0  ;;  %v390_v20 = vmul.f32 0.2, %v262_v10 }
  0x49   :  { %v1161_v19 = vpack.c.bf16 %v453_v15, %v452_v14  ;;  %v193_v21 = vmul.f32 %v1020_v11, %v1306_v1  ;;  %v194_v23 = vmul.f32 %v1021_v12, %v1306_v1  ;;  %v195_v24 = vmul.f32 %v1024_v13, %v1306_v1  ;;  %v1246_v14 = vld [vmem:[%s1631_s0 + $0xe8] sm:$0xff]  }
  0x4a   :  { %vm327_vm11 = vcmp.ge.f32.partialorder %v263_v16, 0.0  ;;  %v391_v22 = vmul.f32 0.2, %v263_v16  ;;  %v454_v25 = vsel %vm326_vm10, %v262_v10, %v390_v20  ;;  %v196_v27 = vmul.f32 %v1025_v17, %v1306_v1  ;;  %v1245_v10 = vld [vmem:[%s1631_s0 + $0xe0] sm:$0xff]  }
  0x4b   :  { %1268 = vst [vmem:[%s1634_s3 + $0xa0] sm:$0xff] %v1161_v19   ;;  %v264_v26 = vadd.f32 %v1320_v7, %v193_v21  ;;  %v1028_v28 = vunpack.c.l.bf16 %v1241_v18  ;;  %v265_v30 = vadd.f32 %v1320_v7, %v194_v23  ;;  %v266_v31 = vadd.f32 %v1320_v7, %v195_v24 }
  0x4c   :  { %v455_v29 = vsel %vm327_vm11, %v263_v16, %v391_v22  ;;  %v1029_v32 = vunpack.c.h.bf16 %v1241_v18  ;;  %v267_v35 = vadd.f32 %v1320_v7, %v196_v27  ;;  %v1032_v46 = vunpack.c.l.bf16 %v1242_v36 }
  0x4d   :  { %v1166_v33 = vpack.c.bf16 %v455_v29, %v454_v25  ;;  %vm328_vm12 = vcmp.ge.f32.partialorder %v264_v26, 0.0  ;;  %v392_v34 = vmul.f32 0.2, %v264_v26  ;;  %vm329_vm13 = vcmp.ge.f32.partialorder %v265_v30, 0.0 }
  0x4e   :  { %v393_v37 = vmul.f32 0.2, %v265_v30  ;;  %vm330_vm14 = vcmp.ge.f32.partialorder %v266_v31, 0.0  ;;  %v394_v38 = vmul.f32 0.2, %v266_v31  ;;  %vm331_vm15 = vcmp.ge.f32.partialorder %v267_v35, 0.0 }
  0x4f   :  { %1269 = vst [vmem:[%s1634_s3 + $0xa8] sm:$0xff] %v1166_v33   ;;  %v456_v39 = vsel %vm328_vm12, %v264_v26, %v392_v34  ;;  %v395_v40 = vmul.f32 0.2, %v267_v35  ;;  %v197_v41 = vmul.f32 %v1028_v28, %v1306_v1  ;;  %v198_v45 = vmul.f32 %v1029_v32, %v1306_v1 }
  0x50   :  { %v457_v43 = vsel %vm329_vm13, %v265_v30, %v393_v37  ;;  %v458_v44 = vsel %vm330_vm14, %v266_v31, %v394_v38  ;;  %v1033_v50 = vunpack.c.h.bf16 %v1242_v36  ;;  %v199_v53 = vmul.f32 %v1032_v46, %v1306_v1  ;;  %v1247_v30 = vld [vmem:[%s1631_s0 + $0xf0] sm:$0xff]  }
  0x51   :  { %v1171_v47 = vpack.c.bf16 %v457_v43, %v456_v39  ;;  %v459_v48 = vsel %vm331_vm15, %v267_v35, %v395_v40  ;;  %v268_v49 = vadd.f32 %v1320_v7, %v197_v41  ;;  %v269_v52 = vadd.f32 %v1320_v7, %v198_v45 }
  0x52   :  { %v1176_v51 = vpack.c.bf16 %v459_v48, %v458_v44  ;;  %v1036_v54 = vunpack.c.l.bf16 %v1243_v42  ;;  %v200_v57 = vmul.f32 %v1033_v50, %v1306_v1  ;;  %v1037_v58 = vunpack.c.h.bf16 %v1243_v42  ;;  %v1248_v44 = vld [vmem:[%s1631_s0 + $0xf8] sm:$0xff]  }
  0x53   :  { %1270 = vst [vmem:[%s1634_s3 + $0xb0] sm:$0xff] %v1171_v47   ;;  %vm332_vm0 = vcmp.ge.f32.partialorder %v268_v49, 0.0  ;;  %v396_v56 = vmul.f32 0.2, %v268_v49  ;;  %vm333_vm1 = vcmp.ge.f32.partialorder %v269_v52, 0.0  ;;  %v270_v60 = vadd.f32 %v1320_v7, %v199_v53 }
  0x54   :  { %1271 = vst [vmem:[%s1634_s3 + $0xb8] sm:$0xff] %v1176_v51   ;;  %v397_v59 = vmul.f32 0.2, %v269_v52  ;;  %v201_v61 = vmul.f32 %v1036_v54, %v1306_v1  ;;  %v271_v63 = vadd.f32 %v1320_v7, %v200_v57  ;;  %v202_v0 = vmul.f32 %v1037_v58, %v1306_v1 }
  0x55   :  { %v460_v62 = vsel %vm332_vm0, %v268_v49, %v396_v56  ;;  %v1040_v2 = vunpack.c.l.bf16 %v1244_v55  ;;  %vm334_vm2 = vcmp.ge.f32.partialorder %v270_v60, 0.0  ;;  %v398_v4 = vmul.f32 0.2, %v270_v60 }
  0x56   :  { %v461_v3 = vsel %vm333_vm1, %v269_v52, %v397_v59  ;;  %v272_v5 = vadd.f32 %v1320_v7, %v201_v61  ;;  %vm335_vm3 = vcmp.ge.f32.partialorder %v271_v63, 0.0  ;;  %v399_v8 = vmul.f32 0.2, %v271_v63 }
  0x57   :  { %v1181_v6 = vpack.c.bf16 %v461_v3, %v460_v62  ;;  %v273_v9 = vadd.f32 %v1320_v7, %v202_v0  ;;  %v462_v11 = vsel %vm334_vm2, %v270_v60, %v398_v4  ;;  %v1041_v13 = vunpack.c.h.bf16 %v1244_v55 }
  0x58   :  { %vm336_vm4 = vcmp.ge.f32.partialorder %v272_v5, 0.0  ;;  %v400_v12 = vmul.f32 0.2, %v272_v5  ;;  %v463_v15 = vsel %vm335_vm3, %v271_v63, %v399_v8  ;;  %v203_v17 = vmul.f32 %v1040_v2, %v1306_v1 }
  0x59   :  { %1272 = vst [vmem:[%s1634_s3 + $0xc0] sm:$0xff] %v1181_v6   ;;  %vm337_vm5 = vcmp.ge.f32.partialorder %v273_v9, 0.0  ;;  %v401_v16 = vmul.f32 0.2, %v273_v9  ;;  %v1186_v18 = vpack.c.bf16 %v463_v15, %v462_v11  ;;  %v204_v20 = vmul.f32 %v1041_v13, %v1306_v1 }
  0x5a   :  { %v464_v19 = vsel %vm336_vm4, %v272_v5, %v400_v12  ;;  %v1044_v21 = vunpack.c.l.bf16 %v1245_v10  ;;  %v274_v23 = vadd.f32 %v1320_v7, %v203_v17  ;;  %v1045_v24 = vunpack.c.h.bf16 %v1245_v10 }
  0x5b   :  { %v465_v22 = vsel %vm337_vm5, %v273_v9, %v401_v16  ;;  %v1048_v25 = vunpack.c.l.bf16 %v1246_v14  ;;  %1273 = vst [vmem:[%s1634_s3 + $0xc8] sm:$0xff] %v1186_v18   ;;  %v275_v27 = vadd.f32 %v1320_v7, %v204_v20  ;;  %v1049_v29 = vunpack.c.h.bf16 %v1246_v14 }
  0x5c   :  { %v1191_v26 = vpack.c.bf16 %v465_v22, %v464_v19  ;;  %v205_v28 = vmul.f32 %v1044_v21, %v1306_v1  ;;  %vm338_vm6 = vcmp.ge.f32.partialorder %v274_v23, 0.0  ;;  %v402_v31 = vmul.f32 0.2, %v274_v23 }
  0x5d   :  { %v206_v32 = vmul.f32 %v1045_v24, %v1306_v1  ;;  %v207_v33 = vmul.f32 %v1048_v25, %v1306_v1  ;;  %vm339_vm7 = vcmp.ge.f32.partialorder %v275_v27, 0.0  ;;  %v403_v34 = vmul.f32 0.2, %v275_v27 }
  0x5e   :  { %1274 = vst [vmem:[%s1634_s3 + $0xd0] sm:$0xff] %v1191_v26   ;;  %v276_v35 = vadd.f32 %v1320_v7, %v205_v28  ;;  %v208_v36 = vmul.f32 %v1049_v29, %v1306_v1  ;;  %v466_v37 = vsel %vm338_vm6, %v274_v23, %v402_v31  ;;  %v1052_v40 = vunpack.c.l.bf16 %v1247_v30 }
  0x5f   :  { %v277_v38 = vadd.f32 %v1320_v7, %v206_v32  ;;  %v278_v39 = vadd.f32 %v1320_v7, %v207_v33  ;;  %v467_v41 = vsel %vm339_vm7, %v275_v27, %v403_v34  ;;  %v1053_v51 = vunpack.c.h.bf16 %v1247_v30 }
  0x60   :  { %vm340_vm8 = vcmp.ge.f32.partialorder %v276_v35, 0.0  ;;  %v404_v42 = vmul.f32 0.2, %v276_v35  ;;  %v279_v43 = vadd.f32 %v1320_v7, %v208_v36  ;;  %v1196_v45 = vpack.c.bf16 %v467_v41, %v466_v37 }
  0x61   :  { %vm341_vm9 = vcmp.ge.f32.partialorder %v277_v38, 0.0  ;;  %v405_v46 = vmul.f32 0.2, %v277_v38  ;;  %vm342_vm10 = vcmp.ge.f32.partialorder %v278_v39, 0.0  ;;  %v406_v48 = vmul.f32 0.2, %v278_v39 }
  0x62   :  { %v468_v47 = vsel %vm340_vm8, %v276_v35, %v404_v42  ;;  %vm343_vm11 = vcmp.ge.f32.partialorder %v279_v43, 0.0  ;;  %v407_v49 = vmul.f32 0.2, %v279_v43  ;;  %1275 = vst [vmem:[%s1634_s3 + $0xd8] sm:$0xff] %v1196_v45   ;;  %v209_v52 = vmul.f32 %v1052_v40, %v1306_v1 }
  0x63   :  { %v469_v50 = vsel %vm341_vm9, %v277_v38, %v405_v46  ;;  %v1056_v53 = vunpack.c.l.bf16 %v1248_v44  ;;  %v470_v55 = vsel %vm342_vm10, %v278_v39, %v406_v48  ;;  %v1057_v57 = vunpack.c.h.bf16 %v1248_v44 }
  0x64   :  { %v1201_v54 = vpack.c.bf16 %v469_v50, %v468_v47  ;;  %v471_v56 = vsel %vm343_vm11, %v279_v43, %v407_v49  ;;  %v210_v59 = vmul.f32 %v1053_v51, %v1306_v1  ;;  %v280_v60 = vadd.f32 %v1320_v7, %v209_v52 }
  0x65   :  { %v1206_v58 = vpack.c.bf16 %v471_v56, %v470_v55  ;;  %v211_v61 = vmul.f32 %v1056_v53, %v1306_v1  ;;  %v212_v62 = vmul.f32 %v1057_v57, %v1306_v1 }
  0x66   :  { %1276 = vst [vmem:[%s1634_s3 + $0xe0] sm:$0xff] %v1201_v54   ;;  %v281_v63 = vadd.f32 %v1320_v7, %v210_v59  ;;  %vm344_vm12 = vcmp.ge.f32.partialorder %v280_v60, 0.0  ;;  %v408_v0 = vmul.f32 0.2, %v280_v60 }
  0x67   :  { %1277 = vst [vmem:[%s1634_s3 + $0xe8] sm:$0xff] %v1206_v58   ;;  %v282_v2 = vadd.f32 %v1320_v7, %v211_v61  ;;  %v283_v3 = vadd.f32 %v1320_v7, %v212_v62 }
  0x68   :  { %vm345_vm13 = vcmp.ge.f32.partialorder %v281_v63, 0.0  ;;  %v409_v4 = vmul.f32 0.2, %v281_v63  ;;  %v472_v5 = vsel %vm344_vm12, %v280_v60, %v408_v0 }
  0x69   :  { %vm346_vm14 = vcmp.ge.f32.partialorder %v282_v2, 0.0  ;;  %vm347_vm15 = vcmp.ge.f32.partialorder %v283_v3, 0.0  ;;  %v410_v6 = vmul.f32 0.2, %v282_v2  ;;  %v411_v8 = vmul.f32 0.2, %v283_v3 }
  0x6a   :  { %v473_v1 = vsel %vm345_vm13, %v281_v63, %v409_v4 }
  0x6b   :  { %v1211_v9 = vpack.c.bf16 %v473_v1, %v472_v5  ;;  %v474_v10 = vsel %vm346_vm14, %v282_v2, %v410_v6  ;;  %v475_v11 = vsel %vm347_vm15, %v283_v3, %v411_v8 }
  0x6c   :  { %v1216_v12 = vpack.c.bf16 %v475_v11, %v474_v10 }
  0x6d   :  { %1278 = vst [vmem:[%s1634_s3 + $0xf0] sm:$0xff] %v1211_v9  }
  0x6e   :  { %1279 = vst [vmem:[%s1634_s3 + $0xf8] sm:$0xff] %v1216_v12  }

// kernel: discriminator_up_forward.9
= control target key start
LH: loop header
LB: loop body
LE: loop exit
PB: predicated region body
PF: predicated region fallthrough
CT: control target
= control target key end

     0   :  { %10 = vsyncpa [#allocation3], 0  ;;  %s1759_s15 = smov [#allocation2]   ;;  %s2221_s0 = inlined_call_operand.vmem [shape: bf16[512,48], index: 0, kind: input, shape index: {}]   ;;  %s2222_s1 = inlined_call_operand.hbm [shape: bf16[48,128], index: 1, kind: input, shape index: {}]   ;;  %s2223_s2 = inlined_call_operand.vmem [shape: bf16[512,128], index: 2, kind: output, shape index: {0}]   ;;  %s2224_s3 = inlined_call_operand.vmem [shape: f32[1,128], index: 3, kind: output, shape index: {1}]   ;;  %s2225_s4 = inlined_call_operand.vmem [shape: f32[1,128], index: 4, kind: output, shape index: {2}]  }
   0x1   :  { %s18_s16 = sshll.u32 %s1759_s15, 4  ;;  %s1735_s19 = scalar_lea.hbm %s2222_s1, 384  ;;  %s19_s16 = int_to_ptr.vmem [resolvable:$true] %s18_s16 }
   0x2   :  { %p1736_p0 = scmp.ne.s32.totalorder %s2222_s1, %s1735_s19  ;;  %p1739_p1 = scmp.lt.u32.totalorder %s1735_s19, %s2222_s1 }
   0x4   :  { %p1741_p2 = pnand %p1739_p1, %p1736_p0 }
   0x6   :  { %1744 = shalt.err (!%p1741_p2)
}
   0x7   :  { %s1745_s24 = scalar_lea.vmem %s19_s16, 384  ;;  %p1750_p4 = scmp.lt.s32.totalorder %s19_s16, %s19_s16 }
   0x8   :  { %p1746_p3 = scmp.ne.s32.totalorder %s19_s16, %s1745_s24  ;;  %p1751_p5 = scmp.lt.s32.totalorder %s1745_s24, %s1745_s24 }
   0xa   :  { %p1752_p6 = por %p1751_p5, %p1750_p4 }
   0xc   :  { %p1753_p7 = pnand %p1752_p6, %p1746_p3 }
   0xe   :  { %1756 = shalt.err (!%p1753_p7)
}
   0xf   :  { %s1760_s25 = smov 64   ;;  %s1761_s26 = smov 4  }
  0x10   :  { %24 = dma.hbm_to_vmem [thread:$0]  %s2222_s1, 384, %s19_s16, [#allocation3], %s1760_s25, %s1760_s25, %s1761_s26  }
  0x11   :  { %1757 = dma.done.wait [#allocation3], 384  }
  0x12   :  { %1758 = vsyncadd [#allocation3], 4294966912  ;;  %v1700_v0 = vld [vmem:[#allocation2] sm:$0xff]   ;;  %v1701_v1 = vld [vmem:[#allocation2 + $0x8] sm:$0xff]   ;;  %vm277_vm0 = vcmask 392192  }
  0x13   :  { %1621 = vmatprep.subr.bf16.mxu0 %v1700_v0  ;;  %1691 = vmatprep.subr.bf16.mxu1 %v1700_v0  ;;  %v1703_v2 = vld [vmem:[%s2221_s0] sm:$0xff]   ;;  %v1702_v3 = vld [vmem:[#allocation2 + $0x10] sm:$0xff]   ;;  %v1704_v4 = vld [vmem:[%s2221_s0 + $0x8] sm:$0xff]  }
  0x14   :  { %1622 = vmatpush3.bf16.msra.mxu0 %v1700_v0  ;;  %1694 = vmatpush3.bf16.msra.mxu1 %v1700_v0  ;;  %v1705_v5 = vld [vmem:[%s2221_s0 + $0x10] sm:$0xff]   ;;  %v1706_v6 = vld [vmem:[%s2221_s0 + $0x18] sm:$0xff]   ;;  %v1707_v7 = vld [vmem:[%s2221_s0 + $0x20] sm:$0xff]  }
  0x15   :  { %1623 = vmatprep.subr.bf16.mxu0 %v1701_v1  ;;  %1692 = vmatprep.subr.bf16.mxu1 %v1701_v1  ;;  %v1719_v8 = vld [vmem:[%s2221_s0 + $0x80] sm:$0xff]   ;;  %v1720_v9 = vld [vmem:[%s2221_s0 + $0x88] sm:$0xff]   ;;  %v1721_v10 = vld [vmem:[%s2221_s0 + $0x90] sm:$0xff]  }
  0x16   :  { %1627 = vmatprep.mubr.msk.bf16.mxu0 %vm277_vm0, %v1703_v2  ;;  %1659 = vmatprep.mubr.msk.bf16.mxu1 %vm277_vm0, %v1719_v8  ;;  %v1708_v11 = vld [vmem:[%s2221_s0 + $0x28] sm:$0xff]   ;;  %v1709_v12 = vld [vmem:[%s2221_s0 + $0x30] sm:$0xff]   ;;  %v1722_v13 = vld [vmem:[%s2221_s0 + $0x98] sm:$0xff]  }
  0x17   :  { %v1723_v14 = vld [vmem:[%s2221_s0 + $0xa0] sm:$0xff]   ;;  %v1710_v15 = vld [vmem:[%s2221_s0 + $0x38] sm:$0xff]   ;;  %v1724_v16 = vld [vmem:[%s2221_s0 + $0xa8] sm:$0xff]  }
  0x18   :  { %1624 = vmatpush3.bf16.msra.mxu0 %v1701_v1  ;;  %1695 = vmatpush3.bf16.msra.mxu1 %v1701_v1  ;;  %v1711_v17 = vld [vmem:[%s2221_s0 + $0x40] sm:$0xff]   ;;  %v1725_v18 = vld [vmem:[%s2221_s0 + $0xb0] sm:$0xff]   ;;  %v1712_v19 = vld [vmem:[%s2221_s0 + $0x48] sm:$0xff]  }
  0x19   :  { %1625 = vmatprep.subr.bf16.mxu0 %v1702_v3  ;;  %1693 = vmatprep.subr.bf16.mxu1 %v1702_v3  ;;  %v1726_v20 = vld [vmem:[%s2221_s0 + $0xb8] sm:$0xff]   ;;  %v1713_v21 = vld [vmem:[%s2221_s0 + $0x50] sm:$0xff]   ;;  %v1727_v22 = vld [vmem:[%s2221_s0 + $0xc0] sm:$0xff]  }
  0x1a   :  { %v1714_v23 = vld [vmem:[%s2221_s0 + $0x58] sm:$0xff]   ;;  %v1728_v24 = vld [vmem:[%s2221_s0 + $0xc8] sm:$0xff]   ;;  %v1715_v25 = vld [vmem:[%s2221_s0 + $0x60] sm:$0xff]  }
  0x1b   :  { %v1729_v26 = vld [vmem:[%s2221_s0 + $0xd0] sm:$0xff]   ;;  %v1716_v27 = vld [vmem:[%s2221_s0 + $0x68] sm:$0xff]   ;;  %v1730_v28 = vld [vmem:[%s2221_s0 + $0xd8] sm:$0xff]  }
  0x1c   :  { %1626 = vmatpush3.bf16.msra.mxu0 %v1702_v3  ;;  %1696 = vmatpush3.bf16.msra.mxu1 %v1702_v3  ;;  %v1717_v29 = vld [vmem:[%s2221_s0 + $0x70] sm:$0xff]   ;;  %v1731_v30 = vld [vmem:[%s2221_s0 + $0xe0] sm:$0xff]   ;;  %v1718_v31 = vld [vmem:[%s2221_s0 + $0x78] sm:$0xff]  }
  0x1d   :  { %v1732_v32 = vld [vmem:[%s2221_s0 + $0xe8] sm:$0xff]   ;;  %v1733_v33 = vld [vmem:[%s2221_s0 + $0xf0] sm:$0xff]   ;;  %v1734_v34 = vld [vmem:[%s2221_s0 + $0xf8] sm:$0xff]  }
  0x1f   :  { %1628 = vmatmul.mubr.msk.bf16.vlgmr.msra.gmra.mrb[0].mxu0 %vm277_vm0, %v1704_v4  ;;  %1660 = vmatmul.mubr.msk.bf16.vlgmr.msra.gmra.mrb[0].mxu1 %vm277_vm0, %v1720_v9 }
  0x20   :  { %1631 = vmatprep.mubr.msk.bf16.mxu0 %vm277_vm0, %v1705_v5  ;;  %1663 = vmatprep.mubr.msk.bf16.mxu1 %vm277_vm0, %v1721_v10 }
  0x27   :  { %1632 = vmatmul.mubr.msk.bf16.gmra.mrb[4].mxu0 %vm277_vm0, %v1706_v6  ;;  %1664 = vmatmul.mubr.msk.bf16.gmra.mrb[4].mxu1 %vm277_vm0, %v1722_v13 }
  0x28   :  { %1635 = vmatprep.mubr.msk.bf16.mxu0 %vm277_vm0, %v1707_v7  ;;  %1667 = vmatprep.mubr.msk.bf16.mxu1 %vm277_vm0, %v1723_v14 }
  0x2f   :  { %1636 = vmatmul.mubr.msk.bf16.gmra.mrb[8].mxu0 %vm277_vm0, %v1708_v11  ;;  %1668 = vmatmul.mubr.msk.bf16.gmra.mrb[8].mxu1 %vm277_vm0, %v1724_v16 }
  0x30   :  { %1639 = vmatprep.mubr.msk.bf16.mxu0 %vm277_vm0, %v1709_v12  ;;  %1671 = vmatprep.mubr.msk.bf16.mxu1 %vm277_vm0, %v1725_v18 }
  0x37   :  { %1640 = vmatmul.mubr.msk.bf16.gmra.mrb[12].mxu0 %vm277_vm0, %v1710_v15  ;;  %1672 = vmatmul.mubr.msk.bf16.gmra.mrb[12].mxu1 %vm277_vm0, %v1726_v20 }
  0x38   :  { %1643 = vmatprep.mubr.msk.bf16.mxu0 %vm277_vm0, %v1711_v17  ;;  %1675 = vmatprep.mubr.msk.bf16.mxu1 %vm277_vm0, %v1727_v22 }
  0x3f   :  { %1644 = vmatmul.mubr.msk.bf16.gmra.mrb[16].mxu0 %vm277_vm0, %v1712_v19  ;;  %1676 = vmatmul.mubr.msk.bf16.gmra.mrb[16].mxu1 %vm277_vm0, %v1728_v24 }
  0x40   :  { %1647 = vmatprep.mubr.msk.bf16.mxu0 %vm277_vm0, %v1713_v21  ;;  %1679 = vmatprep.mubr.msk.bf16.mxu1 %vm277_vm0, %v1729_v26 }
  0x47   :  { %1648 = vmatmul.mubr.msk.bf16.gmra.mrb[20].mxu0 %vm277_vm0, %v1714_v23  ;;  %1680 = vmatmul.mubr.msk.bf16.gmra.mrb[20].mxu1 %vm277_vm0, %v1730_v28 }
  0x48   :  { %1651 = vmatprep.mubr.msk.bf16.mxu0 %vm277_vm0, %v1715_v25  ;;  %1683 = vmatprep.mubr.msk.bf16.mxu1 %vm277_vm0, %v1731_v30 }
  0x4f   :  { %1652 = vmatmul.mubr.msk.bf16.gmra.mrb[24].mxu0 %vm277_vm0, %v1716_v27  ;;  %1684 = vmatmul.mubr.msk.bf16.gmra.mrb[24].mxu1 %vm277_vm0, %v1732_v32 }
  0x50   :  { %1655 = vmatprep.mubr.msk.bf16.mxu0 %vm277_vm0, %v1717_v29  ;;  %1687 = vmatprep.mubr.msk.bf16.mxu1 %vm277_vm0, %v1733_v33 }
  0x57   :  { %1656 = vmatmul.mubr.msk.bf16.gmra.mrb[28].mxu0 %vm277_vm0, %v1718_v31  ;;  %1688 = vmatmul.mubr.msk.bf16.gmra.mrb[28].mxu1 %vm277_vm0, %v1734_v34 }
  0xf2   :  { %v1629_v35 = vpop.f32.mrb[0].mxu0  ;;  %v1933_v51 = vpop.f32.mrb[0].mxu1 }
  0xf3   :  { %v408_v36 = vpop.f32.mrb[1].mxu0  ;;  %v1055_v44 = vmul.f32 %v1629_v35, %v1629_v35  ;;  %v1935_v53 = vpop.f32.mrb[1].mxu1 }
  0xf4   :  { %v1630_v37 = vpop.f32.mrb[2].mxu0  ;;  %v1053_v40 = vmul.f32 %v408_v36, %v408_v36  ;;  %v1937_v58 = vpop.f32.mrb[2].mxu1 }
  0xf5   :  { %v1403_v38 = vpack.c.bf16 %v1630_v37, %v1629_v35  ;;  %v411_v39 = vpop.f32.mrb[3].mxu0  ;;  %v1056_v47 = vmul.f32 %v1630_v37, %v1630_v37  ;;  %v1483_v61 = vpack.c.bf16 %v1937_v58, %v1933_v51  ;;  %v1941_v62 = vpop.f32.mrb[3].mxu1 }
  0xf6   :  { %v1398_v41 = vpack.c.bf16 %v411_v39, %v408_v36  ;;  %v983_v42 = vadd.f32 %v411_v39, %v408_v36  ;;  %v1054_v43 = vmul.f32 %v411_v39, %v411_v39  ;;  %v1478_v3 = vpack.c.bf16 %v1941_v62, %v1935_v53 }
  0xf7   :  { %1555 = vst [vmem:[%s2223_s2 + $0x8] sm:$0xff] %v1403_v38   ;;  %1571 = vst [vmem:[%s2223_s2 + $0x88] sm:$0xff] %v1483_v61  }
  0xf8   :  { %1399 = vst [vmem:[%s2223_s2] sm:$0xff] %v1398_v41   ;;  %v984_v45 = vadd.f32 %v1629_v35, %v983_v42  ;;  %v1117_v46 = vadd.f32 %v1054_v43, %v1053_v40  ;;  %1570 = vst [vmem:[%s2223_s2 + $0x80] sm:$0xff] %v1478_v3  }
  0xfa   :  { %v1118_v48 = vadd.f32 %v1117_v46, %v1055_v44  ;;  %v1633_v49 = vpop.f32.mrb[4].mxu0  ;;  %v985_v50 = vadd.f32 %v1630_v37, %v984_v45  ;;  %v1957_v11 = vpop.f32.mrb[4].mxu1 }
  0xfb   :  { %v424_v52 = vpop.f32.mrb[5].mxu0  ;;  %v1059_v4 = vmul.f32 %v1633_v49, %v1633_v49  ;;  %v1959_v13 = vpop.f32.mrb[5].mxu1 }
  0xfc   :  { %v986_v54 = vadd.f32 %v985_v50, %v424_v52  ;;  %v1057_v55 = vmul.f32 %v424_v52, %v424_v52  ;;  %v1119_v56 = vadd.f32 %v1118_v48, %v1056_v47  ;;  %v1634_v57 = vpop.f32.mrb[6].mxu0  ;;  %v1961_v18 = vpop.f32.mrb[6].mxu1 }
  0xfd   :  { %v1413_v59 = vpack.c.bf16 %v1634_v57, %v1633_v49  ;;  %v427_v60 = vpop.f32.mrb[7].mxu0  ;;  %v1060_v7 = vmul.f32 %v1634_v57, %v1634_v57  ;;  %v1493_v21 = vpack.c.bf16 %v1961_v18, %v1957_v11  ;;  %v1965_v22 = vpop.f32.mrb[7].mxu1 }
  0xfe   :  { %v1120_v63 = vadd.f32 %v1119_v56, %v1057_v55  ;;  %v1408_v0 = vpack.c.bf16 %v427_v60, %v424_v52  ;;  %v987_v1 = vadd.f32 %v986_v54, %v427_v60  ;;  %v1058_v2 = vmul.f32 %v427_v60, %v427_v60 }
  0xff   :  { %1557 = vst [vmem:[%s2223_s2 + $0x18] sm:$0xff] %v1413_v59   ;;  %1573 = vst [vmem:[%s2223_s2 + $0x98] sm:$0xff] %v1493_v21   ;;  %v1488_v27 = vpack.c.bf16 %v1965_v22, %v1959_v13 }
 0x100   :  { %1556 = vst [vmem:[%s2223_s2 + $0x10] sm:$0xff] %v1408_v0   ;;  %v988_v5 = vadd.f32 %v1633_v49, %v987_v1  ;;  %v1121_v6 = vadd.f32 %v1120_v63, %v1058_v2 }
 0x101   :  { %1572 = vst [vmem:[%s2223_s2 + $0x90] sm:$0xff] %v1488_v27  }
 0x102   :  { %v1122_v8 = vadd.f32 %v1121_v6, %v1059_v4  ;;  %v1637_v9 = vpop.f32.mrb[8].mxu0  ;;  %v989_v10 = vadd.f32 %v1634_v57, %v988_v5  ;;  %v1981_v35 = vpop.f32.mrb[8].mxu1 }
 0x103   :  { %v440_v12 = vpop.f32.mrb[9].mxu0  ;;  %v1063_v28 = vmul.f32 %v1637_v9, %v1637_v9  ;;  %v1983_v37 = vpop.f32.mrb[9].mxu1 }
 0x104   :  { %v990_v14 = vadd.f32 %v989_v10, %v440_v12  ;;  %v1061_v15 = vmul.f32 %v440_v12, %v440_v12  ;;  %v1123_v16 = vadd.f32 %v1122_v8, %v1060_v7  ;;  %v1638_v17 = vpop.f32.mrb[10].mxu0  ;;  %v1985_v42 = vpop.f32.mrb[10].mxu1 }
 0x105   :  { %v1423_v19 = vpack.c.bf16 %v1638_v17, %v1637_v9  ;;  %v443_v20 = vpop.f32.mrb[11].mxu0  ;;  %v1064_v31 = vmul.f32 %v1638_v17, %v1638_v17  ;;  %v1503_v45 = vpack.c.bf16 %v1985_v42, %v1981_v35  ;;  %v1989_v46 = vpop.f32.mrb[11].mxu1 }
 0x106   :  { %v1124_v23 = vadd.f32 %v1123_v16, %v1061_v15  ;;  %v1418_v24 = vpack.c.bf16 %v443_v20, %v440_v12  ;;  %v991_v25 = vadd.f32 %v990_v14, %v443_v20  ;;  %v1062_v26 = vmul.f32 %v443_v20, %v443_v20 }
 0x107   :  { %1559 = vst [vmem:[%s2223_s2 + $0x28] sm:$0xff] %v1423_v19   ;;  %1575 = vst [vmem:[%s2223_s2 + $0xa8] sm:$0xff] %v1503_v45   ;;  %v1498_v52 = vpack.c.bf16 %v1989_v46, %v1983_v37 }
 0x108   :  { %1558 = vst [vmem:[%s2223_s2 + $0x20] sm:$0xff] %v1418_v24   ;;  %v992_v29 = vadd.f32 %v1637_v9, %v991_v25  ;;  %v1125_v30 = vadd.f32 %v1124_v23, %v1062_v26 }
 0x109   :  { %1574 = vst [vmem:[%s2223_s2 + $0xa0] sm:$0xff] %v1498_v52  }
 0x10a   :  { %v1126_v32 = vadd.f32 %v1125_v30, %v1063_v28  ;;  %v1641_v33 = vpop.f32.mrb[12].mxu0  ;;  %v993_v34 = vadd.f32 %v1638_v17, %v992_v29  ;;  %v2005_v63 = vpop.f32.mrb[12].mxu1 }
 0x10b   :  { %v456_v36 = vpop.f32.mrb[13].mxu0  ;;  %v1067_v54 = vmul.f32 %v1641_v33, %v1641_v33  ;;  %v2007_v1 = vpop.f32.mrb[13].mxu1 }
 0x10c   :  { %v994_v38 = vadd.f32 %v993_v34, %v456_v36  ;;  %v1065_v39 = vmul.f32 %v456_v36, %v456_v36  ;;  %v1127_v40 = vadd.f32 %v1126_v32, %v1064_v31  ;;  %v1642_v41 = vpop.f32.mrb[14].mxu0  ;;  %v2009_v6 = vpop.f32.mrb[14].mxu1 }
 0x10d   :  { %v1433_v43 = vpack.c.bf16 %v1642_v41, %v1641_v33  ;;  %v459_v44 = vpop.f32.mrb[15].mxu0  ;;  %v1068_v57 = vmul.f32 %v1642_v41, %v1642_v41  ;;  %v1513_v9 = vpack.c.bf16 %v2009_v6, %v2005_v63  ;;  %v2013_v10 = vpop.f32.mrb[15].mxu1 }
 0x10e   :  { %v1128_v47 = vadd.f32 %v1127_v40, %v1065_v39  ;;  %v1428_v48 = vpack.c.bf16 %v459_v44, %v456_v36  ;;  %v995_v49 = vadd.f32 %v994_v38, %v459_v44  ;;  %v1066_v50 = vmul.f32 %v459_v44, %v459_v44 }
 0x10f   :  { %1561 = vst [vmem:[%s2223_s2 + $0x38] sm:$0xff] %v1433_v43   ;;  %1577 = vst [vmem:[%s2223_s2 + $0xb8] sm:$0xff] %v1513_v9   ;;  %v1508_v17 = vpack.c.bf16 %v2013_v10, %v2007_v1 }
 0x110   :  { %1560 = vst [vmem:[%s2223_s2 + $0x30] sm:$0xff] %v1428_v48   ;;  %v996_v55 = vadd.f32 %v1641_v33, %v995_v49  ;;  %v1129_v56 = vadd.f32 %v1128_v47, %v1066_v50 }
 0x111   :  { %1576 = vst [vmem:[%s2223_s2 + $0xb0] sm:$0xff] %v1508_v17  }
 0x112   :  { %v1130_v59 = vadd.f32 %v1129_v56, %v1067_v54  ;;  %v1645_v60 = vpop.f32.mrb[16].mxu0  ;;  %v997_v61 = vadd.f32 %v1642_v41, %v996_v55  ;;  %v2029_v27 = vpop.f32.mrb[16].mxu1 }
 0x113   :  { %v472_v0 = vpop.f32.mrb[17].mxu0  ;;  %v1071_v19 = vmul.f32 %v1645_v60, %v1645_v60  ;;  %v2031_v29 = vpop.f32.mrb[17].mxu1 }
 0x114   :  { %v998_v2 = vadd.f32 %v997_v61, %v472_v0  ;;  %v1069_v3 = vmul.f32 %v472_v0, %v472_v0  ;;  %v1131_v4 = vadd.f32 %v1130_v59, %v1068_v57  ;;  %v1646_v5 = vpop.f32.mrb[18].mxu0  ;;  %v2033_v34 = vpop.f32.mrb[18].mxu1 }
 0x115   :  { %v1443_v7 = vpack.c.bf16 %v1646_v5, %v1645_v60  ;;  %v475_v8 = vpop.f32.mrb[19].mxu0  ;;  %v1072_v23 = vmul.f32 %v1646_v5, %v1646_v5  ;;  %v1523_v39 = vpack.c.bf16 %v2033_v34, %v2029_v27  ;;  %v2037_v40 = vpop.f32.mrb[19].mxu1 }
 0x116   :  { %v1132_v12 = vadd.f32 %v1131_v4, %v1069_v3  ;;  %v1438_v14 = vpack.c.bf16 %v475_v8, %v472_v0  ;;  %v999_v15 = vadd.f32 %v998_v2, %v475_v8  ;;  %v1070_v16 = vmul.f32 %v475_v8, %v475_v8 }
 0x117   :  { %1563 = vst [vmem:[%s2223_s2 + $0x48] sm:$0xff] %v1443_v7   ;;  %1579 = vst [vmem:[%s2223_s2 + $0xc8] sm:$0xff] %v1523_v39   ;;  %v1518_v47 = vpack.c.bf16 %v2037_v40, %v2031_v29 }
 0x118   :  { %1562 = vst [vmem:[%s2223_s2 + $0x40] sm:$0xff] %v1438_v14   ;;  %v1000_v20 = vadd.f32 %v1645_v60, %v999_v15  ;;  %v1133_v21 = vadd.f32 %v1132_v12, %v1070_v16 }
 0x119   :  { %1578 = vst [vmem:[%s2223_s2 + $0xc0] sm:$0xff] %v1518_v47  }
 0x11a   :  { %v1134_v24 = vadd.f32 %v1133_v21, %v1071_v19  ;;  %v1649_v25 = vpop.f32.mrb[20].mxu0  ;;  %v1001_v26 = vadd.f32 %v1646_v5, %v1000_v20  ;;  %v2053_v57 = vpop.f32.mrb[20].mxu1 }
 0x11b   :  { %v488_v28 = vpop.f32.mrb[21].mxu0  ;;  %v1075_v48 = vmul.f32 %v1649_v25, %v1649_v25  ;;  %v2055_v60 = vpop.f32.mrb[21].mxu1 }
 0x11c   :  { %v1002_v30 = vadd.f32 %v1001_v26, %v488_v28  ;;  %v1073_v31 = vmul.f32 %v488_v28, %v488_v28  ;;  %v1135_v32 = vadd.f32 %v1134_v24, %v1072_v23  ;;  %v1650_v33 = vpop.f32.mrb[22].mxu0  ;;  %v2057_v4 = vpop.f32.mrb[22].mxu1 }
 0x11d   :  { %v1453_v36 = vpack.c.bf16 %v1650_v33, %v1649_v25  ;;  %v491_v38 = vpop.f32.mrb[23].mxu0  ;;  %v1076_v52 = vmul.f32 %v1650_v33, %v1650_v33  ;;  %v1533_v8 = vpack.c.bf16 %v2057_v4, %v2053_v57  ;;  %v2061_v9 = vpop.f32.mrb[23].mxu1 }
 0x11e   :  { %v1136_v41 = vadd.f32 %v1135_v32, %v1073_v31  ;;  %v1448_v43 = vpack.c.bf16 %v491_v38, %v488_v28  ;;  %v1003_v44 = vadd.f32 %v1002_v30, %v491_v38  ;;  %v1074_v45 = vmul.f32 %v491_v38, %v491_v38 }
 0x11f   :  { %1565 = vst [vmem:[%s2223_s2 + $0x58] sm:$0xff] %v1453_v36   ;;  %1581 = vst [vmem:[%s2223_s2 + $0xd8] sm:$0xff] %v1533_v8   ;;  %v1528_v17 = vpack.c.bf16 %v2061_v9, %v2055_v60 }
 0x120   :  { %1564 = vst [vmem:[%s2223_s2 + $0x50] sm:$0xff] %v1448_v43   ;;  %v1004_v49 = vadd.f32 %v1649_v25, %v1003_v44  ;;  %v1137_v50 = vadd.f32 %v1136_v41, %v1074_v45 }
 0x121   :  { %1580 = vst [vmem:[%s2223_s2 + $0xd0] sm:$0xff] %v1528_v17  }
 0x122   :  { %v1138_v54 = vadd.f32 %v1137_v50, %v1075_v48  ;;  %v1653_v55 = vpop.f32.mrb[24].mxu0  ;;  %v1005_v56 = vadd.f32 %v1650_v33, %v1004_v49  ;;  %v2077_v28 = vpop.f32.mrb[24].mxu1 }
 0x123   :  { %v504_v59 = vpop.f32.mrb[25].mxu0  ;;  %v1079_v19 = vmul.f32 %v1653_v55, %v1653_v55  ;;  %v2079_v31 = vpop.f32.mrb[25].mxu1 }
 0x124   :  { %v1006_v61 = vadd.f32 %v1005_v56, %v504_v59  ;;  %v1077_v0 = vmul.f32 %v504_v59, %v504_v59  ;;  %v1139_v2 = vadd.f32 %v1138_v54, %v1076_v52  ;;  %v1654_v3 = vpop.f32.mrb[26].mxu0  ;;  %v2081_v39 = vpop.f32.mrb[26].mxu1 }
 0x125   :  { %v1463_v5 = vpack.c.bf16 %v1654_v3, %v1653_v55  ;;  %v507_v7 = vpop.f32.mrb[27].mxu0  ;;  %v1080_v23 = vmul.f32 %v1654_v3, %v1654_v3  ;;  %v1543_v44 = vpack.c.bf16 %v2081_v39, %v2077_v28  ;;  %v2085_v45 = vpop.f32.mrb[27].mxu1 }
 0x126   :  { %v1140_v12 = vadd.f32 %v1139_v2, %v1077_v0  ;;  %v1458_v14 = vpack.c.bf16 %v507_v7, %v504_v59  ;;  %v1007_v15 = vadd.f32 %v1006_v61, %v507_v7  ;;  %v1078_v16 = vmul.f32 %v507_v7, %v507_v7 }
 0x127   :  { %1567 = vst [vmem:[%s2223_s2 + $0x68] sm:$0xff] %v1463_v5   ;;  %1583 = vst [vmem:[%s2223_s2 + $0xe8] sm:$0xff] %v1543_v44   ;;  %v1538_v52 = vpack.c.bf16 %v2085_v45, %v2079_v31  ;;  %v1085_v2 = vmul.f32 %v1935_v53, %v1935_v53 }
 0x128   :  { %1566 = vst [vmem:[%s2223_s2 + $0x60] sm:$0xff] %v1458_v14   ;;  %v1008_v20 = vadd.f32 %v1653_v55, %v1007_v15  ;;  %v1141_v21 = vadd.f32 %v1140_v12, %v1078_v16 }
 0x129   :  { %1582 = vst [vmem:[%s2223_s2 + $0xe0] sm:$0xff] %v1538_v52   ;;  %v1094_v52 = vmul.f32 %v1989_v46, %v1989_v46 }
 0x12a   :  { %v1142_v24 = vadd.f32 %v1141_v21, %v1079_v19  ;;  %v1657_v25 = vpop.f32.mrb[28].mxu0  ;;  %v1009_v26 = vadd.f32 %v1654_v3, %v1008_v20  ;;  %v2103_v3 = vpop.f32.mrb[28].mxu1  ;;  %v1086_v19 = vmul.f32 %v1941_v62, %v1941_v62 }
 0x12b   :  { %v520_v30 = vpop.f32.mrb[29].mxu0  ;;  %v1083_v54 = vmul.f32 %v1657_v25, %v1657_v25  ;;  %v2105_v5 = vpop.f32.mrb[29].mxu1 }
 0x12c   :  { %v1010_v32 = vadd.f32 %v1009_v26, %v520_v30  ;;  %v1081_v33 = vmul.f32 %v520_v30, %v520_v30  ;;  %v1143_v36 = vadd.f32 %v1142_v24, %v1080_v23  ;;  %v1658_v38 = vpop.f32.mrb[30].mxu0  ;;  %v2108_v12 = vpop.f32.mrb[30].mxu1  ;;  %v1089_v26 = vmul.f32 %v1959_v13, %v1959_v13 }
 0x12d   :  { %v1473_v41 = vpack.c.bf16 %v1658_v38, %v1657_v25  ;;  %v523_v43 = vpop.f32.mrb[31].mxu0  ;;  %v1084_v59 = vmul.f32 %v1658_v38, %v1658_v38  ;;  %v1553_v14 = vpack.c.bf16 %v2108_v12, %v2103_v3  ;;  %v2112_v15 = vpop.f32.mrb[31].mxu1 }
 0x12e   :  { %v1144_v47 = vadd.f32 %v1143_v36, %v1081_v33  ;;  %v1468_v48 = vpack.c.bf16 %v523_v43, %v520_v30  ;;  %v1011_v49 = vadd.f32 %v1010_v32, %v523_v43  ;;  %v1082_v50 = vmul.f32 %v523_v43, %v523_v43 }
 0x12f   :  { %1569 = vst [vmem:[%s2223_s2 + $0x78] sm:$0xff] %v1473_v41   ;;  %v1548_v20 = vpack.c.bf16 %v2112_v15, %v2105_v5  ;;  %1585 = vst [vmem:[%s2223_s2 + $0xf8] sm:$0xff] %v1553_v14   ;;  %v1090_v36 = vmul.f32 %v1965_v22, %v1965_v22 }
 0x130   :  { %1568 = vst [vmem:[%s2223_s2 + $0x70] sm:$0xff] %v1468_v48   ;;  %v1012_v55 = vadd.f32 %v1657_v25, %v1011_v49  ;;  %v1145_v56 = vadd.f32 %v1144_v47, %v1082_v50 }
 0x131   :  { %1584 = vst [vmem:[%s2223_s2 + $0xf0] sm:$0xff] %v1548_v20  }
 0x132   :  { %v1146_v61 = vadd.f32 %v1145_v56, %v1083_v54  ;;  %v1013_v0 = vadd.f32 %v1658_v38, %v1012_v55  ;;  %v1091_v38 = vmul.f32 %v1957_v11, %v1957_v11 }
 0x134   :  { %v1014_v7 = vadd.f32 %v1013_v0, %v1935_v53  ;;  %v1147_v8 = vadd.f32 %v1146_v61, %v1084_v59  ;;  %v1087_v53 = vmul.f32 %v1933_v51, %v1933_v51 }
 0x136   :  { %v1148_v16 = vadd.f32 %v1147_v8, %v1085_v2  ;;  %v1015_v17 = vadd.f32 %v1014_v7, %v1941_v62  ;;  %v1088_v62 = vmul.f32 %v1937_v58, %v1937_v58  ;;  %v1098_v7 = vmul.f32 %v2013_v10, %v2013_v10 }
 0x138   :  { %v1016_v21 = vadd.f32 %v1933_v51, %v1015_v17  ;;  %v1149_v23 = vadd.f32 %v1148_v16, %v1086_v19 }
 0x13a   :  { %v1150_v24 = vadd.f32 %v1149_v23, %v1087_v53  ;;  %v1017_v25 = vadd.f32 %v1937_v58, %v1016_v21  ;;  %v1092_v58 = vmul.f32 %v1961_v18, %v1961_v18  ;;  %v1102_v21 = vmul.f32 %v2037_v40, %v2037_v40 }
 0x13c   :  { %v1018_v30 = vadd.f32 %v1017_v25, %v1959_v13  ;;  %v1151_v32 = vadd.f32 %v1150_v24, %v1088_v62  ;;  %v1093_v13 = vmul.f32 %v1983_v37, %v1983_v37 }
 0x13e   :  { %v1152_v33 = vadd.f32 %v1151_v32, %v1089_v26  ;;  %v1019_v51 = vadd.f32 %v1018_v30, %v1965_v22 }
 0x140   :  { %v1020_v41 = vadd.f32 %v1957_v11, %v1019_v51  ;;  %v1153_v43 = vadd.f32 %v1152_v33, %v1090_v36  ;;  %v1095_v11 = vmul.f32 %v1981_v35, %v1981_v35  ;;  %v1106_v33 = vmul.f32 %v2061_v9, %v2061_v9 }
 0x142   :  { %v1154_v44 = vadd.f32 %v1153_v43, %v1091_v38  ;;  %v1021_v47 = vadd.f32 %v1961_v18, %v1020_v41  ;;  %v1096_v18 = vmul.f32 %v1985_v42, %v1985_v42 }
 0x144   :  { %v1022_v48 = vadd.f32 %v1021_v47, %v1983_v37  ;;  %v1155_v49 = vadd.f32 %v1154_v44, %v1092_v58  ;;  %v1097_v37 = vmul.f32 %v2007_v1, %v2007_v1  ;;  %v1110_v47 = vmul.f32 %v2085_v45, %v2085_v45 }
 0x146   :  { %v1156_v50 = vadd.f32 %v1155_v49, %v1093_v13  ;;  %v1023_v22 = vadd.f32 %v1022_v48, %v1989_v46 }
 0x148   :  { %v1024_v54 = vadd.f32 %v1981_v35, %v1023_v22  ;;  %v1157_v55 = vadd.f32 %v1156_v50, %v1094_v52  ;;  %v1099_v35 = vmul.f32 %v2005_v63, %v2005_v63 }
 0x14a   :  { %v1158_v56 = vadd.f32 %v1157_v55, %v1095_v11  ;;  %v1025_v59 = vadd.f32 %v1985_v42, %v1024_v54  ;;  %v1100_v42 = vmul.f32 %v2009_v6, %v2009_v6  ;;  %v1114_v54 = vmul.f32 %v2112_v15, %v2112_v15 }
 0x14c   :  { %v1026_v61 = vadd.f32 %v1025_v59, %v2007_v1  ;;  %v1159_v0 = vadd.f32 %v1158_v56, %v1096_v18  ;;  %v1101_v1 = vmul.f32 %v2031_v29, %v2031_v29 }
 0x14e   :  { %v1160_v2 = vadd.f32 %v1159_v0, %v1097_v37  ;;  %v1027_v46 = vadd.f32 %v1026_v61, %v2013_v10 }
 0x150   :  { %v1028_v8 = vadd.f32 %v2005_v63, %v1027_v46  ;;  %v1161_v14 = vadd.f32 %v1160_v2, %v1098_v7  ;;  %v1103_v63 = vmul.f32 %v2029_v27, %v2029_v27 }
 0x152   :  { %v1162_v16 = vadd.f32 %v1161_v14, %v1099_v35  ;;  %v1029_v17 = vadd.f32 %v2009_v6, %v1028_v8  ;;  %v1104_v6 = vmul.f32 %v2033_v34, %v2033_v34 }
 0x154   :  { %v1030_v19 = vadd.f32 %v1029_v17, %v2031_v29  ;;  %v1163_v20 = vadd.f32 %v1162_v16, %v1100_v42  ;;  %v1105_v29 = vmul.f32 %v2055_v60, %v2055_v60 }
 0x156   :  { %v1164_v53 = vadd.f32 %v1163_v20, %v1101_v1  ;;  %v1031_v10 = vadd.f32 %v1030_v19, %v2037_v40 }
 0x158   :  { %v1032_v23 = vadd.f32 %v2029_v27, %v1031_v10  ;;  %v1165_v62 = vadd.f32 %v1164_v53, %v1102_v21  ;;  %v1107_v27 = vmul.f32 %v2053_v57, %v2053_v57 }
 0x15a   :  { %v1166_v24 = vadd.f32 %v1165_v62, %v1103_v63  ;;  %v1033_v25 = vadd.f32 %v2033_v34, %v1032_v23  ;;  %v1108_v34 = vmul.f32 %v2057_v4, %v2057_v4 }
 0x15c   :  { %v1034_v26 = vadd.f32 %v1033_v25, %v2055_v60  ;;  %v1167_v30 = vadd.f32 %v1166_v24, %v1104_v6  ;;  %v1109_v60 = vmul.f32 %v2079_v31, %v2079_v31 }
 0x15e   :  { %v1168_v32 = vadd.f32 %v1167_v30, %v1105_v29  ;;  %v1035_v40 = vadd.f32 %v1034_v26, %v2061_v9 }
 0x160   :  { %v1036_v51 = vadd.f32 %v2053_v57, %v1035_v40  ;;  %v1169_v36 = vadd.f32 %v1168_v32, %v1106_v33  ;;  %v1111_v57 = vmul.f32 %v2077_v28, %v2077_v28 }
 0x162   :  { %v1170_v38 = vadd.f32 %v1169_v36, %v1107_v27  ;;  %v1037_v41 = vadd.f32 %v2057_v4, %v1036_v51  ;;  %v1112_v4 = vmul.f32 %v2081_v39, %v2081_v39 }
 0x164   :  { %v1038_v43 = vadd.f32 %v1037_v41, %v2079_v31  ;;  %v1171_v58 = vadd.f32 %v1170_v38, %v1108_v34  ;;  %v1113_v31 = vmul.f32 %v2105_v5, %v2105_v5 }
 0x166   :  { %v1172_v44 = vadd.f32 %v1171_v58, %v1109_v60  ;;  %v1039_v9 = vadd.f32 %v1038_v43, %v2085_v45 }
 0x168   :  { %v1040_v13 = vadd.f32 %v2077_v28, %v1039_v9  ;;  %v1173_v48 = vadd.f32 %v1172_v44, %v1110_v47  ;;  %v1115_v28 = vmul.f32 %v2103_v3, %v2103_v3 }
 0x16a   :  { %v1174_v49 = vadd.f32 %v1173_v48, %v1111_v57  ;;  %v1041_v50 = vadd.f32 %v2081_v39, %v1040_v13  ;;  %v1116_v39 = vmul.f32 %v2108_v12, %v2108_v12 }
 0x16c   :  { %v1042_v22 = vadd.f32 %v1041_v50, %v2105_v5  ;;  %v1175_v52 = vadd.f32 %v1174_v49, %v1112_v4 }
 0x16e   :  { %v1176_v11 = vadd.f32 %v1175_v52, %v1113_v31  ;;  %v1043_v45 = vadd.f32 %v1042_v22, %v2112_v15 }
 0x170   :  { %v1044_v55 = vadd.f32 %v2103_v3, %v1043_v45  ;;  %v1177_v18 = vadd.f32 %v1176_v11, %v1114_v54 }
 0x172   :  { %v1045_v56 = vadd.f32 %v2108_v12, %v1044_v55  ;;  %v1178_v59 = vadd.f32 %v1177_v18, %v1115_v28 }
 0x174   :  { %v1046_v5 = vrot.slane %v1045_v56, 4  ;;  %v1179_v37 = vadd.f32 %v1178_v59, %v1116_v39 }
 0x176   :  { %v1047_v61 = vadd.f32 %v1046_v5, %v1045_v56  ;;  %v1180_v0 = vrot.slane %v1179_v37, 4 }
 0x178   :  { %v1048_v2 = vrot.slane %v1047_v61, 2  ;;  %v1181_v46 = vadd.f32 %v1180_v0, %v1179_v37 }
 0x17a   :  { %v1049_v7 = vadd.f32 %v1048_v2, %v1047_v61  ;;  %v1182_v15 = vrot.slane %v1181_v46, 2 }
 0x17c   :  { %v1050_v35 = vrot.slane %v1049_v7, 1  ;;  %v1183_v8 = vadd.f32 %v1182_v15, %v1181_v46 }
 0x17e   :  { %v1051_v14 = vadd.f32 %v1050_v35, %v1049_v7  ;;  %v1184_v42 = vrot.slane %v1183_v8, 1 }
 0x180   :  { %1052 = vst [vmem:[%s2224_s3] sm:$0x1] %v1051_v14  ;;  %v1185_v3 = vadd.f32 %v1184_v42, %v1183_v8 }
 0x182   :  { %1186 = vst [vmem:[%s2225_s4] sm:$0x1] %v1185_v3 }
 0x183   :  { %1199 = vsyncpa [#allocation3], 1 }

// kernel: discriminator_up_forward.11
= control target key start
LH: loop header
LB: loop body
LE: loop exit
PB: predicated region body
PF: predicated region fallthrough
CT: control target
= control target key end

     0   :  { %s2465_s1 = inlined_call_operand.vmem [shape: bf16[1024,128], index: 1, kind: input, shape index: {}]   ;;  %s2466_s0 = inlined_call_operand.vmem [shape: bf16[128,1024], index: 0, kind: input, shape index: {}]   ;;  %s2467_s2 = inlined_call_operand.vmem [shape: bf16[128,128], index: 2, kind: output, shape index: {0}]   ;;  %s2468_s3 = inlined_call_operand.vmem [shape: f32[1,128], index: 3, kind: output, shape index: {1}]   ;;  %s2469_s4 = inlined_call_operand.vmem [shape: f32[1,128], index: 4, kind: output, shape index: {2}]  }
   0x1   :  { %v1914_v0 = vld [vmem:[%s2465_s1 + $0x40] sm:$0xff]   ;;  %v1918_v4 = vld [vmem:[%s2465_s1 + $0x48] sm:$0xff]   ;;  %v1922_v8 = vld [vmem:[%s2465_s1 + $0x50] sm:$0xff]  }
   0x2   :  { %v1915_v1 = vld [vmem:[%s2465_s1 + $0xc0] sm:$0xff]   ;;  %1658 = vmatprep.subr.bf16.mxu0 %v1914_v0  ;;  %v1919_v5 = vld [vmem:[%s2465_s1 + $0xc8] sm:$0xff]   ;;  %v1923_v9 = vld [vmem:[%s2465_s1 + $0xd0] sm:$0xff]  }
   0x3   :  { %v1916_v2 = vld [vmem:[%s2465_s1] sm:$0xff]   ;;  %1722 = vmatprep.subr.bf16.mxu1 %v1915_v1  ;;  %v1920_v6 = vld [vmem:[%s2465_s1 + $0x8] sm:$0xff]   ;;  %v1924_v10 = vld [vmem:[%s2465_s1 + $0x10] sm:$0xff]  }
   0x4   :  { %v1917_v3 = vld [vmem:[%s2465_s1 + $0x80] sm:$0xff]   ;;  %1659 = vmatpush3.bf16.msra.mxu0 %v1916_v2  ;;  %v1921_v7 = vld [vmem:[%s2465_s1 + $0x88] sm:$0xff]   ;;  %v1925_v11 = vld [vmem:[%s2465_s1 + $0x90] sm:$0xff]  }
   0x5   :  { %1723 = vmatpush3.bf16.msra.mxu1 %v1917_v3  ;;  %1660 = vmatprep.subr.bf16.mxu0 %v1918_v4  ;;  %v1926_v12 = vld [vmem:[%s2465_s1 + $0x58] sm:$0xff]   ;;  %v1930_v16 = vld [vmem:[%s2465_s1 + $0x60] sm:$0xff]   ;;  %v1934_v20 = vld [vmem:[%s2465_s1 + $0x68] sm:$0xff]  }
   0x6   :  { %1724 = vmatprep.subr.bf16.mxu1 %v1919_v5  ;;  %v1927_v13 = vld [vmem:[%s2465_s1 + $0xd8] sm:$0xff]   ;;  %v1931_v17 = vld [vmem:[%s2465_s1 + $0xe0] sm:$0xff]   ;;  %v1935_v21 = vld [vmem:[%s2465_s1 + $0xe8] sm:$0xff]  }
   0x7   :  { %v1928_v14 = vld [vmem:[%s2465_s1 + $0x18] sm:$0xff]   ;;  %v1932_v18 = vld [vmem:[%s2465_s1 + $0x20] sm:$0xff]   ;;  %v1936_v22 = vld [vmem:[%s2465_s1 + $0x28] sm:$0xff]  }
   0x8   :  { %1661 = vmatpush3.bf16.msra.mxu0 %v1920_v6  ;;  %v1929_v15 = vld [vmem:[%s2465_s1 + $0x98] sm:$0xff]   ;;  %v1933_v19 = vld [vmem:[%s2465_s1 + $0xa0] sm:$0xff]   ;;  %v1937_v23 = vld [vmem:[%s2465_s1 + $0xa8] sm:$0xff]  }
   0x9   :  { %1725 = vmatpush3.bf16.msra.mxu1 %v1921_v7  ;;  %1662 = vmatprep.subr.bf16.mxu0 %v1922_v8  ;;  %v1938_v24 = vld [vmem:[%s2465_s1 + $0x70] sm:$0xff]   ;;  %v1942_v28 = vld [vmem:[%s2465_s1 + $0x78] sm:$0xff]   ;;  %v15_v32 = vld [vmem:[%s2466_s0] sm:$0xff] }
   0xa   :  { %1726 = vmatprep.subr.bf16.mxu1 %v1923_v9  ;;  %v1939_v25 = vld [vmem:[%s2465_s1 + $0xf0] sm:$0xff]   ;;  %v1943_v29 = vld [vmem:[%s2465_s1 + $0xf8] sm:$0xff]   ;;  %v19_v33 = vld [vmem:[%s2466_s0 + $0x20] sm:$0xff] }
   0xb   :  { %v1940_v26 = vld [vmem:[%s2465_s1 + $0x30] sm:$0xff]   ;;  %v1944_v30 = vld [vmem:[%s2465_s1 + $0x38] sm:$0xff]   ;;  %v16_v34 = vld [vmem:[%s2466_s0 + $0x8] sm:$0xff]  ;;  %v1451_v35 = vcombine.low %v15_v32, %v19_v33  ;;  %v1452_v36 = vcombine.high %v15_v32, %v19_v33 }
   0xc   :  { %1663 = vmatpush3.bf16.msra.mxu0 %v1924_v10  ;;  %v1941_v27 = vld [vmem:[%s2465_s1 + $0xb0] sm:$0xff]   ;;  %v1945_v31 = vld [vmem:[%s2465_s1 + $0xb8] sm:$0xff]   ;;  %v20_v37 = vld [vmem:[%s2466_s0 + $0x28] sm:$0xff] }
   0xd   :  { %1727 = vmatpush3.bf16.msra.mxu1 %v1925_v11  ;;  %1664 = vmatprep.subr.bf16.mxu0 %v1926_v12  ;;  %v1453_v38 = vcombine.low %v16_v34, %v20_v37  ;;  %v1454_v39 = vcombine.high %v16_v34, %v20_v37  ;;  %v1946_v40 = vld [vmem:[%s2465_s1 + $0x140] sm:$0xff]   ;;  %v24_v47 = vld [vmem:[%s2466_s0 + $0x48] sm:$0xff]  ;;  %v1954_v62 = vld [vmem:[%s2465_s1 + $0x150] sm:$0xff]  }
   0xe   :  { %1728 = vmatprep.subr.bf16.mxu1 %v1927_v13  ;;  %943 = vmatprep.mubr.bf16.mxu0 %v1452_v36  ;;  %v1947_v41 = vld [vmem:[%s2465_s1 + $0x100] sm:$0xff]   ;;  %v28_v48 = vld [vmem:[%s2466_s0 + $0x68] sm:$0xff]  ;;  %v1955_v63 = vld [vmem:[%s2465_s1 + $0x110] sm:$0xff]  }
   0xf   :  { %1040 = vmatprep.mubr.bf16.mxu1 %v1454_v39  ;;  %v1948_v42 = vld [vmem:[%s2465_s1 + $0x1c0] sm:$0xff]   ;;  %v1462_v49 = vcombine.high %v24_v47, %v28_v48  ;;  %v1950_v50 = vld [vmem:[%s2465_s1 + $0x148] sm:$0xff]   ;;  %v1461_v53 = vcombine.low %v24_v47, %v28_v48  ;;  %v1956_v0 = vld [vmem:[%s2465_s1 + $0x1d0] sm:$0xff]  }
  0x10   :  { %1665 = vmatpush3.bf16.msra.mxu0 %v1928_v14  ;;  %v1949_v43 = vld [vmem:[%s2465_s1 + $0x180] sm:$0xff]   ;;  %v1951_v52 = vld [vmem:[%s2465_s1 + $0x108] sm:$0xff]   ;;  %v1957_v1 = vld [vmem:[%s2465_s1 + $0x190] sm:$0xff]  }
  0x11   :  { %1729 = vmatpush3.bf16.msra.mxu1 %v1929_v15  ;;  %1666 = vmatprep.subr.bf16.mxu0 %v1930_v16  ;;  %v23_v44 = vld [vmem:[%s2466_s0 + $0x40] sm:$0xff]  ;;  %v1952_v54 = vld [vmem:[%s2465_s1 + $0x1c8] sm:$0xff]   ;;  %v1958_v10 = vld [vmem:[%s2465_s1 + $0x158] sm:$0xff]  }
  0x12   :  { %1730 = vmatprep.subr.bf16.mxu1 %v1931_v17  ;;  %v27_v45 = vld [vmem:[%s2466_s0 + $0x60] sm:$0xff]  ;;  %v1953_v55 = vld [vmem:[%s2465_s1 + $0x188] sm:$0xff]   ;;  %v1959_v11 = vld [vmem:[%s2465_s1 + $0x118] sm:$0xff]  }
  0x13   :  { %v1460_v46 = vcombine.high %v23_v44, %v27_v45  ;;  %v1459_v51 = vcombine.low %v23_v44, %v27_v45  ;;  %v31_v56 = vld [vmem:[%s2466_s0 + $0x80] sm:$0xff]  ;;  %v32_v58 = vld [vmem:[%s2466_s0 + $0x88] sm:$0xff]  ;;  %v1960_v12 = vld [vmem:[%s2465_s1 + $0x1d8] sm:$0xff]  }
  0x14   :  { %1667 = vmatpush3.bf16.msra.mxu0 %v1932_v18  ;;  %v35_v57 = vld [vmem:[%s2466_s0 + $0xa0] sm:$0xff]  ;;  %v36_v59 = vld [vmem:[%s2466_s0 + $0xa8] sm:$0xff]  ;;  %v1961_v13 = vld [vmem:[%s2465_s1 + $0x198] sm:$0xff]  }
  0x15   :  { %1731 = vmatpush3.bf16.msra.mxu1 %v1933_v19  ;;  %1668 = vmatprep.subr.bf16.mxu0 %v1934_v20  ;;  %v1468_v60 = vcombine.high %v31_v56, %v35_v57  ;;  %v1470_v61 = vcombine.high %v32_v58, %v36_v59  ;;  %v1467_v2 = vcombine.low %v31_v56, %v35_v57  ;;  %v39_v3 = vld [vmem:[%s2466_s0 + $0xc0] sm:$0xff]  ;;  %v40_v5 = vld [vmem:[%s2466_s0 + $0xc8] sm:$0xff]  ;;  %v1971_v39 = vld [vmem:[%s2465_s1 + $0x130] sm:$0xff]  }
  0x16   :  { %1732 = vmatprep.subr.bf16.mxu1 %v1935_v21  ;;  %v43_v4 = vld [vmem:[%s2466_s0 + $0xe0] sm:$0xff]  ;;  %v1469_v6 = vcombine.low %v32_v58, %v36_v59  ;;  %v44_v8 = vld [vmem:[%s2466_s0 + $0xe8] sm:$0xff]  ;;  %v1975_v48 = vld [vmem:[%s2465_s1 + $0x138] sm:$0xff]  }
  0x17   :  { %v1476_v7 = vcombine.high %v39_v3, %v43_v4  ;;  %v1478_v9 = vcombine.high %v40_v5, %v44_v8  ;;  %v47_v14 = vld [vmem:[%s2466_s0 + $0x100] sm:$0xff]  ;;  %v48_v16 = vld [vmem:[%s2466_s0 + $0x108] sm:$0xff]  ;;  %v1475_v19 = vcombine.low %v39_v3, %v43_v4  ;;  %v1477_v21 = vcombine.low %v40_v5, %v44_v8  ;;  %v26_v8 = vld [vmem:[%s2466_s0 + $0x58] sm:$0xff] }
  0x18   :  { %1669 = vmatpush3.bf16.msra.mxu0 %v1936_v22  ;;  %v51_v15 = vld [vmem:[%s2466_s0 + $0x120] sm:$0xff]  ;;  %v52_v17 = vld [vmem:[%s2466_s0 + $0x128] sm:$0xff] }
  0x19   :  { %1733 = vmatpush3.bf16.msra.mxu1 %v1937_v23  ;;  %1670 = vmatprep.subr.bf16.mxu0 %v1938_v24  ;;  %v1962_v18 = vld [vmem:[%s2465_s1 + $0x160] sm:$0xff]   ;;  %v1484_v22 = vcombine.high %v47_v14, %v51_v15  ;;  %v1486_v24 = vcombine.high %v48_v16, %v52_v17  ;;  %v1968_v32 = vld [vmem:[%s2465_s1 + $0x1e8] sm:$0xff]   ;;  %v1483_v34 = vcombine.low %v47_v14, %v51_v15  ;;  %v33_v14 = vld [vmem:[%s2466_s0 + $0x90] sm:$0xff] }
  0x1a   :  { %1734 = vmatprep.subr.bf16.mxu1 %v1939_v25  ;;  %v1963_v20 = vld [vmem:[%s2465_s1 + $0x120] sm:$0xff]   ;;  %v1969_v33 = vld [vmem:[%s2465_s1 + $0x1a8] sm:$0xff]   ;;  %v37_v15 = vld [vmem:[%s2466_s0 + $0xb0] sm:$0xff] }
  0x1b   :  { %v1964_v23 = vld [vmem:[%s2465_s1 + $0x1e0] sm:$0xff]   ;;  %v64_v44 = vld [vmem:[%s2466_s0 + $0x188] sm:$0xff] }
  0x1c   :  { %1671 = vmatpush3.bf16.msra.mxu0 %v1940_v26  ;;  %v1965_v25 = vld [vmem:[%s2465_s1 + $0x1a0] sm:$0xff]   ;;  %v68_v45 = vld [vmem:[%s2466_s0 + $0x1a8] sm:$0xff] }
  0x1d   :  { %1735 = vmatpush3.bf16.msra.mxu1 %v1941_v27  ;;  %1672 = vmatprep.subr.bf16.mxu0 %v1942_v28  ;;  %v55_v26 = vld [vmem:[%s2466_s0 + $0x140] sm:$0xff]  ;;  %v1966_v28 = vld [vmem:[%s2465_s1 + $0x168] sm:$0xff]   ;;  %v1501_v59 = vcombine.low %v64_v44, %v68_v45 }
  0x1e   :  { %1736 = vmatprep.subr.bf16.mxu1 %v1943_v29  ;;  %v59_v27 = vld [vmem:[%s2466_s0 + $0x160] sm:$0xff]  ;;  %v56_v29 = vld [vmem:[%s2466_s0 + $0x148] sm:$0xff] }
  0x1f   :  { %v1492_v36 = vcombine.high %v55_v26, %v59_v27  ;;  %v1491_v47 = vcombine.low %v55_v26, %v59_v27  ;;  %v72_v56 = vld [vmem:[%s2466_s0 + $0x1c8] sm:$0xff]  ;;  %v1471_v26 = vcombine.low %v33_v14, %v37_v15 }
  0x20   :  { %1673 = vmatpush3.bf16.msra.mxu0 %v1944_v30  ;;  %v60_v30 = vld [vmem:[%s2466_s0 + $0x168] sm:$0xff] }
  0x21   :  { %1737 = vmatpush3.bf16.msra.mxu1 %v1945_v31  ;;  %1786 = vmatprep.subr.bf16.mxu0 %v1946_v40  ;;  %v1967_v31 = vld [vmem:[%s2465_s1 + $0x128] sm:$0xff]   ;;  %v1494_v37 = vcombine.high %v56_v29, %v60_v30  ;;  %v1972_v40 = vld [vmem:[%s2465_s1 + $0x1f0] sm:$0xff]  }
  0x22   :  { %1850 = vmatprep.subr.bf16.mxu1 %v1948_v42  ;;  %v67_v42 = vld [vmem:[%s2466_s0 + $0x1a0] sm:$0xff]  ;;  %v76_v57 = vld [vmem:[%s2466_s0 + $0x1e8] sm:$0xff] }
  0x23   :  { %944 = vmatmul.mubr.bf16.vlgmr.msra.gmra.mrb[0].mxu0 %v1451_v35  ;;  %v1485_v35 = vcombine.low %v48_v16, %v52_v17  ;;  %v1509_v3 = vcombine.low %v72_v56, %v76_v57  ;;  %v34_v16 = vld [vmem:[%s2466_s0 + $0x98] sm:$0xff] }
  0x24   :  { %1041 = vmatmul.mubr.bf16.vlgmr.msra.gmra.mrb[0].mxu1 %v1453_v38  ;;  %1787 = vmatpush3.bf16.msra.mxu0 %v1947_v41  ;;  %v1970_v38 = vld [vmem:[%s2465_s1 + $0x170] sm:$0xff]   ;;  %v63_v41 = vld [vmem:[%s2466_s0 + $0x180] sm:$0xff]  ;;  %v38_v17 = vld [vmem:[%s2466_s0 + $0xb8] sm:$0xff] }
  0x25   :  { %1851 = vmatpush3.bf16.msra.mxu1 %v1949_v43  ;;  %951 = vmatprep.mubr.bf16.mxu0 %v1460_v46  ;;  %v1973_v43 = vld [vmem:[%s2465_s1 + $0x1b0] sm:$0xff]   ;;  %v1974_v46 = vld [vmem:[%s2465_s1 + $0x178] sm:$0xff]   ;;  %v1499_v58 = vcombine.low %v63_v41, %v67_v42  ;;  %v1473_v27 = vcombine.low %v34_v16, %v38_v17 }
  0x26   :  { %1048 = vmatprep.mubr.bf16.mxu1 %v1462_v49  ;;  %1788 = vmatprep.subr.bf16.mxu0 %v1950_v50  ;;  %v1493_v49 = vcombine.low %v56_v29, %v60_v30  ;;  %v1500_v50 = vcombine.high %v63_v41, %v67_v42  ;;  %v49_v30 = vld [vmem:[%s2466_s0 + $0x110] sm:$0xff]  ;;  %v62_v41 = vld [vmem:[%s2466_s0 + $0x178] sm:$0xff] }
  0x27   :  { %1852 = vmatprep.subr.bf16.mxu1 %v1952_v54  ;;  %v71_v54 = vld [vmem:[%s2466_s0 + $0x1c0] sm:$0xff] }
  0x28   :  { %1789 = vmatpush3.bf16.msra.mxu0 %v1951_v52  ;;  %v1502_v52 = vcombine.high %v64_v44, %v68_v45 }
  0x29   :  { %1853 = vmatpush3.bf16.msra.mxu1 %v1953_v55  ;;  %1790 = vmatprep.subr.bf16.mxu0 %v1954_v62  ;;  %v75_v55 = vld [vmem:[%s2466_s0 + $0x1e0] sm:$0xff]  ;;  %v17_v62 = vld [vmem:[%s2466_s0 + $0x10] sm:$0xff] }
  0x2a   :  { %1854 = vmatprep.subr.bf16.mxu1 %v1956_v0  ;;  %v18_v0 = vld [vmem:[%s2466_s0 + $0x18] sm:$0xff] }
  0x2b   :  { %952 = vmatmul.mubr.bf16.gmra.mrb[4].mxu0 %v1459_v51  ;;  %v1976_v51 = vld [vmem:[%s2465_s1 + $0x1f8] sm:$0xff]  }
  0x2c   :  { %1049 = vmatmul.mubr.bf16.gmra.mrb[4].mxu1 %v1461_v53  ;;  %959 = vmatprep.mubr.bf16.mxu0 %v1468_v60  ;;  %v1977_v53 = vld [vmem:[%s2465_s1 + $0x1b8] sm:$0xff]   ;;  %v1508_v60 = vcombine.high %v71_v54, %v75_v55 }
  0x2d   :  { %1056 = vmatprep.mubr.bf16.mxu1 %v1470_v61  ;;  %1791 = vmatpush3.bf16.msra.mxu0 %v1955_v63  ;;  %v1510_v61 = vcombine.high %v72_v56, %v76_v57  ;;  %v21_v63 = vld [vmem:[%s2466_s0 + $0x30] sm:$0xff]  ;;  %v74_v56 = vld [vmem:[%s2466_s0 + $0x1d8] sm:$0xff] }
  0x2e   :  { %1855 = vmatpush3.bf16.msra.mxu1 %v1957_v1  ;;  %1792 = vmatprep.subr.bf16.mxu0 %v1958_v10  ;;  %v22_v1 = vld [vmem:[%s2466_s0 + $0x38] sm:$0xff]  ;;  %v1456_v4 = vcombine.high %v17_v62, %v21_v63  ;;  %v1455_v10 = vcombine.low %v17_v62, %v21_v63 }
  0x2f   :  { %1856 = vmatprep.subr.bf16.mxu1 %v1960_v12  ;;  %v1458_v5 = vcombine.high %v18_v0, %v22_v1  ;;  %v78_v57 = vld [vmem:[%s2466_s0 + $0x1f8] sm:$0xff] }
  0x30   :  { %v1513_v63 = vcombine.low %v74_v56, %v78_v57 }
  0x31   :  { %1793 = vmatpush3.bf16.msra.mxu0 %v1959_v11  ;;  %v1457_v11 = vcombine.low %v18_v0, %v22_v1 }
  0x32   :  { %1857 = vmatpush3.bf16.msra.mxu1 %v1961_v13  ;;  %1794 = vmatprep.subr.bf16.mxu0 %v1962_v18 }
  0x33   :  { %960 = vmatmul.mubr.bf16.gmra.mrb[8].mxu0 %v1467_v2  ;;  %1858 = vmatprep.subr.bf16.mxu1 %v1964_v23  ;;  %v1507_v2 = vcombine.low %v71_v54, %v75_v55  ;;  %v45_v23 = vld [vmem:[%s2466_s0 + $0xf0] sm:$0xff] }
  0x34   :  { %1057 = vmatmul.mubr.bf16.gmra.mrb[8].mxu1 %v1469_v6  ;;  %967 = vmatprep.mubr.bf16.mxu0 %v1476_v7  ;;  %v25_v6 = vld [vmem:[%s2466_s0 + $0x50] sm:$0xff] }
  0x35   :  { %1064 = vmatprep.mubr.bf16.mxu1 %v1478_v9  ;;  %1795 = vmatpush3.bf16.msra.mxu0 %v1963_v20  ;;  %v29_v7 = vld [vmem:[%s2466_s0 + $0x70] sm:$0xff]  ;;  %v30_v9 = vld [vmem:[%s2466_s0 + $0x78] sm:$0xff]  ;;  %v1472_v20 = vcombine.high %v33_v14, %v37_v15 }
  0x36   :  { %1859 = vmatpush3.bf16.msra.mxu1 %v1965_v25  ;;  %1796 = vmatprep.subr.bf16.mxu0 %v1966_v28  ;;  %v1464_v12 = vcombine.high %v25_v6, %v29_v7  ;;  %v1466_v13 = vcombine.high %v26_v8, %v30_v9  ;;  %v1463_v18 = vcombine.low %v25_v6, %v29_v7  ;;  %v46_v25 = vld [vmem:[%s2466_s0 + $0xf8] sm:$0xff]  ;;  %v73_v54 = vld [vmem:[%s2466_s0 + $0x1d0] sm:$0xff] }
  0x37   :  { %1860 = vmatprep.subr.bf16.mxu1 %v1968_v32  ;;  %v50_v32 = vld [vmem:[%s2466_s0 + $0x118] sm:$0xff]  ;;  %v77_v55 = vld [vmem:[%s2466_s0 + $0x1f0] sm:$0xff] }
  0x38   :  { %v1511_v62 = vcombine.low %v73_v54, %v77_v55 }
  0x39   :  { %1797 = vmatpush3.bf16.msra.mxu0 %v1967_v31  ;;  %v53_v31 = vld [vmem:[%s2466_s0 + $0x130] sm:$0xff] }
  0x3a   :  { %1861 = vmatpush3.bf16.msra.mxu1 %v1969_v33  ;;  %1798 = vmatprep.subr.bf16.mxu0 %v1970_v38  ;;  %v54_v33 = vld [vmem:[%s2466_s0 + $0x138] sm:$0xff]  ;;  %v57_v38 = vld [vmem:[%s2466_s0 + $0x150] sm:$0xff]  ;;  %v1487_v42 = vcombine.low %v49_v30, %v53_v31 }
  0x3b   :  { %968 = vmatmul.mubr.bf16.gmra.mrb[12].mxu0 %v1475_v19  ;;  %1862 = vmatprep.subr.bf16.mxu1 %v1972_v40  ;;  %v1465_v19 = vcombine.low %v26_v8, %v30_v9  ;;  %v58_v40 = vld [vmem:[%s2466_s0 + $0x158] sm:$0xff] }
  0x3c   :  { %1065 = vmatmul.mubr.bf16.gmra.mrb[12].mxu1 %v1477_v21  ;;  %975 = vmatprep.mubr.bf16.mxu0 %v1484_v22  ;;  %v1474_v21 = vcombine.high %v34_v16, %v38_v17  ;;  %v41_v22 = vld [vmem:[%s2466_s0 + $0xd0] sm:$0xff]  ;;  %v1498_v45 = vcombine.high %v58_v40, %v62_v41 }
  0x3d   :  { %1072 = vmatprep.mubr.bf16.mxu1 %v1486_v24  ;;  %1799 = vmatpush3.bf16.msra.mxu0 %v1971_v39  ;;  %v42_v24 = vld [vmem:[%s2466_s0 + $0xd8] sm:$0xff]  ;;  %v1480_v28 = vcombine.high %v41_v22, %v45_v23  ;;  %v61_v39 = vld [vmem:[%s2466_s0 + $0x170] sm:$0xff] }
  0x3e   :  { %1863 = vmatpush3.bf16.msra.mxu1 %v1973_v43  ;;  %1800 = vmatprep.subr.bf16.mxu0 %v1974_v46  ;;  %v1482_v29 = vcombine.high %v42_v24, %v46_v25  ;;  %v1489_v43 = vcombine.low %v50_v32, %v54_v33  ;;  %v1496_v44 = vcombine.high %v57_v38, %v61_v39  ;;  %v65_v46 = vld [vmem:[%s2466_s0 + $0x190] sm:$0xff] }
  0x3f   :  { %1864 = vmatprep.subr.bf16.mxu1 %v1976_v51  ;;  %v1497_v51 = vcombine.low %v58_v40, %v62_v41 }
  0x41   :  { %1801 = vmatpush3.bf16.msra.mxu0 %v1975_v48  ;;  %v66_v48 = vld [vmem:[%s2466_s0 + $0x198] sm:$0xff] }
  0x42   :  { %1865 = vmatpush3.bf16.msra.mxu1 %v1977_v53 }
  0x43   :  { %976 = vmatmul.mubr.bf16.gmra.mrb[16].mxu0 %v1483_v34  ;;  %v1479_v34 = vcombine.low %v41_v22, %v45_v23 }
  0x44   :  { %1073 = vmatmul.mubr.bf16.gmra.mrb[16].mxu1 %v1485_v35  ;;  %983 = vmatprep.mubr.bf16.mxu0 %v1492_v36  ;;  %v1481_v35 = vcombine.low %v42_v24, %v46_v25  ;;  %v1488_v36 = vcombine.high %v49_v30, %v53_v31 }
  0x45   :  { %1080 = vmatprep.mubr.bf16.mxu1 %v1494_v37  ;;  %v1490_v37 = vcombine.high %v50_v32, %v54_v33 }
  0x4b   :  { %984 = vmatmul.mubr.bf16.gmra.mrb[20].mxu0 %v1491_v47  ;;  %v69_v47 = vld [vmem:[%s2466_s0 + $0x1b0] sm:$0xff] }
  0x4c   :  { %1081 = vmatmul.mubr.bf16.gmra.mrb[20].mxu1 %v1493_v49  ;;  %991 = vmatprep.mubr.bf16.mxu0 %v1500_v50  ;;  %v70_v49 = vld [vmem:[%s2466_s0 + $0x1b8] sm:$0xff]  ;;  %v1495_v50 = vcombine.low %v57_v38, %v61_v39 }
  0x4d   :  { %1088 = vmatprep.mubr.bf16.mxu1 %v1502_v52  ;;  %v1504_v52 = vcombine.high %v65_v46, %v69_v47  ;;  %v1506_v53 = vcombine.high %v66_v48, %v70_v49 }
  0x53   :  { %992 = vmatmul.mubr.bf16.gmra.mrb[24].mxu0 %v1499_v58  ;;  %v1503_v58 = vcombine.low %v65_v46, %v69_v47 }
  0x54   :  { %1089 = vmatmul.mubr.bf16.gmra.mrb[24].mxu1 %v1501_v59  ;;  %999 = vmatprep.mubr.bf16.mxu0 %v1508_v60  ;;  %v1505_v59 = vcombine.low %v66_v48, %v70_v49  ;;  %v1512_v60 = vcombine.high %v73_v54, %v77_v55 }
  0x55   :  { %1096 = vmatprep.mubr.bf16.mxu1 %v1510_v61  ;;  %v1514_v61 = vcombine.high %v74_v56, %v78_v57 }
  0x5b   :  { %1000 = vmatmul.mubr.bf16.gmra.mrb[28].mxu0 %v1507_v2 }
  0x5c   :  { %1097 = vmatmul.mubr.bf16.gmra.mrb[28].mxu1 %v1509_v3  ;;  %1137 = vmatprep.mubr.bf16.mxu0 %v1456_v4 }
  0x5d   :  { %1234 = vmatprep.mubr.bf16.mxu1 %v1458_v5 }
  0x63   :  { %1138 = vmatmul.mubr.bf16.vlgmr.msra.gmra.mrb[32].mxu0 %v1455_v10 }
  0x64   :  { %1235 = vmatmul.mubr.bf16.vlgmr.msra.gmra.mrb[32].mxu1 %v1457_v11  ;;  %1145 = vmatprep.mubr.bf16.mxu0 %v1464_v12 }
  0x65   :  { %1242 = vmatprep.mubr.bf16.mxu1 %v1466_v13 }
  0x6b   :  { %1146 = vmatmul.mubr.bf16.gmra.mrb[36].mxu0 %v1463_v18 }
  0x6c   :  { %1243 = vmatmul.mubr.bf16.gmra.mrb[36].mxu1 %v1465_v19  ;;  %1153 = vmatprep.mubr.bf16.mxu0 %v1472_v20 }
  0x6d   :  { %1250 = vmatprep.mubr.bf16.mxu1 %v1474_v21 }
  0x73   :  { %1154 = vmatmul.mubr.bf16.gmra.mrb[40].mxu0 %v1471_v26 }
  0x74   :  { %1251 = vmatmul.mubr.bf16.gmra.mrb[40].mxu1 %v1473_v27  ;;  %1161 = vmatprep.mubr.bf16.mxu0 %v1480_v28 }
  0x75   :  { %1258 = vmatprep.mubr.bf16.mxu1 %v1482_v29 }
  0x7b   :  { %1162 = vmatmul.mubr.bf16.gmra.mrb[44].mxu0 %v1479_v34 }
  0x7c   :  { %1259 = vmatmul.mubr.bf16.gmra.mrb[44].mxu1 %v1481_v35  ;;  %1169 = vmatprep.mubr.bf16.mxu0 %v1488_v36 }
  0x7d   :  { %1266 = vmatprep.mubr.bf16.mxu1 %v1490_v37 }
  0x83   :  { %1170 = vmatmul.mubr.bf16.gmra.mrb[48].mxu0 %v1487_v42 }
  0x84   :  { %1267 = vmatmul.mubr.bf16.gmra.mrb[48].mxu1 %v1489_v43  ;;  %1177 = vmatprep.mubr.bf16.mxu0 %v1496_v44 }
  0x85   :  { %1274 = vmatprep.mubr.bf16.mxu1 %v1498_v45 }
  0x8b   :  { %1178 = vmatmul.mubr.bf16.gmra.mrb[52].mxu0 %v1495_v50 }
  0x8c   :  { %1275 = vmatmul.mubr.bf16.gmra.mrb[52].mxu1 %v1497_v51  ;;  %1185 = vmatprep.mubr.bf16.mxu0 %v1504_v52 }
  0x8d   :  { %1282 = vmatprep.mubr.bf16.mxu1 %v1506_v53 }
  0x93   :  { %1186 = vmatmul.mubr.bf16.gmra.mrb[56].mxu0 %v1503_v58 }
  0x94   :  { %1283 = vmatmul.mubr.bf16.gmra.mrb[56].mxu1 %v1505_v59  ;;  %1193 = vmatprep.mubr.bf16.mxu0 %v1512_v60 }
  0x95   :  { %1290 = vmatprep.mubr.bf16.mxu1 %v1514_v61 }
  0x9b   :  { %1194 = vmatmul.mubr.bf16.gmra.mrb[60].mxu0 %v1511_v62 }
  0x9c   :  { %1291 = vmatmul.mubr.bf16.gmra.mrb[60].mxu1 %v1513_v63 }
  0xf6   :  { %v1674_v0 = vpop.f32.mrb[0].mxu0 }
  0xf7   :  { %v1738_v1 = vpop.f32.mrb[0].mxu1  ;;  %v1675_v2 = vpop.f32.mrb[1].mxu0 }
  0xf8   :  { %v1676_v3 = vadd.f32 %v1675_v2, %v1674_v0  ;;  %v1739_v4 = vpop.f32.mrb[1].mxu1  ;;  %v1677_v5 = vpop.f32.mrb[2].mxu0 }
  0xf9   :  { %v1740_v6 = vadd.f32 %v1739_v4, %v1738_v1  ;;  %v1741_v7 = vpop.f32.mrb[2].mxu1  ;;  %v1678_v8 = vpop.f32.mrb[3].mxu0 }
  0xfa   :  { %v1679_v9 = vadd.f32 %v1678_v8, %v1677_v5  ;;  %v1742_v10 = vpop.f32.mrb[3].mxu1 }
  0xfb   :  { %v2387_v11 = vadd.f32 %v1740_v6, %v1676_v3  ;;  %v1743_v12 = vadd.f32 %v1742_v10, %v1741_v7 }
  0xfd   :  { %v2389_v13 = vadd.f32 %v1743_v12, %v1679_v9 }
  0xfe   :  { %v1680_v14 = vpop.f32.mrb[4].mxu0 }
  0xff   :  { %v1744_v15 = vpop.f32.mrb[4].mxu1  ;;  %v1681_v16 = vpop.f32.mrb[5].mxu0 }
 0x100   :  { %v1682_v17 = vadd.f32 %v1681_v16, %v1680_v14  ;;  %v1745_v18 = vpop.f32.mrb[5].mxu1  ;;  %v1683_v19 = vpop.f32.mrb[6].mxu0 }
 0x101   :  { %v1746_v20 = vadd.f32 %v1745_v18, %v1744_v15  ;;  %v1747_v21 = vpop.f32.mrb[6].mxu1  ;;  %v1684_v22 = vpop.f32.mrb[7].mxu0 }
 0x102   :  { %v1685_v23 = vadd.f32 %v1684_v22, %v1683_v19  ;;  %v1748_v24 = vpop.f32.mrb[7].mxu1 }
 0x103   :  { %v2391_v25 = vadd.f32 %v1746_v20, %v1682_v17  ;;  %v1749_v26 = vadd.f32 %v1748_v24, %v1747_v21 }
 0x105   :  { %v2393_v27 = vadd.f32 %v1749_v26, %v1685_v23 }
 0x106   :  { %v1686_v28 = vpop.f32.mrb[8].mxu0 }
 0x107   :  { %v1750_v29 = vpop.f32.mrb[8].mxu1  ;;  %v1687_v30 = vpop.f32.mrb[9].mxu0 }
 0x108   :  { %v1688_v31 = vadd.f32 %v1687_v30, %v1686_v28  ;;  %v1751_v32 = vpop.f32.mrb[9].mxu1  ;;  %v1689_v33 = vpop.f32.mrb[10].mxu0 }
 0x109   :  { %v1752_v34 = vadd.f32 %v1751_v32, %v1750_v29  ;;  %v1753_v35 = vpop.f32.mrb[10].mxu1  ;;  %v1690_v36 = vpop.f32.mrb[11].mxu0 }
 0x10a   :  { %v1691_v37 = vadd.f32 %v1690_v36, %v1689_v33  ;;  %v1754_v38 = vpop.f32.mrb[11].mxu1 }
 0x10b   :  { %v2395_v39 = vadd.f32 %v1752_v34, %v1688_v31  ;;  %v1755_v40 = vadd.f32 %v1754_v38, %v1753_v35 }
 0x10d   :  { %v2397_v41 = vadd.f32 %v1755_v40, %v1691_v37 }
 0x10e   :  { %v1692_v42 = vpop.f32.mrb[12].mxu0 }
 0x10f   :  { %v1756_v43 = vpop.f32.mrb[12].mxu1  ;;  %v1693_v44 = vpop.f32.mrb[13].mxu0 }
 0x110   :  { %v1694_v45 = vadd.f32 %v1693_v44, %v1692_v42  ;;  %v1757_v46 = vpop.f32.mrb[13].mxu1  ;;  %v1695_v47 = vpop.f32.mrb[14].mxu0 }
 0x111   :  { %v1758_v48 = vadd.f32 %v1757_v46, %v1756_v43  ;;  %v1759_v49 = vpop.f32.mrb[14].mxu1  ;;  %v1696_v50 = vpop.f32.mrb[15].mxu0 }
 0x112   :  { %v1697_v51 = vadd.f32 %v1696_v50, %v1695_v47  ;;  %v1760_v52 = vpop.f32.mrb[15].mxu1 }
 0x113   :  { %v2399_v53 = vadd.f32 %v1758_v48, %v1694_v45  ;;  %v1761_v54 = vadd.f32 %v1760_v52, %v1759_v49 }
 0x115   :  { %v2401_v55 = vadd.f32 %v1761_v54, %v1697_v51 }
 0x116   :  { %v1698_v56 = vpop.f32.mrb[16].mxu0 }
 0x117   :  { %v1762_v57 = vpop.f32.mrb[16].mxu1  ;;  %v1699_v58 = vpop.f32.mrb[17].mxu0 }
 0x118   :  { %v1700_v59 = vadd.f32 %v1699_v58, %v1698_v56  ;;  %v1763_v60 = vpop.f32.mrb[17].mxu1  ;;  %v1701_v61 = vpop.f32.mrb[18].mxu0 }
 0x119   :  { %v1764_v62 = vadd.f32 %v1763_v60, %v1762_v57  ;;  %v1765_v63 = vpop.f32.mrb[18].mxu1  ;;  %v1702_v0 = vpop.f32.mrb[19].mxu0 }
 0x11a   :  { %v1703_v1 = vadd.f32 %v1702_v0, %v1701_v61  ;;  %v1766_v2 = vpop.f32.mrb[19].mxu1 }
 0x11b   :  { %v2403_v3 = vadd.f32 %v1764_v62, %v1700_v59  ;;  %v1767_v4 = vadd.f32 %v1766_v2, %v1765_v63 }
 0x11d   :  { %v2405_v5 = vadd.f32 %v1767_v4, %v1703_v1 }
 0x11e   :  { %v1704_v6 = vpop.f32.mrb[20].mxu0 }
 0x11f   :  { %v1768_v7 = vpop.f32.mrb[20].mxu1  ;;  %v1705_v8 = vpop.f32.mrb[21].mxu0 }
 0x120   :  { %v1706_v9 = vadd.f32 %v1705_v8, %v1704_v6  ;;  %v1769_v10 = vpop.f32.mrb[21].mxu1  ;;  %v1707_v12 = vpop.f32.mrb[22].mxu0 }
 0x121   :  { %v1770_v14 = vadd.f32 %v1769_v10, %v1768_v7  ;;  %v1771_v15 = vpop.f32.mrb[22].mxu1  ;;  %v1708_v16 = vpop.f32.mrb[23].mxu0 }
 0x122   :  { %v1709_v17 = vadd.f32 %v1708_v16, %v1707_v12  ;;  %v1772_v18 = vpop.f32.mrb[23].mxu1 }
 0x123   :  { %v2407_v19 = vadd.f32 %v1770_v14, %v1706_v9  ;;  %v1773_v20 = vadd.f32 %v1772_v18, %v1771_v15 }
 0x125   :  { %v2409_v21 = vadd.f32 %v1773_v20, %v1709_v17 }
 0x126   :  { %v1710_v22 = vpop.f32.mrb[24].mxu0 }
 0x127   :  { %v1774_v23 = vpop.f32.mrb[24].mxu1  ;;  %v1711_v24 = vpop.f32.mrb[25].mxu0 }
 0x128   :  { %v1712_v26 = vadd.f32 %v1711_v24, %v1710_v22  ;;  %v1775_v28 = vpop.f32.mrb[25].mxu1  ;;  %v1713_v29 = vpop.f32.mrb[26].mxu0 }
 0x129   :  { %v1776_v30 = vadd.f32 %v1775_v28, %v1774_v23  ;;  %v1777_v31 = vpop.f32.mrb[26].mxu1  ;;  %v1714_v32 = vpop.f32.mrb[27].mxu0 }
 0x12a   :  { %v1715_v33 = vadd.f32 %v1714_v32, %v1713_v29  ;;  %v1778_v34 = vpop.f32.mrb[27].mxu1 }
 0x12b   :  { %v2411_v35 = vadd.f32 %v1776_v30, %v1712_v26  ;;  %v1779_v36 = vadd.f32 %v1778_v34, %v1777_v31 }
 0x12d   :  { %v2413_v37 = vadd.f32 %v1779_v36, %v1715_v33 }
 0x12e   :  { %v1716_v38 = vpop.f32.mrb[28].mxu0 }
 0x12f   :  { %v1780_v40 = vpop.f32.mrb[28].mxu1  ;;  %v1717_v42 = vpop.f32.mrb[29].mxu0 }
 0x130   :  { %v1718_v43 = vadd.f32 %v1717_v42, %v1716_v38  ;;  %v1781_v44 = vpop.f32.mrb[29].mxu1  ;;  %v1719_v45 = vpop.f32.mrb[30].mxu0 }
 0x131   :  { %v1782_v46 = vadd.f32 %v1781_v44, %v1780_v40  ;;  %v1783_v47 = vpop.f32.mrb[30].mxu1  ;;  %v1720_v48 = vpop.f32.mrb[31].mxu0 }
 0x132   :  { %v1721_v49 = vadd.f32 %v1720_v48, %v1719_v45  ;;  %v1784_v50 = vpop.f32.mrb[31].mxu1 }
 0x133   :  { %v2415_v51 = vadd.f32 %v1782_v46, %v1718_v43  ;;  %v1785_v52 = vadd.f32 %v1784_v50, %v1783_v47 }
 0x135   :  { %v2417_v54 = vadd.f32 %v1785_v52, %v1721_v49 }
 0x136   :  { %v1802_v56 = vpop.f32.mrb[32].mxu0 }
 0x137   :  { %v1866_v57 = vpop.f32.mrb[32].mxu1  ;;  %v1803_v58 = vpop.f32.mrb[33].mxu0 }
 0x138   :  { %v1804_v59 = vadd.f32 %v1803_v58, %v1802_v56  ;;  %v1867_v60 = vpop.f32.mrb[33].mxu1  ;;  %v1805_v61 = vpop.f32.mrb[34].mxu0 }
 0x139   :  { %v1868_v62 = vadd.f32 %v1867_v60, %v1866_v57  ;;  %v1869_v63 = vpop.f32.mrb[34].mxu1  ;;  %v1806_v0 = vpop.f32.mrb[35].mxu0 }
 0x13a   :  { %v1140_v1 = vadd.f32 %v1804_v59, %v2387_v11  ;;  %v1807_v2 = vadd.f32 %v1806_v0, %v1805_v61  ;;  %v1870_v4 = vpop.f32.mrb[35].mxu1 }
 0x13b   :  { %v1871_v6 = vadd.f32 %v1870_v4, %v1869_v63 }
 0x13c   :  { %v1237_v7 = vadd.f32 %v1868_v62, %v1140_v1  ;;  %v1143_v8 = vadd.f32 %v1807_v2, %v2389_v13 }
 0x13e   :  { %v1240_v9 = vadd.f32 %v1871_v6, %v1143_v8  ;;  %v1808_v10 = vpop.f32.mrb[36].mxu0  ;;  %v1401_v12 = vmul.f32 %v1237_v7, %v1237_v7 }
 0x13f   :  { %v1872_v14 = vpop.f32.mrb[36].mxu1  ;;  %v1809_v15 = vpop.f32.mrb[37].mxu0 }
 0x140   :  { %v1614_v16 = vpack.c.bf16 %v1240_v9, %v1237_v7  ;;  %v1379_v17 = vadd.f32 %v1240_v9, %v1237_v7  ;;  %v1402_v18 = vmul.f32 %v1240_v9, %v1240_v9  ;;  %v1810_v20 = vadd.f32 %v1809_v15, %v1808_v10  ;;  %v1873_v22 = vpop.f32.mrb[37].mxu1  ;;  %v1811_v23 = vpop.f32.mrb[38].mxu0 }
 0x141   :  { %v1874_v24 = vadd.f32 %v1873_v22, %v1872_v14  ;;  %v1875_v26 = vpop.f32.mrb[38].mxu1  ;;  %v1812_v11 = vpop.f32.mrb[39].mxu0 }
 0x142   :  { %1615 = vst [vmem:[%s2467_s2] sm:$0xff] %v1614_v16   ;;  %v1417_v28 = vadd.f32 %v1402_v18, %v1401_v12  ;;  %v1148_v13 = vadd.f32 %v1810_v20, %v2391_v25  ;;  %v1813_v29 = vadd.f32 %v1812_v11, %v1811_v23  ;;  %v1876_v30 = vpop.f32.mrb[39].mxu1 }
 0x143   :  { %v1877_v31 = vadd.f32 %v1876_v30, %v1875_v26 }
 0x144   :  { %v1245_v32 = vadd.f32 %v1874_v24, %v1148_v13  ;;  %v1151_v33 = vadd.f32 %v1813_v29, %v2393_v27 }
 0x146   :  { %v1380_v34 = vadd.f32 %v1379_v17, %v1245_v32  ;;  %v1403_v36 = vmul.f32 %v1245_v32, %v1245_v32  ;;  %v1248_v38 = vadd.f32 %v1877_v31, %v1151_v33  ;;  %v1814_v40 = vpop.f32.mrb[40].mxu0 }
 0x147   :  { %v1878_v42 = vpop.f32.mrb[40].mxu1  ;;  %v1815_v43 = vpop.f32.mrb[41].mxu0 }
 0x148   :  { %v1418_v44 = vadd.f32 %v1417_v28, %v1403_v36  ;;  %v1619_v45 = vpack.c.bf16 %v1248_v38, %v1245_v32  ;;  %v1381_v46 = vadd.f32 %v1380_v34, %v1248_v38  ;;  %v1404_v47 = vmul.f32 %v1248_v38, %v1248_v38  ;;  %v1879_v48 = vpop.f32.mrb[41].mxu1  ;;  %v1817_v49 = vpop.f32.mrb[42].mxu0 }
 0x149   :  { %v1816_v50 = vadd.f32 %v1815_v43, %v1814_v40  ;;  %v1880_v25 = vadd.f32 %v1879_v48, %v1878_v42  ;;  %v1881_v52 = vpop.f32.mrb[42].mxu1  ;;  %v1818_v56 = vpop.f32.mrb[43].mxu0 }
 0x14a   :  { %1651 = vst [vmem:[%s2467_s2 + $0x8] sm:$0xff] %v1619_v45   ;;  %v1419_v27 = vadd.f32 %v1418_v44, %v1404_v47  ;;  %v1819_v57 = vadd.f32 %v1818_v56, %v1817_v49  ;;  %v1882_v58 = vpop.f32.mrb[43].mxu1 }
 0x14b   :  { %v1156_v59 = vadd.f32 %v1816_v50, %v2395_v39  ;;  %v1883_v60 = vadd.f32 %v1882_v58, %v1881_v52 }
 0x14c   :  { %v1159_v61 = vadd.f32 %v1819_v57, %v2397_v41 }
 0x14d   :  { %v1253_v62 = vadd.f32 %v1880_v25, %v1156_v59 }
 0x14e   :  { %v1256_v63 = vadd.f32 %v1883_v60, %v1159_v61  ;;  %v1820_v0 = vpop.f32.mrb[44].mxu0 }
 0x14f   :  { %v1382_v1 = vadd.f32 %v1381_v46, %v1253_v62  ;;  %v1405_v2 = vmul.f32 %v1253_v62, %v1253_v62  ;;  %v1884_v4 = vpop.f32.mrb[44].mxu1  ;;  %v1821_v6 = vpop.f32.mrb[45].mxu0 }
 0x150   :  { %v1624_v7 = vpack.c.bf16 %v1256_v63, %v1253_v62  ;;  %v1406_v8 = vmul.f32 %v1256_v63, %v1256_v63  ;;  %v1822_v9 = vadd.f32 %v1821_v6, %v1820_v0  ;;  %v1885_v10 = vpop.f32.mrb[45].mxu1  ;;  %v1823_v12 = vpop.f32.mrb[46].mxu0 }
 0x151   :  { %v1420_v14 = vadd.f32 %v1419_v27, %v1405_v2  ;;  %v1383_v15 = vadd.f32 %v1382_v1, %v1256_v63  ;;  %v1886_v16 = vadd.f32 %v1885_v10, %v1884_v4  ;;  %v1887_v17 = vpop.f32.mrb[46].mxu1  ;;  %v1824_v39 = vpop.f32.mrb[47].mxu0 }
 0x152   :  { %1652 = vst [vmem:[%s2467_s2 + $0x10] sm:$0xff] %v1624_v7   ;;  %v1164_v41 = vadd.f32 %v1822_v9, %v2399_v53  ;;  %v1825_v18 = vadd.f32 %v1824_v39, %v1823_v12  ;;  %v1888_v20 = vpop.f32.mrb[47].mxu1 }
 0x153   :  { %v1421_v22 = vadd.f32 %v1420_v14, %v1406_v8  ;;  %v1889_v23 = vadd.f32 %v1888_v20, %v1887_v17 }
 0x154   :  { %v1261_v24 = vadd.f32 %v1886_v16, %v1164_v41  ;;  %v1167_v26 = vadd.f32 %v1825_v18, %v2401_v55 }
 0x156   :  { %v1384_v11 = vadd.f32 %v1383_v15, %v1261_v24  ;;  %v1407_v28 = vmul.f32 %v1261_v24, %v1261_v24  ;;  %v1264_v13 = vadd.f32 %v1889_v23, %v1167_v26  ;;  %v1826_v29 = vpop.f32.mrb[48].mxu0 }
 0x157   :  { %v1890_v30 = vpop.f32.mrb[48].mxu1  ;;  %v1827_v31 = vpop.f32.mrb[49].mxu0 }
 0x158   :  { %v1422_v32 = vadd.f32 %v1421_v22, %v1407_v28  ;;  %v1629_v33 = vpack.c.bf16 %v1264_v13, %v1261_v24  ;;  %v1385_v34 = vadd.f32 %v1384_v11, %v1264_v13  ;;  %v1408_v36 = vmul.f32 %v1264_v13, %v1264_v13  ;;  %v1891_v38 = vpop.f32.mrb[49].mxu1  ;;  %v1829_v40 = vpop.f32.mrb[50].mxu0 }
 0x159   :  { %v1828_v53 = vadd.f32 %v1827_v31, %v1826_v29  ;;  %v1892_v42 = vadd.f32 %v1891_v38, %v1890_v30  ;;  %v1893_v43 = vpop.f32.mrb[50].mxu1  ;;  %v1830_v44 = vpop.f32.mrb[51].mxu0 }
 0x15a   :  { %1653 = vst [vmem:[%s2467_s2 + $0x18] sm:$0xff] %v1629_v33   ;;  %v1423_v55 = vadd.f32 %v1422_v32, %v1408_v36  ;;  %v1831_v45 = vadd.f32 %v1830_v44, %v1829_v40  ;;  %v1894_v46 = vpop.f32.mrb[51].mxu1 }
 0x15b   :  { %v1172_v47 = vadd.f32 %v1828_v53, %v2403_v3  ;;  %v1895_v48 = vadd.f32 %v1894_v46, %v1893_v43 }
 0x15c   :  { %v1175_v49 = vadd.f32 %v1831_v45, %v2405_v5 }
 0x15d   :  { %v1269_v50 = vadd.f32 %v1892_v42, %v1172_v47 }
 0x15e   :  { %v1272_v25 = vadd.f32 %v1895_v48, %v1175_v49  ;;  %v1832_v52 = vpop.f32.mrb[52].mxu0 }
 0x15f   :  { %v1386_v56 = vadd.f32 %v1385_v34, %v1269_v50  ;;  %v1409_v27 = vmul.f32 %v1269_v50, %v1269_v50  ;;  %v1896_v57 = vpop.f32.mrb[52].mxu1  ;;  %v1833_v58 = vpop.f32.mrb[53].mxu0 }
 0x160   :  { %v1634_v59 = vpack.c.bf16 %v1272_v25, %v1269_v50  ;;  %v1410_v60 = vmul.f32 %v1272_v25, %v1272_v25  ;;  %v1834_v61 = vadd.f32 %v1833_v58, %v1832_v52  ;;  %v1897_v62 = vpop.f32.mrb[53].mxu1  ;;  %v1835_v63 = vpop.f32.mrb[54].mxu0 }
 0x161   :  { %v1424_v0 = vadd.f32 %v1423_v55, %v1409_v27  ;;  %v1387_v1 = vadd.f32 %v1386_v56, %v1272_v25  ;;  %v1898_v2 = vadd.f32 %v1897_v62, %v1896_v57  ;;  %v1899_v4 = vpop.f32.mrb[54].mxu1  ;;  %v1836_v3 = vpop.f32.mrb[55].mxu0 }
 0x162   :  { %1654 = vst [vmem:[%s2467_s2 + $0x20] sm:$0xff] %v1634_v59   ;;  %v1180_v5 = vadd.f32 %v1834_v61, %v2407_v19  ;;  %v1837_v6 = vadd.f32 %v1836_v3, %v1835_v63  ;;  %v1900_v7 = vpop.f32.mrb[55].mxu1 }
 0x163   :  { %v1425_v8 = vadd.f32 %v1424_v0, %v1410_v60  ;;  %v1901_v9 = vadd.f32 %v1900_v7, %v1899_v4 }
 0x164   :  { %v1277_v10 = vadd.f32 %v1898_v2, %v1180_v5  ;;  %v1183_v12 = vadd.f32 %v1837_v6, %v2409_v21 }
 0x166   :  { %v1388_v14 = vadd.f32 %v1387_v1, %v1277_v10  ;;  %v1411_v15 = vmul.f32 %v1277_v10, %v1277_v10  ;;  %v1280_v16 = vadd.f32 %v1901_v9, %v1183_v12  ;;  %v1838_v17 = vpop.f32.mrb[56].mxu0 }
 0x167   :  { %v1902_v39 = vpop.f32.mrb[56].mxu1  ;;  %v1839_v41 = vpop.f32.mrb[57].mxu0 }
 0x168   :  { %v1426_v18 = vadd.f32 %v1425_v8, %v1411_v15  ;;  %v1639_v20 = vpack.c.bf16 %v1280_v16, %v1277_v10  ;;  %v1389_v22 = vadd.f32 %v1388_v14, %v1280_v16  ;;  %v1412_v23 = vmul.f32 %v1280_v16, %v1280_v16  ;;  %v1903_v24 = vpop.f32.mrb[57].mxu1  ;;  %v1841_v26 = vpop.f32.mrb[58].mxu0 }
 0x169   :  { %v1840_v19 = vadd.f32 %v1839_v41, %v1838_v17  ;;  %v1904_v11 = vadd.f32 %v1903_v24, %v1902_v39  ;;  %v1905_v28 = vpop.f32.mrb[58].mxu1  ;;  %v1842_v13 = vpop.f32.mrb[59].mxu0 }
 0x16a   :  { %1655 = vst [vmem:[%s2467_s2 + $0x28] sm:$0xff] %v1639_v20   ;;  %v1427_v21 = vadd.f32 %v1426_v18, %v1412_v23  ;;  %v1843_v29 = vadd.f32 %v1842_v13, %v1841_v26  ;;  %v1906_v30 = vpop.f32.mrb[59].mxu1 }
 0x16b   :  { %v1188_v31 = vadd.f32 %v1840_v19, %v2411_v35  ;;  %v1907_v32 = vadd.f32 %v1906_v30, %v1905_v28 }
 0x16c   :  { %v1191_v33 = vadd.f32 %v1843_v29, %v2413_v37 }
 0x16d   :  { %v1285_v34 = vadd.f32 %v1904_v11, %v1188_v31 }
 0x16e   :  { %v1288_v36 = vadd.f32 %v1907_v32, %v1191_v33  ;;  %v1844_v38 = vpop.f32.mrb[60].mxu0 }
 0x16f   :  { %v1390_v40 = vadd.f32 %v1389_v22, %v1285_v34  ;;  %v1413_v53 = vmul.f32 %v1285_v34, %v1285_v34  ;;  %v1908_v42 = vpop.f32.mrb[60].mxu1  ;;  %v1845_v43 = vpop.f32.mrb[61].mxu0 }
 0x170   :  { %v1644_v44 = vpack.c.bf16 %v1288_v36, %v1285_v34  ;;  %v1414_v55 = vmul.f32 %v1288_v36, %v1288_v36  ;;  %v1846_v45 = vadd.f32 %v1845_v43, %v1844_v38  ;;  %v1909_v46 = vpop.f32.mrb[61].mxu1  ;;  %v1847_v47 = vpop.f32.mrb[62].mxu0 }
 0x171   :  { %v1428_v48 = vadd.f32 %v1427_v21, %v1413_v53  ;;  %v1391_v49 = vadd.f32 %v1390_v40, %v1288_v36  ;;  %v1910_v50 = vadd.f32 %v1909_v46, %v1908_v42  ;;  %v1911_v25 = vpop.f32.mrb[62].mxu1  ;;  %v1848_v35 = vpop.f32.mrb[63].mxu0 }
 0x172   :  { %1656 = vst [vmem:[%s2467_s2 + $0x30] sm:$0xff] %v1644_v44   ;;  %v1196_v37 = vadd.f32 %v1846_v45, %v2415_v51  ;;  %v1849_v52 = vadd.f32 %v1848_v35, %v1847_v47  ;;  %v1912_v56 = vpop.f32.mrb[63].mxu1 }
 0x173   :  { %v1429_v27 = vadd.f32 %v1428_v48, %v1414_v55  ;;  %v1913_v57 = vadd.f32 %v1912_v56, %v1911_v25 }
 0x174   :  { %v1293_v58 = vadd.f32 %v1910_v50, %v1196_v37  ;;  %v1199_v59 = vadd.f32 %v1849_v52, %v2417_v54 }
 0x176   :  { %v1392_v60 = vadd.f32 %v1391_v49, %v1293_v58  ;;  %v1415_v61 = vmul.f32 %v1293_v58, %v1293_v58  ;;  %v1296_v62 = vadd.f32 %v1913_v57, %v1199_v59 }
 0x178   :  { %v1430_v63 = vadd.f32 %v1429_v27, %v1415_v61  ;;  %v1649_v0 = vpack.c.bf16 %v1296_v62, %v1293_v58  ;;  %v1393_v1 = vadd.f32 %v1392_v60, %v1296_v62  ;;  %v1416_v2 = vmul.f32 %v1296_v62, %v1296_v62 }
 0x17a   :  { %1657 = vst [vmem:[%s2467_s2 + $0x38] sm:$0xff] %v1649_v0   ;;  %v1394_v4 = vrot.slane %v1393_v1, 4  ;;  %v1431_v51 = vadd.f32 %v1430_v63, %v1416_v2 }
 0x17c   :  { %v1395_v3 = vadd.f32 %v1394_v4, %v1393_v1  ;;  %v1432_v5 = vrot.slane %v1431_v51, 4 }
 0x17e   :  { %v1396_v6 = vrot.slane %v1395_v3, 2  ;;  %v1433_v7 = vadd.f32 %v1432_v5, %v1431_v51 }
 0x180   :  { %v1397_v8 = vadd.f32 %v1396_v6, %v1395_v3  ;;  %v1434_v9 = vrot.slane %v1433_v7, 2 }
 0x182   :  { %v1398_v54 = vrot.slane %v1397_v8, 1  ;;  %v1435_v10 = vadd.f32 %v1434_v9, %v1433_v7 }
 0x184   :  { %v1399_v12 = vadd.f32 %v1398_v54, %v1397_v8  ;;  %v1436_v14 = vrot.slane %v1435_v10, 1 }
 0x186   :  { %1400 = vst [vmem:[%s2468_s3] sm:$0x1] %v1399_v12  ;;  %v1437_v15 = vadd.f32 %v1436_v14, %v1435_v10 }
 0x188   :  { %1438 = vst [vmem:[%s2469_s4] sm:$0x1] %v1437_v15 }

// kernel: discriminator_up_forward.12
= control target key start
LH: loop header
LB: loop body
LE: loop exit
PB: predicated region body
PF: predicated region fallthrough
CT: control target
= control target key end

     0   :  { %s455_s0 = inlined_call_operand.vmem [shape: bf16[128,128], index: 0, kind: input, shape index: {}]   ;;  %s456_s1 = inlined_call_operand.vmem [shape: f32[1,128], index: 1, kind: input, shape index: {}]   ;;  %s457_s2 = inlined_call_operand.vmem [shape: f32[1,128], index: 2, kind: input, shape index: {}]   ;;  %s458_s3 = inlined_call_operand.vmem [shape: bf16[128,128], index: 3, kind: output, shape index: {}]  }
   0x1   :  { %v259_v0 = vld [vmem:[%s455_s0] sm:$0xff]   ;;  %v330_v4 = vld [vmem:[%s455_s0 + $0x8] sm:$0xff]   ;;  %v331_v5 = vld [vmem:[%s455_s0 + $0x10] sm:$0xff]  }
   0x2   :  { %v370_v1 = vld [vmem:[%s456_s1] ss:$0 sm:$0xff]  ;;  %v260_v2 = vunpack.c.l.bf16 %v259_v0  ;;  %v261_v3 = vunpack.c.h.bf16 %v259_v0  ;;  %v332_v6 = vld [vmem:[%s455_s0 + $0x18] sm:$0xff]   ;;  %v264_v8 = vunpack.c.l.bf16 %v330_v4  ;;  %v265_v9 = vunpack.c.h.bf16 %v330_v4  ;;  %v334_v35 = vld [vmem:[%s455_s0 + $0x28] sm:$0xff]  }
   0x3   :  { %v384_v7 = vld [vmem:[%s457_s2] ss:$0 sm:$0xff]  ;;  %v268_v10 = vunpack.c.l.bf16 %v331_v5  ;;  %v269_v11 = vunpack.c.h.bf16 %v331_v5  ;;  %v272_v14 = vunpack.c.l.bf16 %v332_v6  ;;  %v273_v15 = vunpack.c.h.bf16 %v332_v6  ;;  %v335_v48 = vld [vmem:[%s455_s0 + $0x30] sm:$0xff]   ;;  %v336_v4 = vld [vmem:[%s455_s0 + $0x38] sm:$0xff]  }
   0x4   :  { %v53_v12 = vmul.f32 %v260_v2, %v370_v1  ;;  %v54_v13 = vmul.f32 %v261_v3, %v370_v1  ;;  %v55_v16 = vmul.f32 %v264_v8, %v370_v1  ;;  %v56_v17 = vmul.f32 %v265_v9, %v370_v1  ;;  %v333_v34 = vld [vmem:[%s455_s0 + $0x20] sm:$0xff]  }
   0x5   :  { %v57_v18 = vmul.f32 %v268_v10, %v370_v1  ;;  %v58_v19 = vmul.f32 %v269_v11, %v370_v1  ;;  %v59_v22 = vmul.f32 %v272_v14, %v370_v1  ;;  %v60_v23 = vmul.f32 %v273_v15, %v370_v1 }
   0x6   :  { %v76_v20 = vadd.f32 %v384_v7, %v53_v12  ;;  %v77_v21 = vadd.f32 %v384_v7, %v54_v13  ;;  %v78_v24 = vadd.f32 %v384_v7, %v55_v16  ;;  %v79_v25 = vadd.f32 %v384_v7, %v56_v17 }
   0x7   :  { %v80_v26 = vadd.f32 %v384_v7, %v57_v18  ;;  %v81_v27 = vadd.f32 %v384_v7, %v58_v19  ;;  %v82_v42 = vadd.f32 %v384_v7, %v59_v22  ;;  %v83_v43 = vadd.f32 %v384_v7, %v60_v23 }
   0x8   :  { %vm92_vm0 = vcmp.ge.f32.partialorder %v76_v20, 0.0  ;;  %vm93_vm1 = vcmp.ge.f32.partialorder %v77_v21, 0.0  ;;  %v108_v28 = vmul.f32 0.2, %v76_v20  ;;  %v109_v29 = vmul.f32 0.2, %v77_v21 }
   0x9   :  { %vm94_vm2 = vcmp.ge.f32.partialorder %v78_v24, 0.0  ;;  %vm95_vm3 = vcmp.ge.f32.partialorder %v79_v25, 0.0  ;;  %v110_v30 = vmul.f32 0.2, %v78_v24  ;;  %v111_v31 = vmul.f32 0.2, %v79_v25 }
   0xa   :  { %v124_v32 = vsel %vm92_vm0, %v76_v20, %v108_v28  ;;  %v125_v33 = vsel %vm93_vm1, %v77_v21, %v109_v29  ;;  %vm96_vm4 = vcmp.ge.f32.partialorder %v80_v26, 0.0  ;;  %vm97_vm5 = vcmp.ge.f32.partialorder %v81_v27, 0.0 }
   0xb   :  { %v293_v36 = vpack.c.bf16 %v125_v33, %v124_v32  ;;  %v126_v37 = vsel %vm94_vm2, %v78_v24, %v110_v30  ;;  %v127_v38 = vsel %vm95_vm3, %v79_v25, %v111_v31  ;;  %v112_v39 = vmul.f32 0.2, %v80_v26 }
   0xc   :  { %v298_v40 = vpack.c.bf16 %v127_v38, %v126_v37  ;;  %v113_v41 = vmul.f32 0.2, %v81_v27  ;;  %v276_v45 = vunpack.c.l.bf16 %v333_v34  ;;  %v277_v46 = vunpack.c.h.bf16 %v333_v34 }
   0xd   :  { %294 = vst [vmem:[%s458_s3] sm:$0xff] %v293_v36   ;;  %v128_v44 = vsel %vm96_vm4, %v80_v26, %v112_v39  ;;  %v280_v47 = vunpack.c.l.bf16 %v334_v35  ;;  %vm98_vm6 = vcmp.ge.f32.partialorder %v82_v42, 0.0  ;;  %vm99_vm7 = vcmp.ge.f32.partialorder %v83_v43, 0.0 }
   0xe   :  { %337 = vst [vmem:[%s458_s3 + $0x8] sm:$0xff] %v298_v40   ;;  %v129_v49 = vsel %vm97_vm5, %v81_v27, %v113_v41  ;;  %v114_v50 = vmul.f32 0.2, %v82_v42  ;;  %v115_v52 = vmul.f32 0.2, %v83_v43  ;;  %v61_v53 = vmul.f32 %v276_v45, %v370_v1 }
   0xf   :  { %v303_v51 = vpack.c.bf16 %v129_v49, %v128_v44  ;;  %v62_v54 = vmul.f32 %v277_v46, %v370_v1  ;;  %v281_v56 = vunpack.c.h.bf16 %v334_v35  ;;  %v63_v57 = vmul.f32 %v280_v47, %v370_v1 }
  0x10   :  { %v130_v55 = vsel %vm98_vm6, %v82_v42, %v114_v50  ;;  %v284_v58 = vunpack.c.l.bf16 %v335_v48  ;;  %v131_v59 = vsel %vm99_vm7, %v83_v43, %v115_v52  ;;  %v84_v60 = vadd.f32 %v384_v7, %v61_v53 }
  0x11   :  { %338 = vst [vmem:[%s458_s3 + $0x10] sm:$0xff] %v303_v51   ;;  %v85_v61 = vadd.f32 %v384_v7, %v62_v54  ;;  %v285_v62 = vunpack.c.h.bf16 %v335_v48  ;;  %v308_v63 = vpack.c.bf16 %v131_v59, %v130_v55  ;;  %v64_v0 = vmul.f32 %v281_v56, %v370_v1 }
  0x12   :  { %v86_v2 = vadd.f32 %v384_v7, %v63_v57  ;;  %v65_v3 = vmul.f32 %v284_v58, %v370_v1  ;;  %vm100_vm8 = vcmp.ge.f32.partialorder %v84_v60, 0.0  ;;  %v116_v5 = vmul.f32 0.2, %v84_v60 }
  0x13   :  { %vm101_vm9 = vcmp.ge.f32.partialorder %v85_v61, 0.0  ;;  %v117_v6 = vmul.f32 0.2, %v85_v61  ;;  %339 = vst [vmem:[%s458_s3 + $0x18] sm:$0xff] %v308_v63   ;;  %v87_v8 = vadd.f32 %v384_v7, %v64_v0  ;;  %v66_v10 = vmul.f32 %v285_v62, %v370_v1 }
  0x14   :  { %vm102_vm10 = vcmp.ge.f32.partialorder %v86_v2, 0.0  ;;  %v118_v9 = vmul.f32 0.2, %v86_v2  ;;  %v132_v11 = vsel %vm100_vm8, %v84_v60, %v116_v5  ;;  %v88_v13 = vadd.f32 %v384_v7, %v65_v3 }
  0x15   :  { %v133_v12 = vsel %vm101_vm9, %v85_v61, %v117_v6  ;;  %v288_v14 = vunpack.c.l.bf16 %v336_v4  ;;  %vm103_vm11 = vcmp.ge.f32.partialorder %v87_v8, 0.0  ;;  %v119_v16 = vmul.f32 0.2, %v87_v8 }
  0x16   :  { %v313_v15 = vpack.c.bf16 %v133_v12, %v132_v11  ;;  %v134_v17 = vsel %vm102_vm10, %v86_v2, %v118_v9  ;;  %v89_v18 = vadd.f32 %v384_v7, %v66_v10  ;;  %vm104_vm12 = vcmp.ge.f32.partialorder %v88_v13, 0.0 }
  0x17   :  { %v120_v19 = vmul.f32 0.2, %v88_v13  ;;  %v289_v20 = vunpack.c.h.bf16 %v336_v4  ;;  %v135_v21 = vsel %vm103_vm11, %v87_v8, %v119_v16  ;;  %v67_v22 = vmul.f32 %v288_v14, %v370_v1 }
  0x18   :  { %340 = vst [vmem:[%s458_s3 + $0x20] sm:$0xff] %v313_v15   ;;  %v318_v23 = vpack.c.bf16 %v135_v21, %v134_v17  ;;  %vm105_vm13 = vcmp.ge.f32.partialorder %v89_v18, 0.0  ;;  %v121_v24 = vmul.f32 0.2, %v89_v18 }
  0x19   :  { %v136_v25 = vsel %vm104_vm12, %v88_v13, %v120_v19  ;;  %v68_v26 = vmul.f32 %v289_v20, %v370_v1  ;;  %v90_v27 = vadd.f32 %v384_v7, %v67_v22 }
  0x1a   :  { %341 = vst [vmem:[%s458_s3 + $0x28] sm:$0xff] %v318_v23   ;;  %v137_v28 = vsel %vm105_vm13, %v89_v18, %v121_v24 }
  0x1b   :  { %v323_v29 = vpack.c.bf16 %v137_v28, %v136_v25  ;;  %v91_v30 = vadd.f32 %v384_v7, %v68_v26  ;;  %vm106_vm14 = vcmp.ge.f32.partialorder %v90_v27, 0.0  ;;  %v122_v31 = vmul.f32 0.2, %v90_v27 }
  0x1d   :  { %342 = vst [vmem:[%s458_s3 + $0x30] sm:$0xff] %v323_v29   ;;  %vm107_vm15 = vcmp.ge.f32.partialorder %v91_v30, 0.0  ;;  %v123_v32 = vmul.f32 0.2, %v91_v30  ;;  %v138_v33 = vsel %vm106_vm14, %v90_v27, %v122_v31 }
  0x1f   :  { %v139_v1 = vsel %vm107_vm15, %v91_v30, %v123_v32 }
  0x20   :  { %v328_v34 = vpack.c.bf16 %v139_v1, %v138_v33 }
  0x22   :  { %343 = vst [vmem:[%s458_s3 + $0x38] sm:$0xff] %v328_v34  }

// kernel: discriminator_up_forward.14
= control target key start
LH: loop header
LB: loop body
LE: loop exit
PB: predicated region body
PF: predicated region fallthrough
CT: control target
= control target key end

     0   :  { %v28_v0 = vlaneseq  ;;  %s180_s0 = inlined_call_operand.vmem [shape: bf16[32,256], index: 0, kind: input, shape index: {}]   ;;  %s181_s1 = inlined_call_operand.vmem [shape: f32[1,256], index: 1, kind: input, shape index: {}]   ;;  %s182_s2 = inlined_call_operand.vmem [shape: f32[1,256], index: 2, kind: input, shape index: {}]   ;;  %s183_s3 = inlined_call_operand.vmem [shape: bf16[32,256], index: 3, kind: output, shape index: {}]  }
   0x1   :  { %v14_v1 = vld [vmem:[%s180_s0] sm:$0xff]  ;;  %v15_v3 = vld [vmem:[%s180_s0 + $0x8] sm:$0xff]  ;;  %v16_v4 = vld [vmem:[%s180_s0 + $0x10] sm:$0xff] }
   0x2   :  { %v29_v2 = vshrl.u32 %v28_v0, 7  ;;  %v17_v5 = vld [vmem:[%s180_s0 + $0x18] sm:$0xff]  ;;  %v18_v6 = vunpack.c.l.bf16 %v14_v1  ;;  %v19_v7 = vunpack.c.h.bf16 %v14_v1  ;;  %v26_v8 = vld [vmem:[%s181_s1] sm:$0x3]  ;;  %v20_v12 = vunpack.c.l.bf16 %v15_v3 }
   0x3   :  { %v46_v9 = vld [vmem:[%s182_s2] sm:$0x3]  ;;  %v21_v13 = vunpack.c.h.bf16 %v15_v3  ;;  %v22_v14 = vunpack.c.l.bf16 %v16_v4  ;;  %v23_v15 = vunpack.c.h.bf16 %v16_v4  ;;  %v24_v16 = vunpack.c.l.bf16 %v17_v5 }
   0x4   :  { %v30_v10 = vsub.s32 0, %v29_v2  ;;  %v34_v11 = vsub.s32 1, %v29_v2  ;;  %v25_v17 = vunpack.c.h.bf16 %v17_v5 }
   0x6   :  { %v31_v18 = vrot.slane %v26_v8, %v30_v10  ;;  %v35_v19 = vrot.slane %v26_v8, %v34_v11  ;;  %v51_v20 = vrot.slane %v46_v9, %v30_v10  ;;  %v55_v21 = vrot.slane %v46_v9, %v34_v11 }
   0x8   :  { %v38_v22 = vmul.f32 %v31_v18, %v18_v6  ;;  %v39_v23 = vmul.f32 %v35_v19, %v19_v7  ;;  %v40_v24 = vmul.f32 %v31_v18, %v20_v12  ;;  %v41_v25 = vmul.f32 %v35_v19, %v21_v13 }
   0x9   :  { %v42_v26 = vmul.f32 %v31_v18, %v22_v14  ;;  %v43_v27 = vmul.f32 %v35_v19, %v23_v15  ;;  %v44_v28 = vmul.f32 %v31_v18, %v24_v16  ;;  %v45_v29 = vmul.f32 %v35_v19, %v25_v17 }
   0xa   :  { %v58_v30 = vadd.f32 %v51_v20, %v38_v22  ;;  %v59_v31 = vadd.f32 %v55_v21, %v39_v23  ;;  %v60_v32 = vadd.f32 %v51_v20, %v40_v24  ;;  %v61_v33 = vadd.f32 %v55_v21, %v41_v25 }
   0xb   :  { %v62_v34 = vadd.f32 %v51_v20, %v42_v26  ;;  %v63_v35 = vadd.f32 %v55_v21, %v43_v27  ;;  %v64_v36 = vadd.f32 %v51_v20, %v44_v28  ;;  %v65_v37 = vadd.f32 %v55_v21, %v45_v29 }
   0xc   :  { %vm66_vm0 = vcmp.ge.f32.partialorder %v58_v30, 0.0  ;;  %vm67_vm1 = vcmp.ge.f32.partialorder %v59_v31, 0.0  ;;  %v74_v38 = vmul.f32 0.2, %v58_v30  ;;  %v75_v39 = vmul.f32 0.2, %v59_v31 }
   0xd   :  { %vm68_vm2 = vcmp.ge.f32.partialorder %v60_v32, 0.0  ;;  %vm69_vm3 = vcmp.ge.f32.partialorder %v61_v33, 0.0  ;;  %v76_v40 = vmul.f32 0.2, %v60_v32  ;;  %v77_v41 = vmul.f32 0.2, %v61_v33 }
   0xe   :  { %v82_v42 = vsel %vm66_vm0, %v58_v30, %v74_v38  ;;  %v83_v43 = vsel %vm67_vm1, %v59_v31, %v75_v39  ;;  %vm70_vm4 = vcmp.ge.f32.partialorder %v62_v34, 0.0  ;;  %vm71_vm5 = vcmp.ge.f32.partialorder %v63_v35, 0.0 }
   0xf   :  { %v126_v44 = vpack.c.bf16 %v83_v43, %v82_v42  ;;  %v84_v45 = vsel %vm68_vm2, %v60_v32, %v76_v40  ;;  %v85_v46 = vsel %vm69_vm3, %v61_v33, %v77_v41  ;;  %v78_v47 = vmul.f32 0.2, %v62_v34 }
  0x10   :  { %v127_v48 = vpack.c.bf16 %v85_v46, %v84_v45  ;;  %v79_v49 = vmul.f32 0.2, %v63_v35  ;;  %vm72_vm6 = vcmp.ge.f32.partialorder %v64_v36, 0.0  ;;  %vm73_vm7 = vcmp.ge.f32.partialorder %v65_v37, 0.0 }
  0x11   :  { %114 = vst [vmem:[%s183_s3] sm:$0xff] %v126_v44  ;;  %v86_v50 = vsel %vm70_vm4, %v62_v34, %v78_v47  ;;  %v80_v51 = vmul.f32 0.2, %v64_v36  ;;  %v81_v52 = vmul.f32 0.2, %v65_v37 }
  0x12   :  { %115 = vst [vmem:[%s183_s3 + $0x8] sm:$0xff] %v127_v48  ;;  %v87_v53 = vsel %vm71_vm5, %v63_v35, %v79_v49 }
  0x13   :  { %v128_v54 = vpack.c.bf16 %v87_v53, %v86_v50  ;;  %v88_v55 = vsel %vm72_vm6, %v64_v36, %v80_v51  ;;  %v89_v56 = vsel %vm73_vm7, %v65_v37, %v81_v52 }
  0x14   :  { %v129_v57 = vpack.c.bf16 %v89_v56, %v88_v55 }
  0x15   :  { %116 = vst [vmem:[%s183_s3 + $0x10] sm:$0xff] %v128_v54 }
  0x16   :  { %117 = vst [vmem:[%s183_s3 + $0x18] sm:$0xff] %v129_v57 }

// kernel: discriminator_up_forward.13
= control target key start
LH: loop header
LB: loop body
LE: loop exit
PB: predicated region body
PF: predicated region fallthrough
CT: control target
= control target key end

     0   :  { %s3985_s1 = inlined_call_operand.vmem [shape: bf16[2048,256], index: 1, kind: input, shape index: {}]   ;;  %s3986_s0 = inlined_call_operand.vmem [shape: bf16[32,2048], index: 0, kind: input, shape index: {}]   ;;  %s3987_s2 = inlined_call_operand.vmem [shape: bf16[32,256], index: 2, kind: output, shape index: {0}]   ;;  %s3988_s3 = inlined_call_operand.vmem [shape: f32[1,256], index: 3, kind: output, shape index: {1}]   ;;  %s3989_s4 = inlined_call_operand.vmem [shape: f32[1,256], index: 4, kind: output, shape index: {2}]  }
   0x1   :  { %v2645_v0 = vld [vmem:[%s3985_s1 + $0x4] ss:$8 sps:$4 sm:$0xff]   ;;  %v2649_v2 = vld [vmem:[%s3985_s1] ss:$8 sps:$4 sm:$0xff]   ;;  %v2651_v4 = vld [vmem:[%s3985_s1 + $0x14] ss:$8 sps:$4 sm:$0xff]  }
   0x2   :  { %v2647_v1 = vld [vmem:[%s3985_s1 + $0x404] ss:$8 sps:$4 sm:$0xff]   ;;  %1742 = vmatprep.subr.bf16.mxu1 %v2645_v0  ;;  %v2650_v3 = vld [vmem:[%s3985_s1 + $0x400] ss:$8 sps:$4 sm:$0xff]   ;;  %v2653_v5 = vld [vmem:[%s3985_s1 + $0x414] ss:$8 sps:$4 sm:$0xff]  }
   0x3   :  { %1954 = vmatprep.subr.bf16.mxu0 %v2647_v1  ;;  %1743 = vmatpush1.bf16.msra.mxu1 %v2649_v2  ;;  %v2655_v6 = vld [vmem:[%s3985_s1 + $0x10] ss:$8 sps:$4 sm:$0xff]   ;;  %v2657_v8 = vld [vmem:[%s3985_s1 + $0x24] ss:$8 sps:$4 sm:$0xff]   ;;  %v2661_v10 = vld [vmem:[%s3985_s1 + $0x20] ss:$8 sps:$4 sm:$0xff]  }
   0x4   :  { %1955 = vmatpush1.bf16.msra.mxu0 %v2650_v3  ;;  %1744 = vmatprep.subr.bf16.mxu1 %v2651_v4  ;;  %v2656_v7 = vld [vmem:[%s3985_s1 + $0x410] ss:$8 sps:$4 sm:$0xff]   ;;  %v2659_v9 = vld [vmem:[%s3985_s1 + $0x424] ss:$8 sps:$4 sm:$0xff]   ;;  %v2662_v11 = vld [vmem:[%s3985_s1 + $0x420] ss:$8 sps:$4 sm:$0xff]  }
   0x5   :  { %1956 = vmatprep.subr.bf16.mxu0 %v2653_v5  ;;  %v2663_v12 = vld [vmem:[%s3985_s1 + $0x34] ss:$8 sps:$4 sm:$0xff]   ;;  %v2667_v14 = vld [vmem:[%s3985_s1 + $0x30] ss:$8 sps:$4 sm:$0xff]   ;;  %v2669_v16 = vld [vmem:[%s3985_s1 + $0x44] ss:$8 sps:$4 sm:$0xff]  }
   0x6   :  { %v2665_v13 = vld [vmem:[%s3985_s1 + $0x434] ss:$8 sps:$4 sm:$0xff]   ;;  %v2668_v15 = vld [vmem:[%s3985_s1 + $0x430] ss:$8 sps:$4 sm:$0xff]   ;;  %v2671_v17 = vld [vmem:[%s3985_s1 + $0x444] ss:$8 sps:$4 sm:$0xff]  }
   0x7   :  { %1745 = vmatpush1.bf16.msra.mxu1 %v2655_v6  ;;  %v2673_v18 = vld [vmem:[%s3985_s1 + $0x40] ss:$8 sps:$4 sm:$0xff]   ;;  %v2675_v20 = vld [vmem:[%s3985_s1 + $0x54] ss:$8 sps:$4 sm:$0xff]   ;;  %v2679_v22 = vld [vmem:[%s3985_s1 + $0x50] ss:$8 sps:$4 sm:$0xff]  }
   0x8   :  { %1957 = vmatpush1.bf16.msra.mxu0 %v2656_v7  ;;  %1746 = vmatprep.subr.bf16.mxu1 %v2657_v8  ;;  %v2674_v19 = vld [vmem:[%s3985_s1 + $0x440] ss:$8 sps:$4 sm:$0xff]   ;;  %v2677_v21 = vld [vmem:[%s3985_s1 + $0x454] ss:$8 sps:$4 sm:$0xff]   ;;  %v2680_v23 = vld [vmem:[%s3985_s1 + $0x450] ss:$8 sps:$4 sm:$0xff]  }
   0x9   :  { %1958 = vmatprep.subr.bf16.mxu0 %v2659_v9  ;;  %v2681_v24 = vld [vmem:[%s3985_s1 + $0x64] ss:$8 sps:$4 sm:$0xff]   ;;  %v2685_v26 = vld [vmem:[%s3985_s1 + $0x60] ss:$8 sps:$4 sm:$0xff]   ;;  %v2687_v28 = vld [vmem:[%s3985_s1 + $0x74] ss:$8 sps:$4 sm:$0xff]  }
   0xa   :  { %v2683_v25 = vld [vmem:[%s3985_s1 + $0x464] ss:$8 sps:$4 sm:$0xff]   ;;  %v2686_v27 = vld [vmem:[%s3985_s1 + $0x460] ss:$8 sps:$4 sm:$0xff]   ;;  %v2689_v29 = vld [vmem:[%s3985_s1 + $0x474] ss:$8 sps:$4 sm:$0xff]  }
   0xb   :  { %1747 = vmatpush1.bf16.msra.mxu1 %v2661_v10  ;;  %v2691_v30 = vld [vmem:[%s3985_s1 + $0x70] ss:$8 sps:$4 sm:$0xff]   ;;  %v2693_v32 = vld [vmem:[%s3985_s1 + $0x84] ss:$8 sps:$4 sm:$0xff]   ;;  %v2697_v34 = vld [vmem:[%s3985_s1 + $0x80] ss:$8 sps:$4 sm:$0xff]  }
   0xc   :  { %1959 = vmatpush1.bf16.msra.mxu0 %v2662_v11  ;;  %1748 = vmatprep.subr.bf16.mxu1 %v2663_v12  ;;  %v2692_v31 = vld [vmem:[%s3985_s1 + $0x470] ss:$8 sps:$4 sm:$0xff]   ;;  %v2695_v33 = vld [vmem:[%s3985_s1 + $0x484] ss:$8 sps:$4 sm:$0xff]   ;;  %v2698_v35 = vld [vmem:[%s3985_s1 + $0x480] ss:$8 sps:$4 sm:$0xff]  }
   0xd   :  { %1960 = vmatprep.subr.bf16.mxu0 %v2665_v13  ;;  %v2699_v36 = vld [vmem:[%s3985_s1 + $0x94] ss:$8 sps:$4 sm:$0xff]   ;;  %v2703_v38 = vld [vmem:[%s3985_s1 + $0x90] ss:$8 sps:$4 sm:$0xff]   ;;  %v2705_v40 = vld [vmem:[%s3985_s1 + $0xa4] ss:$8 sps:$4 sm:$0xff]  }
   0xe   :  { %v2701_v37 = vld [vmem:[%s3985_s1 + $0x494] ss:$8 sps:$4 sm:$0xff]   ;;  %v2704_v39 = vld [vmem:[%s3985_s1 + $0x490] ss:$8 sps:$4 sm:$0xff]   ;;  %v2707_v41 = vld [vmem:[%s3985_s1 + $0x4a4] ss:$8 sps:$4 sm:$0xff]  }
   0xf   :  { %1749 = vmatpush1.bf16.msra.mxu1 %v2667_v14  ;;  %v2709_v42 = vld [vmem:[%s3985_s1 + $0xa0] ss:$8 sps:$4 sm:$0xff]   ;;  %v2711_v44 = vld [vmem:[%s3985_s1 + $0xb4] ss:$8 sps:$4 sm:$0xff]   ;;  %v2715_v46 = vld [vmem:[%s3985_s1 + $0xb0] ss:$8 sps:$4 sm:$0xff]  }
  0x10   :  { %1961 = vmatpush1.bf16.msra.mxu0 %v2668_v15  ;;  %1750 = vmatprep.subr.bf16.mxu1 %v2669_v16  ;;  %v2710_v43 = vld [vmem:[%s3985_s1 + $0x4a0] ss:$8 sps:$4 sm:$0xff]   ;;  %v2713_v45 = vld [vmem:[%s3985_s1 + $0x4b4] ss:$8 sps:$4 sm:$0xff]   ;;  %v2716_v47 = vld [vmem:[%s3985_s1 + $0x4b0] ss:$8 sps:$4 sm:$0xff]  }
  0x11   :  { %1962 = vmatprep.subr.bf16.mxu0 %v2671_v17  ;;  %v14_v48 = vld [vmem:[%s3986_s0] sm:$0xff]  ;;  %v2723_v58 = vld [vmem:[%s3985_s1 + $0xd4] ss:$8 sps:$4 sm:$0xff]   ;;  %v2727_v60 = vld [vmem:[%s3985_s1 + $0xd0] ss:$8 sps:$4 sm:$0xff]  }
  0x12   :  { %v22_v49 = vld [vmem:[%s3986_s0 + $0x40] sm:$0xff]  ;;  %v2725_v59 = vld [vmem:[%s3985_s1 + $0x4d4] ss:$8 sps:$4 sm:$0xff]   ;;  %v2728_v61 = vld [vmem:[%s3985_s1 + $0x4d0] ss:$8 sps:$4 sm:$0xff]  }
  0x13   :  { %1751 = vmatpush1.bf16.msra.mxu1 %v2673_v18  ;;  %v2717_v50 = vld [vmem:[%s3985_s1 + $0xc4] ss:$8 sps:$4 sm:$0xff]   ;;  %v2293_v52 = vcombine.high %v14_v48, %v22_v49  ;;  %v2721_v56 = vld [vmem:[%s3985_s1 + $0xc0] ss:$8 sps:$4 sm:$0xff]   ;;  %v2735_v2 = vld [vmem:[%s3985_s1 + $0xf4] ss:$8 sps:$4 sm:$0xff]   ;;  %v2292_v8 = vcombine.low %v14_v48, %v22_v49 }
  0x14   :  { %1963 = vmatpush1.bf16.msra.mxu0 %v2674_v19  ;;  %1752 = vmatprep.subr.bf16.mxu1 %v2675_v20  ;;  %v2719_v51 = vld [vmem:[%s3985_s1 + $0x4c4] ss:$8 sps:$4 sm:$0xff]   ;;  %v2722_v57 = vld [vmem:[%s3985_s1 + $0x4c0] ss:$8 sps:$4 sm:$0xff]   ;;  %v2737_v3 = vld [vmem:[%s3985_s1 + $0x4f4] ss:$8 sps:$4 sm:$0xff]  }
  0x15   :  { %1964 = vmatprep.subr.bf16.mxu0 %v2677_v21  ;;  %v18_v53 = vld [vmem:[%s3986_s0 + $0x20] sm:$0xff]  ;;  %1774 = vmatprep.mubr.bf16.mxu1 %v2293_v52  ;;  %v2739_v4 = vld [vmem:[%s3985_s1 + $0xf0] ss:$8 sps:$4 sm:$0xff]   ;;  %v2749_v12 = vld [vmem:[%s3985_s1 + $0x114] ss:$8 sps:$4 sm:$0xff]  }
  0x16   :  { %v26_v54 = vld [vmem:[%s3986_s0 + $0x60] sm:$0xff]  ;;  %v2740_v5 = vld [vmem:[%s3985_s1 + $0x4f0] ss:$8 sps:$4 sm:$0xff]   ;;  %v2752_v13 = vld [vmem:[%s3985_s1 + $0x514] ss:$8 sps:$4 sm:$0xff]  }
  0x17   :  { %1753 = vmatpush1.bf16.msra.mxu1 %v2679_v22  ;;  %v2301_v55 = vcombine.high %v18_v53, %v26_v54  ;;  %v2729_v62 = vld [vmem:[%s3985_s1 + $0xe4] ss:$8 sps:$4 sm:$0xff]   ;;  %v2733_v0 = vld [vmem:[%s3985_s1 + $0xe0] ss:$8 sps:$4 sm:$0xff]   ;;  %v2300_v10 = vcombine.low %v18_v53, %v26_v54  ;;  %v2747_v14 = vld [vmem:[%s3985_s1 + $0x110] ss:$8 sps:$4 sm:$0xff]  }
  0x18   :  { %1965 = vmatpush1.bf16.msra.mxu0 %v2680_v23  ;;  %1754 = vmatprep.subr.bf16.mxu1 %v2681_v24  ;;  %v2731_v63 = vld [vmem:[%s3985_s1 + $0x4e4] ss:$8 sps:$4 sm:$0xff]   ;;  %v2734_v1 = vld [vmem:[%s3985_s1 + $0x4e0] ss:$8 sps:$4 sm:$0xff]   ;;  %v2750_v15 = vld [vmem:[%s3985_s1 + $0x510] ss:$8 sps:$4 sm:$0xff]  }
  0x19   :  { %1966 = vmatprep.subr.bf16.mxu0 %v2683_v25  ;;  %1986 = vmatprep.mubr.bf16.mxu0 %v2301_v55  ;;  %v2743_v6 = vld [vmem:[%s3985_s1 + $0x104] ss:$8 sps:$4 sm:$0xff]   ;;  %v2741_v9 = vld [vmem:[%s3985_s1 + $0x100] ss:$8 sps:$4 sm:$0xff]   ;;  %v2761_v20 = vld [vmem:[%s3985_s1 + $0x134] ss:$8 sps:$4 sm:$0xff]  }
  0x1a   :  { %v2746_v7 = vld [vmem:[%s3985_s1 + $0x504] ss:$8 sps:$4 sm:$0xff]   ;;  %v2744_v11 = vld [vmem:[%s3985_s1 + $0x500] ss:$8 sps:$4 sm:$0xff]   ;;  %v2764_v21 = vld [vmem:[%s3985_s1 + $0x534] ss:$8 sps:$4 sm:$0xff]  }
  0x1b   :  { %1755 = vmatpush1.bf16.msra.mxu1 %v2685_v26  ;;  %v2755_v16 = vld [vmem:[%s3985_s1 + $0x124] ss:$8 sps:$4 sm:$0xff]   ;;  %v2753_v18 = vld [vmem:[%s3985_s1 + $0x120] ss:$8 sps:$4 sm:$0xff]   ;;  %v2759_v22 = vld [vmem:[%s3985_s1 + $0x130] ss:$8 sps:$4 sm:$0xff]  }
  0x1c   :  { %1967 = vmatpush1.bf16.msra.mxu0 %v2686_v27  ;;  %1756 = vmatprep.subr.bf16.mxu1 %v2687_v28  ;;  %v2758_v17 = vld [vmem:[%s3985_s1 + $0x524] ss:$8 sps:$4 sm:$0xff]   ;;  %v2756_v19 = vld [vmem:[%s3985_s1 + $0x520] ss:$8 sps:$4 sm:$0xff]   ;;  %v2762_v23 = vld [vmem:[%s3985_s1 + $0x530] ss:$8 sps:$4 sm:$0xff]  }
  0x1d   :  { %1968 = vmatprep.subr.bf16.mxu0 %v2689_v29  ;;  %v2767_v24 = vld [vmem:[%s3985_s1 + $0x144] ss:$8 sps:$4 sm:$0xff]   ;;  %v2765_v26 = vld [vmem:[%s3985_s1 + $0x140] ss:$8 sps:$4 sm:$0xff]   ;;  %v2773_v28 = vld [vmem:[%s3985_s1 + $0x154] ss:$8 sps:$4 sm:$0xff]  }
  0x1e   :  { %v2770_v25 = vld [vmem:[%s3985_s1 + $0x544] ss:$8 sps:$4 sm:$0xff]   ;;  %v2768_v27 = vld [vmem:[%s3985_s1 + $0x540] ss:$8 sps:$4 sm:$0xff]   ;;  %v2776_v29 = vld [vmem:[%s3985_s1 + $0x554] ss:$8 sps:$4 sm:$0xff]  }
  0x1f   :  { %1757 = vmatpush1.bf16.msra.mxu1 %v2691_v30  ;;  %v30_v30 = vld [vmem:[%s3986_s0 + $0x80] sm:$0xff]  ;;  %v3376_v49 = vld [vmem:[%s3986_s0 + $0x28] sm:$0xff]  ;;  %v2786_v52 = vld [vmem:[%s3985_s1 + $0x570] ss:$8 sps:$4 sm:$0xff]  }
  0x20   :  { %1969 = vmatpush1.bf16.msra.mxu0 %v2692_v31  ;;  %1758 = vmatprep.subr.bf16.mxu1 %v2693_v32  ;;  %v38_v31 = vld [vmem:[%s3986_s0 + $0xc0] sm:$0xff]  ;;  %v2771_v32 = vld [vmem:[%s3985_s1 + $0x150] ss:$8 sps:$4 sm:$0xff]  }
  0x21   :  { %1970 = vmatprep.subr.bf16.mxu0 %v2695_v33  ;;  %v2309_v33 = vcombine.high %v30_v30, %v38_v31  ;;  %v2791_v54 = vld [vmem:[%s3985_s1 + $0x184] ss:$8 sps:$4 sm:$0xff]  }
  0x22   :  { %v2794_v55 = vld [vmem:[%s3985_s1 + $0x584] ss:$8 sps:$4 sm:$0xff]  }
  0x23   :  { %1759 = vmatpush1.bf16.msra.mxu1 %v2697_v34  ;;  %v2774_v34 = vld [vmem:[%s3985_s1 + $0x550] ss:$8 sps:$4 sm:$0xff]  }
  0x24   :  { %1971 = vmatpush1.bf16.msra.mxu0 %v2698_v35  ;;  %1760 = vmatprep.subr.bf16.mxu1 %v2699_v36  ;;  %v34_v35 = vld [vmem:[%s3986_s0 + $0xa0] sm:$0xff] }
  0x25   :  { %1972 = vmatprep.subr.bf16.mxu0 %v2701_v37  ;;  %v42_v36 = vld [vmem:[%s3986_s0 + $0xe0] sm:$0xff]  ;;  %v2308_v37 = vcombine.low %v30_v30, %v38_v31  ;;  %v2845_v30 = vld [vmem:[%s3985_s1 + $0x214] ss:$8 sps:$4 sm:$0xff]  }
  0x26   :  { %v2848_v31 = vld [vmem:[%s3985_s1 + $0x614] ss:$8 sps:$4 sm:$0xff]  }
  0x27   :  { %1761 = vmatpush1.bf16.msra.mxu1 %v2703_v38  ;;  %v2779_v38 = vld [vmem:[%s3985_s1 + $0x164] ss:$8 sps:$4 sm:$0xff]  }
  0x28   :  { %1973 = vmatpush1.bf16.msra.mxu0 %v2704_v39  ;;  %1762 = vmatprep.subr.bf16.mxu1 %v2705_v40  ;;  %v2317_v39 = vcombine.high %v34_v35, %v42_v36  ;;  %v2316_v40 = vcombine.low %v34_v35, %v42_v36  ;;  %v2843_v36 = vld [vmem:[%s3985_s1 + $0x210] ss:$8 sps:$4 sm:$0xff]  }
  0x29   :  { %1974 = vmatprep.subr.bf16.mxu0 %v2707_v41  ;;  %v2782_v41 = vld [vmem:[%s3985_s1 + $0x564] ss:$8 sps:$4 sm:$0xff]  }
  0x2b   :  { %1763 = vmatpush1.bf16.msra.mxu1 %v2709_v42  ;;  %v2777_v42 = vld [vmem:[%s3985_s1 + $0x160] ss:$8 sps:$4 sm:$0xff]  }
  0x2c   :  { %1975 = vmatpush1.bf16.msra.mxu0 %v2710_v43  ;;  %1764 = vmatprep.subr.bf16.mxu1 %v2711_v44  ;;  %v2780_v43 = vld [vmem:[%s3985_s1 + $0x560] ss:$8 sps:$4 sm:$0xff]  }
  0x2d   :  { %1976 = vmatprep.subr.bf16.mxu0 %v2713_v45  ;;  %v3358_v44 = vld [vmem:[%s3986_s0 + $0x8] sm:$0xff] }
  0x2e   :  { %v3363_v45 = vld [vmem:[%s3986_s0 + $0x48] sm:$0xff] }
  0x2f   :  { %1765 = vmatpush1.bf16.msra.mxu1 %v2715_v46  ;;  %v2785_v46 = vld [vmem:[%s3985_s1 + $0x174] ss:$8 sps:$4 sm:$0xff]   ;;  %v2295_v48 = vcombine.high %v3358_v44, %v3363_v45 }
  0x30   :  { %1977 = vmatpush1.bf16.msra.mxu0 %v2716_v47  ;;  %1766 = vmatprep.subr.bf16.mxu1 %v2717_v50  ;;  %v2788_v47 = vld [vmem:[%s3985_s1 + $0x574] ss:$8 sps:$4 sm:$0xff]   ;;  %v3381_v50 = vld [vmem:[%s3986_s0 + $0x68] sm:$0xff] }
  0x31   :  { %1978 = vmatprep.subr.bf16.mxu0 %v2719_v51  ;;  %v2783_v51 = vld [vmem:[%s3985_s1 + $0x170] ss:$8 sps:$4 sm:$0xff]   ;;  %v2303_v53 = vcombine.high %v3376_v49, %v3381_v50 }
  0x33   :  { %1767 = vmatpush1.bf16.msra.mxu1 %v2721_v56  ;;  %v2789_v56 = vld [vmem:[%s3985_s1 + $0x180] ss:$8 sps:$4 sm:$0xff]  }
  0x34   :  { %1979 = vmatpush1.bf16.msra.mxu0 %v2722_v57  ;;  %1768 = vmatprep.subr.bf16.mxu1 %v2723_v58  ;;  %v2792_v57 = vld [vmem:[%s3985_s1 + $0x580] ss:$8 sps:$4 sm:$0xff]   ;;  %v2797_v58 = vld [vmem:[%s3985_s1 + $0x194] ss:$8 sps:$4 sm:$0xff]  }
  0x35   :  { %1980 = vmatprep.subr.bf16.mxu0 %v2725_v59  ;;  %v2800_v59 = vld [vmem:[%s3985_s1 + $0x594] ss:$8 sps:$4 sm:$0xff]  }
  0x37   :  { %1769 = vmatpush1.bf16.msra.mxu1 %v2727_v60  ;;  %v2795_v60 = vld [vmem:[%s3985_s1 + $0x190] ss:$8 sps:$4 sm:$0xff]  }
  0x38   :  { %1981 = vmatpush1.bf16.msra.mxu0 %v2728_v61  ;;  %1770 = vmatprep.subr.bf16.mxu1 %v2729_v62  ;;  %v2798_v61 = vld [vmem:[%s3985_s1 + $0x590] ss:$8 sps:$4 sm:$0xff]   ;;  %v2803_v62 = vld [vmem:[%s3985_s1 + $0x1a4] ss:$8 sps:$4 sm:$0xff]  }
  0x39   :  { %1982 = vmatprep.subr.bf16.mxu0 %v2731_v63  ;;  %v2806_v63 = vld [vmem:[%s3985_s1 + $0x5a4] ss:$8 sps:$4 sm:$0xff]  }
  0x3b   :  { %1771 = vmatpush1.bf16.msra.mxu1 %v2733_v0  ;;  %v2801_v0 = vld [vmem:[%s3985_s1 + $0x1a0] ss:$8 sps:$4 sm:$0xff]  }
  0x3c   :  { %1983 = vmatpush1.bf16.msra.mxu0 %v2734_v1  ;;  %1772 = vmatprep.subr.bf16.mxu1 %v2735_v2  ;;  %v2804_v1 = vld [vmem:[%s3985_s1 + $0x5a0] ss:$8 sps:$4 sm:$0xff]   ;;  %v2809_v2 = vld [vmem:[%s3985_s1 + $0x1b4] ss:$8 sps:$4 sm:$0xff]  }
  0x3d   :  { %1984 = vmatprep.subr.bf16.mxu0 %v2737_v3  ;;  %v2812_v3 = vld [vmem:[%s3985_s1 + $0x5b4] ss:$8 sps:$4 sm:$0xff]  }
  0x3f   :  { %1773 = vmatpush1.bf16.msra.mxu1 %v2739_v4  ;;  %v2807_v4 = vld [vmem:[%s3985_s1 + $0x1b0] ss:$8 sps:$4 sm:$0xff]  }
  0x40   :  { %1985 = vmatpush1.bf16.msra.mxu0 %v2740_v5  ;;  %1795 = vmatprep.subr.bf16.mxu1 %v2743_v6  ;;  %v2810_v5 = vld [vmem:[%s3985_s1 + $0x5b0] ss:$8 sps:$4 sm:$0xff]   ;;  %v2815_v6 = vld [vmem:[%s3985_s1 + $0x1c4] ss:$8 sps:$4 sm:$0xff]  }
  0x41   :  { %2007 = vmatprep.subr.bf16.mxu0 %v2746_v7  ;;  %v2818_v7 = vld [vmem:[%s3985_s1 + $0x5c4] ss:$8 sps:$4 sm:$0xff]  }
  0x42   :  { %1775 = vmatmul.mubr.bf16.vlgmr.msra.gmra.mrb[0].mxu1 %v2292_v8  ;;  %v2813_v8 = vld [vmem:[%s3985_s1 + $0x1c0] ss:$8 sps:$4 sm:$0xff]  }
  0x43   :  { %1987 = vmatmul.mubr.bf16.vlgmr.msra.gmra.mrb[0].mxu0 %v2300_v10  ;;  %1796 = vmatpush1.bf16.msra.mxu1 %v2741_v9  ;;  %v2816_v9 = vld [vmem:[%s3985_s1 + $0x5c0] ss:$8 sps:$4 sm:$0xff]   ;;  %v2821_v10 = vld [vmem:[%s3985_s1 + $0x1d4] ss:$8 sps:$4 sm:$0xff]  }
  0x44   :  { %2008 = vmatpush1.bf16.msra.mxu0 %v2744_v11  ;;  %1797 = vmatprep.subr.bf16.mxu1 %v2749_v12  ;;  %v2824_v11 = vld [vmem:[%s3985_s1 + $0x5d4] ss:$8 sps:$4 sm:$0xff]   ;;  %v2819_v12 = vld [vmem:[%s3985_s1 + $0x1d0] ss:$8 sps:$4 sm:$0xff]  }
  0x45   :  { %2009 = vmatprep.subr.bf16.mxu0 %v2752_v13  ;;  %1784 = vmatprep.mubr.bf16.mxu1 %v2309_v33  ;;  %v2822_v13 = vld [vmem:[%s3985_s1 + $0x5d0] ss:$8 sps:$4 sm:$0xff]   ;;  %v43_v33 = vld [vmem:[%s3986_s0 + $0xe8] sm:$0xff] }
  0x46   :  { %1996 = vmatprep.mubr.bf16.mxu0 %v2317_v39  ;;  %v2854_v39 = vld [vmem:[%s3985_s1 + $0x624] ss:$8 sps:$4 sm:$0xff]  }
  0x47   :  { %1798 = vmatpush1.bf16.msra.mxu1 %v2747_v14  ;;  %v2827_v14 = vld [vmem:[%s3985_s1 + $0x1e4] ss:$8 sps:$4 sm:$0xff]  }
  0x48   :  { %2010 = vmatpush1.bf16.msra.mxu0 %v2750_v15  ;;  %1799 = vmatprep.subr.bf16.mxu1 %v2755_v16  ;;  %v2830_v15 = vld [vmem:[%s3985_s1 + $0x5e4] ss:$8 sps:$4 sm:$0xff]   ;;  %v2825_v16 = vld [vmem:[%s3985_s1 + $0x1e0] ss:$8 sps:$4 sm:$0xff]  }
  0x49   :  { %2011 = vmatprep.subr.bf16.mxu0 %v2758_v17  ;;  %v2828_v17 = vld [vmem:[%s3985_s1 + $0x5e0] ss:$8 sps:$4 sm:$0xff]  }
  0x4a   :  { %1785 = vmatmul.mubr.bf16.gmra.mrb[4].mxu1 %v2308_v37  ;;  %v2846_v37 = vld [vmem:[%s3985_s1 + $0x610] ss:$8 sps:$4 sm:$0xff]  }
  0x4b   :  { %1800 = vmatpush1.bf16.msra.mxu1 %v2753_v18  ;;  %1997 = vmatmul.mubr.bf16.gmra.mrb[4].mxu0 %v2316_v40  ;;  %v2833_v18 = vld [vmem:[%s3985_s1 + $0x1f4] ss:$8 sps:$4 sm:$0xff]   ;;  %v2849_v40 = vld [vmem:[%s3985_s1 + $0x220] ss:$8 sps:$4 sm:$0xff]  }
  0x4c   :  { %2012 = vmatpush1.bf16.msra.mxu0 %v2756_v19  ;;  %1801 = vmatprep.subr.bf16.mxu1 %v2761_v20  ;;  %v2836_v19 = vld [vmem:[%s3985_s1 + $0x5f4] ss:$8 sps:$4 sm:$0xff]   ;;  %v2831_v20 = vld [vmem:[%s3985_s1 + $0x1f0] ss:$8 sps:$4 sm:$0xff]  }
  0x4d   :  { %2013 = vmatprep.subr.bf16.mxu0 %v2764_v21  ;;  %1827 = vmatprep.mubr.bf16.mxu1 %v2295_v48  ;;  %v2834_v21 = vld [vmem:[%s3985_s1 + $0x5f0] ss:$8 sps:$4 sm:$0xff]   ;;  %v2857_v48 = vld [vmem:[%s3985_s1 + $0x234] ss:$8 sps:$4 sm:$0xff]  }
  0x4e   :  { %2039 = vmatprep.mubr.bf16.mxu0 %v2303_v53  ;;  %v2858_v53 = vld [vmem:[%s3985_s1 + $0x630] ss:$8 sps:$4 sm:$0xff]  }
  0x4f   :  { %1802 = vmatpush1.bf16.msra.mxu1 %v2759_v22  ;;  %v2839_v22 = vld [vmem:[%s3985_s1 + $0x204] ss:$8 sps:$4 sm:$0xff]  }
  0x50   :  { %2014 = vmatpush1.bf16.msra.mxu0 %v2762_v23  ;;  %1803 = vmatprep.subr.bf16.mxu1 %v2767_v24  ;;  %v2842_v23 = vld [vmem:[%s3985_s1 + $0x604] ss:$8 sps:$4 sm:$0xff]   ;;  %v2837_v24 = vld [vmem:[%s3985_s1 + $0x200] ss:$8 sps:$4 sm:$0xff]  }
  0x51   :  { %2015 = vmatprep.subr.bf16.mxu0 %v2770_v25  ;;  %v2840_v25 = vld [vmem:[%s3985_s1 + $0x600] ss:$8 sps:$4 sm:$0xff]  }
  0x53   :  { %1804 = vmatpush1.bf16.msra.mxu1 %v2765_v26  ;;  %v31_v26 = vld [vmem:[%s3986_s0 + $0x88] sm:$0xff] }
  0x54   :  { %2016 = vmatpush1.bf16.msra.mxu0 %v2768_v27  ;;  %1805 = vmatprep.subr.bf16.mxu1 %v2773_v28  ;;  %v2294_v27 = vcombine.low %v3358_v44, %v3363_v45  ;;  %v2302_v28 = vcombine.low %v3376_v49, %v3381_v50  ;;  %v3547_v45 = vld [vmem:[%s3986_s0 + $0x50] sm:$0xff] }
  0x55   :  { %2017 = vmatprep.subr.bf16.mxu0 %v2776_v29  ;;  %v39_v29 = vld [vmem:[%s3986_s0 + $0xc8] sm:$0xff]  ;;  %v2860_v49 = vld [vmem:[%s3985_s1 + $0x634] ss:$8 sps:$4 sm:$0xff]  }
  0x57   :  { %1806 = vmatpush1.bf16.msra.mxu1 %v2771_v32  ;;  %v35_v32 = vld [vmem:[%s3986_s0 + $0xa8] sm:$0xff] }
  0x58   :  { %2018 = vmatpush1.bf16.msra.mxu0 %v2774_v34  ;;  %1807 = vmatprep.subr.bf16.mxu1 %v2779_v38  ;;  %v2311_v34 = vcombine.high %v31_v26, %v39_v29  ;;  %v2319_v35 = vcombine.high %v35_v32, %v43_v33  ;;  %v2851_v38 = vld [vmem:[%s3985_s1 + $0x224] ss:$8 sps:$4 sm:$0xff]   ;;  %v2318_v44 = vcombine.low %v35_v32, %v43_v33  ;;  %v2921_v32 = vld [vmem:[%s3985_s1 + $0x2e0] ss:$8 sps:$4 sm:$0xff]  }
  0x59   :  { %2019 = vmatprep.subr.bf16.mxu0 %v2782_v41  ;;  %v2852_v41 = vld [vmem:[%s3985_s1 + $0x620] ss:$8 sps:$4 sm:$0xff]  }
  0x5a   :  { %v2924_v33 = vld [vmem:[%s3985_s1 + $0x6e0] ss:$8 sps:$4 sm:$0xff]  }
  0x5b   :  { %1808 = vmatpush1.bf16.msra.mxu1 %v2777_v42  ;;  %v3542_v42 = vld [vmem:[%s3986_s0 + $0x10] sm:$0xff] }
  0x5c   :  { %2020 = vmatpush1.bf16.msra.mxu0 %v2780_v43  ;;  %1809 = vmatprep.subr.bf16.mxu1 %v2785_v46  ;;  %v2310_v43 = vcombine.low %v31_v26, %v39_v29  ;;  %v3552_v46 = vld [vmem:[%s3986_s0 + $0x30] sm:$0xff]  ;;  %v2297_v50 = vcombine.high %v3542_v42, %v3547_v45 }
  0x5d   :  { %2021 = vmatprep.subr.bf16.mxu0 %v2788_v47  ;;  %v3557_v47 = vld [vmem:[%s3986_s0 + $0x70] sm:$0xff] }
  0x5e   :  { %v2917_v26 = vld [vmem:[%s3985_s1 + $0x2d4] ss:$8 sps:$4 sm:$0xff]   ;;  %v2918_v29 = vld [vmem:[%s3985_s1 + $0x6d0] ss:$8 sps:$4 sm:$0xff]  }
  0x5f   :  { %1810 = vmatpush1.bf16.msra.mxu1 %v2783_v51  ;;  %v2305_v51 = vcombine.high %v3552_v46, %v3557_v47 }
  0x60   :  { %2022 = vmatpush1.bf16.msra.mxu0 %v2786_v52  ;;  %1811 = vmatprep.subr.bf16.mxu1 %v2791_v54  ;;  %v2855_v52 = vld [vmem:[%s3985_s1 + $0x230] ss:$8 sps:$4 sm:$0xff]   ;;  %v2863_v54 = vld [vmem:[%s3985_s1 + $0x244] ss:$8 sps:$4 sm:$0xff]  }
  0x61   :  { %2023 = vmatprep.subr.bf16.mxu0 %v2794_v55  ;;  %v2866_v55 = vld [vmem:[%s3985_s1 + $0x644] ss:$8 sps:$4 sm:$0xff]  }
  0x63   :  { %1812 = vmatpush1.bf16.msra.mxu1 %v2789_v56  ;;  %v2861_v56 = vld [vmem:[%s3985_s1 + $0x240] ss:$8 sps:$4 sm:$0xff]  }
  0x64   :  { %2024 = vmatpush1.bf16.msra.mxu0 %v2792_v57  ;;  %1813 = vmatprep.subr.bf16.mxu1 %v2797_v58  ;;  %v2864_v57 = vld [vmem:[%s3985_s1 + $0x640] ss:$8 sps:$4 sm:$0xff]   ;;  %v2869_v58 = vld [vmem:[%s3985_s1 + $0x254] ss:$8 sps:$4 sm:$0xff]  }
  0x65   :  { %2025 = vmatprep.subr.bf16.mxu0 %v2800_v59  ;;  %v2872_v59 = vld [vmem:[%s3985_s1 + $0x654] ss:$8 sps:$4 sm:$0xff]  }
  0x67   :  { %1814 = vmatpush1.bf16.msra.mxu1 %v2795_v60  ;;  %v2867_v60 = vld [vmem:[%s3985_s1 + $0x250] ss:$8 sps:$4 sm:$0xff]  }
  0x68   :  { %2026 = vmatpush1.bf16.msra.mxu0 %v2798_v61  ;;  %1815 = vmatprep.subr.bf16.mxu1 %v2803_v62  ;;  %v2870_v61 = vld [vmem:[%s3985_s1 + $0x650] ss:$8 sps:$4 sm:$0xff]   ;;  %v2875_v62 = vld [vmem:[%s3985_s1 + $0x264] ss:$8 sps:$4 sm:$0xff]  }
  0x69   :  { %2027 = vmatprep.subr.bf16.mxu0 %v2806_v63  ;;  %v2878_v63 = vld [vmem:[%s3985_s1 + $0x664] ss:$8 sps:$4 sm:$0xff]  }
  0x6b   :  { %1816 = vmatpush1.bf16.msra.mxu1 %v2801_v0  ;;  %v2873_v0 = vld [vmem:[%s3985_s1 + $0x260] ss:$8 sps:$4 sm:$0xff]  }
  0x6c   :  { %2028 = vmatpush1.bf16.msra.mxu0 %v2804_v1  ;;  %1817 = vmatprep.subr.bf16.mxu1 %v2809_v2  ;;  %v2876_v1 = vld [vmem:[%s3985_s1 + $0x660] ss:$8 sps:$4 sm:$0xff]   ;;  %v2881_v2 = vld [vmem:[%s3985_s1 + $0x274] ss:$8 sps:$4 sm:$0xff]  }
  0x6d   :  { %2029 = vmatprep.subr.bf16.mxu0 %v2812_v3  ;;  %v2884_v3 = vld [vmem:[%s3985_s1 + $0x674] ss:$8 sps:$4 sm:$0xff]  }
  0x6f   :  { %1818 = vmatpush1.bf16.msra.mxu1 %v2807_v4  ;;  %v2879_v4 = vld [vmem:[%s3985_s1 + $0x270] ss:$8 sps:$4 sm:$0xff]  }
  0x70   :  { %2030 = vmatpush1.bf16.msra.mxu0 %v2810_v5  ;;  %1819 = vmatprep.subr.bf16.mxu1 %v2815_v6  ;;  %v2882_v5 = vld [vmem:[%s3985_s1 + $0x670] ss:$8 sps:$4 sm:$0xff]   ;;  %v2887_v6 = vld [vmem:[%s3985_s1 + $0x284] ss:$8 sps:$4 sm:$0xff]  }
  0x71   :  { %2031 = vmatprep.subr.bf16.mxu0 %v2818_v7  ;;  %v2890_v7 = vld [vmem:[%s3985_s1 + $0x684] ss:$8 sps:$4 sm:$0xff]  }
  0x73   :  { %1820 = vmatpush1.bf16.msra.mxu1 %v2813_v8  ;;  %v2885_v8 = vld [vmem:[%s3985_s1 + $0x280] ss:$8 sps:$4 sm:$0xff]  }
  0x74   :  { %2032 = vmatpush1.bf16.msra.mxu0 %v2816_v9  ;;  %1821 = vmatprep.subr.bf16.mxu1 %v2821_v10  ;;  %v2888_v9 = vld [vmem:[%s3985_s1 + $0x680] ss:$8 sps:$4 sm:$0xff]   ;;  %v2893_v10 = vld [vmem:[%s3985_s1 + $0x294] ss:$8 sps:$4 sm:$0xff]  }
  0x75   :  { %2033 = vmatprep.subr.bf16.mxu0 %v2824_v11  ;;  %v2896_v11 = vld [vmem:[%s3985_s1 + $0x694] ss:$8 sps:$4 sm:$0xff]  }
  0x77   :  { %1822 = vmatpush1.bf16.msra.mxu1 %v2819_v12  ;;  %v2891_v12 = vld [vmem:[%s3985_s1 + $0x290] ss:$8 sps:$4 sm:$0xff]  }
  0x78   :  { %2034 = vmatpush1.bf16.msra.mxu0 %v2822_v13  ;;  %1823 = vmatprep.subr.bf16.mxu1 %v2827_v14  ;;  %v2894_v13 = vld [vmem:[%s3985_s1 + $0x690] ss:$8 sps:$4 sm:$0xff]   ;;  %v2899_v14 = vld [vmem:[%s3985_s1 + $0x2a4] ss:$8 sps:$4 sm:$0xff]  }
  0x79   :  { %2035 = vmatprep.subr.bf16.mxu0 %v2830_v15  ;;  %v2902_v15 = vld [vmem:[%s3985_s1 + $0x6a4] ss:$8 sps:$4 sm:$0xff]  }
  0x7b   :  { %1824 = vmatpush1.bf16.msra.mxu1 %v2825_v16  ;;  %v2897_v16 = vld [vmem:[%s3985_s1 + $0x2a0] ss:$8 sps:$4 sm:$0xff]  }
  0x7c   :  { %2036 = vmatpush1.bf16.msra.mxu0 %v2828_v17  ;;  %1825 = vmatprep.subr.bf16.mxu1 %v2833_v18  ;;  %v2900_v17 = vld [vmem:[%s3985_s1 + $0x6a0] ss:$8 sps:$4 sm:$0xff]   ;;  %v2905_v18 = vld [vmem:[%s3985_s1 + $0x2b4] ss:$8 sps:$4 sm:$0xff]  }
  0x7d   :  { %2037 = vmatprep.subr.bf16.mxu0 %v2836_v19  ;;  %v2908_v19 = vld [vmem:[%s3985_s1 + $0x6b4] ss:$8 sps:$4 sm:$0xff]  }
  0x7f   :  { %1826 = vmatpush1.bf16.msra.mxu1 %v2831_v20  ;;  %v2903_v20 = vld [vmem:[%s3985_s1 + $0x2b0] ss:$8 sps:$4 sm:$0xff]  }
  0x80   :  { %2038 = vmatpush1.bf16.msra.mxu0 %v2834_v21  ;;  %1848 = vmatprep.subr.bf16.mxu1 %v2839_v22  ;;  %v2906_v21 = vld [vmem:[%s3985_s1 + $0x6b0] ss:$8 sps:$4 sm:$0xff]   ;;  %v2911_v22 = vld [vmem:[%s3985_s1 + $0x2c4] ss:$8 sps:$4 sm:$0xff]  }
  0x81   :  { %2060 = vmatprep.subr.bf16.mxu0 %v2842_v23  ;;  %v2914_v23 = vld [vmem:[%s3985_s1 + $0x6c4] ss:$8 sps:$4 sm:$0xff]  }
  0x82   :  { %1828 = vmatmul.mubr.bf16.vlgmr.msra.gmra.mrb[0].mxu1 %v2294_v27  ;;  %v2920_v27 = vld [vmem:[%s3985_s1 + $0x6d4] ss:$8 sps:$4 sm:$0xff]  }
  0x83   :  { %2040 = vmatmul.mubr.bf16.vlgmr.msra.gmra.mrb[0].mxu0 %v2302_v28  ;;  %1849 = vmatpush1.bf16.msra.mxu1 %v2837_v24  ;;  %v2909_v24 = vld [vmem:[%s3985_s1 + $0x2c0] ss:$8 sps:$4 sm:$0xff]   ;;  %v2915_v28 = vld [vmem:[%s3985_s1 + $0x2d0] ss:$8 sps:$4 sm:$0xff]  }
  0x84   :  { %2061 = vmatpush1.bf16.msra.mxu0 %v2840_v25  ;;  %1850 = vmatprep.subr.bf16.mxu1 %v2845_v30  ;;  %v2912_v25 = vld [vmem:[%s3985_s1 + $0x6c0] ss:$8 sps:$4 sm:$0xff]   ;;  %v2923_v30 = vld [vmem:[%s3985_s1 + $0x2e4] ss:$8 sps:$4 sm:$0xff]  }
  0x85   :  { %2062 = vmatprep.subr.bf16.mxu0 %v2848_v31  ;;  %1837 = vmatprep.mubr.bf16.mxu1 %v2311_v34  ;;  %v2926_v31 = vld [vmem:[%s3985_s1 + $0x6e4] ss:$8 sps:$4 sm:$0xff]   ;;  %v2929_v34 = vld [vmem:[%s3985_s1 + $0x2f4] ss:$8 sps:$4 sm:$0xff]  }
  0x86   :  { %2049 = vmatprep.mubr.bf16.mxu0 %v2319_v35  ;;  %v2932_v35 = vld [vmem:[%s3985_s1 + $0x6f4] ss:$8 sps:$4 sm:$0xff]  }
  0x87   :  { %1851 = vmatpush1.bf16.msra.mxu1 %v2843_v36  ;;  %v2927_v36 = vld [vmem:[%s3985_s1 + $0x2f0] ss:$8 sps:$4 sm:$0xff]  }
  0x88   :  { %2063 = vmatpush1.bf16.msra.mxu0 %v2846_v37  ;;  %1852 = vmatprep.subr.bf16.mxu1 %v2851_v38  ;;  %v2930_v37 = vld [vmem:[%s3985_s1 + $0x6f0] ss:$8 sps:$4 sm:$0xff]   ;;  %v2935_v38 = vld [vmem:[%s3985_s1 + $0x304] ss:$8 sps:$4 sm:$0xff]  }
  0x89   :  { %2064 = vmatprep.subr.bf16.mxu0 %v2854_v39  ;;  %v2938_v39 = vld [vmem:[%s3985_s1 + $0x704] ss:$8 sps:$4 sm:$0xff]  }
  0x8a   :  { %1838 = vmatmul.mubr.bf16.gmra.mrb[4].mxu1 %v2310_v43  ;;  %v2304_v43 = vcombine.low %v3552_v46, %v3557_v47  ;;  %v2941_v46 = vld [vmem:[%s3985_s1 + $0x314] ss:$8 sps:$4 sm:$0xff]  }
  0x8b   :  { %2050 = vmatmul.mubr.bf16.gmra.mrb[4].mxu0 %v2318_v44  ;;  %1853 = vmatpush1.bf16.msra.mxu1 %v2849_v40  ;;  %v32_v40 = vld [vmem:[%s3986_s0 + $0x90] sm:$0xff] }
  0x8c   :  { %2065 = vmatpush1.bf16.msra.mxu0 %v2852_v41  ;;  %1854 = vmatprep.subr.bf16.mxu1 %v2857_v48  ;;  %v2296_v41 = vcombine.low %v3542_v42, %v3547_v45  ;;  %v40_v44 = vld [vmem:[%s3986_s0 + $0xd0] sm:$0xff]  ;;  %v2933_v42 = vld [vmem:[%s3985_s1 + $0x300] ss:$8 sps:$4 sm:$0xff]  }
  0x8d   :  { %2066 = vmatprep.subr.bf16.mxu0 %v2860_v49  ;;  %1880 = vmatprep.mubr.bf16.mxu1 %v2297_v50  ;;  %v36_v48 = vld [vmem:[%s3986_s0 + $0xb0] sm:$0xff]  ;;  %v2936_v45 = vld [vmem:[%s3985_s1 + $0x700] ss:$8 sps:$4 sm:$0xff]   ;;  %v2313_v50 = vcombine.high %v32_v40, %v40_v44 }
  0x8e   :  { %2092 = vmatprep.mubr.bf16.mxu0 %v2305_v51  ;;  %v44_v49 = vld [vmem:[%s3986_s0 + $0xf0] sm:$0xff] }
  0x8f   :  { %1855 = vmatpush1.bf16.msra.mxu1 %v2855_v52  ;;  %v2944_v47 = vld [vmem:[%s3985_s1 + $0x714] ss:$8 sps:$4 sm:$0xff]   ;;  %v2321_v51 = vcombine.high %v36_v48, %v44_v49  ;;  %v2939_v52 = vld [vmem:[%s3985_s1 + $0x310] ss:$8 sps:$4 sm:$0xff]  }
  0x90   :  { %2067 = vmatpush1.bf16.msra.mxu0 %v2858_v53  ;;  %1856 = vmatprep.subr.bf16.mxu1 %v2863_v54  ;;  %v2942_v53 = vld [vmem:[%s3985_s1 + $0x710] ss:$8 sps:$4 sm:$0xff]   ;;  %v2947_v54 = vld [vmem:[%s3985_s1 + $0x324] ss:$8 sps:$4 sm:$0xff]  }
  0x91   :  { %2068 = vmatprep.subr.bf16.mxu0 %v2866_v55  ;;  %v2950_v55 = vld [vmem:[%s3985_s1 + $0x724] ss:$8 sps:$4 sm:$0xff]  }
  0x93   :  { %1857 = vmatpush1.bf16.msra.mxu1 %v2861_v56  ;;  %v3768_v56 = vld [vmem:[%s3986_s0 + $0x18] sm:$0xff] }
  0x94   :  { %2069 = vmatpush1.bf16.msra.mxu0 %v2864_v57  ;;  %1858 = vmatprep.subr.bf16.mxu1 %v2869_v58  ;;  %v2312_v57 = vcombine.low %v32_v40, %v40_v44  ;;  %v2320_v58 = vcombine.low %v36_v48, %v44_v49  ;;  %v3005_v40 = vld [vmem:[%s3985_s1 + $0x3c0] ss:$8 sps:$4 sm:$0xff]   ;;  %v3016_v44 = vld [vmem:[%s3985_s1 + $0x7d4] ss:$8 sps:$4 sm:$0xff]   ;;  %v3011_v48 = vld [vmem:[%s3985_s1 + $0x3d0] ss:$8 sps:$4 sm:$0xff]  }
  0x95   :  { %2070 = vmatprep.subr.bf16.mxu0 %v2872_v59  ;;  %v3773_v59 = vld [vmem:[%s3986_s0 + $0x58] sm:$0xff] }
  0x96   :  { %v3014_v49 = vld [vmem:[%s3985_s1 + $0x7d0] ss:$8 sps:$4 sm:$0xff]  }
  0x97   :  { %1859 = vmatpush1.bf16.msra.mxu1 %v2867_v60  ;;  %v3778_v60 = vld [vmem:[%s3986_s0 + $0x38] sm:$0xff] }
  0x98   :  { %2071 = vmatpush1.bf16.msra.mxu0 %v2870_v61  ;;  %1860 = vmatprep.subr.bf16.mxu1 %v2875_v62  ;;  %v3783_v61 = vld [vmem:[%s3986_s0 + $0x78] sm:$0xff]  ;;  %v2945_v62 = vld [vmem:[%s3985_s1 + $0x320] ss:$8 sps:$4 sm:$0xff]  }
  0x99   :  { %2072 = vmatprep.subr.bf16.mxu0 %v2878_v63  ;;  %v2948_v63 = vld [vmem:[%s3985_s1 + $0x720] ss:$8 sps:$4 sm:$0xff]  }
  0x9b   :  { %1861 = vmatpush1.bf16.msra.mxu1 %v2873_v0  ;;  %v2953_v0 = vld [vmem:[%s3985_s1 + $0x334] ss:$8 sps:$4 sm:$0xff]  }
  0x9c   :  { %2073 = vmatpush1.bf16.msra.mxu0 %v2876_v1  ;;  %1862 = vmatprep.subr.bf16.mxu1 %v2881_v2  ;;  %v2956_v1 = vld [vmem:[%s3985_s1 + $0x734] ss:$8 sps:$4 sm:$0xff]   ;;  %v2299_v2 = vcombine.high %v3768_v56, %v3773_v59 }
  0x9d   :  { %2074 = vmatprep.subr.bf16.mxu0 %v2884_v3  ;;  %v2307_v3 = vcombine.high %v3778_v60, %v3783_v61 }
  0x9f   :  { %1863 = vmatpush1.bf16.msra.mxu1 %v2879_v4  ;;  %v2951_v4 = vld [vmem:[%s3985_s1 + $0x330] ss:$8 sps:$4 sm:$0xff]  }
  0xa0   :  { %2075 = vmatpush1.bf16.msra.mxu0 %v2882_v5  ;;  %1864 = vmatprep.subr.bf16.mxu1 %v2887_v6  ;;  %v2954_v5 = vld [vmem:[%s3985_s1 + $0x730] ss:$8 sps:$4 sm:$0xff]   ;;  %v2959_v6 = vld [vmem:[%s3985_s1 + $0x344] ss:$8 sps:$4 sm:$0xff]  }
  0xa1   :  { %2076 = vmatprep.subr.bf16.mxu0 %v2890_v7  ;;  %v2962_v7 = vld [vmem:[%s3985_s1 + $0x744] ss:$8 sps:$4 sm:$0xff]  }
  0xa3   :  { %1865 = vmatpush1.bf16.msra.mxu1 %v2885_v8  ;;  %v2957_v8 = vld [vmem:[%s3985_s1 + $0x340] ss:$8 sps:$4 sm:$0xff]  }
  0xa4   :  { %2077 = vmatpush1.bf16.msra.mxu0 %v2888_v9  ;;  %1866 = vmatprep.subr.bf16.mxu1 %v2893_v10  ;;  %v2960_v9 = vld [vmem:[%s3985_s1 + $0x740] ss:$8 sps:$4 sm:$0xff]   ;;  %v2965_v10 = vld [vmem:[%s3985_s1 + $0x354] ss:$8 sps:$4 sm:$0xff]  }
  0xa5   :  { %2078 = vmatprep.subr.bf16.mxu0 %v2896_v11  ;;  %v2968_v11 = vld [vmem:[%s3985_s1 + $0x754] ss:$8 sps:$4 sm:$0xff]  }
  0xa7   :  { %1867 = vmatpush1.bf16.msra.mxu1 %v2891_v12  ;;  %v2963_v12 = vld [vmem:[%s3985_s1 + $0x350] ss:$8 sps:$4 sm:$0xff]  }
  0xa8   :  { %2079 = vmatpush1.bf16.msra.mxu0 %v2894_v13  ;;  %1868 = vmatprep.subr.bf16.mxu1 %v2899_v14  ;;  %v2966_v13 = vld [vmem:[%s3985_s1 + $0x750] ss:$8 sps:$4 sm:$0xff]   ;;  %v2971_v14 = vld [vmem:[%s3985_s1 + $0x364] ss:$8 sps:$4 sm:$0xff]  }
  0xa9   :  { %2080 = vmatprep.subr.bf16.mxu0 %v2902_v15  ;;  %v2974_v15 = vld [vmem:[%s3985_s1 + $0x764] ss:$8 sps:$4 sm:$0xff]  }
  0xab   :  { %1869 = vmatpush1.bf16.msra.mxu1 %v2897_v16  ;;  %v2969_v16 = vld [vmem:[%s3985_s1 + $0x360] ss:$8 sps:$4 sm:$0xff]  }
  0xac   :  { %2081 = vmatpush1.bf16.msra.mxu0 %v2900_v17  ;;  %1870 = vmatprep.subr.bf16.mxu1 %v2905_v18  ;;  %v2972_v17 = vld [vmem:[%s3985_s1 + $0x760] ss:$8 sps:$4 sm:$0xff]   ;;  %v2977_v18 = vld [vmem:[%s3985_s1 + $0x374] ss:$8 sps:$4 sm:$0xff]  }
  0xad   :  { %2082 = vmatprep.subr.bf16.mxu0 %v2908_v19  ;;  %v2980_v19 = vld [vmem:[%s3985_s1 + $0x774] ss:$8 sps:$4 sm:$0xff]  }
  0xaf   :  { %1871 = vmatpush1.bf16.msra.mxu1 %v2903_v20  ;;  %v2975_v20 = vld [vmem:[%s3985_s1 + $0x370] ss:$8 sps:$4 sm:$0xff]  }
  0xb0   :  { %2083 = vmatpush1.bf16.msra.mxu0 %v2906_v21  ;;  %1872 = vmatprep.subr.bf16.mxu1 %v2911_v22  ;;  %v2978_v21 = vld [vmem:[%s3985_s1 + $0x770] ss:$8 sps:$4 sm:$0xff]   ;;  %v2983_v22 = vld [vmem:[%s3985_s1 + $0x384] ss:$8 sps:$4 sm:$0xff]  }
  0xb1   :  { %2084 = vmatprep.subr.bf16.mxu0 %v2914_v23  ;;  %v2986_v23 = vld [vmem:[%s3985_s1 + $0x784] ss:$8 sps:$4 sm:$0xff]  }
  0xb3   :  { %1873 = vmatpush1.bf16.msra.mxu1 %v2909_v24  ;;  %v2981_v24 = vld [vmem:[%s3985_s1 + $0x380] ss:$8 sps:$4 sm:$0xff]  }
  0xb4   :  { %2085 = vmatpush1.bf16.msra.mxu0 %v2912_v25  ;;  %1874 = vmatprep.subr.bf16.mxu1 %v2917_v26  ;;  %v2984_v25 = vld [vmem:[%s3985_s1 + $0x780] ss:$8 sps:$4 sm:$0xff]   ;;  %v2989_v26 = vld [vmem:[%s3985_s1 + $0x394] ss:$8 sps:$4 sm:$0xff]  }
  0xb5   :  { %2086 = vmatprep.subr.bf16.mxu0 %v2920_v27  ;;  %v2992_v27 = vld [vmem:[%s3985_s1 + $0x794] ss:$8 sps:$4 sm:$0xff]  }
  0xb7   :  { %1875 = vmatpush1.bf16.msra.mxu1 %v2915_v28  ;;  %v2987_v28 = vld [vmem:[%s3985_s1 + $0x390] ss:$8 sps:$4 sm:$0xff]  }
  0xb8   :  { %2087 = vmatpush1.bf16.msra.mxu0 %v2918_v29  ;;  %1876 = vmatprep.subr.bf16.mxu1 %v2923_v30  ;;  %v2990_v29 = vld [vmem:[%s3985_s1 + $0x790] ss:$8 sps:$4 sm:$0xff]   ;;  %v2995_v30 = vld [vmem:[%s3985_s1 + $0x3a4] ss:$8 sps:$4 sm:$0xff]  }
  0xb9   :  { %2088 = vmatprep.subr.bf16.mxu0 %v2926_v31  ;;  %v2998_v31 = vld [vmem:[%s3985_s1 + $0x7a4] ss:$8 sps:$4 sm:$0xff]  }
  0xbb   :  { %1877 = vmatpush1.bf16.msra.mxu1 %v2921_v32  ;;  %v2993_v32 = vld [vmem:[%s3985_s1 + $0x3a0] ss:$8 sps:$4 sm:$0xff]  }
  0xbc   :  { %2089 = vmatpush1.bf16.msra.mxu0 %v2924_v33  ;;  %1878 = vmatprep.subr.bf16.mxu1 %v2929_v34  ;;  %v2996_v33 = vld [vmem:[%s3985_s1 + $0x7a0] ss:$8 sps:$4 sm:$0xff]   ;;  %v3001_v34 = vld [vmem:[%s3985_s1 + $0x3b4] ss:$8 sps:$4 sm:$0xff]  }
  0xbd   :  { %2090 = vmatprep.subr.bf16.mxu0 %v2932_v35  ;;  %v3004_v35 = vld [vmem:[%s3985_s1 + $0x7b4] ss:$8 sps:$4 sm:$0xff]  }
  0xbf   :  { %1879 = vmatpush1.bf16.msra.mxu1 %v2927_v36  ;;  %v2999_v36 = vld [vmem:[%s3985_s1 + $0x3b0] ss:$8 sps:$4 sm:$0xff]  }
  0xc0   :  { %2091 = vmatpush1.bf16.msra.mxu0 %v2930_v37  ;;  %1901 = vmatprep.subr.bf16.mxu1 %v2935_v38  ;;  %v3002_v37 = vld [vmem:[%s3985_s1 + $0x7b0] ss:$8 sps:$4 sm:$0xff]   ;;  %v3007_v38 = vld [vmem:[%s3985_s1 + $0x3c4] ss:$8 sps:$4 sm:$0xff]  }
  0xc1   :  { %2113 = vmatprep.subr.bf16.mxu0 %v2938_v39  ;;  %v3010_v39 = vld [vmem:[%s3985_s1 + $0x7c4] ss:$8 sps:$4 sm:$0xff]  }
  0xc2   :  { %1881 = vmatmul.mubr.bf16.vlgmr.msra.gmra.mrb[0].mxu1 %v2296_v41  ;;  %v3008_v41 = vld [vmem:[%s3985_s1 + $0x7c0] ss:$8 sps:$4 sm:$0xff]  }
  0xc3   :  { %2093 = vmatmul.mubr.bf16.vlgmr.msra.gmra.mrb[0].mxu0 %v2304_v43  ;;  %1902 = vmatpush1.bf16.msra.mxu1 %v2933_v42  ;;  %v3013_v43 = vld [vmem:[%s3985_s1 + $0x3d4] ss:$8 sps:$4 sm:$0xff]   ;;  %v3019_v42 = vld [vmem:[%s3985_s1 + $0x3e4] ss:$8 sps:$4 sm:$0xff]  }
  0xc4   :  { %2114 = vmatpush1.bf16.msra.mxu0 %v2936_v45  ;;  %1903 = vmatprep.subr.bf16.mxu1 %v2941_v46  ;;  %v3022_v45 = vld [vmem:[%s3985_s1 + $0x7e4] ss:$8 sps:$4 sm:$0xff]   ;;  %v3017_v46 = vld [vmem:[%s3985_s1 + $0x3e0] ss:$8 sps:$4 sm:$0xff]  }
  0xc5   :  { %2115 = vmatprep.subr.bf16.mxu0 %v2944_v47  ;;  %1890 = vmatprep.mubr.bf16.mxu1 %v2313_v50  ;;  %v3020_v47 = vld [vmem:[%s3985_s1 + $0x7e0] ss:$8 sps:$4 sm:$0xff]   ;;  %v3025_v50 = vld [vmem:[%s3985_s1 + $0x3f4] ss:$8 sps:$4 sm:$0xff]  }
  0xc6   :  { %2102 = vmatprep.mubr.bf16.mxu0 %v2321_v51  ;;  %v3028_v51 = vld [vmem:[%s3985_s1 + $0x7f4] ss:$8 sps:$4 sm:$0xff]  }
  0xc7   :  { %1904 = vmatpush1.bf16.msra.mxu1 %v2939_v52  ;;  %v3023_v52 = vld [vmem:[%s3985_s1 + $0x3f0] ss:$8 sps:$4 sm:$0xff]  }
  0xc8   :  { %2116 = vmatpush1.bf16.msra.mxu0 %v2942_v53  ;;  %1905 = vmatprep.subr.bf16.mxu1 %v2947_v54  ;;  %v3026_v53 = vld [vmem:[%s3985_s1 + $0x7f0] ss:$8 sps:$4 sm:$0xff]  }
  0xc9   :  { %2117 = vmatprep.subr.bf16.mxu0 %v2950_v55  ;;  %v33_v54 = vld [vmem:[%s3986_s0 + $0x98] sm:$0xff] }
  0xca   :  { %1891 = vmatmul.mubr.bf16.gmra.mrb[4].mxu1 %v2312_v57  ;;  %v41_v55 = vld [vmem:[%s3986_s0 + $0xd8] sm:$0xff] }
  0xcb   :  { %2103 = vmatmul.mubr.bf16.gmra.mrb[4].mxu0 %v2320_v58  ;;  %1906 = vmatpush1.bf16.msra.mxu1 %v2945_v62  ;;  %v37_v57 = vld [vmem:[%s3986_s0 + $0xb8] sm:$0xff]  ;;  %v2298_v62 = vcombine.low %v3768_v56, %v3773_v59 }
  0xcc   :  { %2118 = vmatpush1.bf16.msra.mxu0 %v2948_v63  ;;  %1907 = vmatprep.subr.bf16.mxu1 %v2953_v0  ;;  %v45_v58 = vld [vmem:[%s3986_s0 + $0xf8] sm:$0xff]  ;;  %v2306_v63 = vcombine.low %v3778_v60, %v3783_v61  ;;  %v2315_v0 = vcombine.high %v33_v54, %v41_v55 }
  0xcd   :  { %2119 = vmatprep.subr.bf16.mxu0 %v2956_v1  ;;  %1933 = vmatprep.mubr.bf16.mxu1 %v2299_v2  ;;  %v2323_v1 = vcombine.high %v37_v57, %v45_v58  ;;  %v2314_v2 = vcombine.low %v33_v54, %v41_v55  ;;  %v2218_v55 = vlaneseq }
  0xce   :  { %2145 = vmatprep.mubr.bf16.mxu0 %v2307_v3  ;;  %v2322_v3 = vcombine.low %v37_v57, %v45_v58 }
  0xcf   :  { %1908 = vmatpush1.bf16.msra.mxu1 %v2951_v4  ;;  %vm2232_vm0 = vcmp.lt.s32.totalorder %v2218_v55, 256 }
  0xd0   :  { %2120 = vmatpush1.bf16.msra.mxu0 %v2954_v5  ;;  %1909 = vmatprep.subr.bf16.mxu1 %v2959_v6 }
  0xd1   :  { %2121 = vmatprep.subr.bf16.mxu0 %v2962_v7 }
  0xd3   :  { %1910 = vmatpush1.bf16.msra.mxu1 %v2957_v8 }
  0xd4   :  { %2122 = vmatpush1.bf16.msra.mxu0 %v2960_v9  ;;  %1911 = vmatprep.subr.bf16.mxu1 %v2965_v10 }
  0xd5   :  { %2123 = vmatprep.subr.bf16.mxu0 %v2968_v11 }
  0xd7   :  { %1912 = vmatpush1.bf16.msra.mxu1 %v2963_v12 }
  0xd8   :  { %2124 = vmatpush1.bf16.msra.mxu0 %v2966_v13  ;;  %1913 = vmatprep.subr.bf16.mxu1 %v2971_v14 }
  0xd9   :  { %2125 = vmatprep.subr.bf16.mxu0 %v2974_v15 }
  0xdb   :  { %1914 = vmatpush1.bf16.msra.mxu1 %v2969_v16 }
  0xdc   :  { %2126 = vmatpush1.bf16.msra.mxu0 %v2972_v17  ;;  %1915 = vmatprep.subr.bf16.mxu1 %v2977_v18 }
  0xdd   :  { %2127 = vmatprep.subr.bf16.mxu0 %v2980_v19 }
  0xdf   :  { %1916 = vmatpush1.bf16.msra.mxu1 %v2975_v20 }
  0xe0   :  { %2128 = vmatpush1.bf16.msra.mxu0 %v2978_v21  ;;  %1917 = vmatprep.subr.bf16.mxu1 %v2983_v22 }
  0xe1   :  { %2129 = vmatprep.subr.bf16.mxu0 %v2986_v23 }
  0xe3   :  { %1918 = vmatpush1.bf16.msra.mxu1 %v2981_v24 }
  0xe4   :  { %2130 = vmatpush1.bf16.msra.mxu0 %v2984_v25  ;;  %1919 = vmatprep.subr.bf16.mxu1 %v2989_v26 }
  0xe5   :  { %2131 = vmatprep.subr.bf16.mxu0 %v2992_v27 }
  0xe7   :  { %1920 = vmatpush1.bf16.msra.mxu1 %v2987_v28 }
  0xe8   :  { %2132 = vmatpush1.bf16.msra.mxu0 %v2990_v29  ;;  %1921 = vmatprep.subr.bf16.mxu1 %v2995_v30 }
  0xe9   :  { %2133 = vmatprep.subr.bf16.mxu0 %v2998_v31 }
  0xeb   :  { %1922 = vmatpush1.bf16.msra.mxu1 %v2993_v32 }
  0xec   :  { %2134 = vmatpush1.bf16.msra.mxu0 %v2996_v33  ;;  %1923 = vmatprep.subr.bf16.mxu1 %v3001_v34 }
  0xed   :  { %2135 = vmatprep.subr.bf16.mxu0 %v3004_v35 }
  0xef   :  { %1924 = vmatpush1.bf16.msra.mxu1 %v2999_v36 }
  0xf0   :  { %2136 = vmatpush1.bf16.msra.mxu0 %v3002_v37  ;;  %1925 = vmatprep.subr.bf16.mxu1 %v3007_v38 }
  0xf1   :  { %2137 = vmatprep.subr.bf16.mxu0 %v3010_v39 }
  0xf3   :  { %1926 = vmatpush1.bf16.msra.mxu1 %v3005_v40 }
  0xf4   :  { %2138 = vmatpush1.bf16.msra.mxu0 %v3008_v41  ;;  %1927 = vmatprep.subr.bf16.mxu1 %v3013_v43 }
  0xf5   :  { %2139 = vmatprep.subr.bf16.mxu0 %v3016_v44 }
  0xf7   :  { %1928 = vmatpush1.bf16.msra.mxu1 %v3011_v48 }
  0xf8   :  { %2140 = vmatpush1.bf16.msra.mxu0 %v3014_v49  ;;  %1929 = vmatprep.subr.bf16.mxu1 %v3019_v42 }
  0xf9   :  { %2141 = vmatprep.subr.bf16.mxu0 %v3022_v45 }
  0xfb   :  { %1930 = vmatpush1.bf16.msra.mxu1 %v3017_v46 }
  0xfc   :  { %2142 = vmatpush1.bf16.msra.mxu0 %v3020_v47  ;;  %1931 = vmatprep.subr.bf16.mxu1 %v3025_v50 }
  0xfd   :  { %2143 = vmatprep.subr.bf16.mxu0 %v3028_v51 }
  0xff   :  { %1932 = vmatpush1.bf16.msra.mxu1 %v3023_v52 }
 0x100   :  { %2144 = vmatpush1.bf16.msra.mxu0 %v3026_v53  ;;  %v3029_v53 = vmov 1966171168  }
 0x101   :  { %v2216_v54 = vunpack.c.l.s4 %v3029_v53 }
 0x102   :  { %1934 = vmatmul.mubr.bf16.vlgmr.msra.gmra.mrb[0].mxu1 %v2298_v62 }
 0x103   :  { %2146 = vmatmul.mubr.bf16.vlgmr.msra.gmra.mrb[0].mxu0 %v2306_v63  ;;  %1943 = vmatprep.mubr.bf16.mxu1 %v2315_v0 }
 0x104   :  { %2155 = vmatprep.mubr.bf16.mxu0 %v2323_v1 }
 0x10a   :  { %1944 = vmatmul.mubr.bf16.gmra.mrb[4].mxu1 %v2314_v2 }
 0x10b   :  { %2156 = vmatmul.mubr.bf16.gmra.mrb[4].mxu0 %v2322_v3 }
 0x1d5   :  { %v1935_v4 = vpop.f32.mrb[0].mxu1 }
 0x1d6   :  { %v2147_v5 = vpop.f32.mrb[0].mxu0  ;;  %v1937_v7 = vpop.f32.mrb[1].mxu1 }
 0x1d7   :  { %v2588_v6 = vadd.f32 %v2147_v5, %v1935_v4  ;;  %v2149_v56 = vpop.f32.mrb[1].mxu0  ;;  %v1939_v8 = vpop.f32.mrb[2].mxu1  ;;  %v2217_v4 = vunpack.c.0.s8 %v2216_v54  ;;  %v2219_v5 = vshrl.u32 %v2218_v55, 7 }
 0x1d8   :  { %v2589_v59 = vadd.f32 %v2149_v56, %v1937_v7  ;;  %v2151_v60 = vpop.f32.mrb[2].mxu0  ;;  %v1941_v9 = vpop.f32.mrb[3].mxu1 }
 0x1d9   :  { %v2590_v61 = vadd.f32 %v2151_v60, %v1939_v8  ;;  %v2153_v10 = vpop.f32.mrb[3].mxu0  ;;  %v2235_v13 = vmul.f32 %v2588_v6, %v2588_v6 }
 0x1da   :  { %v2584_v11 = vpack.c.bf16 %v2589_v59, %v2588_v6  ;;  %v2591_v12 = vadd.f32 %v2153_v10, %v1941_v9  ;;  %v2236_v16 = vmul.f32 %v2589_v59, %v2589_v59  ;;  %v2220_v10 = vsub.s32 %v2217_v4, %v2219_v5 }
 0x1db   :  { %v2194_v14 = vadd.f32 %v2590_v61, %v2588_v6  ;;  %v2237_v15 = vmul.f32 %v2590_v61, %v2590_v61 }
 0x1dc   :  { %2190 = vst [vmem:[%s3987_s2] sm:$0xff] %v2584_v11  ;;  %v2585_v17 = vpack.c.bf16 %v2591_v12, %v2590_v61  ;;  %v2203_v18 = vadd.f32 %v2591_v12, %v2589_v59  ;;  %v2238_v19 = vmul.f32 %v2591_v12, %v2591_v12 }
 0x1dd   :  { %v2243_v20 = vadd.f32 %v2237_v15, %v2235_v13  ;;  %v1945_v22 = vpop.f32.mrb[4].mxu1 }
 0x1de   :  { %2191 = vst [vmem:[%s3987_s2 + $0x8] sm:$0xff] %v2585_v17  ;;  %v2252_v21 = vadd.f32 %v2238_v19, %v2236_v16  ;;  %v2157_v23 = vpop.f32.mrb[4].mxu0  ;;  %v1947_v25 = vpop.f32.mrb[5].mxu1 }
 0x1df   :  { %v2592_v24 = vadd.f32 %v2157_v23, %v1945_v22  ;;  %v2159_v26 = vpop.f32.mrb[5].mxu0  ;;  %v1949_v28 = vpop.f32.mrb[6].mxu1 }
 0x1e0   :  { %v2593_v27 = vadd.f32 %v2159_v26, %v1947_v25  ;;  %v2161_v29 = vpop.f32.mrb[6].mxu0  ;;  %v1951_v33 = vpop.f32.mrb[7].mxu1 }
 0x1e1   :  { %v2195_v30 = vadd.f32 %v2592_v24, %v2194_v14  ;;  %v2239_v31 = vmul.f32 %v2592_v24, %v2592_v24  ;;  %v2594_v32 = vadd.f32 %v2161_v29, %v1949_v28  ;;  %v2163_v34 = vpop.f32.mrb[7].mxu0 }
 0x1e2   :  { %v2586_v35 = vpack.c.bf16 %v2593_v27, %v2592_v24  ;;  %v2204_v36 = vadd.f32 %v2593_v27, %v2203_v18  ;;  %v2240_v37 = vmul.f32 %v2593_v27, %v2593_v27  ;;  %v2595_v38 = vadd.f32 %v2163_v34, %v1951_v33 }
 0x1e3   :  { %v2244_v39 = vadd.f32 %v2243_v20, %v2239_v31  ;;  %v2196_v40 = vadd.f32 %v2594_v32, %v2195_v30  ;;  %v2241_v41 = vmul.f32 %v2594_v32, %v2594_v32 }
 0x1e4   :  { %2192 = vst [vmem:[%s3987_s2 + $0x10] sm:$0xff] %v2586_v35  ;;  %v2253_v43 = vadd.f32 %v2252_v21, %v2240_v37  ;;  %v2587_v44 = vpack.c.bf16 %v2595_v38, %v2594_v32  ;;  %v2205_v48 = vadd.f32 %v2595_v38, %v2204_v36  ;;  %v2242_v49 = vmul.f32 %v2595_v38, %v2595_v38 }
 0x1e5   :  { %v2197_v42 = vrot.slane %v2196_v40, 4  ;;  %v2245_v45 = vadd.f32 %v2244_v39, %v2241_v41 }
 0x1e6   :  { %2193 = vst [vmem:[%s3987_s2 + $0x18] sm:$0xff] %v2587_v44  ;;  %v2206_v46 = vrot.slane %v2205_v48, 4  ;;  %v2254_v47 = vadd.f32 %v2253_v43, %v2242_v49 }
 0x1e7   :  { %v2198_v50 = vadd.f32 %v2197_v42, %v2196_v40  ;;  %v2246_v51 = vrot.slane %v2245_v45, 4 }
 0x1e8   :  { %v2207_v52 = vadd.f32 %v2206_v46, %v2205_v48  ;;  %v2255_v57 = vrot.slane %v2254_v47, 4 }
 0x1e9   :  { %v2199_v58 = vrot.slane %v2198_v50, 2  ;;  %v2247_v62 = vadd.f32 %v2246_v51, %v2245_v45 }
 0x1ea   :  { %v2208_v63 = vrot.slane %v2207_v52, 2  ;;  %v2256_v0 = vadd.f32 %v2255_v57, %v2254_v47 }
 0x1eb   :  { %v2200_v1 = vadd.f32 %v2199_v58, %v2198_v50  ;;  %v2248_v2 = vrot.slane %v2247_v62, 2 }
 0x1ec   :  { %v2209_v3 = vadd.f32 %v2208_v63, %v2207_v52  ;;  %v2257_v6 = vrot.slane %v2256_v0, 2 }
 0x1ed   :  { %v2201_v7 = vrot.slane %v2200_v1, 1  ;;  %v2249_v56 = vadd.f32 %v2248_v2, %v2247_v62 }
 0x1ee   :  { %v2210_v59 = vrot.slane %v2209_v3, 1  ;;  %v2258_v8 = vadd.f32 %v2257_v6, %v2256_v0 }
 0x1ef   :  { %v2202_v60 = vadd.f32 %v2201_v7, %v2200_v1  ;;  %v2250_v61 = vrot.slane %v2249_v56, 1 }
 0x1f0   :  { %v2211_v9 = vadd.f32 %v2210_v59, %v2209_v3  ;;  %v2259_v11 = vrot.slane %v2258_v8, 1 }
 0x1f1   :  { %v2251_v12 = vadd.f32 %v2250_v61, %v2249_v56 }
 0x1f2   :  { %v2214_v13 = vcombine.low %v2202_v60, %v2211_v9  ;;  %v2260_v14 = vadd.f32 %v2259_v11, %v2258_v8 }
 0x1f4   :  { %v2221_v15 = vrot.slane %v2214_v13, %v2220_v10  ;;  %v2263_v16 = vcombine.low %v2251_v12, %v2260_v14 }
 0x1f6   :  { %v2228_v17 = vrot.slane %v2221_v15, %v2220_v10  ;;  %v2270_v18 = vrot.slane %v2263_v16, %v2220_v10 }
 0x1f8   :  { %2234 = vst.msk [vmem:[%s3988_s3] sm:$0x3] %vm2232_vm0, %v2228_v17  ;;  %v2277_v19 = vrot.slane %v2270_v18, %v2220_v10 }
 0x1fa   :  { %2279 = vst.msk [vmem:[%s3989_s4] sm:$0x3] %vm2232_vm0, %v2277_v19 }

// kernel: discriminator_up_forward.16
= control target key start
LH: loop header
LB: loop body
LE: loop exit
PB: predicated region body
PF: predicated region fallthrough
CT: control target
= control target key end

     0   :  { %v34_v0 = vlaneseq  ;;  %s275_s0 = inlined_call_operand.vmem [shape: bf16[18,512], index: 0, kind: input, shape index: {}]   ;;  %s276_s1 = inlined_call_operand.vmem [shape: f32[1,512], index: 1, kind: input, shape index: {}]   ;;  %s277_s2 = inlined_call_operand.vmem [shape: f32[1,512], index: 2, kind: input, shape index: {}]   ;;  %s278_s3 = inlined_call_operand.vmem [shape: bf16[18,512], index: 3, kind: output, shape index: {}]  }
   0x1   :  { %v14_v1 = vld [vmem:[%s275_s0] sm:$0xff]  ;;  %v15_v5 = vld [vmem:[%s275_s0 + $0x8] sm:$0xff]  ;;  %v16_v6 = vld [vmem:[%s275_s0 + $0x10] sm:$0xff] }
   0x2   :  { %v20_v2 = vunpack.c.l.bf16 %v14_v1  ;;  %v21_v3 = vunpack.c.h.bf16 %v14_v1  ;;  %v35_v4 = vshrl.u32 %v34_v0, 7  ;;  %v17_v7 = vld [vmem:[%s275_s0 + $0x18] sm:$0xff]  ;;  %v32_v8 = vld [vmem:[%s276_s1] sm:$0xf]  ;;  %v22_v10 = vunpack.c.l.bf16 %v15_v5  ;;  %v19_v57 = vld [vmem:[%s275_s0 + $0x28] sm:$0x11] }
   0x3   :  { %v66_v9 = vld [vmem:[%s277_s2] sm:$0xf]  ;;  %v23_v11 = vunpack.c.h.bf16 %v15_v5  ;;  %v24_v12 = vunpack.c.l.bf16 %v16_v6  ;;  %v25_v13 = vunpack.c.h.bf16 %v16_v6  ;;  %v26_v19 = vunpack.c.l.bf16 %v17_v7 }
   0x4   :  { %v239_v14 = vld [vmem:[%s275_s0 + $0x20] sm:$0x11]  ;;  %v36_v15 = vsub.s32 0, %v35_v4  ;;  %v40_v16 = vsub.s32 1, %v35_v4  ;;  %v44_v17 = vsub.s32 2, %v35_v4  ;;  %v48_v18 = vsub.s32 3, %v35_v4 }
   0x5   :  { %v27_v20 = vunpack.c.h.bf16 %v17_v7  ;;  %v28_v21 = vunpack.c.l.bf16 %v239_v14  ;;  %v29_v22 = vunpack.c.h.bf16 %v239_v14 }
   0x6   :  { %v37_v23 = vrot.slane %v32_v8, %v36_v15  ;;  %v41_v24 = vrot.slane %v32_v8, %v40_v16  ;;  %v71_v25 = vrot.slane %v66_v9, %v36_v15  ;;  %v75_v26 = vrot.slane %v66_v9, %v40_v16 }
   0x7   :  { %v45_v27 = vrot.slane %v32_v8, %v44_v17  ;;  %v49_v28 = vrot.slane %v32_v8, %v48_v18  ;;  %v243_v29 = vrot.slane %v66_v9, %v44_v17  ;;  %v245_v30 = vrot.slane %v66_v9, %v48_v18 }
   0x8   :  { %v54_v31 = vmul.f32 %v37_v23, %v20_v2  ;;  %v55_v32 = vmul.f32 %v41_v24, %v21_v3  ;;  %v58_v33 = vmul.f32 %v37_v23, %v24_v12  ;;  %v59_v34 = vmul.f32 %v41_v24, %v25_v13 }
   0x9   :  { %v56_v35 = vmul.f32 %v45_v27, %v22_v10  ;;  %v57_v36 = vmul.f32 %v49_v28, %v23_v11  ;;  %v60_v37 = vmul.f32 %v45_v27, %v26_v19  ;;  %v61_v38 = vmul.f32 %v49_v28, %v27_v20 }
   0xa   :  { %v88_v39 = vadd.f32 %v71_v25, %v54_v31  ;;  %v89_v40 = vadd.f32 %v75_v26, %v55_v32  ;;  %v92_v41 = vadd.f32 %v71_v25, %v58_v33  ;;  %v93_v42 = vadd.f32 %v75_v26, %v59_v34 }
   0xb   :  { %v90_v43 = vadd.f32 %v243_v29, %v56_v35  ;;  %v91_v44 = vadd.f32 %v245_v30, %v57_v36  ;;  %v94_v45 = vadd.f32 %v243_v29, %v60_v37  ;;  %v95_v46 = vadd.f32 %v245_v30, %v61_v38 }
   0xc   :  { %vm100_vm0 = vcmp.ge.f32.partialorder %v88_v39, 0.0  ;;  %vm101_vm1 = vcmp.ge.f32.partialorder %v89_v40, 0.0  ;;  %v112_v47 = vmul.f32 0.2, %v88_v39  ;;  %v113_v48 = vmul.f32 0.2, %v89_v40 }
   0xd   :  { %vm102_vm2 = vcmp.ge.f32.partialorder %v90_v43, 0.0  ;;  %vm103_vm3 = vcmp.ge.f32.partialorder %v91_v44, 0.0  ;;  %v114_v49 = vmul.f32 0.2, %v90_v43  ;;  %v115_v50 = vmul.f32 0.2, %v91_v44 }
   0xe   :  { %v124_v51 = vsel %vm100_vm0, %v88_v39, %v112_v47  ;;  %v125_v52 = vsel %vm101_vm1, %v89_v40, %v113_v48  ;;  %vm104_vm4 = vcmp.ge.f32.partialorder %v92_v41, 0.0  ;;  %vm105_vm5 = vcmp.ge.f32.partialorder %v93_v42, 0.0 }
   0xf   :  { %v192_v53 = vpack.c.bf16 %v125_v52, %v124_v51  ;;  %v126_v54 = vsel %vm102_vm2, %v90_v43, %v114_v49  ;;  %v127_v55 = vsel %vm103_vm3, %v91_v44, %v115_v50  ;;  %v116_v56 = vmul.f32 0.2, %v92_v41 }
  0x10   :  { %v193_v58 = vpack.c.bf16 %v127_v55, %v126_v54  ;;  %v117_v59 = vmul.f32 0.2, %v93_v42  ;;  %vm106_vm6 = vcmp.ge.f32.partialorder %v94_v45, 0.0  ;;  %vm107_vm7 = vcmp.ge.f32.partialorder %v95_v46, 0.0 }
  0x11   :  { %176 = vst [vmem:[%s278_s3] sm:$0xff] %v192_v53  ;;  %v128_v60 = vsel %vm104_vm4, %v92_v41, %v116_v56  ;;  %v118_v61 = vmul.f32 0.2, %v94_v45  ;;  %v119_v62 = vmul.f32 0.2, %v95_v46  ;;  %v62_v63 = vmul.f32 %v37_v23, %v28_v21 }
  0x12   :  { %177 = vst [vmem:[%s278_s3 + $0x8] sm:$0xff] %v193_v58  ;;  %v129_v0 = vsel %vm105_vm5, %v93_v42, %v117_v59  ;;  %v63_v1 = vmul.f32 %v41_v24, %v29_v22  ;;  %v30_v2 = vunpack.c.l.bf16 %v19_v57  ;;  %v31_v3 = vunpack.c.h.bf16 %v19_v57 }
  0x13   :  { %v194_v4 = vpack.c.bf16 %v129_v0, %v128_v60  ;;  %v130_v5 = vsel %vm106_vm6, %v94_v45, %v118_v61  ;;  %v131_v6 = vsel %vm107_vm7, %v95_v46, %v119_v62  ;;  %v96_v7 = vadd.f32 %v71_v25, %v62_v63 }
  0x14   :  { %v195_v8 = vpack.c.bf16 %v131_v6, %v130_v5  ;;  %v97_v9 = vadd.f32 %v75_v26, %v63_v1  ;;  %v64_v10 = vmul.f32 %v45_v27, %v30_v2  ;;  %v65_v11 = vmul.f32 %v49_v28, %v31_v3 }
  0x15   :  { %178 = vst [vmem:[%s278_s3 + $0x10] sm:$0xff] %v194_v4  ;;  %vm108_vm8 = vcmp.ge.f32.partialorder %v96_v7, 0.0  ;;  %v120_v12 = vmul.f32 0.2, %v96_v7 }
  0x16   :  { %179 = vst [vmem:[%s278_s3 + $0x18] sm:$0xff] %v195_v8  ;;  %vm109_vm9 = vcmp.ge.f32.partialorder %v97_v9, 0.0  ;;  %v121_v13 = vmul.f32 0.2, %v97_v9  ;;  %v98_v14 = vadd.f32 %v243_v29, %v64_v10  ;;  %v99_v15 = vadd.f32 %v245_v30, %v65_v11 }
  0x17   :  { %v132_v16 = vsel %vm108_vm8, %v96_v7, %v120_v12 }
  0x18   :  { %v133_v17 = vsel %vm109_vm9, %v97_v9, %v121_v13  ;;  %vm110_vm10 = vcmp.ge.f32.partialorder %v98_v14, 0.0  ;;  %vm111_vm11 = vcmp.ge.f32.partialorder %v99_v15, 0.0  ;;  %v122_v18 = vmul.f32 0.2, %v98_v14 }
  0x19   :  { %v196_v19 = vpack.c.bf16 %v133_v17, %v132_v16  ;;  %v123_v20 = vmul.f32 0.2, %v99_v15 }
  0x1a   :  { %v134_v21 = vsel %vm110_vm10, %v98_v14, %v122_v18 }
  0x1b   :  { %180 = vst [vmem:[%s278_s3 + $0x20] sm:$0x11] %v196_v19  ;;  %v135_v22 = vsel %vm111_vm11, %v99_v15, %v123_v20 }
  0x1c   :  { %v197_v23 = vpack.c.bf16 %v135_v22, %v134_v21 }
  0x1e   :  { %181 = vst [vmem:[%s278_s3 + $0x28] sm:$0x11] %v197_v23 }

// kernel: discriminator_up_forward.15
= control target key start
LH: loop header
LB: loop body
LE: loop exit
PB: predicated region body
PF: predicated region fallthrough
CT: control target
= control target key end

     0   :  { %s6420_s15 = smov 0   ;;  %s6422_s16 = smov 0   ;;  %s7217_s0 = inlined_call_operand.vmem [shape: bf16[18,4096], index: 0, kind: input, shape index: {}]   ;;  %s7218_s1 = inlined_call_operand.vmem [shape: bf16[4096,512], index: 1, kind: input, shape index: {}]   ;;  %s7219_s2 = inlined_call_operand.vmem [shape: bf16[18,512], index: 2, kind: output, shape index: {0}]   ;;  %s7220_s3 = inlined_call_operand.vmem [shape: f32[1,512], index: 3, kind: output, shape index: {1}]   ;;  %s7221_s4 = inlined_call_operand.vmem [shape: f32[1,512], index: 4, kind: output, shape index: {2}]  }
   0x1   :  { %s6424_s17 = smov 0   ;;  %s6426_s18 = smov 0  }
   0x2   :  { %s6428_s19 = smov 0  }
   0x3 LB: > { %s27_s20 = sadd.s32 1, %s6387_s18  ;;  %p50_p1 = scmp.ne.s32.totalorder %s6379_s16, %s6375_s15  ;;  %s6391_s19 = sphi %s6428_s19, %s15_s19   ;;  %s6387_s18 = sphi %s6426_s18, %s7225_s18   ;;  %s6383_s17 = sphi %s6424_s17, %s7224_s17   ;;  %s6379_s16 = sphi %s6422_s16, %s7223_s16   ;;  %s6375_s15 = sphi %s6420_s15, %s7222_s15  }
   0x4   : > { %p28_p0 = scmp.ge.s32.totalorder %s27_s20, 2  ;;  %p51_p2 = scmp.eq.s32.totalorder %s6391_s19, 0 }
   0x5   : > { %s43_s22 = sadd.s32 1, %s6379_s16  ;;  %p4894_p5 = scmp.ge.s32.totalorder %s6391_s19, 2 }
   0x6   : > { %s7227_s20 = smov (%p28_p0, %s27_s20), 0  ;;  %p52_p3 = por %p51_p2, %p50_p1 }
   0x7   : > { %s39_s21 = ssub.s32 %s6387_s18, %s7227_s20  ;;  %188 = sbr.rel (%p4894_p5) target bundleno = 31 (0x1f), region = 16 }
   0x8   : > { %p41_p4 = scmp.eq.s32.totalorder %s39_s21, 0 }
   0xa   : > { %s6455_s23 = scalar_select %p41_p4, %s6379_s16, %s43_s22  }
   0xe   : > { %191 = sbr.rel (!%p52_p3) target bundleno = 31 (0x1f), region = 20  ;;  %s193_s24 = sand.u32 (%p52_p3), 1, %s6379_s16  }
   0xf   : > { %s5461_s25 = sshll.u32 (%p52_p3), %s6387_s18, 6  ;;  %s5525_s26 = smul.u32 (%p52_p3), 192, %s193_s24 }
  0x10   : > { %s6463_s29 = scalar_lea.vmem (%p52_p3), %s7217_s0, %s5461_s25 }
  0x11   : > { %v214_v0 = vld [vmem:[%s6463_s29] sm:$0xff] (%p52_p3)  ;;  %v216_v1 = vld [vmem:[%s6463_s29 + $0x8] sm:$0xff] (%p52_p3)  ;;  %v218_v2 = vld [vmem:[%s6463_s29 + $0x10] sm:$0xff] (%p52_p3)  ;;  %s6471_s30 = scalar_lea.vmem (%p52_p3), [#allocation3], %s5525_s26 }
  0x12   : > { %v220_v3 = vld [vmem:[%s6463_s29 + $0x18] sm:$0xff] (%p52_p3)  ;;  %v222_v4 = vld [vmem:[%s6463_s29 + $0x20] sm:$0xff] (%p52_p3)  ;;  %v224_v5 = vld [vmem:[%s6463_s29 + $0x28] sm:$0xff] (%p52_p3)  ;;  %215 = vst [vmem:[%s6471_s30] sm:$0xff] (%p52_p3), %v214_v0 }
  0x13   : > { %217 = vst [vmem:[%s6471_s30 + $0x8] sm:$0xff] (%p52_p3), %v216_v1  ;;  %219 = vst [vmem:[%s6471_s30 + $0x10] sm:$0xff] (%p52_p3), %v218_v2  ;;  %v226_v6 = vld [vmem:[%s6463_s29 + $0x30] sm:$0xff] (%p52_p3)  ;;  %v228_v7 = vld [vmem:[%s6463_s29 + $0x38] sm:$0xff] (%p52_p3) }
  0x14   : > { %221 = vst [vmem:[%s6471_s30 + $0x18] sm:$0xff] (%p52_p3), %v220_v3  ;;  %223 = vst [vmem:[%s6471_s30 + $0x20] sm:$0xff] (%p52_p3), %v222_v4  ;;  %v230_v8 = vld [vmem:[%s6463_s29 + $0x80] sm:$0xff] (%p52_p3)  ;;  %v232_v9 = vld [vmem:[%s6463_s29 + $0x88] sm:$0xff] (%p52_p3) }
  0x15   : > { %225 = vst [vmem:[%s6471_s30 + $0x28] sm:$0xff] %v224_v5  ;;  %227 = vst [vmem:[%s6471_s30 + $0x30] sm:$0xff] %v226_v6  ;;  %v234_v10 = vld [vmem:[%s6463_s29 + $0x90] sm:$0xff]  ;;  %v236_v11 = vld [vmem:[%s6463_s29 + $0x98] sm:$0xff] }
  0x16   : > { %229 = vst [vmem:[%s6471_s30 + $0x38] sm:$0xff] %v228_v7  ;;  %231 = vst [vmem:[%s6471_s30 + $0x40] sm:$0xff] %v230_v8  ;;  %v238_v12 = vld [vmem:[%s6463_s29 + $0xa0] sm:$0xff]  ;;  %v240_v13 = vld [vmem:[%s6463_s29 + $0xa8] sm:$0xff] }
  0x17   : > { %233 = vst [vmem:[%s6471_s30 + $0x48] sm:$0xff] %v232_v9  ;;  %235 = vst [vmem:[%s6471_s30 + $0x50] sm:$0xff] %v234_v10  ;;  %v242_v14 = vld [vmem:[%s6463_s29 + $0xb0] sm:$0xff]  ;;  %v244_v15 = vld [vmem:[%s6463_s29 + $0xb8] sm:$0xff] }
  0x18   : > { %237 = vst [vmem:[%s6471_s30 + $0x58] sm:$0xff] %v236_v11  ;;  %239 = vst [vmem:[%s6471_s30 + $0x60] sm:$0xff] %v238_v12  ;;  %v246_v16 = vld [vmem:[%s6463_s29 + $0x100] sm:$0xff]  ;;  %v248_v17 = vld [vmem:[%s6463_s29 + $0x108] sm:$0xff] }
  0x19   : > { %241 = vst [vmem:[%s6471_s30 + $0x68] sm:$0xff] %v240_v13  ;;  %243 = vst [vmem:[%s6471_s30 + $0x70] sm:$0xff] %v242_v14  ;;  %v250_v18 = vld [vmem:[%s6463_s29 + $0x110] sm:$0xff]  ;;  %v252_v19 = vld [vmem:[%s6463_s29 + $0x118] sm:$0xff] }
  0x1a   : > { %245 = vst [vmem:[%s6471_s30 + $0x78] sm:$0xff] %v244_v15  ;;  %247 = vst [vmem:[%s6471_s30 + $0x80] sm:$0xff] %v246_v16  ;;  %v254_v20 = vld [vmem:[%s6463_s29 + $0x120] sm:$0xff]  ;;  %v256_v21 = vld [vmem:[%s6463_s29 + $0x128] sm:$0xff] }
  0x1b   : > { %249 = vst [vmem:[%s6471_s30 + $0x88] sm:$0xff] %v248_v17  ;;  %251 = vst [vmem:[%s6471_s30 + $0x90] sm:$0xff] %v250_v18  ;;  %v258_v22 = vld [vmem:[%s6463_s29 + $0x130] sm:$0xff]  ;;  %v260_v23 = vld [vmem:[%s6463_s29 + $0x138] sm:$0xff] }
  0x1c   : > { %253 = vst [vmem:[%s6471_s30 + $0x98] sm:$0xff] %v252_v19  ;;  %255 = vst [vmem:[%s6471_s30 + $0xa0] sm:$0xff] %v254_v20 }
  0x1d   : > { %257 = vst [vmem:[%s6471_s30 + $0xa8] sm:$0xff] %v256_v21  ;;  %259 = vst [vmem:[%s6471_s30 + $0xb0] sm:$0xff] %v258_v22 }
  0x1e   : > { %261 = vst [vmem:[%s6471_s30 + $0xb8] sm:$0xff] %v260_v23 }
  0x1f PF: > { %p4897_p6 = scmp.ge.s32.totalorder %s6391_s19, 1  ;;  %p281_p7 = scmp.lt.s32.totalorder %s6391_s19, 3 }
  0x21   : > { %p282_p8 = pnand %p4897_p6, %p281_p7 }
  0x22   : > { %s288_s5 = sand.u32 (!%p282_p8), 1, %s6375_s15   ;;  %s4898_s6 = sshll.u32 (!%p282_p8), %s6383_s17, 8 }
  0x23   : > { %285 = sbr.rel (%p282_p8) target bundleno = 827 (0x33b), region = 47  ;;  %p348_p9 = scmp.lt.s32.totalorder (!%p282_p8), %s4898_s6, 511 }
  0x24   : > { %s5526_s7 = smul.u32 (!%p282_p8), 192, %s288_s5  ;;  %p4901_p10 = scmp.ne.s32.totalorder (!%p282_p8), %s6383_s17, 0 }
  0x26   : > { %s6524_s12 = scalar_lea.vmem (!%p282_p8), [#allocation3], %s5526_s7 }
  0x2a   : > { %s7229_s6 = smov (!%p348_p9, %s4898_s6), 511  ;;  %391 = sbr.rel (%p4901_p10) target bundleno = 50 (0x32), region = 55 }
  0x2b   : > { %s5462_s8 = sshll.u32 %s7229_s6, 4  ;;  %v6393_v24 = vmov (!%p4901_p10), 0.0  }
  0x2c   : > { %s6522_s11 = scalar_lea.vmem %s7218_s1, %s5462_s8  ;;  %392 = vst [vmem:[#allocation2] sm:$0xff] (!%p4901_p10), %v6393_v24  ;;  %393 = vst [vmem:[#allocation2 + $0x8] sm:$0xff] (!%p4901_p10), %v6393_v24 }
  0x2d   : > { %394 = vst [vmem:[#allocation2 + $0x10] sm:$0xff] (!%p4901_p10), %v6393_v24  ;;  %395 = vst [vmem:[#allocation2 + $0x18] sm:$0xff] (!%p4901_p10), %v6393_v24 }
  0x2e   : > { %396 = vst [vmem:[#allocation2 + $0x20] sm:$0xff] (!%p4901_p10), %v6393_v24  ;;  %397 = vst [vmem:[#allocation2 + $0x28] sm:$0xff] (!%p4901_p10), %v6393_v24 }
  0x2f   : > { %398 = vst [vmem:[#allocation2 + $0x30] sm:$0xff] (!%p4901_p10), %v6393_v24  ;;  %399 = vst [vmem:[#allocation2 + $0x38] sm:$0xff] (!%p4901_p10), %v6393_v24 }
  0x30   : > { %400 = vst [vmem:[#allocation2 + $0x40] sm:$0x3] (!%p4901_p10), %v6393_v24  ;;  %401 = vst [vmem:[#allocation2 + $0x48] sm:$0x3] (!%p4901_p10), %v6393_v24 }
  0x31   : > { %402 = vst [vmem:[#allocation2 + $0x50] sm:$0x3] %v6393_v24  ;;  %403 = vst [vmem:[#allocation2 + $0x58] sm:$0x3] %v6393_v24 }
  0x32 PF: > { %v5569_v25 = vld [vmem:[%s6522_s11 + $0x4] ss:$16 sps:$4 sm:$0xff]   ;;  %v5571_v26 = vld [vmem:[%s6522_s11 + $0xc] ss:$16 sps:$4 sm:$0xff]   ;;  %v5573_v27 = vld [vmem:[%s6522_s11] ss:$16 sps:$4 sm:$0xff]  }
  0x33   : > { %3648 = vmatprep.subr.bf16.mxu0 %v5569_v25  ;;  %v5574_v28 = vld [vmem:[%s6522_s11 + $0x8] ss:$16 sps:$4 sm:$0xff]   ;;  %4056 = vmatprep.subr.bf16.mxu1 %v5571_v26  ;;  %v5575_v29 = vld [vmem:[%s6522_s11 + $0x24] ss:$16 sps:$4 sm:$0xff]   ;;  %v5577_v30 = vld [vmem:[%s6522_s11 + $0x2c] ss:$16 sps:$4 sm:$0xff]  }
  0x34   : > { %3649 = vmatpush1.bf16.msra.mxu0 %v5573_v27  ;;  %4057 = vmatpush1.bf16.msra.mxu1 %v5574_v28  ;;  %v5579_v31 = vld [vmem:[%s6522_s11 + $0x20] ss:$16 sps:$4 sm:$0xff]   ;;  %v5580_v32 = vld [vmem:[%s6522_s11 + $0x28] ss:$16 sps:$4 sm:$0xff]   ;;  %v5581_v33 = vld [vmem:[%s6522_s11 + $0x44] ss:$16 sps:$4 sm:$0xff]  }
  0x35   : > { %3650 = vmatprep.subr.bf16.mxu0 %v5575_v29  ;;  %4058 = vmatprep.subr.bf16.mxu1 %v5577_v30  ;;  %v5583_v34 = vld [vmem:[%s6522_s11 + $0x4c] ss:$16 sps:$4 sm:$0xff]   ;;  %v5585_v35 = vld [vmem:[%s6522_s11 + $0x40] ss:$16 sps:$4 sm:$0xff]   ;;  %v5586_v36 = vld [vmem:[%s6522_s11 + $0x48] ss:$16 sps:$4 sm:$0xff]  }
  0x36   : > { %v5587_v37 = vld [vmem:[%s6522_s11 + $0x64] ss:$16 sps:$4 sm:$0xff]   ;;  %v5589_v38 = vld [vmem:[%s6522_s11 + $0x6c] ss:$16 sps:$4 sm:$0xff]   ;;  %v5591_v39 = vld [vmem:[%s6522_s11 + $0x60] ss:$16 sps:$4 sm:$0xff]  }
  0x37   : > { %v5592_v40 = vld [vmem:[%s6522_s11 + $0x68] ss:$16 sps:$4 sm:$0xff]   ;;  %v5593_v41 = vld [vmem:[%s6522_s11 + $0x84] ss:$16 sps:$4 sm:$0xff]   ;;  %v5595_v42 = vld [vmem:[%s6522_s11 + $0x8c] ss:$16 sps:$4 sm:$0xff]  }
  0x38   : > { %3651 = vmatpush1.bf16.msra.mxu0 %v5579_v31  ;;  %4059 = vmatpush1.bf16.msra.mxu1 %v5580_v32  ;;  %v5597_v43 = vld [vmem:[%s6522_s11 + $0x80] ss:$16 sps:$4 sm:$0xff]   ;;  %v5598_v44 = vld [vmem:[%s6522_s11 + $0x88] ss:$16 sps:$4 sm:$0xff]   ;;  %v5599_v45 = vld [vmem:[%s6522_s11 + $0xa4] ss:$16 sps:$4 sm:$0xff]  }
  0x39   : > { %3652 = vmatprep.subr.bf16.mxu0 %v5581_v33  ;;  %4060 = vmatprep.subr.bf16.mxu1 %v5583_v34  ;;  %v5601_v46 = vld [vmem:[%s6522_s11 + $0xac] ss:$16 sps:$4 sm:$0xff]   ;;  %v5603_v47 = vld [vmem:[%s6522_s11 + $0xa0] ss:$16 sps:$4 sm:$0xff]   ;;  %v5604_v48 = vld [vmem:[%s6522_s11 + $0xa8] ss:$16 sps:$4 sm:$0xff]  }
  0x3a   : > { %v5605_v49 = vld [vmem:[%s6522_s11 + $0xc4] ss:$16 sps:$4 sm:$0xff]   ;;  %v5607_v50 = vld [vmem:[%s6522_s11 + $0xcc] ss:$16 sps:$4 sm:$0xff]   ;;  %v5609_v51 = vld [vmem:[%s6522_s11 + $0xc0] ss:$16 sps:$4 sm:$0xff]  }
  0x3b   : > { %v5610_v52 = vld [vmem:[%s6522_s11 + $0xc8] ss:$16 sps:$4 sm:$0xff]   ;;  %v5611_v53 = vld [vmem:[%s6522_s11 + $0xe4] ss:$16 sps:$4 sm:$0xff]   ;;  %v5613_v54 = vld [vmem:[%s6522_s11 + $0xec] ss:$16 sps:$4 sm:$0xff]  }
  0x3c   : > { %3653 = vmatpush1.bf16.msra.mxu0 %v5585_v35  ;;  %4061 = vmatpush1.bf16.msra.mxu1 %v5586_v36  ;;  %v5615_v55 = vld [vmem:[%s6522_s11 + $0xe0] ss:$16 sps:$4 sm:$0xff]   ;;  %v5616_v56 = vld [vmem:[%s6522_s11 + $0xe8] ss:$16 sps:$4 sm:$0xff]   ;;  %v5617_v57 = vld [vmem:[%s6522_s11 + $0x104] ss:$16 sps:$4 sm:$0xff]  }
  0x3d   : > { %3654 = vmatprep.subr.bf16.mxu0 %v5587_v37  ;;  %4062 = vmatprep.subr.bf16.mxu1 %v5589_v38  ;;  %v5619_v58 = vld [vmem:[%s6522_s11 + $0x10c] ss:$16 sps:$4 sm:$0xff]   ;;  %v5621_v59 = vld [vmem:[%s6522_s11 + $0x100] ss:$16 sps:$4 sm:$0xff]   ;;  %v5622_v60 = vld [vmem:[%s6522_s11 + $0x108] ss:$16 sps:$4 sm:$0xff]  }
  0x3e   : > { %v5623_v61 = vld [vmem:[%s6522_s11 + $0x124] ss:$16 sps:$4 sm:$0xff]   ;;  %v5625_v62 = vld [vmem:[%s6522_s11 + $0x12c] ss:$16 sps:$4 sm:$0xff]   ;;  %v5627_v63 = vld [vmem:[%s6522_s11 + $0x120] ss:$16 sps:$4 sm:$0xff]  }
  0x3f   : > { %v5628_v0 = vld [vmem:[%s6522_s11 + $0x128] ss:$16 sps:$4 sm:$0xff]   ;;  %v5629_v1 = vld [vmem:[%s6522_s11 + $0x144] ss:$16 sps:$4 sm:$0xff]   ;;  %v5631_v2 = vld [vmem:[%s6522_s11 + $0x14c] ss:$16 sps:$4 sm:$0xff]  }
  0x40   : > { %3655 = vmatpush1.bf16.msra.mxu0 %v5591_v39  ;;  %4063 = vmatpush1.bf16.msra.mxu1 %v5592_v40  ;;  %v5633_v3 = vld [vmem:[%s6522_s11 + $0x140] ss:$16 sps:$4 sm:$0xff]   ;;  %v5634_v4 = vld [vmem:[%s6522_s11 + $0x148] ss:$16 sps:$4 sm:$0xff]   ;;  %v5635_v5 = vld [vmem:[%s6522_s11 + $0x164] ss:$16 sps:$4 sm:$0xff]  }
  0x41   : > { %3656 = vmatprep.subr.bf16.mxu0 %v5593_v41  ;;  %4064 = vmatprep.subr.bf16.mxu1 %v5595_v42  ;;  %v5637_v6 = vld [vmem:[%s6522_s11 + $0x16c] ss:$16 sps:$4 sm:$0xff]   ;;  %v416_v7 = vld [vmem:[%s6524_s12] sm:$0xff]  ;;  %v5640_v10 = vld [vmem:[%s6522_s11 + $0x168] ss:$16 sps:$4 sm:$0xff]   ;;  %p5446_p11 = scmp.ne.s32.totalorder %s6383_s17, 1 }
  0x42   : > { %v424_v8 = vld [vmem:[%s6524_s12 + $0x40] sm:$0xff]  ;;  %v5643_v13 = vld [vmem:[%s6522_s11 + $0x18c] ss:$16 sps:$4 sm:$0xff]   ;;  %v5646_v15 = vld [vmem:[%s6522_s11 + $0x188] ss:$16 sps:$4 sm:$0xff]   ;;  %vm4551_vm0 = vcmask (!%p5446_p11), 1041408  }
  0x43   : > { %v5639_v9 = vld [vmem:[%s6522_s11 + $0x160] ss:$16 sps:$4 sm:$0xff]   ;;  %v4903_v11 = vcombine.high %v416_v7, %v424_v8  ;;  %v5641_v12 = vld [vmem:[%s6522_s11 + $0x184] ss:$16 sps:$4 sm:$0xff]   ;;  %v5649_v17 = vld [vmem:[%s6522_s11 + $0x1ac] ss:$16 sps:$4 sm:$0xff]   ;;  %v4902_v30 = vcombine.low %v416_v7, %v424_v8 }
  0x44   : > { %3657 = vmatpush1.bf16.msra.mxu0 %v5597_v43  ;;  %4065 = vmatpush1.bf16.msra.mxu1 %v5598_v44  ;;  %v5645_v14 = vld [vmem:[%s6522_s11 + $0x180] ss:$16 sps:$4 sm:$0xff]   ;;  %v5647_v16 = vld [vmem:[%s6522_s11 + $0x1a4] ss:$16 sps:$4 sm:$0xff]   ;;  %v5652_v19 = vld [vmem:[%s6522_s11 + $0x1a8] ss:$16 sps:$4 sm:$0xff]  }
  0x45   : > { %3658 = vmatprep.subr.bf16.mxu0 %v5599_v45  ;;  %4066 = vmatprep.subr.bf16.mxu1 %v5601_v46  ;;  %v5651_v18 = vld [vmem:[%s6522_s11 + $0x1a0] ss:$16 sps:$4 sm:$0xff]   ;;  %v5653_v20 = vld [vmem:[%s6522_s11 + $0x1c4] ss:$16 sps:$4 sm:$0xff]   ;;  %v5655_v21 = vld [vmem:[%s6522_s11 + $0x1cc] ss:$16 sps:$4 sm:$0xff]  }
  0x46   : > { %3680 = vmatprep.mubr.bf16.mxu0 %v4903_v11  ;;  %4088 = vmatprep.mubr.bf16.mxu1 %v4903_v11  ;;  %v5657_v22 = vld [vmem:[%s6522_s11 + $0x1c0] ss:$16 sps:$4 sm:$0xff]   ;;  %v5658_v23 = vld [vmem:[%s6522_s11 + $0x1c8] ss:$16 sps:$4 sm:$0xff]   ;;  %v5659_v24 = vld [vmem:[%s6522_s11 + $0x1e4] ss:$16 sps:$4 sm:$0xff]  }
  0x47   : > { %v5661_v25 = vld [vmem:[%s6522_s11 + $0x1ec] ss:$16 sps:$4 sm:$0xff]   ;;  %v5663_v26 = vld [vmem:[%s6522_s11 + $0x1e0] ss:$16 sps:$4 sm:$0xff]   ;;  %v5664_v27 = vld [vmem:[%s6522_s11 + $0x1e8] ss:$16 sps:$4 sm:$0xff]  }
  0x48   : > { %3659 = vmatpush1.bf16.msra.mxu0 %v5603_v47  ;;  %4067 = vmatpush1.bf16.msra.mxu1 %v5604_v48  ;;  %v5667_v28 = vld [vmem:[%s6522_s11 + $0x204] ss:$16 sps:$4 sm:$0xff]   ;;  %v5670_v29 = vld [vmem:[%s6522_s11 + $0x20c] ss:$16 sps:$4 sm:$0xff]   ;;  %v5665_v31 = vld [vmem:[%s6522_s11 + $0x200] ss:$16 sps:$4 sm:$0xff]  }
  0x49   : > { %3660 = vmatprep.subr.bf16.mxu0 %v5605_v49  ;;  %4068 = vmatprep.subr.bf16.mxu1 %v5607_v50  ;;  %v5668_v32 = vld [vmem:[%s6522_s11 + $0x208] ss:$16 sps:$4 sm:$0xff]   ;;  %v5673_v33 = vld [vmem:[%s6522_s11 + $0x224] ss:$16 sps:$4 sm:$0xff]   ;;  %v5676_v34 = vld [vmem:[%s6522_s11 + $0x22c] ss:$16 sps:$4 sm:$0xff]  }
  0x4a   : > { %v5671_v35 = vld [vmem:[%s6522_s11 + $0x220] ss:$16 sps:$4 sm:$0xff]   ;;  %v5674_v36 = vld [vmem:[%s6522_s11 + $0x228] ss:$16 sps:$4 sm:$0xff]   ;;  %v5679_v37 = vld [vmem:[%s6522_s11 + $0x244] ss:$16 sps:$4 sm:$0xff]  }
  0x4b   : > { %v5682_v38 = vld [vmem:[%s6522_s11 + $0x24c] ss:$16 sps:$4 sm:$0xff]   ;;  %v5677_v39 = vld [vmem:[%s6522_s11 + $0x240] ss:$16 sps:$4 sm:$0xff]   ;;  %v5680_v40 = vld [vmem:[%s6522_s11 + $0x248] ss:$16 sps:$4 sm:$0xff]  }
  0x4c   : > { %3661 = vmatpush1.bf16.msra.mxu0 %v5609_v51  ;;  %4069 = vmatpush1.bf16.msra.mxu1 %v5610_v52  ;;  %v5685_v41 = vld [vmem:[%s6522_s11 + $0x264] ss:$16 sps:$4 sm:$0xff]   ;;  %v5688_v42 = vld [vmem:[%s6522_s11 + $0x26c] ss:$16 sps:$4 sm:$0xff]   ;;  %v5683_v43 = vld [vmem:[%s6522_s11 + $0x260] ss:$16 sps:$4 sm:$0xff]  }
  0x4d   : > { %3662 = vmatprep.subr.bf16.mxu0 %v5611_v53  ;;  %4070 = vmatprep.subr.bf16.mxu1 %v5613_v54  ;;  %v5686_v44 = vld [vmem:[%s6522_s11 + $0x268] ss:$16 sps:$4 sm:$0xff]   ;;  %v5691_v45 = vld [vmem:[%s6522_s11 + $0x284] ss:$16 sps:$4 sm:$0xff]   ;;  %v5694_v46 = vld [vmem:[%s6522_s11 + $0x28c] ss:$16 sps:$4 sm:$0xff]  }
  0x4e   : > { %v5689_v47 = vld [vmem:[%s6522_s11 + $0x280] ss:$16 sps:$4 sm:$0xff]   ;;  %v5692_v48 = vld [vmem:[%s6522_s11 + $0x288] ss:$16 sps:$4 sm:$0xff]   ;;  %v5697_v49 = vld [vmem:[%s6522_s11 + $0x2a4] ss:$16 sps:$4 sm:$0xff]  }
  0x4f   : > { %v432_v50 = vld [vmem:[%s6524_s12 + $0x80] sm:$0x11]  ;;  %v5700_v51 = vld [vmem:[%s6522_s11 + $0x2ac] ss:$16 sps:$4 sm:$0xff]  }
  0x50   : > { %3663 = vmatpush1.bf16.msra.mxu0 %v5615_v55  ;;  %4071 = vmatpush1.bf16.msra.mxu1 %v5616_v56  ;;  %v4919_v52 = vcombine.high %v432_v50, %v432_v50  ;;  %v4918_v53 = vcombine.low %v432_v50, %v432_v50  ;;  %v5695_v54 = vld [vmem:[%s6522_s11 + $0x2a0] ss:$16 sps:$4 sm:$0xff]   ;;  %v5698_v55 = vld [vmem:[%s6522_s11 + $0x2a8] ss:$16 sps:$4 sm:$0xff]   ;;  %v5703_v56 = vld [vmem:[%s6522_s11 + $0x2c4] ss:$16 sps:$4 sm:$0xff]  }
  0x51   : > { %3664 = vmatprep.subr.bf16.mxu0 %v5617_v57  ;;  %4072 = vmatprep.subr.bf16.mxu1 %v5619_v58  ;;  %v5706_v57 = vld [vmem:[%s6522_s11 + $0x2cc] ss:$16 sps:$4 sm:$0xff]   ;;  %v5721_v7 = vld [vmem:[%s6522_s11 + $0x324] ss:$16 sps:$4 sm:$0xff]  }
  0x52   : > { %v6621_v58 = vld [vmem:[%s6524_s12 + $0x8] sm:$0xff]  ;;  %v5727_v11 = vld [vmem:[%s6522_s11 + $0x344] ss:$16 sps:$4 sm:$0xff]  }
  0x53   : > { %v5724_v8 = vld [vmem:[%s6522_s11 + $0x32c] ss:$16 sps:$4 sm:$0xff]   ;;  %v6681_v50 = vld [vmem:[%s6524_s12 + $0x10] sm:$0xff] }
  0x54   : > { %3665 = vmatpush1.bf16.msra.mxu0 %v5621_v59  ;;  %4073 = vmatpush1.bf16.msra.mxu1 %v5622_v60  ;;  %v6624_v59 = vld [vmem:[%s6524_s12 + $0x48] sm:$0xff]  ;;  %v5701_v60 = vld [vmem:[%s6522_s11 + $0x2c0] ss:$16 sps:$4 sm:$0xff]  }
  0x55   : > { %3666 = vmatprep.subr.bf16.mxu0 %v5623_v61  ;;  %4074 = vmatprep.subr.bf16.mxu1 %v5625_v62  ;;  %v4905_v61 = vcombine.high %v6621_v58, %v6624_v59  ;;  %v5704_v62 = vld [vmem:[%s6522_s11 + $0x2c8] ss:$16 sps:$4 sm:$0xff]  }
  0x58   : > { %3667 = vmatpush1.bf16.msra.mxu0 %v5627_v63  ;;  %4075 = vmatpush1.bf16.msra.mxu1 %v5628_v0  ;;  %v5709_v63 = vld [vmem:[%s6522_s11 + $0x2e4] ss:$16 sps:$4 sm:$0xff]   ;;  %v5712_v0 = vld [vmem:[%s6522_s11 + $0x2ec] ss:$16 sps:$4 sm:$0xff]  }
  0x59   : > { %3668 = vmatprep.subr.bf16.mxu0 %v5629_v1  ;;  %4076 = vmatprep.subr.bf16.mxu1 %v5631_v2  ;;  %v5707_v1 = vld [vmem:[%s6522_s11 + $0x2e0] ss:$16 sps:$4 sm:$0xff]   ;;  %v5710_v2 = vld [vmem:[%s6522_s11 + $0x2e8] ss:$16 sps:$4 sm:$0xff]  }
  0x5c   : > { %3669 = vmatpush1.bf16.msra.mxu0 %v5633_v3  ;;  %4077 = vmatpush1.bf16.msra.mxu1 %v5634_v4  ;;  %v5715_v3 = vld [vmem:[%s6522_s11 + $0x304] ss:$16 sps:$4 sm:$0xff]   ;;  %v5718_v4 = vld [vmem:[%s6522_s11 + $0x30c] ss:$16 sps:$4 sm:$0xff]  }
  0x5d   : > { %3670 = vmatprep.subr.bf16.mxu0 %v5635_v5  ;;  %4078 = vmatprep.subr.bf16.mxu1 %v5637_v6  ;;  %v5713_v5 = vld [vmem:[%s6522_s11 + $0x300] ss:$16 sps:$4 sm:$0xff]   ;;  %v5716_v6 = vld [vmem:[%s6522_s11 + $0x308] ss:$16 sps:$4 sm:$0xff]  }
  0x60   : > { %3671 = vmatpush1.bf16.msra.mxu0 %v5639_v9  ;;  %4079 = vmatpush1.bf16.msra.mxu1 %v5640_v10  ;;  %v5719_v9 = vld [vmem:[%s6522_s11 + $0x320] ss:$16 sps:$4 sm:$0xff]   ;;  %v5722_v10 = vld [vmem:[%s6522_s11 + $0x328] ss:$16 sps:$4 sm:$0xff]  }
  0x61   : > { %3672 = vmatprep.subr.bf16.mxu0 %v5641_v12  ;;  %4080 = vmatprep.subr.bf16.mxu1 %v5643_v13  ;;  %v5730_v12 = vld [vmem:[%s6522_s11 + $0x34c] ss:$16 sps:$4 sm:$0xff]   ;;  %v5725_v13 = vld [vmem:[%s6522_s11 + $0x340] ss:$16 sps:$4 sm:$0xff]  }
  0x64   : > { %3673 = vmatpush1.bf16.msra.mxu0 %v5645_v14  ;;  %4081 = vmatpush1.bf16.msra.mxu1 %v5646_v15  ;;  %v5728_v14 = vld [vmem:[%s6522_s11 + $0x348] ss:$16 sps:$4 sm:$0xff]   ;;  %v5733_v15 = vld [vmem:[%s6522_s11 + $0x364] ss:$16 sps:$4 sm:$0xff]  }
  0x65   : > { %3674 = vmatprep.subr.bf16.mxu0 %v5647_v16  ;;  %4082 = vmatprep.subr.bf16.mxu1 %v5649_v17  ;;  %v5736_v16 = vld [vmem:[%s6522_s11 + $0x36c] ss:$16 sps:$4 sm:$0xff]   ;;  %v5731_v17 = vld [vmem:[%s6522_s11 + $0x360] ss:$16 sps:$4 sm:$0xff]  }
  0x68   : > { %3675 = vmatpush1.bf16.msra.mxu0 %v5651_v18  ;;  %4083 = vmatpush1.bf16.msra.mxu1 %v5652_v19  ;;  %v5734_v18 = vld [vmem:[%s6522_s11 + $0x368] ss:$16 sps:$4 sm:$0xff]   ;;  %v5739_v19 = vld [vmem:[%s6522_s11 + $0x384] ss:$16 sps:$4 sm:$0xff]  }
  0x69   : > { %3676 = vmatprep.subr.bf16.mxu0 %v5653_v20  ;;  %4084 = vmatprep.subr.bf16.mxu1 %v5655_v21  ;;  %v5742_v20 = vld [vmem:[%s6522_s11 + $0x38c] ss:$16 sps:$4 sm:$0xff]   ;;  %v5737_v21 = vld [vmem:[%s6522_s11 + $0x380] ss:$16 sps:$4 sm:$0xff]  }
  0x6c   : > { %3677 = vmatpush1.bf16.msra.mxu0 %v5657_v22  ;;  %4085 = vmatpush1.bf16.msra.mxu1 %v5658_v23  ;;  %v5740_v22 = vld [vmem:[%s6522_s11 + $0x388] ss:$16 sps:$4 sm:$0xff]   ;;  %v5745_v23 = vld [vmem:[%s6522_s11 + $0x3a4] ss:$16 sps:$4 sm:$0xff]  }
  0x6d   : > { %3678 = vmatprep.subr.bf16.mxu0 %v5659_v24  ;;  %4086 = vmatprep.subr.bf16.mxu1 %v5661_v25  ;;  %v5748_v24 = vld [vmem:[%s6522_s11 + $0x3ac] ss:$16 sps:$4 sm:$0xff]   ;;  %v5743_v25 = vld [vmem:[%s6522_s11 + $0x3a0] ss:$16 sps:$4 sm:$0xff]  }
  0x70   : > { %3679 = vmatpush1.bf16.msra.mxu0 %v5663_v26  ;;  %4087 = vmatpush1.bf16.msra.mxu1 %v5664_v27  ;;  %v5746_v26 = vld [vmem:[%s6522_s11 + $0x3a8] ss:$16 sps:$4 sm:$0xff]   ;;  %v5753_v27 = vld [vmem:[%s6522_s11 + $0x3c4] ss:$16 sps:$4 sm:$0xff]  }
  0x71   : > { %3699 = vmatprep.subr.bf16.mxu0 %v5667_v28  ;;  %4107 = vmatprep.subr.bf16.mxu1 %v5670_v29  ;;  %v5756_v28 = vld [vmem:[%s6522_s11 + $0x3cc] ss:$16 sps:$4 sm:$0xff]   ;;  %v5751_v29 = vld [vmem:[%s6522_s11 + $0x3c0] ss:$16 sps:$4 sm:$0xff]  }
  0x73   : > { %3681 = vmatmul.mubr.bf16.vlgmr.msra.gmra.mrb[0].mxu0 %v4902_v30  ;;  %4089 = vmatmul.mubr.bf16.vlgmr.msra.gmra.mrb[0].mxu1 %v4902_v30  ;;  %v5754_v30 = vld [vmem:[%s6522_s11 + $0x3c8] ss:$16 sps:$4 sm:$0xff]  }
  0x74   : > { %3700 = vmatpush1.bf16.msra.mxu0 %v5665_v31  ;;  %4108 = vmatpush1.bf16.msra.mxu1 %v5668_v32  ;;  %v5759_v31 = vld [vmem:[%s6522_s11 + $0x3e4] ss:$16 sps:$4 sm:$0xff]   ;;  %v5762_v32 = vld [vmem:[%s6522_s11 + $0x3ec] ss:$16 sps:$4 sm:$0xff]  }
  0x75   : > { %3701 = vmatprep.subr.bf16.mxu0 %v5673_v33  ;;  %4109 = vmatprep.subr.bf16.mxu1 %v5676_v34  ;;  %v5757_v33 = vld [vmem:[%s6522_s11 + $0x3e0] ss:$16 sps:$4 sm:$0xff]   ;;  %v5760_v34 = vld [vmem:[%s6522_s11 + $0x3e8] ss:$16 sps:$4 sm:$0xff]  }
  0x76   : > { %3690 = vmatprep.mubr.bf16.mxu0 %v4919_v52  ;;  %4098 = vmatprep.mubr.bf16.mxu1 %v4919_v52  ;;  %v5780_v52 = vld [vmem:[%s6522_s11 + $0x448] ss:$16 sps:$4 sm:$0xff]  }
  0x78   : > { %3702 = vmatpush1.bf16.msra.mxu0 %v5671_v35  ;;  %4110 = vmatpush1.bf16.msra.mxu1 %v5674_v36  ;;  %v5765_v35 = vld [vmem:[%s6522_s11 + $0x404] ss:$16 sps:$4 sm:$0xff]   ;;  %v5768_v36 = vld [vmem:[%s6522_s11 + $0x40c] ss:$16 sps:$4 sm:$0xff]  }
  0x79   : > { %3703 = vmatprep.subr.bf16.mxu0 %v5679_v37  ;;  %4111 = vmatprep.subr.bf16.mxu1 %v5682_v38  ;;  %v4904_v37 = vcombine.low %v6621_v58, %v6624_v59  ;;  %v433_v38 = vld [vmem:[%s6524_s12 + $0x88] sm:$0x11]  ;;  %v5791_v58 = vld [vmem:[%s6522_s11 + $0x484] ss:$16 sps:$4 sm:$0xff]  }
  0x7a   : > { %v5794_v59 = vld [vmem:[%s6522_s11 + $0x48c] ss:$16 sps:$4 sm:$0xff]  }
  0x7b   : > { %3691 = vmatmul.mubr.bf16.gmra.mrb[4].mxu0 %v4918_v53  ;;  %4099 = vmatmul.mubr.bf16.gmra.mrb[4].mxu1 %v4918_v53  ;;  %v5785_v53 = vld [vmem:[%s6522_s11 + $0x464] ss:$16 sps:$4 sm:$0xff]  }
  0x7c   : > { %3704 = vmatpush1.bf16.msra.mxu0 %v5677_v39  ;;  %4112 = vmatpush1.bf16.msra.mxu1 %v5680_v40  ;;  %v5763_v39 = vld [vmem:[%s6522_s11 + $0x400] ss:$16 sps:$4 sm:$0xff]   ;;  %v5766_v40 = vld [vmem:[%s6522_s11 + $0x408] ss:$16 sps:$4 sm:$0xff]  }
  0x7d   : > { %3705 = vmatprep.subr.bf16.mxu0 %v5685_v41  ;;  %4113 = vmatprep.subr.bf16.mxu1 %v5688_v42  ;;  %v5771_v41 = vld [vmem:[%s6522_s11 + $0x424] ss:$16 sps:$4 sm:$0xff]   ;;  %v5774_v42 = vld [vmem:[%s6522_s11 + $0x42c] ss:$16 sps:$4 sm:$0xff]  }
  0x7e   : > { %3731 = vmatprep.mubr.bf16.mxu0 %v4905_v61  ;;  %4139 = vmatprep.mubr.bf16.mxu1 %v4905_v61  ;;  %v5792_v61 = vld [vmem:[%s6522_s11 + $0x488] ss:$16 sps:$4 sm:$0xff]  }
  0x80   : > { %3706 = vmatpush1.bf16.msra.mxu0 %v5683_v43  ;;  %4114 = vmatpush1.bf16.msra.mxu1 %v5686_v44  ;;  %v4921_v43 = vcombine.high %v433_v38, %v433_v38  ;;  %v5769_v44 = vld [vmem:[%s6522_s11 + $0x420] ss:$16 sps:$4 sm:$0xff]  }
  0x81   : > { %3707 = vmatprep.subr.bf16.mxu0 %v5691_v45  ;;  %4115 = vmatprep.subr.bf16.mxu1 %v5694_v46  ;;  %v5772_v45 = vld [vmem:[%s6522_s11 + $0x428] ss:$16 sps:$4 sm:$0xff]   ;;  %v5779_v46 = vld [vmem:[%s6522_s11 + $0x444] ss:$16 sps:$4 sm:$0xff]  }
  0x84   : > { %3708 = vmatpush1.bf16.msra.mxu0 %v5689_v47  ;;  %4116 = vmatpush1.bf16.msra.mxu1 %v5692_v48  ;;  %v5782_v47 = vld [vmem:[%s6522_s11 + $0x44c] ss:$16 sps:$4 sm:$0xff]   ;;  %v5777_v48 = vld [vmem:[%s6522_s11 + $0x440] ss:$16 sps:$4 sm:$0xff]  }
  0x85   : > { %3709 = vmatprep.subr.bf16.mxu0 %v5697_v49  ;;  %4117 = vmatprep.subr.bf16.mxu1 %v5700_v51  ;;  %v4920_v49 = vcombine.low %v433_v38, %v433_v38  ;;  %v6684_v51 = vld [vmem:[%s6524_s12 + $0x50] sm:$0xff] }
  0x86   : > { %v5857_v38 = vld [vmem:[%s6522_s11 + $0x5e4] ss:$16 sps:$4 sm:$0xff]  }
  0x88   : > { %3710 = vmatpush1.bf16.msra.mxu0 %v5695_v54  ;;  %4118 = vmatpush1.bf16.msra.mxu1 %v5698_v55  ;;  %v5788_v54 = vld [vmem:[%s6522_s11 + $0x46c] ss:$16 sps:$4 sm:$0xff]   ;;  %v4907_v55 = vcombine.high %v6681_v50, %v6684_v51 }
  0x89   : > { %3711 = vmatprep.subr.bf16.mxu0 %v5703_v56  ;;  %4119 = vmatprep.subr.bf16.mxu1 %v5706_v57  ;;  %v5783_v56 = vld [vmem:[%s6522_s11 + $0x460] ss:$16 sps:$4 sm:$0xff]   ;;  %v5786_v57 = vld [vmem:[%s6522_s11 + $0x468] ss:$16 sps:$4 sm:$0xff]  }
  0x8c   : > { %3712 = vmatpush1.bf16.msra.mxu0 %v5701_v60  ;;  %4120 = vmatpush1.bf16.msra.mxu1 %v5704_v62  ;;  %v5789_v60 = vld [vmem:[%s6522_s11 + $0x480] ss:$16 sps:$4 sm:$0xff]   ;;  %v5797_v62 = vld [vmem:[%s6522_s11 + $0x4a4] ss:$16 sps:$4 sm:$0xff]  }
  0x8d   : > { %3713 = vmatprep.subr.bf16.mxu0 %v5709_v63  ;;  %4121 = vmatprep.subr.bf16.mxu1 %v5712_v0  ;;  %v5800_v63 = vld [vmem:[%s6522_s11 + $0x4ac] ss:$16 sps:$4 sm:$0xff]   ;;  %v5795_v0 = vld [vmem:[%s6522_s11 + $0x4a0] ss:$16 sps:$4 sm:$0xff]  }
  0x90   : > { %3714 = vmatpush1.bf16.msra.mxu0 %v5707_v1  ;;  %4122 = vmatpush1.bf16.msra.mxu1 %v5710_v2  ;;  %v5798_v1 = vld [vmem:[%s6522_s11 + $0x4a8] ss:$16 sps:$4 sm:$0xff]   ;;  %v5803_v2 = vld [vmem:[%s6522_s11 + $0x4c4] ss:$16 sps:$4 sm:$0xff]  }
  0x91   : > { %3715 = vmatprep.subr.bf16.mxu0 %v5715_v3  ;;  %4123 = vmatprep.subr.bf16.mxu1 %v5718_v4  ;;  %v5806_v3 = vld [vmem:[%s6522_s11 + $0x4cc] ss:$16 sps:$4 sm:$0xff]   ;;  %v5801_v4 = vld [vmem:[%s6522_s11 + $0x4c0] ss:$16 sps:$4 sm:$0xff]  }
  0x94   : > { %3716 = vmatpush1.bf16.msra.mxu0 %v5713_v5  ;;  %4124 = vmatpush1.bf16.msra.mxu1 %v5716_v6  ;;  %v5804_v5 = vld [vmem:[%s6522_s11 + $0x4c8] ss:$16 sps:$4 sm:$0xff]   ;;  %v5809_v6 = vld [vmem:[%s6522_s11 + $0x4e4] ss:$16 sps:$4 sm:$0xff]  }
  0x95   : > { %3717 = vmatprep.subr.bf16.mxu0 %v5721_v7  ;;  %4125 = vmatprep.subr.bf16.mxu1 %v5724_v8  ;;  %v5812_v7 = vld [vmem:[%s6522_s11 + $0x4ec] ss:$16 sps:$4 sm:$0xff]   ;;  %v5807_v8 = vld [vmem:[%s6522_s11 + $0x4e0] ss:$16 sps:$4 sm:$0xff]  }
  0x98   : > { %3718 = vmatpush1.bf16.msra.mxu0 %v5719_v9  ;;  %4126 = vmatpush1.bf16.msra.mxu1 %v5722_v10  ;;  %v5810_v9 = vld [vmem:[%s6522_s11 + $0x4e8] ss:$16 sps:$4 sm:$0xff]   ;;  %v5815_v10 = vld [vmem:[%s6522_s11 + $0x504] ss:$16 sps:$4 sm:$0xff]  }
  0x99   : > { %3719 = vmatprep.subr.bf16.mxu0 %v5727_v11  ;;  %4127 = vmatprep.subr.bf16.mxu1 %v5730_v12  ;;  %v5818_v11 = vld [vmem:[%s6522_s11 + $0x50c] ss:$16 sps:$4 sm:$0xff]   ;;  %v5813_v12 = vld [vmem:[%s6522_s11 + $0x500] ss:$16 sps:$4 sm:$0xff]  }
  0x9c   : > { %3720 = vmatpush1.bf16.msra.mxu0 %v5725_v13  ;;  %4128 = vmatpush1.bf16.msra.mxu1 %v5728_v14  ;;  %v5816_v13 = vld [vmem:[%s6522_s11 + $0x508] ss:$16 sps:$4 sm:$0xff]   ;;  %v5821_v14 = vld [vmem:[%s6522_s11 + $0x524] ss:$16 sps:$4 sm:$0xff]  }
  0x9d   : > { %3721 = vmatprep.subr.bf16.mxu0 %v5733_v15  ;;  %4129 = vmatprep.subr.bf16.mxu1 %v5736_v16  ;;  %v5824_v15 = vld [vmem:[%s6522_s11 + $0x52c] ss:$16 sps:$4 sm:$0xff]   ;;  %v5819_v16 = vld [vmem:[%s6522_s11 + $0x520] ss:$16 sps:$4 sm:$0xff]  }
  0xa0   : > { %3722 = vmatpush1.bf16.msra.mxu0 %v5731_v17  ;;  %4130 = vmatpush1.bf16.msra.mxu1 %v5734_v18  ;;  %v5822_v17 = vld [vmem:[%s6522_s11 + $0x528] ss:$16 sps:$4 sm:$0xff]   ;;  %v5827_v18 = vld [vmem:[%s6522_s11 + $0x544] ss:$16 sps:$4 sm:$0xff]  }
  0xa1   : > { %3723 = vmatprep.subr.bf16.mxu0 %v5739_v19  ;;  %4131 = vmatprep.subr.bf16.mxu1 %v5742_v20  ;;  %v5830_v19 = vld [vmem:[%s6522_s11 + $0x54c] ss:$16 sps:$4 sm:$0xff]   ;;  %v5825_v20 = vld [vmem:[%s6522_s11 + $0x540] ss:$16 sps:$4 sm:$0xff]  }
  0xa4   : > { %3724 = vmatpush1.bf16.msra.mxu0 %v5737_v21  ;;  %4132 = vmatpush1.bf16.msra.mxu1 %v5740_v22  ;;  %v5828_v21 = vld [vmem:[%s6522_s11 + $0x548] ss:$16 sps:$4 sm:$0xff]   ;;  %v5833_v22 = vld [vmem:[%s6522_s11 + $0x564] ss:$16 sps:$4 sm:$0xff]  }
  0xa5   : > { %3725 = vmatprep.subr.bf16.mxu0 %v5745_v23  ;;  %4133 = vmatprep.subr.bf16.mxu1 %v5748_v24  ;;  %v5836_v23 = vld [vmem:[%s6522_s11 + $0x56c] ss:$16 sps:$4 sm:$0xff]   ;;  %v5831_v24 = vld [vmem:[%s6522_s11 + $0x560] ss:$16 sps:$4 sm:$0xff]  }
  0xa8   : > { %3726 = vmatpush1.bf16.msra.mxu0 %v5743_v25  ;;  %4134 = vmatpush1.bf16.msra.mxu1 %v5746_v26  ;;  %v5834_v25 = vld [vmem:[%s6522_s11 + $0x568] ss:$16 sps:$4 sm:$0xff]   ;;  %v5839_v26 = vld [vmem:[%s6522_s11 + $0x584] ss:$16 sps:$4 sm:$0xff]  }
  0xa9   : > { %3727 = vmatprep.subr.bf16.mxu0 %v5753_v27  ;;  %4135 = vmatprep.subr.bf16.mxu1 %v5756_v28  ;;  %v5842_v27 = vld [vmem:[%s6522_s11 + $0x58c] ss:$16 sps:$4 sm:$0xff]   ;;  %v5837_v28 = vld [vmem:[%s6522_s11 + $0x580] ss:$16 sps:$4 sm:$0xff]  }
  0xac   : > { %3728 = vmatpush1.bf16.msra.mxu0 %v5751_v29  ;;  %4136 = vmatpush1.bf16.msra.mxu1 %v5754_v30  ;;  %v5840_v29 = vld [vmem:[%s6522_s11 + $0x588] ss:$16 sps:$4 sm:$0xff]   ;;  %v5845_v30 = vld [vmem:[%s6522_s11 + $0x5a4] ss:$16 sps:$4 sm:$0xff]  }
  0xad   : > { %3729 = vmatprep.subr.bf16.mxu0 %v5759_v31  ;;  %4137 = vmatprep.subr.bf16.mxu1 %v5762_v32  ;;  %v5848_v31 = vld [vmem:[%s6522_s11 + $0x5ac] ss:$16 sps:$4 sm:$0xff]   ;;  %v5843_v32 = vld [vmem:[%s6522_s11 + $0x5a0] ss:$16 sps:$4 sm:$0xff]  }
  0xb0   : > { %3730 = vmatpush1.bf16.msra.mxu0 %v5757_v33  ;;  %4138 = vmatpush1.bf16.msra.mxu1 %v5760_v34  ;;  %v5846_v33 = vld [vmem:[%s6522_s11 + $0x5a8] ss:$16 sps:$4 sm:$0xff]   ;;  %v5851_v34 = vld [vmem:[%s6522_s11 + $0x5c4] ss:$16 sps:$4 sm:$0xff]  }
  0xb1   : > { %3750 = vmatprep.subr.bf16.mxu0 %v5765_v35  ;;  %4158 = vmatprep.subr.bf16.mxu1 %v5768_v36  ;;  %v5854_v35 = vld [vmem:[%s6522_s11 + $0x5cc] ss:$16 sps:$4 sm:$0xff]   ;;  %v5849_v36 = vld [vmem:[%s6522_s11 + $0x5c0] ss:$16 sps:$4 sm:$0xff]  }
  0xb3   : > { %3732 = vmatmul.mubr.bf16.vlgmr.msra.gmra.mrb[0].mxu0 %v4904_v37  ;;  %4140 = vmatmul.mubr.bf16.vlgmr.msra.gmra.mrb[0].mxu1 %v4904_v37  ;;  %v5852_v37 = vld [vmem:[%s6522_s11 + $0x5c8] ss:$16 sps:$4 sm:$0xff]  }
  0xb4   : > { %3751 = vmatpush1.bf16.msra.mxu0 %v5763_v39  ;;  %4159 = vmatpush1.bf16.msra.mxu1 %v5766_v40  ;;  %v5860_v39 = vld [vmem:[%s6522_s11 + $0x5ec] ss:$16 sps:$4 sm:$0xff]   ;;  %v5855_v40 = vld [vmem:[%s6522_s11 + $0x5e0] ss:$16 sps:$4 sm:$0xff]  }
  0xb5   : > { %3752 = vmatprep.subr.bf16.mxu0 %v5771_v41  ;;  %4160 = vmatprep.subr.bf16.mxu1 %v5774_v42  ;;  %v5858_v41 = vld [vmem:[%s6522_s11 + $0x5e8] ss:$16 sps:$4 sm:$0xff]   ;;  %v5863_v42 = vld [vmem:[%s6522_s11 + $0x604] ss:$16 sps:$4 sm:$0xff]  }
  0xb6   : > { %3741 = vmatprep.mubr.bf16.mxu0 %v4921_v43  ;;  %4149 = vmatprep.mubr.bf16.mxu1 %v4921_v43  ;;  %v5866_v43 = vld [vmem:[%s6522_s11 + $0x60c] ss:$16 sps:$4 sm:$0xff]  }
  0xb8   : > { %3753 = vmatpush1.bf16.msra.mxu0 %v5769_v44  ;;  %4161 = vmatpush1.bf16.msra.mxu1 %v5772_v45  ;;  %v5861_v44 = vld [vmem:[%s6522_s11 + $0x600] ss:$16 sps:$4 sm:$0xff]   ;;  %v4906_v45 = vcombine.low %v6681_v50, %v6684_v51  ;;  %v5877_v50 = vld [vmem:[%s6522_s11 + $0x644] ss:$16 sps:$4 sm:$0xff]   ;;  %v5880_v51 = vld [vmem:[%s6522_s11 + $0x64c] ss:$16 sps:$4 sm:$0xff]  }
  0xb9   : > { %3754 = vmatprep.subr.bf16.mxu0 %v5779_v46  ;;  %4162 = vmatprep.subr.bf16.mxu1 %v5782_v47  ;;  %v5864_v46 = vld [vmem:[%s6522_s11 + $0x608] ss:$16 sps:$4 sm:$0xff]   ;;  %v434_v47 = vld [vmem:[%s6524_s12 + $0x90] sm:$0x11] }
  0xbb   : > { %3742 = vmatmul.mubr.bf16.gmra.mrb[8].mxu0 %v4920_v49  ;;  %4150 = vmatmul.mubr.bf16.gmra.mrb[8].mxu1 %v4920_v49  ;;  %v5872_v49 = vld [vmem:[%s6522_s11 + $0x62c] ss:$16 sps:$4 sm:$0xff]  }
  0xbc   : > { %3755 = vmatpush1.bf16.msra.mxu0 %v5777_v48  ;;  %4163 = vmatpush1.bf16.msra.mxu1 %v5780_v52  ;;  %v5869_v48 = vld [vmem:[%s6522_s11 + $0x624] ss:$16 sps:$4 sm:$0xff]   ;;  %v4923_v52 = vcombine.high %v434_v47, %v434_v47 }
  0xbd   : > { %3756 = vmatprep.subr.bf16.mxu0 %v5785_v53  ;;  %4164 = vmatprep.subr.bf16.mxu1 %v5788_v54  ;;  %v5867_v53 = vld [vmem:[%s6522_s11 + $0x620] ss:$16 sps:$4 sm:$0xff]   ;;  %v5870_v54 = vld [vmem:[%s6522_s11 + $0x628] ss:$16 sps:$4 sm:$0xff]  }
  0xbe   : > { %3782 = vmatprep.mubr.bf16.mxu0 %v4907_v55  ;;  %4190 = vmatprep.mubr.bf16.mxu1 %v4907_v55  ;;  %v5875_v55 = vld [vmem:[%s6522_s11 + $0x640] ss:$16 sps:$4 sm:$0xff]  }
  0xc0   : > { %3757 = vmatpush1.bf16.msra.mxu0 %v5783_v56  ;;  %4165 = vmatpush1.bf16.msra.mxu1 %v5786_v57  ;;  %v5878_v56 = vld [vmem:[%s6522_s11 + $0x648] ss:$16 sps:$4 sm:$0xff]   ;;  %v4922_v57 = vcombine.low %v434_v47, %v434_v47  ;;  %v5953_v47 = vld [vmem:[%s6522_s11 + $0x7e0] ss:$16 sps:$4 sm:$0xff]  }
  0xc1   : > { %3758 = vmatprep.subr.bf16.mxu0 %v5791_v58  ;;  %4166 = vmatprep.subr.bf16.mxu1 %v5794_v59  ;;  %v6757_v58 = vld [vmem:[%s6524_s12 + $0x18] sm:$0xff] }
  0xc2   : > { %v6760_v59 = vld [vmem:[%s6524_s12 + $0x58] sm:$0xff] }
  0xc4   : > { %3759 = vmatpush1.bf16.msra.mxu0 %v5789_v60  ;;  %4167 = vmatpush1.bf16.msra.mxu1 %v5792_v61  ;;  %v5883_v60 = vld [vmem:[%s6522_s11 + $0x664] ss:$16 sps:$4 sm:$0xff]   ;;  %v5886_v61 = vld [vmem:[%s6522_s11 + $0x66c] ss:$16 sps:$4 sm:$0xff]  }
  0xc5   : > { %3760 = vmatprep.subr.bf16.mxu0 %v5797_v62  ;;  %4168 = vmatprep.subr.bf16.mxu1 %v5800_v63  ;;  %v4909_v62 = vcombine.high %v6757_v58, %v6760_v59  ;;  %v5881_v63 = vld [vmem:[%s6522_s11 + $0x660] ss:$16 sps:$4 sm:$0xff]  }
  0xc8   : > { %3761 = vmatpush1.bf16.msra.mxu0 %v5795_v0  ;;  %4169 = vmatpush1.bf16.msra.mxu1 %v5798_v1  ;;  %v5884_v0 = vld [vmem:[%s6522_s11 + $0x668] ss:$16 sps:$4 sm:$0xff]   ;;  %v5889_v1 = vld [vmem:[%s6522_s11 + $0x684] ss:$16 sps:$4 sm:$0xff]  }
  0xc9   : > { %3762 = vmatprep.subr.bf16.mxu0 %v5803_v2  ;;  %4170 = vmatprep.subr.bf16.mxu1 %v5806_v3  ;;  %v5892_v2 = vld [vmem:[%s6522_s11 + $0x68c] ss:$16 sps:$4 sm:$0xff]   ;;  %v5887_v3 = vld [vmem:[%s6522_s11 + $0x680] ss:$16 sps:$4 sm:$0xff]  }
  0xcc   : > { %3763 = vmatpush1.bf16.msra.mxu0 %v5801_v4  ;;  %4171 = vmatpush1.bf16.msra.mxu1 %v5804_v5  ;;  %v5890_v4 = vld [vmem:[%s6522_s11 + $0x688] ss:$16 sps:$4 sm:$0xff]   ;;  %v5895_v5 = vld [vmem:[%s6522_s11 + $0x6a4] ss:$16 sps:$4 sm:$0xff]  }
  0xcd   : > { %3764 = vmatprep.subr.bf16.mxu0 %v5809_v6  ;;  %4172 = vmatprep.subr.bf16.mxu1 %v5812_v7  ;;  %v5898_v6 = vld [vmem:[%s6522_s11 + $0x6ac] ss:$16 sps:$4 sm:$0xff]   ;;  %v5893_v7 = vld [vmem:[%s6522_s11 + $0x6a0] ss:$16 sps:$4 sm:$0xff]  }
  0xd0   : > { %3765 = vmatpush1.bf16.msra.mxu0 %v5807_v8  ;;  %4173 = vmatpush1.bf16.msra.mxu1 %v5810_v9  ;;  %v5896_v8 = vld [vmem:[%s6522_s11 + $0x6a8] ss:$16 sps:$4 sm:$0xff]   ;;  %v5901_v9 = vld [vmem:[%s6522_s11 + $0x6c4] ss:$16 sps:$4 sm:$0xff]  }
  0xd1   : > { %3766 = vmatprep.subr.bf16.mxu0 %v5815_v10  ;;  %4174 = vmatprep.subr.bf16.mxu1 %v5818_v11  ;;  %v5904_v10 = vld [vmem:[%s6522_s11 + $0x6cc] ss:$16 sps:$4 sm:$0xff]   ;;  %v5899_v11 = vld [vmem:[%s6522_s11 + $0x6c0] ss:$16 sps:$4 sm:$0xff]  }
  0xd4   : > { %3767 = vmatpush1.bf16.msra.mxu0 %v5813_v12  ;;  %4175 = vmatpush1.bf16.msra.mxu1 %v5816_v13  ;;  %v5902_v12 = vld [vmem:[%s6522_s11 + $0x6c8] ss:$16 sps:$4 sm:$0xff]   ;;  %v5907_v13 = vld [vmem:[%s6522_s11 + $0x6e4] ss:$16 sps:$4 sm:$0xff]  }
  0xd5   : > { %3768 = vmatprep.subr.bf16.mxu0 %v5821_v14  ;;  %4176 = vmatprep.subr.bf16.mxu1 %v5824_v15  ;;  %v5910_v14 = vld [vmem:[%s6522_s11 + $0x6ec] ss:$16 sps:$4 sm:$0xff]   ;;  %v5905_v15 = vld [vmem:[%s6522_s11 + $0x6e0] ss:$16 sps:$4 sm:$0xff]  }
  0xd8   : > { %3769 = vmatpush1.bf16.msra.mxu0 %v5819_v16  ;;  %4177 = vmatpush1.bf16.msra.mxu1 %v5822_v17  ;;  %v5908_v16 = vld [vmem:[%s6522_s11 + $0x6e8] ss:$16 sps:$4 sm:$0xff]   ;;  %v5913_v17 = vld [vmem:[%s6522_s11 + $0x704] ss:$16 sps:$4 sm:$0xff]  }
  0xd9   : > { %3770 = vmatprep.subr.bf16.mxu0 %v5827_v18  ;;  %4178 = vmatprep.subr.bf16.mxu1 %v5830_v19  ;;  %v5916_v18 = vld [vmem:[%s6522_s11 + $0x70c] ss:$16 sps:$4 sm:$0xff]   ;;  %v5911_v19 = vld [vmem:[%s6522_s11 + $0x700] ss:$16 sps:$4 sm:$0xff]  }
  0xdc   : > { %3771 = vmatpush1.bf16.msra.mxu0 %v5825_v20  ;;  %4179 = vmatpush1.bf16.msra.mxu1 %v5828_v21  ;;  %v5914_v20 = vld [vmem:[%s6522_s11 + $0x708] ss:$16 sps:$4 sm:$0xff]   ;;  %v5919_v21 = vld [vmem:[%s6522_s11 + $0x724] ss:$16 sps:$4 sm:$0xff]  }
  0xdd   : > { %3772 = vmatprep.subr.bf16.mxu0 %v5833_v22  ;;  %4180 = vmatprep.subr.bf16.mxu1 %v5836_v23  ;;  %v5922_v22 = vld [vmem:[%s6522_s11 + $0x72c] ss:$16 sps:$4 sm:$0xff]   ;;  %v5917_v23 = vld [vmem:[%s6522_s11 + $0x720] ss:$16 sps:$4 sm:$0xff]  }
  0xe0   : > { %3773 = vmatpush1.bf16.msra.mxu0 %v5831_v24  ;;  %4181 = vmatpush1.bf16.msra.mxu1 %v5834_v25  ;;  %v5920_v24 = vld [vmem:[%s6522_s11 + $0x728] ss:$16 sps:$4 sm:$0xff]   ;;  %v5925_v25 = vld [vmem:[%s6522_s11 + $0x744] ss:$16 sps:$4 sm:$0xff]  }
  0xe1   : > { %3774 = vmatprep.subr.bf16.mxu0 %v5839_v26  ;;  %4182 = vmatprep.subr.bf16.mxu1 %v5842_v27  ;;  %v5928_v26 = vld [vmem:[%s6522_s11 + $0x74c] ss:$16 sps:$4 sm:$0xff]   ;;  %v5923_v27 = vld [vmem:[%s6522_s11 + $0x740] ss:$16 sps:$4 sm:$0xff]  }
  0xe4   : > { %3775 = vmatpush1.bf16.msra.mxu0 %v5837_v28  ;;  %4183 = vmatpush1.bf16.msra.mxu1 %v5840_v29  ;;  %v5926_v28 = vld [vmem:[%s6522_s11 + $0x748] ss:$16 sps:$4 sm:$0xff]   ;;  %v5931_v29 = vld [vmem:[%s6522_s11 + $0x764] ss:$16 sps:$4 sm:$0xff]  }
  0xe5   : > { %3776 = vmatprep.subr.bf16.mxu0 %v5845_v30  ;;  %4184 = vmatprep.subr.bf16.mxu1 %v5848_v31  ;;  %v5934_v30 = vld [vmem:[%s6522_s11 + $0x76c] ss:$16 sps:$4 sm:$0xff]   ;;  %v5929_v31 = vld [vmem:[%s6522_s11 + $0x760] ss:$16 sps:$4 sm:$0xff]  }
  0xe8   : > { %3777 = vmatpush1.bf16.msra.mxu0 %v5843_v32  ;;  %4185 = vmatpush1.bf16.msra.mxu1 %v5846_v33  ;;  %v5932_v32 = vld [vmem:[%s6522_s11 + $0x768] ss:$16 sps:$4 sm:$0xff]   ;;  %v5937_v33 = vld [vmem:[%s6522_s11 + $0x784] ss:$16 sps:$4 sm:$0xff]  }
  0xe9   : > { %3778 = vmatprep.subr.bf16.mxu0 %v5851_v34  ;;  %4186 = vmatprep.subr.bf16.mxu1 %v5854_v35  ;;  %v5940_v34 = vld [vmem:[%s6522_s11 + $0x78c] ss:$16 sps:$4 sm:$0xff]   ;;  %v5935_v35 = vld [vmem:[%s6522_s11 + $0x780] ss:$16 sps:$4 sm:$0xff]  }
  0xec   : > { %3779 = vmatpush1.bf16.msra.mxu0 %v5849_v36  ;;  %4187 = vmatpush1.bf16.msra.mxu1 %v5852_v37  ;;  %v5938_v36 = vld [vmem:[%s6522_s11 + $0x788] ss:$16 sps:$4 sm:$0xff]   ;;  %v5943_v37 = vld [vmem:[%s6522_s11 + $0x7a4] ss:$16 sps:$4 sm:$0xff]  }
  0xed   : > { %3780 = vmatprep.subr.bf16.mxu0 %v5857_v38  ;;  %4188 = vmatprep.subr.bf16.mxu1 %v5860_v39  ;;  %v5946_v38 = vld [vmem:[%s6522_s11 + $0x7ac] ss:$16 sps:$4 sm:$0xff]   ;;  %v5941_v39 = vld [vmem:[%s6522_s11 + $0x7a0] ss:$16 sps:$4 sm:$0xff]  }
  0xf0   : > { %3781 = vmatpush1.bf16.msra.mxu0 %v5855_v40  ;;  %4189 = vmatpush1.bf16.msra.mxu1 %v5858_v41  ;;  %v5944_v40 = vld [vmem:[%s6522_s11 + $0x7a8] ss:$16 sps:$4 sm:$0xff]   ;;  %v5949_v41 = vld [vmem:[%s6522_s11 + $0x7c4] ss:$16 sps:$4 sm:$0xff]  }
  0xf1   : > { %3801 = vmatprep.subr.bf16.mxu0 %v5863_v42  ;;  %4209 = vmatprep.subr.bf16.mxu1 %v5866_v43  ;;  %v5952_v42 = vld [vmem:[%s6522_s11 + $0x7cc] ss:$16 sps:$4 sm:$0xff]   ;;  %v5947_v43 = vld [vmem:[%s6522_s11 + $0x7c0] ss:$16 sps:$4 sm:$0xff]  }
  0xf3   : > { %3783 = vmatmul.mubr.bf16.vlgmr.msra.gmra.mrb[0].mxu0 %v4906_v45  ;;  %4191 = vmatmul.mubr.bf16.vlgmr.msra.gmra.mrb[0].mxu1 %v4906_v45  ;;  %v5955_v45 = vld [vmem:[%s6522_s11 + $0x7e4] ss:$16 sps:$4 sm:$0xff]  }
  0xf4   : > { %3802 = vmatpush1.bf16.msra.mxu0 %v5861_v44  ;;  %4210 = vmatpush1.bf16.msra.mxu1 %v5864_v46  ;;  %v5950_v44 = vld [vmem:[%s6522_s11 + $0x7c8] ss:$16 sps:$4 sm:$0xff]   ;;  %v5958_v46 = vld [vmem:[%s6522_s11 + $0x7ec] ss:$16 sps:$4 sm:$0xff]  }
  0xf5   : > { %3803 = vmatprep.subr.bf16.mxu0 %v5869_v48  ;;  %4211 = vmatprep.subr.bf16.mxu1 %v5872_v49  ;;  %v5956_v48 = vld [vmem:[%s6522_s11 + $0x7e8] ss:$16 sps:$4 sm:$0xff]   ;;  %v5961_v49 = vld [vmem:[%s6522_s11 + $0x804] ss:$16 sps:$4 sm:$0xff]  }
  0xf6   : > { %3792 = vmatprep.mubr.bf16.mxu0 %v4923_v52  ;;  %4200 = vmatprep.mubr.bf16.mxu1 %v4923_v52  ;;  %v5964_v52 = vld [vmem:[%s6522_s11 + $0x80c] ss:$16 sps:$4 sm:$0xff]  }
  0xf8   : > { %3804 = vmatpush1.bf16.msra.mxu0 %v5867_v53  ;;  %4212 = vmatpush1.bf16.msra.mxu1 %v5870_v54  ;;  %v4908_v53 = vcombine.low %v6757_v58, %v6760_v59  ;;  %v5959_v54 = vld [vmem:[%s6522_s11 + $0x800] ss:$16 sps:$4 sm:$0xff]   ;;  %v5968_v59 = vld [vmem:[%s6522_s11 + $0x828] ss:$16 sps:$4 sm:$0xff]  }
  0xf9   : > { %3805 = vmatprep.subr.bf16.mxu0 %v5877_v50  ;;  %4213 = vmatprep.subr.bf16.mxu1 %v5880_v51  ;;  %v435_v50 = vld [vmem:[%s6524_s12 + $0x98] sm:$0x11]  ;;  %v5965_v58 = vld [vmem:[%s6522_s11 + $0x820] ss:$16 sps:$4 sm:$0xff]  }
  0xfa   : > { %v5962_v51 = vld [vmem:[%s6522_s11 + $0x808] ss:$16 sps:$4 sm:$0xff]  }
  0xfb   : > { %3793 = vmatmul.mubr.bf16.gmra.mrb[12].mxu0 %v4922_v57  ;;  %4201 = vmatmul.mubr.bf16.gmra.mrb[12].mxu1 %v4922_v57  ;;  %v4925_v57 = vcombine.high %v435_v50, %v435_v50 }
  0xfc   : > { %3806 = vmatpush1.bf16.msra.mxu0 %v5875_v55  ;;  %4214 = vmatpush1.bf16.msra.mxu1 %v5878_v56  ;;  %v5967_v55 = vld [vmem:[%s6522_s11 + $0x824] ss:$16 sps:$4 sm:$0xff]   ;;  %v5970_v56 = vld [vmem:[%s6522_s11 + $0x82c] ss:$16 sps:$4 sm:$0xff]  }
  0xfd   : > { %3807 = vmatprep.subr.bf16.mxu0 %v5883_v60  ;;  %4215 = vmatprep.subr.bf16.mxu1 %v5886_v61  ;;  %v5975_v60 = vld [vmem:[%s6522_s11 + $0x844] ss:$16 sps:$4 sm:$0xff]   ;;  %v5978_v61 = vld [vmem:[%s6522_s11 + $0x84c] ss:$16 sps:$4 sm:$0xff]  }
  0xfe   : > { %3833 = vmatprep.mubr.bf16.mxu0 %v4909_v62  ;;  %4241 = vmatprep.mubr.bf16.mxu1 %v4909_v62  ;;  %v5973_v62 = vld [vmem:[%s6522_s11 + $0x840] ss:$16 sps:$4 sm:$0xff]  }
 0x100   : > { %3808 = vmatpush1.bf16.msra.mxu0 %v5881_v63  ;;  %4216 = vmatpush1.bf16.msra.mxu1 %v5884_v0  ;;  %v6831_v63 = vld [vmem:[%s6524_s12 + $0x20] sm:$0xff]  ;;  %v4924_v0 = vcombine.low %v435_v50, %v435_v50  ;;  %v6044_v50 = vld [vmem:[%s6522_s11 + $0x9ac] ss:$16 sps:$4 sm:$0xff]  }
 0x101   : > { %3809 = vmatprep.subr.bf16.mxu0 %v5889_v1  ;;  %4217 = vmatprep.subr.bf16.mxu1 %v5892_v2  ;;  %v6834_v1 = vld [vmem:[%s6524_s12 + $0x60] sm:$0xff]  ;;  %v5976_v2 = vld [vmem:[%s6522_s11 + $0x848] ss:$16 sps:$4 sm:$0xff]  }
 0x104   : > { %3810 = vmatpush1.bf16.msra.mxu0 %v5887_v3  ;;  %4218 = vmatpush1.bf16.msra.mxu1 %v5890_v4  ;;  %v5981_v3 = vld [vmem:[%s6522_s11 + $0x864] ss:$16 sps:$4 sm:$0xff]   ;;  %v5984_v4 = vld [vmem:[%s6522_s11 + $0x86c] ss:$16 sps:$4 sm:$0xff]  }
 0x105   : > { %3811 = vmatprep.subr.bf16.mxu0 %v5895_v5  ;;  %4219 = vmatprep.subr.bf16.mxu1 %v5898_v6  ;;  %v4911_v5 = vcombine.high %v6831_v63, %v6834_v1  ;;  %v5979_v6 = vld [vmem:[%s6522_s11 + $0x860] ss:$16 sps:$4 sm:$0xff]  }
 0x108   : > { %3812 = vmatpush1.bf16.msra.mxu0 %v5893_v7  ;;  %4220 = vmatpush1.bf16.msra.mxu1 %v5896_v8  ;;  %v5982_v7 = vld [vmem:[%s6522_s11 + $0x868] ss:$16 sps:$4 sm:$0xff]   ;;  %v5987_v8 = vld [vmem:[%s6522_s11 + $0x884] ss:$16 sps:$4 sm:$0xff]  }
 0x109   : > { %3813 = vmatprep.subr.bf16.mxu0 %v5901_v9  ;;  %4221 = vmatprep.subr.bf16.mxu1 %v5904_v10  ;;  %v5990_v9 = vld [vmem:[%s6522_s11 + $0x88c] ss:$16 sps:$4 sm:$0xff]   ;;  %v5985_v10 = vld [vmem:[%s6522_s11 + $0x880] ss:$16 sps:$4 sm:$0xff]  }
 0x10c   : > { %3814 = vmatpush1.bf16.msra.mxu0 %v5899_v11  ;;  %4222 = vmatpush1.bf16.msra.mxu1 %v5902_v12  ;;  %v5988_v11 = vld [vmem:[%s6522_s11 + $0x888] ss:$16 sps:$4 sm:$0xff]   ;;  %v5993_v12 = vld [vmem:[%s6522_s11 + $0x8a4] ss:$16 sps:$4 sm:$0xff]  }
 0x10d   : > { %3815 = vmatprep.subr.bf16.mxu0 %v5907_v13  ;;  %4223 = vmatprep.subr.bf16.mxu1 %v5910_v14  ;;  %v5996_v13 = vld [vmem:[%s6522_s11 + $0x8ac] ss:$16 sps:$4 sm:$0xff]   ;;  %v5991_v14 = vld [vmem:[%s6522_s11 + $0x8a0] ss:$16 sps:$4 sm:$0xff]  }
 0x110   : > { %3816 = vmatpush1.bf16.msra.mxu0 %v5905_v15  ;;  %4224 = vmatpush1.bf16.msra.mxu1 %v5908_v16  ;;  %v5994_v15 = vld [vmem:[%s6522_s11 + $0x8a8] ss:$16 sps:$4 sm:$0xff]   ;;  %v5999_v16 = vld [vmem:[%s6522_s11 + $0x8c4] ss:$16 sps:$4 sm:$0xff]  }
 0x111   : > { %3817 = vmatprep.subr.bf16.mxu0 %v5913_v17  ;;  %4225 = vmatprep.subr.bf16.mxu1 %v5916_v18  ;;  %v6002_v17 = vld [vmem:[%s6522_s11 + $0x8cc] ss:$16 sps:$4 sm:$0xff]   ;;  %v5997_v18 = vld [vmem:[%s6522_s11 + $0x8c0] ss:$16 sps:$4 sm:$0xff]  }
 0x114   : > { %3818 = vmatpush1.bf16.msra.mxu0 %v5911_v19  ;;  %4226 = vmatpush1.bf16.msra.mxu1 %v5914_v20  ;;  %v6000_v19 = vld [vmem:[%s6522_s11 + $0x8c8] ss:$16 sps:$4 sm:$0xff]   ;;  %v6005_v20 = vld [vmem:[%s6522_s11 + $0x8e4] ss:$16 sps:$4 sm:$0xff]  }
 0x115   : > { %3819 = vmatprep.subr.bf16.mxu0 %v5919_v21  ;;  %4227 = vmatprep.subr.bf16.mxu1 %v5922_v22  ;;  %v6008_v21 = vld [vmem:[%s6522_s11 + $0x8ec] ss:$16 sps:$4 sm:$0xff]   ;;  %v6003_v22 = vld [vmem:[%s6522_s11 + $0x8e0] ss:$16 sps:$4 sm:$0xff]  }
 0x118   : > { %3820 = vmatpush1.bf16.msra.mxu0 %v5917_v23  ;;  %4228 = vmatpush1.bf16.msra.mxu1 %v5920_v24  ;;  %v6006_v23 = vld [vmem:[%s6522_s11 + $0x8e8] ss:$16 sps:$4 sm:$0xff]   ;;  %v6011_v24 = vld [vmem:[%s6522_s11 + $0x904] ss:$16 sps:$4 sm:$0xff]  }
 0x119   : > { %3821 = vmatprep.subr.bf16.mxu0 %v5925_v25  ;;  %4229 = vmatprep.subr.bf16.mxu1 %v5928_v26  ;;  %v6014_v25 = vld [vmem:[%s6522_s11 + $0x90c] ss:$16 sps:$4 sm:$0xff]   ;;  %v6009_v26 = vld [vmem:[%s6522_s11 + $0x900] ss:$16 sps:$4 sm:$0xff]  }
 0x11c   : > { %3822 = vmatpush1.bf16.msra.mxu0 %v5923_v27  ;;  %4230 = vmatpush1.bf16.msra.mxu1 %v5926_v28  ;;  %v6012_v27 = vld [vmem:[%s6522_s11 + $0x908] ss:$16 sps:$4 sm:$0xff]   ;;  %v6017_v28 = vld [vmem:[%s6522_s11 + $0x924] ss:$16 sps:$4 sm:$0xff]  }
 0x11d   : > { %3823 = vmatprep.subr.bf16.mxu0 %v5931_v29  ;;  %4231 = vmatprep.subr.bf16.mxu1 %v5934_v30  ;;  %v6020_v29 = vld [vmem:[%s6522_s11 + $0x92c] ss:$16 sps:$4 sm:$0xff]   ;;  %v6015_v30 = vld [vmem:[%s6522_s11 + $0x920] ss:$16 sps:$4 sm:$0xff]  }
 0x120   : > { %3824 = vmatpush1.bf16.msra.mxu0 %v5929_v31  ;;  %4232 = vmatpush1.bf16.msra.mxu1 %v5932_v32  ;;  %v6018_v31 = vld [vmem:[%s6522_s11 + $0x928] ss:$16 sps:$4 sm:$0xff]   ;;  %v6023_v32 = vld [vmem:[%s6522_s11 + $0x944] ss:$16 sps:$4 sm:$0xff]  }
 0x121   : > { %3825 = vmatprep.subr.bf16.mxu0 %v5937_v33  ;;  %4233 = vmatprep.subr.bf16.mxu1 %v5940_v34  ;;  %v6026_v33 = vld [vmem:[%s6522_s11 + $0x94c] ss:$16 sps:$4 sm:$0xff]   ;;  %v6021_v34 = vld [vmem:[%s6522_s11 + $0x940] ss:$16 sps:$4 sm:$0xff]  }
 0x124   : > { %3826 = vmatpush1.bf16.msra.mxu0 %v5935_v35  ;;  %4234 = vmatpush1.bf16.msra.mxu1 %v5938_v36  ;;  %v6024_v35 = vld [vmem:[%s6522_s11 + $0x948] ss:$16 sps:$4 sm:$0xff]   ;;  %v6029_v36 = vld [vmem:[%s6522_s11 + $0x964] ss:$16 sps:$4 sm:$0xff]  }
 0x125   : > { %3827 = vmatprep.subr.bf16.mxu0 %v5943_v37  ;;  %4235 = vmatprep.subr.bf16.mxu1 %v5946_v38  ;;  %v6032_v37 = vld [vmem:[%s6522_s11 + $0x96c] ss:$16 sps:$4 sm:$0xff]  }
 0x128   : > { %3828 = vmatpush1.bf16.msra.mxu0 %v5941_v39  ;;  %4236 = vmatpush1.bf16.msra.mxu1 %v5944_v40 }
 0x129   : > { %3829 = vmatprep.subr.bf16.mxu0 %v5949_v41  ;;  %4237 = vmatprep.subr.bf16.mxu1 %v5952_v42 }
 0x12c   : > { %3830 = vmatpush1.bf16.msra.mxu0 %v5947_v43  ;;  %4238 = vmatpush1.bf16.msra.mxu1 %v5950_v44  ;;  %v6027_v44 = vld [vmem:[%s6522_s11 + $0x960] ss:$16 sps:$4 sm:$0xff]  }
 0x12d   : > { %3831 = vmatprep.subr.bf16.mxu0 %v5955_v45  ;;  %4239 = vmatprep.subr.bf16.mxu1 %v5958_v46  ;;  %v6030_v45 = vld [vmem:[%s6522_s11 + $0x968] ss:$16 sps:$4 sm:$0xff]  }
 0x130   : > { %3832 = vmatpush1.bf16.msra.mxu0 %v5953_v47  ;;  %4240 = vmatpush1.bf16.msra.mxu1 %v5956_v48  ;;  %v6035_v48 = vld [vmem:[%s6522_s11 + $0x984] ss:$16 sps:$4 sm:$0xff]  }
 0x131   : > { %3852 = vmatprep.subr.bf16.mxu0 %v5961_v49  ;;  %4260 = vmatprep.subr.bf16.mxu1 %v5964_v52  ;;  %v6038_v49 = vld [vmem:[%s6522_s11 + $0x98c] ss:$16 sps:$4 sm:$0xff]   ;;  %v6033_v52 = vld [vmem:[%s6522_s11 + $0x980] ss:$16 sps:$4 sm:$0xff]  }
 0x133   : > { %3834 = vmatmul.mubr.bf16.vlgmr.msra.gmra.mrb[0].mxu0 %v4908_v53  ;;  %4242 = vmatmul.mubr.bf16.vlgmr.msra.gmra.mrb[0].mxu1 %v4908_v53  ;;  %v6036_v53 = vld [vmem:[%s6522_s11 + $0x988] ss:$16 sps:$4 sm:$0xff]  }
 0x134   : > { %3853 = vmatpush1.bf16.msra.mxu0 %v5959_v54  ;;  %4261 = vmatpush1.bf16.msra.mxu1 %v5962_v51  ;;  %v6041_v54 = vld [vmem:[%s6522_s11 + $0x9a4] ss:$16 sps:$4 sm:$0xff]   ;;  %v6039_v51 = vld [vmem:[%s6522_s11 + $0x9a0] ss:$16 sps:$4 sm:$0xff]  }
 0x135   : > { %3854 = vmatprep.subr.bf16.mxu0 %v5967_v55  ;;  %4262 = vmatprep.subr.bf16.mxu1 %v5970_v56  ;;  %v6042_v55 = vld [vmem:[%s6522_s11 + $0x9a8] ss:$16 sps:$4 sm:$0xff]   ;;  %v6047_v56 = vld [vmem:[%s6522_s11 + $0x9c4] ss:$16 sps:$4 sm:$0xff]  }
 0x136   : > { %3843 = vmatprep.mubr.bf16.mxu0 %v4925_v57  ;;  %4251 = vmatprep.mubr.bf16.mxu1 %v4925_v57  ;;  %v6050_v57 = vld [vmem:[%s6522_s11 + $0x9cc] ss:$16 sps:$4 sm:$0xff]  }
 0x138   : > { %3855 = vmatpush1.bf16.msra.mxu0 %v5965_v58  ;;  %4263 = vmatpush1.bf16.msra.mxu1 %v5968_v59  ;;  %v6045_v58 = vld [vmem:[%s6522_s11 + $0x9c0] ss:$16 sps:$4 sm:$0xff]   ;;  %v6048_v59 = vld [vmem:[%s6522_s11 + $0x9c8] ss:$16 sps:$4 sm:$0xff]  }
 0x139   : > { %3856 = vmatprep.subr.bf16.mxu0 %v5975_v60  ;;  %4264 = vmatprep.subr.bf16.mxu1 %v5978_v61  ;;  %v6053_v60 = vld [vmem:[%s6522_s11 + $0x9e4] ss:$16 sps:$4 sm:$0xff]   ;;  %v6056_v61 = vld [vmem:[%s6522_s11 + $0x9ec] ss:$16 sps:$4 sm:$0xff]  }
 0x13b   : > { %3844 = vmatmul.mubr.bf16.gmra.mrb[16].mxu0 %v4924_v0  ;;  %4252 = vmatmul.mubr.bf16.gmra.mrb[16].mxu1 %v4924_v0  ;;  %v6054_v0 = vld [vmem:[%s6522_s11 + $0x9e8] ss:$16 sps:$4 sm:$0xff]  }
 0x13c   : > { %3857 = vmatpush1.bf16.msra.mxu0 %v5973_v62  ;;  %4265 = vmatpush1.bf16.msra.mxu1 %v5976_v2  ;;  %v6051_v62 = vld [vmem:[%s6522_s11 + $0x9e0] ss:$16 sps:$4 sm:$0xff]   ;;  %v6059_v2 = vld [vmem:[%s6522_s11 + $0xa04] ss:$16 sps:$4 sm:$0xff]  }
 0x13d   : > { %3858 = vmatprep.subr.bf16.mxu0 %v5981_v3  ;;  %4266 = vmatprep.subr.bf16.mxu1 %v5984_v4  ;;  %v6062_v3 = vld [vmem:[%s6522_s11 + $0xa0c] ss:$16 sps:$4 sm:$0xff]   ;;  %v6057_v4 = vld [vmem:[%s6522_s11 + $0xa00] ss:$16 sps:$4 sm:$0xff]  }
 0x13e   : > { %3884 = vmatprep.mubr.bf16.mxu0 %v4911_v5  ;;  %4292 = vmatprep.mubr.bf16.mxu1 %v4911_v5  ;;  %v4910_v5 = vcombine.low %v6831_v63, %v6834_v1  ;;  %v6066_v63 = vld [vmem:[%s6522_s11 + $0xa28] ss:$16 sps:$4 sm:$0xff]   ;;  %v6073_v1 = vld [vmem:[%s6522_s11 + $0xa44] ss:$16 sps:$4 sm:$0xff]  }
 0x140   : > { %3859 = vmatpush1.bf16.msra.mxu0 %v5979_v6  ;;  %4267 = vmatpush1.bf16.msra.mxu1 %v5982_v7  ;;  %v6060_v6 = vld [vmem:[%s6522_s11 + $0xa08] ss:$16 sps:$4 sm:$0xff]   ;;  %v436_v7 = vld [vmem:[%s6524_s12 + $0xa0] sm:$0x11] }
 0x141   : > { %3860 = vmatprep.subr.bf16.mxu0 %v5987_v8  ;;  %4268 = vmatprep.subr.bf16.mxu1 %v5990_v9  ;;  %v6065_v8 = vld [vmem:[%s6522_s11 + $0xa24] ss:$16 sps:$4 sm:$0xff]   ;;  %v6068_v9 = vld [vmem:[%s6522_s11 + $0xa2c] ss:$16 sps:$4 sm:$0xff]  }
 0x144   : > { %3861 = vmatpush1.bf16.msra.mxu0 %v5985_v10  ;;  %4269 = vmatpush1.bf16.msra.mxu1 %v5988_v11  ;;  %v6063_v10 = vld [vmem:[%s6522_s11 + $0xa20] ss:$16 sps:$4 sm:$0xff]   ;;  %v4927_v11 = vcombine.high %v436_v7, %v436_v7 }
 0x145   : > { %3862 = vmatprep.subr.bf16.mxu0 %v5993_v12  ;;  %4270 = vmatprep.subr.bf16.mxu1 %v5996_v13  ;;  %v6076_v12 = vld [vmem:[%s6522_s11 + $0xa4c] ss:$16 sps:$4 sm:$0xff]  }
 0x146   : > { %v6913_v13 = vld [vmem:[%s6524_s12 + $0x28] sm:$0xff] }
 0x148   : > { %3863 = vmatpush1.bf16.msra.mxu0 %v5991_v14  ;;  %4271 = vmatpush1.bf16.msra.mxu1 %v5994_v15  ;;  %v6071_v14 = vld [vmem:[%s6522_s11 + $0xa40] ss:$16 sps:$4 sm:$0xff]   ;;  %v6074_v15 = vld [vmem:[%s6522_s11 + $0xa48] ss:$16 sps:$4 sm:$0xff]  }
 0x149   : > { %3864 = vmatprep.subr.bf16.mxu0 %v5999_v16  ;;  %4272 = vmatprep.subr.bf16.mxu1 %v6002_v17  ;;  %v4926_v16 = vcombine.low %v436_v7, %v436_v7  ;;  %v6918_v17 = vld [vmem:[%s6524_s12 + $0x68] sm:$0xff]  ;;  %v6131_v7 = vld [vmem:[%s6522_s11 + $0xb80] ss:$16 sps:$4 sm:$0xff]  }
 0x14c   : > { %3865 = vmatpush1.bf16.msra.mxu0 %v5997_v18  ;;  %4273 = vmatpush1.bf16.msra.mxu1 %v6000_v19  ;;  %v6079_v18 = vld [vmem:[%s6522_s11 + $0xa64] ss:$16 sps:$4 sm:$0xff]   ;;  %v6082_v19 = vld [vmem:[%s6522_s11 + $0xa6c] ss:$16 sps:$4 sm:$0xff]  }
 0x14d   : > { %3866 = vmatprep.subr.bf16.mxu0 %v6005_v20  ;;  %4274 = vmatprep.subr.bf16.mxu1 %v6008_v21  ;;  %v4913_v20 = vcombine.high %v6913_v13, %v6918_v17  ;;  %v6077_v21 = vld [vmem:[%s6522_s11 + $0xa60] ss:$16 sps:$4 sm:$0xff]  }
 0x14e   : > { %v6873_v38 = vpop.f32.mrb[4].mxu0  ;;  %v6875_v39 = vpop.f32.mrb[4].mxu1 }
 0x14f   : > { %v6877_v40 = vpop.f32.mrb[5].mxu0  ;;  %v6879_v41 = vpop.f32.mrb[5].mxu1 }
 0x150   : > { %3867 = vmatpush1.bf16.msra.mxu0 %v6003_v22  ;;  %4275 = vmatpush1.bf16.msra.mxu1 %v6006_v23  ;;  %v3696_v42 = vpop.f32.mrb[6].mxu0  ;;  %v4104_v43 = vpop.f32.mrb[6].mxu1  ;;  %v6080_v22 = vld [vmem:[%s6522_s11 + $0xa68] ss:$16 sps:$4 sm:$0xff]   ;;  %v6085_v23 = vld [vmem:[%s6522_s11 + $0xa84] ss:$16 sps:$4 sm:$0xff]  }
 0x151   : > { %3868 = vmatprep.subr.bf16.mxu0 %v6011_v24  ;;  %4276 = vmatprep.subr.bf16.mxu1 %v6014_v25  ;;  %v3697_v46 = vpop.f32.mrb[7].mxu0  ;;  %v4105_v47 = vpop.f32.mrb[7].mxu1  ;;  %v6088_v24 = vld [vmem:[%s6522_s11 + $0xa8c] ss:$16 sps:$4 sm:$0xff]   ;;  %v6083_v25 = vld [vmem:[%s6522_s11 + $0xa80] ss:$16 sps:$4 sm:$0xff]  }
 0x152   : > { %v6104_v42 = vld [vmem:[%s6522_s11 + $0xae8] ss:$16 sps:$4 sm:$0xff]   ;;  %v6109_v43 = vld [vmem:[%s6522_s11 + $0xb04] ss:$16 sps:$4 sm:$0xff]  }
 0x154   : > { %3869 = vmatpush1.bf16.msra.mxu0 %v6009_v26  ;;  %4277 = vmatpush1.bf16.msra.mxu1 %v6012_v27  ;;  %v6086_v26 = vld [vmem:[%s6522_s11 + $0xa88] ss:$16 sps:$4 sm:$0xff]   ;;  %v6091_v27 = vld [vmem:[%s6522_s11 + $0xaa4] ss:$16 sps:$4 sm:$0xff]  }
 0x155   : > { %3870 = vmatprep.subr.bf16.mxu0 %v6017_v28  ;;  %4278 = vmatprep.subr.bf16.mxu1 %v6020_v29  ;;  %v6094_v28 = vld [vmem:[%s6522_s11 + $0xaac] ss:$16 sps:$4 sm:$0xff]   ;;  %v6089_v29 = vld [vmem:[%s6522_s11 + $0xaa0] ss:$16 sps:$4 sm:$0xff]  }
 0x158   : > { %3871 = vmatpush1.bf16.msra.mxu0 %v6015_v30  ;;  %4279 = vmatpush1.bf16.msra.mxu1 %v6018_v31  ;;  %v6092_v30 = vld [vmem:[%s6522_s11 + $0xaa8] ss:$16 sps:$4 sm:$0xff]   ;;  %v6097_v31 = vld [vmem:[%s6522_s11 + $0xac4] ss:$16 sps:$4 sm:$0xff]  }
 0x159   : > { %3872 = vmatprep.subr.bf16.mxu0 %v6023_v32  ;;  %4280 = vmatprep.subr.bf16.mxu1 %v6026_v33  ;;  %v6100_v32 = vld [vmem:[%s6522_s11 + $0xacc] ss:$16 sps:$4 sm:$0xff]   ;;  %v6095_v33 = vld [vmem:[%s6522_s11 + $0xac0] ss:$16 sps:$4 sm:$0xff]  }
 0x15c   : > { %3873 = vmatpush1.bf16.msra.mxu0 %v6021_v34  ;;  %4281 = vmatpush1.bf16.msra.mxu1 %v6024_v35  ;;  %v6098_v34 = vld [vmem:[%s6522_s11 + $0xac8] ss:$16 sps:$4 sm:$0xff]   ;;  %v6103_v35 = vld [vmem:[%s6522_s11 + $0xae4] ss:$16 sps:$4 sm:$0xff]  }
 0x15d   : > { %3874 = vmatprep.subr.bf16.mxu0 %v6029_v36  ;;  %4282 = vmatprep.subr.bf16.mxu1 %v6032_v37  ;;  %v6106_v36 = vld [vmem:[%s6522_s11 + $0xaec] ss:$16 sps:$4 sm:$0xff]   ;;  %v6101_v37 = vld [vmem:[%s6522_s11 + $0xae0] ss:$16 sps:$4 sm:$0xff]  }
 0x160   : > { %3875 = vmatpush1.bf16.msra.mxu0 %v6027_v44  ;;  %4283 = vmatpush1.bf16.msra.mxu1 %v6030_v45  ;;  %v6112_v44 = vld [vmem:[%s6522_s11 + $0xb0c] ss:$16 sps:$4 sm:$0xff]  }
 0x161   : > { %3876 = vmatprep.subr.bf16.mxu0 %v6035_v48  ;;  %4284 = vmatprep.subr.bf16.mxu1 %v6038_v49 }
 0x164   : > { %3877 = vmatpush1.bf16.msra.mxu0 %v6033_v52  ;;  %4285 = vmatpush1.bf16.msra.mxu1 %v6036_v53 }
 0x165   : > { %3878 = vmatprep.subr.bf16.mxu0 %v6041_v54  ;;  %4286 = vmatprep.subr.bf16.mxu1 %v6044_v50  ;;  %v6107_v50 = vld [vmem:[%s6522_s11 + $0xb00] ss:$16 sps:$4 sm:$0xff]  }
 0x168   : > { %3879 = vmatpush1.bf16.msra.mxu0 %v6039_v51  ;;  %4287 = vmatpush1.bf16.msra.mxu1 %v6042_v55  ;;  %v6110_v51 = vld [vmem:[%s6522_s11 + $0xb08] ss:$16 sps:$4 sm:$0xff]  }
 0x169   : > { %3880 = vmatprep.subr.bf16.mxu0 %v6047_v56  ;;  %4288 = vmatprep.subr.bf16.mxu1 %v6050_v57 }
 0x16c   : > { %3881 = vmatpush1.bf16.msra.mxu0 %v6045_v58  ;;  %4289 = vmatpush1.bf16.msra.mxu1 %v6048_v59  ;;  %v6116_v58 = vld [vmem:[%s6522_s11 + $0xb28] ss:$16 sps:$4 sm:$0xff]   ;;  %v6121_v59 = vld [vmem:[%s6522_s11 + $0xb44] ss:$16 sps:$4 sm:$0xff]  }
 0x16d   : > { %3882 = vmatprep.subr.bf16.mxu0 %v6053_v60  ;;  %4290 = vmatprep.subr.bf16.mxu1 %v6056_v61  ;;  %v6124_v60 = vld [vmem:[%s6522_s11 + $0xb4c] ss:$16 sps:$4 sm:$0xff]   ;;  %v6119_v61 = vld [vmem:[%s6522_s11 + $0xb40] ss:$16 sps:$4 sm:$0xff]  }
 0x170   : > { %3883 = vmatpush1.bf16.msra.mxu0 %v6051_v62  ;;  %4291 = vmatpush1.bf16.msra.mxu1 %v6054_v0  ;;  %v6122_v62 = vld [vmem:[%s6522_s11 + $0xb48] ss:$16 sps:$4 sm:$0xff]   ;;  %v6127_v0 = vld [vmem:[%s6522_s11 + $0xb64] ss:$16 sps:$4 sm:$0xff]  }
 0x171   : > { %3903 = vmatprep.subr.bf16.mxu0 %v6059_v2  ;;  %4311 = vmatprep.subr.bf16.mxu1 %v6062_v3  ;;  %v6130_v2 = vld [vmem:[%s6522_s11 + $0xb6c] ss:$16 sps:$4 sm:$0xff]   ;;  %v6125_v3 = vld [vmem:[%s6522_s11 + $0xb60] ss:$16 sps:$4 sm:$0xff]  }
 0x173   : > { %3885 = vmatmul.mubr.bf16.vlgmr.msra.gmra.mrb[0].mxu0 %v4910_v5  ;;  %4293 = vmatmul.mubr.bf16.vlgmr.msra.gmra.mrb[0].mxu1 %v4910_v5  ;;  %v6133_v5 = vld [vmem:[%s6522_s11 + $0xb84] ss:$16 sps:$4 sm:$0xff]  }
 0x174   : > { %3904 = vmatpush1.bf16.msra.mxu0 %v6057_v4  ;;  %4312 = vmatpush1.bf16.msra.mxu1 %v6060_v6  ;;  %v6128_v4 = vld [vmem:[%s6522_s11 + $0xb68] ss:$16 sps:$4 sm:$0xff]   ;;  %v6136_v6 = vld [vmem:[%s6522_s11 + $0xb8c] ss:$16 sps:$4 sm:$0xff]  }
 0x175   : > { %3905 = vmatprep.subr.bf16.mxu0 %v6065_v8  ;;  %4313 = vmatprep.subr.bf16.mxu1 %v6068_v9  ;;  %v6134_v8 = vld [vmem:[%s6522_s11 + $0xb88] ss:$16 sps:$4 sm:$0xff]   ;;  %v6139_v9 = vld [vmem:[%s6522_s11 + $0xba4] ss:$16 sps:$4 sm:$0xff]  }
 0x176   : > { %3894 = vmatprep.mubr.bf16.mxu0 %v4927_v11  ;;  %4302 = vmatprep.mubr.bf16.mxu1 %v4927_v11  ;;  %v6137_v11 = vld [vmem:[%s6522_s11 + $0xba0] ss:$16 sps:$4 sm:$0xff]  }
 0x178   : > { %3906 = vmatpush1.bf16.msra.mxu0 %v6063_v10  ;;  %4314 = vmatpush1.bf16.msra.mxu1 %v6066_v63  ;;  %v6142_v10 = vld [vmem:[%s6522_s11 + $0xbac] ss:$16 sps:$4 sm:$0xff]   ;;  %v6140_v63 = vld [vmem:[%s6522_s11 + $0xba8] ss:$16 sps:$4 sm:$0xff]  }
 0x179   : > { %3907 = vmatprep.subr.bf16.mxu0 %v6073_v1  ;;  %4315 = vmatprep.subr.bf16.mxu1 %v6076_v12  ;;  %v6145_v1 = vld [vmem:[%s6522_s11 + $0xbc4] ss:$16 sps:$4 sm:$0xff]   ;;  %v6148_v12 = vld [vmem:[%s6522_s11 + $0xbcc] ss:$16 sps:$4 sm:$0xff]  }
 0x17b   : > { %3895 = vmatmul.mubr.bf16.gmra.mrb[20].mxu0 %v4926_v16  ;;  %4303 = vmatmul.mubr.bf16.gmra.mrb[20].mxu1 %v4926_v16  ;;  %v6151_v16 = vld [vmem:[%s6522_s11 + $0xbe4] ss:$16 sps:$4 sm:$0xff]  }
 0x17c   : > { %3908 = vmatpush1.bf16.msra.mxu0 %v6071_v14  ;;  %4316 = vmatpush1.bf16.msra.mxu1 %v6074_v15  ;;  %v6143_v14 = vld [vmem:[%s6522_s11 + $0xbc0] ss:$16 sps:$4 sm:$0xff]   ;;  %v6146_v15 = vld [vmem:[%s6522_s11 + $0xbc8] ss:$16 sps:$4 sm:$0xff]  }
 0x17d   : > { %3909 = vmatprep.subr.bf16.mxu0 %v6079_v18  ;;  %4317 = vmatprep.subr.bf16.mxu1 %v6082_v19  ;;  %v6154_v18 = vld [vmem:[%s6522_s11 + $0xbec] ss:$16 sps:$4 sm:$0xff]   ;;  %v6149_v19 = vld [vmem:[%s6522_s11 + $0xbe0] ss:$16 sps:$4 sm:$0xff]  }
 0x17e   : > { %3935 = vmatprep.mubr.bf16.mxu0 %v4913_v20  ;;  %4343 = vmatprep.mubr.bf16.mxu1 %v4913_v20  ;;  %v6152_v20 = vld [vmem:[%s6522_s11 + $0xbe8] ss:$16 sps:$4 sm:$0xff]  }
 0x180   : > { %3910 = vmatpush1.bf16.msra.mxu0 %v6077_v21  ;;  %4318 = vmatpush1.bf16.msra.mxu1 %v6080_v22  ;;  %v6157_v21 = vld [vmem:[%s6522_s11 + $0xc04] ss:$16 sps:$4 sm:$0xff]   ;;  %v6160_v22 = vld [vmem:[%s6522_s11 + $0xc0c] ss:$16 sps:$4 sm:$0xff]  }
 0x181   : > { %3911 = vmatprep.subr.bf16.mxu0 %v6085_v23  ;;  %4319 = vmatprep.subr.bf16.mxu1 %v6088_v24  ;;  %v4912_v23 = vcombine.low %v6913_v13, %v6918_v17  ;;  %v437_v24 = vld [vmem:[%s6524_s12 + $0xa8] sm:$0x11]  ;;  %v6161_v13 = vld [vmem:[%s6522_s11 + $0xc20] ss:$16 sps:$4 sm:$0xff]  }
 0x182   : > { %v6164_v17 = vld [vmem:[%s6522_s11 + $0xc28] ss:$16 sps:$4 sm:$0xff]  }
 0x184   : > { %3912 = vmatpush1.bf16.msra.mxu0 %v6083_v25  ;;  %4320 = vmatpush1.bf16.msra.mxu1 %v6086_v26  ;;  %v6155_v25 = vld [vmem:[%s6522_s11 + $0xc00] ss:$16 sps:$4 sm:$0xff]   ;;  %v6158_v26 = vld [vmem:[%s6522_s11 + $0xc08] ss:$16 sps:$4 sm:$0xff]  }
 0x185   : > { %3913 = vmatprep.subr.bf16.mxu0 %v6091_v27  ;;  %4321 = vmatprep.subr.bf16.mxu1 %v6094_v28  ;;  %v6163_v27 = vld [vmem:[%s6522_s11 + $0xc24] ss:$16 sps:$4 sm:$0xff]   ;;  %v6166_v28 = vld [vmem:[%s6522_s11 + $0xc2c] ss:$16 sps:$4 sm:$0xff]  }
 0x188   : > { %3914 = vmatpush1.bf16.msra.mxu0 %v6089_v29  ;;  %4322 = vmatpush1.bf16.msra.mxu1 %v6092_v30  ;;  %v4929_v29 = vcombine.high %v437_v24, %v437_v24  ;;  %v6171_v30 = vld [vmem:[%s6522_s11 + $0xc44] ss:$16 sps:$4 sm:$0xff]  }
 0x189   : > { %3915 = vmatprep.subr.bf16.mxu0 %v6097_v31  ;;  %4323 = vmatprep.subr.bf16.mxu1 %v6100_v32  ;;  %v6174_v31 = vld [vmem:[%s6522_s11 + $0xc4c] ss:$16 sps:$4 sm:$0xff]   ;;  %v4928_v32 = vcombine.low %v437_v24, %v437_v24  ;;  %v6231_v24 = vld [vmem:[%s6522_s11 + $0xd84] ss:$16 sps:$4 sm:$0xff]  }
 0x18c   : > { %3916 = vmatpush1.bf16.msra.mxu0 %v6095_v33  ;;  %4324 = vmatpush1.bf16.msra.mxu1 %v6098_v34  ;;  %v7000_v33 = vld [vmem:[%s6524_s12 + $0x30] sm:$0xff] }
 0x18d   : > { %3917 = vmatprep.subr.bf16.mxu0 %v6103_v35  ;;  %4325 = vmatprep.subr.bf16.mxu1 %v6106_v36  ;;  %v7003_v34 = vld [vmem:[%s6524_s12 + $0x70] sm:$0xff]  ;;  %v6172_v36 = vld [vmem:[%s6522_s11 + $0xc48] ss:$16 sps:$4 sm:$0xff]  }
 0x18e   : > { %v3743_v45 = vpop.f32.mrb[8].mxu0  ;;  %v4151_v46 = vpop.f32.mrb[8].mxu1  ;;  %v6169_v35 = vld [vmem:[%s6522_s11 + $0xc40] ss:$16 sps:$4 sm:$0xff]  }
 0x18f   : > { %v6945_v47 = vadd.f32 %v3743_v45, %v6873_v38  ;;  %v6948_v48 = vadd.f32 %v4151_v46, %v6875_v39  ;;  %v3745_v49 = vpop.f32.mrb[9].mxu0  ;;  %v4153_v52 = vpop.f32.mrb[9].mxu1  ;;  %v6115_v39 = vld [vmem:[%s6522_s11 + $0xb24] ss:$16 sps:$4 sm:$0xff]   ;;  %v6178_v45 = vld [vmem:[%s6522_s11 + $0xc68] ss:$16 sps:$4 sm:$0xff]  }
 0x190   : > { %v6951_v53 = vadd.f32 %v3745_v49, %v6877_v40  ;;  %v6954_v54 = vadd.f32 %v4153_v52, %v6879_v41  ;;  %3918 = vmatpush1.bf16.msra.mxu0 %v6101_v37  ;;  %4326 = vmatpush1.bf16.msra.mxu1 %v6104_v42  ;;  %v3747_v38 = vpop.f32.mrb[10].mxu0  ;;  %v4155_v55 = vpop.f32.mrb[10].mxu1  ;;  %v6118_v40 = vld [vmem:[%s6522_s11 + $0xb2c] ss:$16 sps:$4 sm:$0xff]   ;;  %v6113_v41 = vld [vmem:[%s6522_s11 + $0xb20] ss:$16 sps:$4 sm:$0xff]  }
 0x191   : > { %3919 = vmatprep.subr.bf16.mxu0 %v6109_v43  ;;  %4327 = vmatprep.subr.bf16.mxu1 %v6112_v44  ;;  %v3748_v56 = vpop.f32.mrb[11].mxu0  ;;  %v4156_v57 = vpop.f32.mrb[11].mxu1  ;;  %v6177_v37 = vld [vmem:[%s6522_s11 + $0xc64] ss:$16 sps:$4 sm:$0xff]   ;;  %v6180_v42 = vld [vmem:[%s6522_s11 + $0xc6c] ss:$16 sps:$4 sm:$0xff]   ;;  %v4915_v43 = vcombine.high %v7000_v33, %v7003_v34 }
 0x192   : > { %v6175_v44 = vld [vmem:[%s6522_s11 + $0xc60] ss:$16 sps:$4 sm:$0xff]   ;;  %v6183_v46 = vld [vmem:[%s6522_s11 + $0xc84] ss:$16 sps:$4 sm:$0xff]   ;;  %v6186_v49 = vld [vmem:[%s6522_s11 + $0xc8c] ss:$16 sps:$4 sm:$0xff]  }
 0x193   : > { %v6181_v52 = vld [vmem:[%s6522_s11 + $0xc80] ss:$16 sps:$4 sm:$0xff]   ;;  %v6192_v38 = vld [vmem:[%s6522_s11 + $0xcac] ss:$16 sps:$4 sm:$0xff]  }
 0x194   : > { %3920 = vmatpush1.bf16.msra.mxu0 %v6107_v50  ;;  %4328 = vmatpush1.bf16.msra.mxu1 %v6110_v51  ;;  %v6184_v50 = vld [vmem:[%s6522_s11 + $0xc88] ss:$16 sps:$4 sm:$0xff]   ;;  %v6189_v51 = vld [vmem:[%s6522_s11 + $0xca4] ss:$16 sps:$4 sm:$0xff]   ;;  %v6187_v55 = vld [vmem:[%s6522_s11 + $0xca0] ss:$16 sps:$4 sm:$0xff]  }
 0x195   : > { %3921 = vmatprep.subr.bf16.mxu0 %v6115_v39  ;;  %4329 = vmatprep.subr.bf16.mxu1 %v6118_v40  ;;  %v6190_v39 = vld [vmem:[%s6522_s11 + $0xca8] ss:$16 sps:$4 sm:$0xff]   ;;  %v6195_v40 = vld [vmem:[%s6522_s11 + $0xcc4] ss:$16 sps:$4 sm:$0xff]   ;;  %v6198_v56 = vld [vmem:[%s6522_s11 + $0xccc] ss:$16 sps:$4 sm:$0xff]  }
 0x196   : > { %v6193_v57 = vld [vmem:[%s6522_s11 + $0xcc0] ss:$16 sps:$4 sm:$0xff]  }
 0x198   : > { %3922 = vmatpush1.bf16.msra.mxu0 %v6113_v41  ;;  %4330 = vmatpush1.bf16.msra.mxu1 %v6116_v58  ;;  %v6196_v41 = vld [vmem:[%s6522_s11 + $0xcc8] ss:$16 sps:$4 sm:$0xff]   ;;  %v6201_v58 = vld [vmem:[%s6522_s11 + $0xce4] ss:$16 sps:$4 sm:$0xff]  }
 0x199   : > { %3923 = vmatprep.subr.bf16.mxu0 %v6121_v59  ;;  %4331 = vmatprep.subr.bf16.mxu1 %v6124_v60  ;;  %v6204_v59 = vld [vmem:[%s6522_s11 + $0xcec] ss:$16 sps:$4 sm:$0xff]   ;;  %v6199_v60 = vld [vmem:[%s6522_s11 + $0xce0] ss:$16 sps:$4 sm:$0xff]  }
 0x19c   : > { %3924 = vmatpush1.bf16.msra.mxu0 %v6119_v61  ;;  %4332 = vmatpush1.bf16.msra.mxu1 %v6122_v62  ;;  %v6202_v61 = vld [vmem:[%s6522_s11 + $0xce8] ss:$16 sps:$4 sm:$0xff]   ;;  %v6207_v62 = vld [vmem:[%s6522_s11 + $0xd04] ss:$16 sps:$4 sm:$0xff]  }
 0x19d   : > { %3925 = vmatprep.subr.bf16.mxu0 %v6127_v0  ;;  %4333 = vmatprep.subr.bf16.mxu1 %v6130_v2  ;;  %v6210_v0 = vld [vmem:[%s6522_s11 + $0xd0c] ss:$16 sps:$4 sm:$0xff]  }
 0x1a0   : > { %3926 = vmatpush1.bf16.msra.mxu0 %v6125_v3  ;;  %4334 = vmatpush1.bf16.msra.mxu1 %v6128_v4 }
 0x1a1   : > { %3927 = vmatprep.subr.bf16.mxu0 %v6133_v5  ;;  %4335 = vmatprep.subr.bf16.mxu1 %v6136_v6 }
 0x1a4   : > { %3928 = vmatpush1.bf16.msra.mxu0 %v6131_v7  ;;  %4336 = vmatpush1.bf16.msra.mxu1 %v6134_v8 }
 0x1a5   : > { %3929 = vmatprep.subr.bf16.mxu0 %v6139_v9  ;;  %4337 = vmatprep.subr.bf16.mxu1 %v6142_v10  ;;  %v6205_v10 = vld [vmem:[%s6522_s11 + $0xd00] ss:$16 sps:$4 sm:$0xff]  }
 0x1a8   : > { %3930 = vmatpush1.bf16.msra.mxu0 %v6137_v11  ;;  %4338 = vmatpush1.bf16.msra.mxu1 %v6140_v63  ;;  %v6208_v11 = vld [vmem:[%s6522_s11 + $0xd08] ss:$16 sps:$4 sm:$0xff]  }
 0x1a9   : > { %3931 = vmatprep.subr.bf16.mxu0 %v6145_v1  ;;  %4339 = vmatprep.subr.bf16.mxu1 %v6148_v12 }
 0x1ac   : > { %3932 = vmatpush1.bf16.msra.mxu0 %v6143_v14  ;;  %4340 = vmatpush1.bf16.msra.mxu1 %v6146_v15  ;;  %v6214_v14 = vld [vmem:[%s6522_s11 + $0xd28] ss:$16 sps:$4 sm:$0xff]   ;;  %v6219_v15 = vld [vmem:[%s6522_s11 + $0xd44] ss:$16 sps:$4 sm:$0xff]  }
 0x1ad   : > { %3933 = vmatprep.subr.bf16.mxu0 %v6151_v16  ;;  %4341 = vmatprep.subr.bf16.mxu1 %v6154_v18  ;;  %v6222_v16 = vld [vmem:[%s6522_s11 + $0xd4c] ss:$16 sps:$4 sm:$0xff]   ;;  %v6217_v18 = vld [vmem:[%s6522_s11 + $0xd40] ss:$16 sps:$4 sm:$0xff]  }
 0x1b0   : > { %3934 = vmatpush1.bf16.msra.mxu0 %v6149_v19  ;;  %4342 = vmatpush1.bf16.msra.mxu1 %v6152_v20  ;;  %v6220_v19 = vld [vmem:[%s6522_s11 + $0xd48] ss:$16 sps:$4 sm:$0xff]   ;;  %v6225_v20 = vld [vmem:[%s6522_s11 + $0xd64] ss:$16 sps:$4 sm:$0xff]  }
 0x1b1   : > { %3954 = vmatprep.subr.bf16.mxu0 %v6157_v21  ;;  %4362 = vmatprep.subr.bf16.mxu1 %v6160_v22  ;;  %v6228_v21 = vld [vmem:[%s6522_s11 + $0xd6c] ss:$16 sps:$4 sm:$0xff]   ;;  %v6223_v22 = vld [vmem:[%s6522_s11 + $0xd60] ss:$16 sps:$4 sm:$0xff]  }
 0x1b3   : > { %3936 = vmatmul.mubr.bf16.vlgmr.msra.gmra.mrb[0].mxu0 %v4912_v23  ;;  %4344 = vmatmul.mubr.bf16.vlgmr.msra.gmra.mrb[0].mxu1 %v4912_v23  ;;  %v6226_v23 = vld [vmem:[%s6522_s11 + $0xd68] ss:$16 sps:$4 sm:$0xff]  }
 0x1b4   : > { %3955 = vmatpush1.bf16.msra.mxu0 %v6155_v25  ;;  %4363 = vmatpush1.bf16.msra.mxu1 %v6158_v26  ;;  %v6234_v25 = vld [vmem:[%s6522_s11 + $0xd8c] ss:$16 sps:$4 sm:$0xff]   ;;  %v6229_v26 = vld [vmem:[%s6522_s11 + $0xd80] ss:$16 sps:$4 sm:$0xff]  }
 0x1b5   : > { %3956 = vmatprep.subr.bf16.mxu0 %v6163_v27  ;;  %4364 = vmatprep.subr.bf16.mxu1 %v6166_v28  ;;  %v6232_v27 = vld [vmem:[%s6522_s11 + $0xd88] ss:$16 sps:$4 sm:$0xff]   ;;  %v6237_v28 = vld [vmem:[%s6522_s11 + $0xda4] ss:$16 sps:$4 sm:$0xff]  }
 0x1b6   : > { %3945 = vmatprep.mubr.bf16.mxu0 %v4929_v29  ;;  %4353 = vmatprep.mubr.bf16.mxu1 %v4929_v29  ;;  %v6240_v29 = vld [vmem:[%s6522_s11 + $0xdac] ss:$16 sps:$4 sm:$0xff]  }
 0x1b8   : > { %3957 = vmatpush1.bf16.msra.mxu0 %v6161_v13  ;;  %4365 = vmatpush1.bf16.msra.mxu1 %v6164_v17  ;;  %v6235_v13 = vld [vmem:[%s6522_s11 + $0xda0] ss:$16 sps:$4 sm:$0xff]   ;;  %v6238_v17 = vld [vmem:[%s6522_s11 + $0xda8] ss:$16 sps:$4 sm:$0xff]  }
 0x1b9   : > { %3958 = vmatprep.subr.bf16.mxu0 %v6171_v30  ;;  %4366 = vmatprep.subr.bf16.mxu1 %v6174_v31  ;;  %v6243_v30 = vld [vmem:[%s6522_s11 + $0xdc4] ss:$16 sps:$4 sm:$0xff]   ;;  %v6246_v31 = vld [vmem:[%s6522_s11 + $0xdcc] ss:$16 sps:$4 sm:$0xff]  }
 0x1bb   : > { %3946 = vmatmul.mubr.bf16.gmra.mrb[24].mxu0 %v4928_v32  ;;  %4354 = vmatmul.mubr.bf16.gmra.mrb[24].mxu1 %v4928_v32  ;;  %v6241_v32 = vld [vmem:[%s6522_s11 + $0xdc0] ss:$16 sps:$4 sm:$0xff]  }
 0x1bc   : > { %3959 = vmatpush1.bf16.msra.mxu0 %v6169_v35  ;;  %4367 = vmatpush1.bf16.msra.mxu1 %v6172_v36  ;;  %v6244_v35 = vld [vmem:[%s6522_s11 + $0xdc8] ss:$16 sps:$4 sm:$0xff]   ;;  %v6249_v36 = vld [vmem:[%s6522_s11 + $0xde4] ss:$16 sps:$4 sm:$0xff]  }
 0x1bd   : > { %3960 = vmatprep.subr.bf16.mxu0 %v6177_v37  ;;  %4368 = vmatprep.subr.bf16.mxu1 %v6180_v42  ;;  %v6252_v37 = vld [vmem:[%s6522_s11 + $0xdec] ss:$16 sps:$4 sm:$0xff]   ;;  %v6247_v42 = vld [vmem:[%s6522_s11 + $0xde0] ss:$16 sps:$4 sm:$0xff]  }
 0x1be   : > { %3986 = vmatprep.mubr.bf16.mxu0 %v4915_v43  ;;  %4394 = vmatprep.mubr.bf16.mxu1 %v4915_v43  ;;  %v6250_v43 = vld [vmem:[%s6522_s11 + $0xde8] ss:$16 sps:$4 sm:$0xff]  }
 0x1c0   : > { %3961 = vmatpush1.bf16.msra.mxu0 %v6175_v44  ;;  %4369 = vmatpush1.bf16.msra.mxu1 %v6178_v45  ;;  %v6255_v44 = vld [vmem:[%s6522_s11 + $0xe04] ss:$16 sps:$4 sm:$0xff]   ;;  %v6258_v45 = vld [vmem:[%s6522_s11 + $0xe0c] ss:$16 sps:$4 sm:$0xff]  }
 0x1c1   : > { %3962 = vmatprep.subr.bf16.mxu0 %v6183_v46  ;;  %4370 = vmatprep.subr.bf16.mxu1 %v6186_v49  ;;  %v4914_v46 = vcombine.low %v7000_v33, %v7003_v34  ;;  %v438_v49 = vld [vmem:[%s6524_s12 + $0xb0] sm:$0x11]  ;;  %v6262_v34 = vld [vmem:[%s6522_s11 + $0xe28] ss:$16 sps:$4 sm:$0xff]  }
 0x1c2   : > { %v6259_v33 = vld [vmem:[%s6522_s11 + $0xe20] ss:$16 sps:$4 sm:$0xff]  }
 0x1c4   : > { %3963 = vmatpush1.bf16.msra.mxu0 %v6181_v52  ;;  %4371 = vmatpush1.bf16.msra.mxu1 %v6184_v50  ;;  %v6253_v52 = vld [vmem:[%s6522_s11 + $0xe00] ss:$16 sps:$4 sm:$0xff]   ;;  %v6256_v50 = vld [vmem:[%s6522_s11 + $0xe08] ss:$16 sps:$4 sm:$0xff]  }
 0x1c5   : > { %3964 = vmatprep.subr.bf16.mxu0 %v6189_v51  ;;  %4372 = vmatprep.subr.bf16.mxu1 %v6192_v38  ;;  %v6261_v51 = vld [vmem:[%s6522_s11 + $0xe24] ss:$16 sps:$4 sm:$0xff]   ;;  %v6264_v38 = vld [vmem:[%s6522_s11 + $0xe2c] ss:$16 sps:$4 sm:$0xff]  }
 0x1c8   : > { %3965 = vmatpush1.bf16.msra.mxu0 %v6187_v55  ;;  %4373 = vmatpush1.bf16.msra.mxu1 %v6190_v39  ;;  %v4931_v55 = vcombine.high %v438_v49, %v438_v49  ;;  %v6269_v39 = vld [vmem:[%s6522_s11 + $0xe44] ss:$16 sps:$4 sm:$0xff]  }
 0x1c9   : > { %3966 = vmatprep.subr.bf16.mxu0 %v6195_v40  ;;  %4374 = vmatprep.subr.bf16.mxu1 %v6198_v56  ;;  %v6272_v40 = vld [vmem:[%s6522_s11 + $0xe4c] ss:$16 sps:$4 sm:$0xff]   ;;  %v4930_v56 = vcombine.low %v438_v49, %v438_v49  ;;  %v6329_v49 = vld [vmem:[%s6522_s11 + $0xf84] ss:$16 sps:$4 sm:$0xff]  }
 0x1cc   : > { %3967 = vmatpush1.bf16.msra.mxu0 %v6193_v57  ;;  %4375 = vmatpush1.bf16.msra.mxu1 %v6196_v41  ;;  %v7087_v57 = vld [vmem:[%s6524_s12 + $0x38] sm:$0xff] }
 0x1cd   : > { %3968 = vmatprep.subr.bf16.mxu0 %v6201_v58  ;;  %4376 = vmatprep.subr.bf16.mxu1 %v6204_v59  ;;  %v7090_v41 = vld [vmem:[%s6524_s12 + $0x78] sm:$0xff]  ;;  %v6267_v58 = vld [vmem:[%s6522_s11 + $0xe40] ss:$16 sps:$4 sm:$0xff]  }
 0x1ce   : > { %v3794_v2 = vpop.f32.mrb[12].mxu0  ;;  %v4202_v3 = vpop.f32.mrb[12].mxu1  ;;  %v6270_v59 = vld [vmem:[%s6522_s11 + $0xe48] ss:$16 sps:$4 sm:$0xff]  }
 0x1cf   : > { %v7032_v4 = vadd.f32 %v3794_v2, %v6945_v47  ;;  %v7035_v5 = vadd.f32 %v4202_v3, %v6948_v48  ;;  %v3796_v6 = vpop.f32.mrb[13].mxu0  ;;  %v4204_v7 = vpop.f32.mrb[13].mxu1  ;;  %v6213_v48 = vld [vmem:[%s6522_s11 + $0xd24] ss:$16 sps:$4 sm:$0xff]   ;;  %v6276_v2 = vld [vmem:[%s6522_s11 + $0xe68] ss:$16 sps:$4 sm:$0xff]  }
 0x1d0   : > { %v7038_v8 = vadd.f32 %v3796_v6, %v6951_v53  ;;  %v7041_v9 = vadd.f32 %v4204_v7, %v6954_v54  ;;  %3969 = vmatpush1.bf16.msra.mxu0 %v6199_v60  ;;  %4377 = vmatpush1.bf16.msra.mxu1 %v6202_v61  ;;  %v3798_v47 = vpop.f32.mrb[14].mxu0  ;;  %v4206_v63 = vpop.f32.mrb[14].mxu1  ;;  %v6216_v53 = vld [vmem:[%s6522_s11 + $0xd2c] ss:$16 sps:$4 sm:$0xff]   ;;  %v6211_v54 = vld [vmem:[%s6522_s11 + $0xd20] ss:$16 sps:$4 sm:$0xff]  }
 0x1d1   : > { %3970 = vmatprep.subr.bf16.mxu0 %v6207_v62  ;;  %4378 = vmatprep.subr.bf16.mxu1 %v6210_v0  ;;  %v3799_v1 = vpop.f32.mrb[15].mxu0  ;;  %v4207_v12 = vpop.f32.mrb[15].mxu1  ;;  %v6275_v60 = vld [vmem:[%s6522_s11 + $0xe64] ss:$16 sps:$4 sm:$0xff]   ;;  %v6278_v61 = vld [vmem:[%s6522_s11 + $0xe6c] ss:$16 sps:$4 sm:$0xff]   ;;  %v4917_v62 = vcombine.high %v7087_v57, %v7090_v41 }
 0x1d2   : > { %v6273_v0 = vld [vmem:[%s6522_s11 + $0xe60] ss:$16 sps:$4 sm:$0xff]   ;;  %v6281_v3 = vld [vmem:[%s6522_s11 + $0xe84] ss:$16 sps:$4 sm:$0xff]   ;;  %v6284_v6 = vld [vmem:[%s6522_s11 + $0xe8c] ss:$16 sps:$4 sm:$0xff]  }
 0x1d3   : > { %v6279_v7 = vld [vmem:[%s6522_s11 + $0xe80] ss:$16 sps:$4 sm:$0xff]   ;;  %v6290_v47 = vld [vmem:[%s6522_s11 + $0xeac] ss:$16 sps:$4 sm:$0xff]  }
 0x1d4   : > { %3971 = vmatpush1.bf16.msra.mxu0 %v6205_v10  ;;  %4379 = vmatpush1.bf16.msra.mxu1 %v6208_v11  ;;  %v6282_v10 = vld [vmem:[%s6522_s11 + $0xe88] ss:$16 sps:$4 sm:$0xff]   ;;  %v6287_v11 = vld [vmem:[%s6522_s11 + $0xea4] ss:$16 sps:$4 sm:$0xff]   ;;  %v6285_v63 = vld [vmem:[%s6522_s11 + $0xea0] ss:$16 sps:$4 sm:$0xff]  }
 0x1d5   : > { %3972 = vmatprep.subr.bf16.mxu0 %v6213_v48  ;;  %4380 = vmatprep.subr.bf16.mxu1 %v6216_v53  ;;  %v6288_v48 = vld [vmem:[%s6522_s11 + $0xea8] ss:$16 sps:$4 sm:$0xff]   ;;  %v6293_v53 = vld [vmem:[%s6522_s11 + $0xec4] ss:$16 sps:$4 sm:$0xff]   ;;  %v6296_v1 = vld [vmem:[%s6522_s11 + $0xecc] ss:$16 sps:$4 sm:$0xff]  }
 0x1d6   : > { %v6291_v12 = vld [vmem:[%s6522_s11 + $0xec0] ss:$16 sps:$4 sm:$0xff]  }
 0x1d8   : > { %3973 = vmatpush1.bf16.msra.mxu0 %v6211_v54  ;;  %4381 = vmatpush1.bf16.msra.mxu1 %v6214_v14  ;;  %v6294_v54 = vld [vmem:[%s6522_s11 + $0xec8] ss:$16 sps:$4 sm:$0xff]   ;;  %v6299_v14 = vld [vmem:[%s6522_s11 + $0xee4] ss:$16 sps:$4 sm:$0xff]  }
 0x1d9   : > { %3974 = vmatprep.subr.bf16.mxu0 %v6219_v15  ;;  %4382 = vmatprep.subr.bf16.mxu1 %v6222_v16  ;;  %v6302_v15 = vld [vmem:[%s6522_s11 + $0xeec] ss:$16 sps:$4 sm:$0xff]   ;;  %v6297_v16 = vld [vmem:[%s6522_s11 + $0xee0] ss:$16 sps:$4 sm:$0xff]  }
 0x1dc   : > { %3975 = vmatpush1.bf16.msra.mxu0 %v6217_v18  ;;  %4383 = vmatpush1.bf16.msra.mxu1 %v6220_v19  ;;  %v6300_v18 = vld [vmem:[%s6522_s11 + $0xee8] ss:$16 sps:$4 sm:$0xff]   ;;  %v6305_v19 = vld [vmem:[%s6522_s11 + $0xf04] ss:$16 sps:$4 sm:$0xff]  }
 0x1dd   : > { %3976 = vmatprep.subr.bf16.mxu0 %v6225_v20  ;;  %4384 = vmatprep.subr.bf16.mxu1 %v6228_v21  ;;  %v6308_v20 = vld [vmem:[%s6522_s11 + $0xf0c] ss:$16 sps:$4 sm:$0xff]  }
 0x1e0   : > { %3977 = vmatpush1.bf16.msra.mxu0 %v6223_v22  ;;  %4385 = vmatpush1.bf16.msra.mxu1 %v6226_v23 }
 0x1e1   : > { %3978 = vmatprep.subr.bf16.mxu0 %v6231_v24  ;;  %4386 = vmatprep.subr.bf16.mxu1 %v6234_v25 }
 0x1e4   : > { %3979 = vmatpush1.bf16.msra.mxu0 %v6229_v26  ;;  %4387 = vmatpush1.bf16.msra.mxu1 %v6232_v27 }
 0x1e5   : > { %3980 = vmatprep.subr.bf16.mxu0 %v6237_v28  ;;  %4388 = vmatprep.subr.bf16.mxu1 %v6240_v29  ;;  %v6303_v29 = vld [vmem:[%s6522_s11 + $0xf00] ss:$16 sps:$4 sm:$0xff]  }
 0x1e8   : > { %3981 = vmatpush1.bf16.msra.mxu0 %v6235_v13  ;;  %4389 = vmatpush1.bf16.msra.mxu1 %v6238_v17  ;;  %v6306_v13 = vld [vmem:[%s6522_s11 + $0xf08] ss:$16 sps:$4 sm:$0xff]  }
 0x1e9   : > { %3982 = vmatprep.subr.bf16.mxu0 %v6243_v30  ;;  %4390 = vmatprep.subr.bf16.mxu1 %v6246_v31 }
 0x1ec   : > { %3983 = vmatpush1.bf16.msra.mxu0 %v6241_v32  ;;  %4391 = vmatpush1.bf16.msra.mxu1 %v6244_v35  ;;  %v6312_v32 = vld [vmem:[%s6522_s11 + $0xf28] ss:$16 sps:$4 sm:$0xff]   ;;  %v6317_v35 = vld [vmem:[%s6522_s11 + $0xf44] ss:$16 sps:$4 sm:$0xff]  }
 0x1ed   : > { %3984 = vmatprep.subr.bf16.mxu0 %v6249_v36  ;;  %4392 = vmatprep.subr.bf16.mxu1 %v6252_v37  ;;  %v6320_v36 = vld [vmem:[%s6522_s11 + $0xf4c] ss:$16 sps:$4 sm:$0xff]   ;;  %v6315_v37 = vld [vmem:[%s6522_s11 + $0xf40] ss:$16 sps:$4 sm:$0xff]  }
 0x1f0   : > { %3985 = vmatpush1.bf16.msra.mxu0 %v6247_v42  ;;  %4393 = vmatpush1.bf16.msra.mxu1 %v6250_v43  ;;  %v6318_v42 = vld [vmem:[%s6522_s11 + $0xf48] ss:$16 sps:$4 sm:$0xff]   ;;  %v6323_v43 = vld [vmem:[%s6522_s11 + $0xf64] ss:$16 sps:$4 sm:$0xff]  }
 0x1f1   : > { %4005 = vmatprep.subr.bf16.mxu0 %v6255_v44  ;;  %4413 = vmatprep.subr.bf16.mxu1 %v6258_v45  ;;  %v6326_v44 = vld [vmem:[%s6522_s11 + $0xf6c] ss:$16 sps:$4 sm:$0xff]   ;;  %v6321_v45 = vld [vmem:[%s6522_s11 + $0xf60] ss:$16 sps:$4 sm:$0xff]  }
 0x1f3   : > { %3987 = vmatmul.mubr.bf16.vlgmr.msra.gmra.mrb[0].mxu0 %v4914_v46  ;;  %4395 = vmatmul.mubr.bf16.vlgmr.msra.gmra.mrb[0].mxu1 %v4914_v46  ;;  %v6324_v46 = vld [vmem:[%s6522_s11 + $0xf68] ss:$16 sps:$4 sm:$0xff]  }
 0x1f4   : > { %4006 = vmatpush1.bf16.msra.mxu0 %v6253_v52  ;;  %4414 = vmatpush1.bf16.msra.mxu1 %v6256_v50  ;;  %v6332_v52 = vld [vmem:[%s6522_s11 + $0xf8c] ss:$16 sps:$4 sm:$0xff]   ;;  %v6327_v50 = vld [vmem:[%s6522_s11 + $0xf80] ss:$16 sps:$4 sm:$0xff]  }
 0x1f5   : > { %4007 = vmatprep.subr.bf16.mxu0 %v6261_v51  ;;  %4415 = vmatprep.subr.bf16.mxu1 %v6264_v38  ;;  %v6330_v51 = vld [vmem:[%s6522_s11 + $0xf88] ss:$16 sps:$4 sm:$0xff]   ;;  %v6335_v38 = vld [vmem:[%s6522_s11 + $0xfa4] ss:$16 sps:$4 sm:$0xff]  }
 0x1f6   : > { %3996 = vmatprep.mubr.bf16.mxu0 %v4931_v55  ;;  %4404 = vmatprep.mubr.bf16.mxu1 %v4931_v55  ;;  %v6338_v55 = vld [vmem:[%s6522_s11 + $0xfac] ss:$16 sps:$4 sm:$0xff]  }
 0x1f8   : > { %4008 = vmatpush1.bf16.msra.mxu0 %v6259_v33  ;;  %4416 = vmatpush1.bf16.msra.mxu1 %v6262_v34  ;;  %v6333_v33 = vld [vmem:[%s6522_s11 + $0xfa0] ss:$16 sps:$4 sm:$0xff]   ;;  %v6336_v34 = vld [vmem:[%s6522_s11 + $0xfa8] ss:$16 sps:$4 sm:$0xff]  }
 0x1f9   : > { %4009 = vmatprep.subr.bf16.mxu0 %v6269_v39  ;;  %4417 = vmatprep.subr.bf16.mxu1 %v6272_v40  ;;  %v6341_v39 = vld [vmem:[%s6522_s11 + $0xfc4] ss:$16 sps:$4 sm:$0xff]   ;;  %v6344_v40 = vld [vmem:[%s6522_s11 + $0xfcc] ss:$16 sps:$4 sm:$0xff]  }
 0x1fb   : > { %3997 = vmatmul.mubr.bf16.gmra.mrb[28].mxu0 %v4930_v56  ;;  %4405 = vmatmul.mubr.bf16.gmra.mrb[28].mxu1 %v4930_v56  ;;  %v6339_v56 = vld [vmem:[%s6522_s11 + $0xfc0] ss:$16 sps:$4 sm:$0xff]  }
 0x1fc   : > { %4010 = vmatpush1.bf16.msra.mxu0 %v6267_v58  ;;  %4418 = vmatpush1.bf16.msra.mxu1 %v6270_v59  ;;  %v6342_v58 = vld [vmem:[%s6522_s11 + $0xfc8] ss:$16 sps:$4 sm:$0xff]   ;;  %v6347_v59 = vld [vmem:[%s6522_s11 + $0xfe4] ss:$16 sps:$4 sm:$0xff]  }
 0x1fd   : > { %4011 = vmatprep.subr.bf16.mxu0 %v6275_v60  ;;  %4419 = vmatprep.subr.bf16.mxu1 %v6278_v61  ;;  %v6350_v60 = vld [vmem:[%s6522_s11 + $0xfec] ss:$16 sps:$4 sm:$0xff]   ;;  %v6345_v61 = vld [vmem:[%s6522_s11 + $0xfe0] ss:$16 sps:$4 sm:$0xff]  }
 0x1fe   : > { %4037 = vmatprep.mubr.bf16.mxu0 %v4917_v62  ;;  %4445 = vmatprep.mubr.bf16.mxu1 %v4917_v62  ;;  %v6348_v62 = vld [vmem:[%s6522_s11 + $0xfe8] ss:$16 sps:$4 sm:$0xff]  }
 0x200   : > { %4012 = vmatpush1.bf16.msra.mxu0 %v6273_v0  ;;  %4420 = vmatpush1.bf16.msra.mxu1 %v6276_v2  ;;  %v439_v0 = vld [vmem:[%s6524_s12 + $0xb8] sm:$0x11]  ;;  %v4916_v2 = vcombine.low %v7087_v57, %v7090_v41 }
 0x201   : > { %4013 = vmatprep.subr.bf16.mxu0 %v6281_v3  ;;  %4421 = vmatprep.subr.bf16.mxu1 %v6284_v6  ;;  %v4933_v3 = vcombine.high %v439_v0, %v439_v0  ;;  %v4932_v6 = vcombine.low %v439_v0, %v439_v0  ;;  %v412_v0 = vld [vmem:[#allocation2 + $0x40] sm:$0x3] }
 0x204   : > { %4014 = vmatpush1.bf16.msra.mxu0 %v6279_v7  ;;  %4422 = vmatpush1.bf16.msra.mxu1 %v6282_v10 }
 0x205   : > { %4015 = vmatprep.subr.bf16.mxu0 %v6287_v11  ;;  %4423 = vmatprep.subr.bf16.mxu1 %v6290_v47 }
 0x208   : > { %4016 = vmatpush1.bf16.msra.mxu0 %v6285_v63  ;;  %4424 = vmatpush1.bf16.msra.mxu1 %v6288_v48 }
 0x209   : > { %4017 = vmatprep.subr.bf16.mxu0 %v6293_v53  ;;  %4425 = vmatprep.subr.bf16.mxu1 %v6296_v1 }
 0x20c   : > { %4018 = vmatpush1.bf16.msra.mxu0 %v6291_v12  ;;  %4426 = vmatpush1.bf16.msra.mxu1 %v6294_v54 }
 0x20d   : > { %4019 = vmatprep.subr.bf16.mxu0 %v6299_v14  ;;  %4427 = vmatprep.subr.bf16.mxu1 %v6302_v15 }
 0x20e   : > { %v3845_v21 = vpop.f32.mrb[16].mxu0  ;;  %v4253_v22 = vpop.f32.mrb[16].mxu1 }
 0x20f   : > { %v7119_v23 = vadd.f32 %v3845_v21, %v7032_v4  ;;  %v7122_v24 = vadd.f32 %v4253_v22, %v7035_v5  ;;  %v3847_v25 = vpop.f32.mrb[17].mxu0  ;;  %v4255_v26 = vpop.f32.mrb[17].mxu1  ;;  %v6311_v5 = vld [vmem:[%s6522_s11 + $0xf24] ss:$16 sps:$4 sm:$0xff]  }
 0x210   : > { %v7125_v27 = vadd.f32 %v3847_v25, %v7038_v8  ;;  %v7128_v28 = vadd.f32 %v4255_v26, %v7041_v9  ;;  %4020 = vmatpush1.bf16.msra.mxu0 %v6297_v16  ;;  %4428 = vmatpush1.bf16.msra.mxu1 %v6300_v18  ;;  %v3849_v4 = vpop.f32.mrb[18].mxu0  ;;  %v4257_v17 = vpop.f32.mrb[18].mxu1  ;;  %v6314_v8 = vld [vmem:[%s6522_s11 + $0xf2c] ss:$16 sps:$4 sm:$0xff]   ;;  %v6309_v9 = vld [vmem:[%s6522_s11 + $0xf20] ss:$16 sps:$4 sm:$0xff]  }
 0x211   : > { %4021 = vmatprep.subr.bf16.mxu0 %v6305_v19  ;;  %4429 = vmatprep.subr.bf16.mxu1 %v6308_v20  ;;  %v3850_v30 = vpop.f32.mrb[19].mxu0  ;;  %v4258_v31 = vpop.f32.mrb[19].mxu1 }
 0x214   : > { %4022 = vmatpush1.bf16.msra.mxu0 %v6303_v29  ;;  %4430 = vmatpush1.bf16.msra.mxu1 %v6306_v13 }
 0x215   : > { %4023 = vmatprep.subr.bf16.mxu0 %v6311_v5  ;;  %4431 = vmatprep.subr.bf16.mxu1 %v6314_v8 }
 0x218   : > { %4024 = vmatpush1.bf16.msra.mxu0 %v6309_v9  ;;  %4432 = vmatpush1.bf16.msra.mxu1 %v6312_v32 }
 0x219   : > { %4025 = vmatprep.subr.bf16.mxu0 %v6317_v35  ;;  %4433 = vmatprep.subr.bf16.mxu1 %v6320_v36  ;;  %v404_v35 = vld [vmem:[#allocation2] sm:$0xff]  ;;  %v406_v36 = vld [vmem:[#allocation2 + $0x10] sm:$0xff] }
 0x21c   : > { %4026 = vmatpush1.bf16.msra.mxu0 %v6315_v37  ;;  %4434 = vmatpush1.bf16.msra.mxu1 %v6318_v42  ;;  %v405_v37 = vld [vmem:[#allocation2 + $0x8] sm:$0xff]  ;;  %v407_v42 = vld [vmem:[#allocation2 + $0x18] sm:$0xff] }
 0x21d   : > { %4027 = vmatprep.subr.bf16.mxu0 %v6323_v43  ;;  %4435 = vmatprep.subr.bf16.mxu1 %v6326_v44 }
 0x220   : > { %4028 = vmatpush1.bf16.msra.mxu0 %v6321_v45  ;;  %4436 = vmatpush1.bf16.msra.mxu1 %v6324_v46  ;;  %v408_v45 = vld [vmem:[#allocation2 + $0x20] sm:$0xff]  ;;  %v410_v46 = vld [vmem:[#allocation2 + $0x30] sm:$0xff] }
 0x221   : > { %4029 = vmatprep.subr.bf16.mxu0 %v6329_v49  ;;  %4437 = vmatprep.subr.bf16.mxu1 %v6332_v52 }
 0x224   : > { %4030 = vmatpush1.bf16.msra.mxu0 %v6327_v50  ;;  %4438 = vmatpush1.bf16.msra.mxu1 %v6330_v51 }
 0x225   : > { %4031 = vmatprep.subr.bf16.mxu0 %v6335_v38  ;;  %4439 = vmatprep.subr.bf16.mxu1 %v6338_v55  ;;  %v409_v38 = vld [vmem:[#allocation2 + $0x28] sm:$0xff]  ;;  %v411_v55 = vld [vmem:[#allocation2 + $0x38] sm:$0xff] }
 0x228   : > { %4032 = vmatpush1.bf16.msra.mxu0 %v6333_v33  ;;  %4440 = vmatpush1.bf16.msra.mxu1 %v6336_v34 }
 0x229   : > { %4033 = vmatprep.subr.bf16.mxu0 %v6341_v39  ;;  %4441 = vmatprep.subr.bf16.mxu1 %v6344_v40 }
 0x22c   : > { %4034 = vmatpush1.bf16.msra.mxu0 %v6339_v56  ;;  %4442 = vmatpush1.bf16.msra.mxu1 %v6342_v58 }
 0x22d   : > { %4035 = vmatprep.subr.bf16.mxu0 %v6347_v59  ;;  %4443 = vmatprep.subr.bf16.mxu1 %v6350_v60 }
 0x230   : > { %4036 = vmatpush1.bf16.msra.mxu0 %v6345_v61  ;;  %4444 = vmatpush1.bf16.msra.mxu1 %v6348_v62 }
 0x233   : > { %4038 = vmatmul.mubr.bf16.vlgmr.msra.gmra.mrb[0].mxu0 %v4916_v2  ;;  %4446 = vmatmul.mubr.bf16.vlgmr.msra.gmra.mrb[0].mxu1 %v4916_v2 }
 0x234   : > { %4047 = vmatprep.mubr.bf16.mxu0 %v4933_v3  ;;  %4455 = vmatprep.mubr.bf16.mxu1 %v4933_v3  ;;  %v414_v3 = vld [vmem:[#allocation2 + $0x50] sm:$0x3] }
 0x23b   : > { %4048 = vmatmul.mubr.bf16.gmra.mrb[32].mxu0 %v4932_v6  ;;  %4456 = vmatmul.mubr.bf16.gmra.mrb[32].mxu1 %v4932_v6 }
 0x24e   : > { %v3896_v7 = vpop.f32.mrb[20].mxu0  ;;  %v4304_v10 = vpop.f32.mrb[20].mxu1 }
 0x24f   : > { %v3897_v11 = vadd.f32 %v3896_v7, %v7119_v23  ;;  %v4305_v47 = vadd.f32 %v4304_v10, %v7122_v24  ;;  %v3898_v63 = vpop.f32.mrb[21].mxu0  ;;  %v4306_v48 = vpop.f32.mrb[21].mxu1 }
 0x250   : > { %v3899_v57 = vadd.f32 %v3898_v63, %v7125_v27  ;;  %v4307_v41 = vadd.f32 %v4306_v48, %v7128_v28  ;;  %v3900_v53 = vpop.f32.mrb[22].mxu0  ;;  %v4308_v1 = vpop.f32.mrb[22].mxu1  ;;  %v415_v63 = vld [vmem:[#allocation2 + $0x58] sm:$0x3] }
 0x251   : > { %v3901_v12 = vpop.f32.mrb[23].mxu0  ;;  %v4309_v54 = vpop.f32.mrb[23].mxu1 }
 0x28e   : > { %v3947_v14 = vpop.f32.mrb[24].mxu0  ;;  %v4355_v15 = vpop.f32.mrb[24].mxu1 }
 0x28f   : > { %v3948_v16 = vadd.f32 %v3947_v14, %v3897_v11  ;;  %v4356_v18 = vadd.f32 %v4355_v15, %v4305_v47  ;;  %v3949_v19 = vpop.f32.mrb[25].mxu0  ;;  %v4357_v20 = vpop.f32.mrb[25].mxu1  ;;  %v413_v11 = vld [vmem:[#allocation2 + $0x48] sm:$0x3] }
 0x290   : > { %v3950_v21 = vadd.f32 %v3949_v19, %v3899_v57  ;;  %v4358_v22 = vadd.f32 %v4357_v20, %v4307_v41  ;;  %v3951_v23 = vpop.f32.mrb[26].mxu0  ;;  %v4359_v24 = vpop.f32.mrb[26].mxu1 }
 0x291   : > { %v3952_v25 = vpop.f32.mrb[27].mxu0  ;;  %v4360_v26 = vpop.f32.mrb[27].mxu1 }
 0x2ce   : > { %v3998_v29 = vpop.f32.mrb[28].mxu0  ;;  %v4406_v27 = vpop.f32.mrb[28].mxu1 }
 0x2cf   : > { %v3999_v13 = vadd.f32 %v3998_v29, %v3948_v16  ;;  %v4407_v28 = vadd.f32 %v4406_v27, %v4356_v18  ;;  %v4000_v4 = vpop.f32.mrb[29].mxu0  ;;  %v4408_v17 = vpop.f32.mrb[29].mxu1 }
 0x2d0   : > { %v4001_v5 = vadd.f32 %v4000_v4, %v3950_v21  ;;  %v4409_v8 = vadd.f32 %v4408_v17, %v4358_v22  ;;  %v4002_v30 = vpop.f32.mrb[30].mxu0  ;;  %v4410_v31 = vpop.f32.mrb[30].mxu1  ;;  %v4596_v22 = vlaneseq (!%p5446_p11) }
 0x2d1   : > { %v4003_v9 = vpop.f32.mrb[31].mxu0  ;;  %v4411_v32 = vpop.f32.mrb[31].mxu1 }
 0x2d2   : > { %vm4618_vm1 = vcmp.lt.s32.totalorder (!%p5446_p11), %v4596_v22, 512 }
 0x306   : > { %v4039_v43 = vpop.f32.mrb[0].mxu0  ;;  %v4447_v44 = vpop.f32.mrb[0].mxu1 }
 0x307   : > { %v4464_v49 = vadd.f32 %v4039_v43, %v404_v35  ;;  %v4466_v52 = vadd.f32 %v4447_v44, %v406_v36  ;;  %v4041_v50 = vpop.f32.mrb[1].mxu0  ;;  %v4449_v51 = vpop.f32.mrb[1].mxu1 }
 0x308   : > { %v4465_v33 = vadd.f32 %v4041_v50, %v405_v37  ;;  %v4467_v34 = vadd.f32 %v4449_v51, %v407_v42  ;;  %v4043_v39 = vpop.f32.mrb[2].mxu0  ;;  %v4451_v40 = vpop.f32.mrb[2].mxu1 }
 0x309   : > { %4476 = vst [vmem:[#allocation2] sm:$0xff] %v4464_v49  ;;  %4478 = vst [vmem:[#allocation2 + $0x10] sm:$0xff] %v4466_v52  ;;  %v4468_v56 = vadd.f32 %v4043_v39, %v408_v45  ;;  %v4470_v58 = vadd.f32 %v4451_v40, %v410_v46  ;;  %v4045_v59 = vpop.f32.mrb[3].mxu0  ;;  %v4453_v60 = vpop.f32.mrb[3].mxu1 }
 0x30a   : > { %4477 = vst [vmem:[#allocation2 + $0x8] sm:$0xff] %v4465_v33  ;;  %4479 = vst [vmem:[#allocation2 + $0x18] sm:$0xff] %v4467_v34  ;;  %v4469_v61 = vadd.f32 %v4045_v59, %v409_v38  ;;  %v4471_v62 = vadd.f32 %v4453_v60, %v411_v55 }
 0x30b   : > { %4480 = vst [vmem:[#allocation2 + $0x20] sm:$0xff] %v4468_v56  ;;  %4482 = vst [vmem:[#allocation2 + $0x30] sm:$0xff] %v4470_v58 }
 0x30c   : > { %4481 = vst [vmem:[#allocation2 + $0x28] sm:$0xff] %v4469_v61  ;;  %4483 = vst [vmem:[#allocation2 + $0x38] sm:$0xff] %v4471_v62 }
 0x30e   : > { %v4049_v2 = vpop.f32.mrb[32].mxu0  ;;  %v4457_v6 = vpop.f32.mrb[32].mxu1  ;;  %4491 = sbr.rel (%p5446_p11) target bundleno = 827 (0x33b), region = 59 }
 0x30f   : > { %v4050_v7 = vadd.f32 %v4049_v2, %v3999_v13  ;;  %v4458_v10 = vadd.f32 %v4457_v6, %v4407_v28  ;;  %v4051_v47 = vpop.f32.mrb[33].mxu0  ;;  %v4459_v48 = vpop.f32.mrb[33].mxu1 }
 0x310   : > { %v4052_v57 = vadd.f32 %v4051_v47, %v4001_v5  ;;  %v4460_v41 = vadd.f32 %v4459_v48, %v4409_v8  ;;  %v4053_v53 = vpop.f32.mrb[34].mxu0  ;;  %v4461_v1 = vpop.f32.mrb[34].mxu1  ;;  %v4492_v19 = vld [vmem:[#allocation2] sm:$0xff] (!%p5446_p11)  ;;  %v4494_v21 = vld [vmem:[#allocation2 + $0x10] sm:$0xff] (!%p5446_p11) }
 0x311   : > { %v4472_v12 = vadd.f32 %v4050_v7, %v412_v0  ;;  %v4474_v54 = vadd.f32 %v4458_v10, %v414_v3  ;;  %v4054_v14 = vpop.f32.mrb[35].mxu0  ;;  %v4462_v15 = vpop.f32.mrb[35].mxu1  ;;  %v4493_v20 = vld [vmem:[#allocation2 + $0x8] sm:$0xff] (!%p5446_p11)  ;;  %v4621_v24 = vmul.f32 (!%p5446_p11), %v4492_v19, %v4492_v19  ;;  %v4495_v26 = vld [vmem:[#allocation2 + $0x18] sm:$0xff] (!%p5446_p11)  ;;  %v4623_v29 = vmul.f32 (!%p5446_p11), %v4494_v21, %v4494_v21 }
 0x312   : > { %v4473_v16 = vadd.f32 %v4052_v57, %v413_v11  ;;  %v4475_v18 = vadd.f32 %v4460_v41, %v415_v63  ;;  %v5463_v23 = vpack.c.bf16 (!%p5446_p11), %v4493_v20, %v4492_v19  ;;  %v4622_v25 = vmul.f32 (!%p5446_p11), %v4493_v20, %v4493_v20  ;;  %v4496_v27 = vld [vmem:[#allocation2 + $0x20] sm:$0xff] (!%p5446_p11)  ;;  %v4498_v8 = vld [vmem:[#allocation2 + $0x30] sm:$0xff] (!%p5446_p11) }
 0x313   : > { %4484 = vst [vmem:[#allocation2 + $0x40] sm:$0x3] %v4472_v12  ;;  %4486 = vst [vmem:[#allocation2 + $0x50] sm:$0x3] %v4474_v54  ;;  %v4497_v13 = vld [vmem:[#allocation2 + $0x28] sm:$0xff] (!%p5446_p11)  ;;  %v5464_v28 = vpack.c.bf16 (!%p5446_p11), %v4495_v26, %v4494_v21  ;;  %v4624_v4 = vmul.f32 (!%p5446_p11), %v4495_v26, %v4495_v26  ;;  %v4550_v5 = vadd.f32 (!%p5446_p11), %v4496_v27, %v4492_v19  ;;  %v4499_v30 = vld [vmem:[#allocation2 + $0x38] sm:$0xff] (!%p5446_p11) }
 0x314   : > { %4485 = vst [vmem:[#allocation2 + $0x48] sm:$0x3] %v4473_v16  ;;  %4487 = vst [vmem:[#allocation2 + $0x58] sm:$0x3] %v4475_v18  ;;  %v5465_v17 = vpack.c.bf16 (!%p5446_p11), %v4497_v13, %v4496_v27  ;;  %v4560_v31 = vadd.f32 (!%p5446_p11), %v4497_v13, %v4493_v20  ;;  %v4625_v9 = vmul.f32 (!%p5446_p11), %v4496_v27, %v4496_v27 }
 0x315   : > { %4544 = vst [vmem:[%s7219_s2] sm:$0xff] %v5463_v23  ;;  %v4626_v32 = vmul.f32 %v4497_v13, %v4497_v13  ;;  %v5466_v35 = vpack.c.bf16 %v4499_v30, %v4498_v8  ;;  %4545 = vst [vmem:[%s7219_s2 + $0x8] sm:$0xff] %v5464_v28  ;;  %v4569_v36 = vadd.f32 %v4498_v8, %v4494_v21 }
 0x316   : > { %4546 = vst [vmem:[%s7219_s2 + $0x10] sm:$0xff] %v5465_v17  ;;  %v4578_v37 = vadd.f32 %v4499_v30, %v4495_v26  ;;  %v4627_v42 = vmul.f32 %v4498_v8, %v4498_v8  ;;  %v4628_v43 = vmul.f32 %v4499_v30, %v4499_v30  ;;  %v4633_v46 = vadd.f32 %v4625_v9, %v4621_v24 }
 0x317   : > { %v4642_v49 = vadd.f32 %v4626_v32, %v4622_v25  ;;  %4547 = vst [vmem:[%s7219_s2 + $0x18] sm:$0xff] %v5466_v35  ;;  %v6394_v35 = vmov 1966171168  }
 0x318   : > { %v4651_v38 = vadd.f32 %v4627_v42, %v4623_v29  ;;  %v4660_v55 = vadd.f32 %v4628_v43, %v4624_v4 }
 0x31a   : > { %v4500_v44 = vld [vmem:[#allocation2 + $0x40] sm:$0x3]  ;;  %v4502_v51 = vld [vmem:[#allocation2 + $0x50] sm:$0x3] }
 0x31b   : > { %v4501_v45 = vld [vmem:[#allocation2 + $0x48] sm:$0x3]  ;;  %v4552_v50 = vsel %vm4551_vm0, %v4500_v44, 0.0  ;;  %v4503_v39 = vld [vmem:[#allocation2 + $0x58] sm:$0x3]  ;;  %v4629_v56 = vmul.f32 %v4500_v44, %v4500_v44  ;;  %v4570_v61 = vsel %vm4551_vm0, %v4502_v51, 0.0  ;;  %v4631_v0 = vmul.f32 %v4502_v51, %v4502_v51 }
 0x31c   : > { %v5467_v52 = vpack.c.bf16 %v4501_v45, %v4500_v44  ;;  %v4553_v33 = vadd.f32 %v4552_v50, %v4550_v5  ;;  %v4561_v34 = vsel %vm4551_vm0, %v4501_v45, 0.0  ;;  %v4630_v58 = vmul.f32 %v4501_v45, %v4501_v45 }
 0x31d   : > { %v4562_v40 = vadd.f32 %v4561_v34, %v4560_v31  ;;  %v5468_v59 = vpack.c.bf16 %v4503_v39, %v4502_v51  ;;  %v4579_v62 = vsel %vm4551_vm0, %v4503_v39, 0.0  ;;  %v4634_v3 = vsel %vm4551_vm0, %v4629_v56, 0.0 }
 0x31e   : > { %4548 = vst [vmem:[%s7219_s2 + $0x20] sm:$0x11] %v5467_v52  ;;  %v4554_v60 = vrot.slane %v4553_v33, 4  ;;  %v4643_v6 = vsel %vm4551_vm0, %v4630_v58, 0.0  ;;  %v4571_v7 = vadd.f32 %v4570_v61, %v4569_v36  ;;  %v4635_v11 = vadd.f32 %v4634_v3, %v4633_v46 }
 0x31f   : > { %v4563_v2 = vrot.slane %v4562_v40, 4  ;;  %4549 = vst [vmem:[%s7219_s2 + $0x28] sm:$0x11] %v5468_v59  ;;  %v4644_v47 = vadd.f32 %v4643_v6, %v4642_v49  ;;  %v4580_v63 = vadd.f32 %v4579_v62, %v4578_v37  ;;  %v4632_v41 = vmul.f32 %v4503_v39, %v4503_v39 }
 0x320   : > { %v4555_v10 = vadd.f32 %v4554_v60, %v4553_v33  ;;  %v4572_v57 = vrot.slane %v4571_v7, 4  ;;  %v4652_v53 = vsel %vm4551_vm0, %v4631_v0, 0.0  ;;  %v4636_v12 = vrot.slane %v4635_v11, 4 }
 0x321   : > { %v4564_v48 = vadd.f32 %v4563_v2, %v4562_v40  ;;  %v4645_v54 = vrot.slane %v4644_v47, 4  ;;  %v4581_v14 = vrot.slane %v4580_v63, 4  ;;  %v4653_v18 = vadd.f32 %v4652_v53, %v4651_v38 }
 0x322   : > { %v4556_v1 = vrot.slane %v4555_v10, 2  ;;  %v4573_v16 = vadd.f32 %v4572_v57, %v4571_v7  ;;  %v4661_v19 = vsel %vm4551_vm0, %v4632_v41, 0.0  ;;  %v4637_v21 = vadd.f32 %v4636_v12, %v4635_v11 }
 0x323   : > { %v4565_v15 = vrot.slane %v4564_v48, 2  ;;  %v4646_v23 = vadd.f32 %v4645_v54, %v4644_v47  ;;  %v4582_v24 = vadd.f32 %v4581_v14, %v4580_v63  ;;  %v4654_v29 = vrot.slane %v4653_v18, 4 }
 0x324   : > { %v4557_v20 = vadd.f32 %v4556_v1, %v4555_v10  ;;  %v4574_v26 = vrot.slane %v4573_v16, 2  ;;  %v4662_v27 = vadd.f32 %v4661_v19, %v4660_v55  ;;  %v4638_v13 = vrot.slane %v4637_v21, 2 }
 0x325   : > { %v4566_v25 = vadd.f32 %v4565_v15, %v4564_v48  ;;  %v4647_v28 = vrot.slane %v4646_v23, 2  ;;  %v4583_v4 = vrot.slane %v4582_v24, 2  ;;  %v4655_v8 = vadd.f32 %v4654_v29, %v4653_v18 }
 0x326   : > { %v4558_v17 = vrot.slane %v4557_v20, 1  ;;  %v4575_v5 = vadd.f32 %v4574_v26, %v4573_v16  ;;  %v4663_v30 = vrot.slane %v4662_v27, 4  ;;  %v4594_v36 = vunpack.c.l.s4 %v6394_v35 }
 0x327   : > { %v4567_v31 = vrot.slane %v4566_v25, 1  ;;  %v4584_v9 = vadd.f32 %v4583_v4, %v4582_v24  ;;  %v4597_v37 = vshrl.u32 %v4596_v22, 7  ;;  %v4656_v42 = vrot.slane %v4655_v8, 2 }
 0x328   : > { %v4559_v32 = vadd.f32 %v4558_v17, %v4557_v20  ;;  %v4664_v43 = vadd.f32 %v4663_v30, %v4662_v27  ;;  %v4576_v45 = vrot.slane %v4575_v5, 1  ;;  %v4595_v49 = vunpack.c.0.s8 %v4594_v36 }
 0x329   : > { %v4568_v44 = vadd.f32 %v4567_v31, %v4566_v25  ;;  %v4585_v46 = vrot.slane %v4584_v9, 1  ;;  %v4639_v52 = vadd.f32 %v4638_v13, %v4637_v21  ;;  %v4648_v55 = vadd.f32 %v4647_v28, %v4646_v23 }
 0x32a   : > { %v4665_v50 = vrot.slane %v4664_v43, 2  ;;  %v4577_v51 = vadd.f32 %v4576_v45, %v4575_v5  ;;  %v4598_v34 = vsub.s32 %v4595_v49, %v4597_v37  ;;  %v4657_v40 = vadd.f32 %v4656_v42, %v4655_v8 }
 0x32b   : > { %v4591_v38 = vcombine.low %v4559_v32, %v4568_v44  ;;  %v4586_v33 = vadd.f32 %v4585_v46, %v4584_v9  ;;  %v4640_v39 = vrot.slane %v4639_v52, 1  ;;  %v4649_v56 = vrot.slane %v4648_v55, 1 }
 0x32c   : > { %v4666_v58 = vadd.f32 %v4665_v50, %v4664_v43  ;;  %v4658_v62 = vrot.slane %v4657_v40, 1 }
 0x32d   : > { %v4592_v59 = vcombine.low %v4577_v51, %v4586_v33  ;;  %v4599_v60 = vrot.slane %v4591_v38, %v4598_v34  ;;  %v4641_v61 = vadd.f32 %v4640_v39, %v4639_v52  ;;  %v4650_v0 = vadd.f32 %v4649_v56, %v4648_v55 }
 0x32e   : > { %v4667_v2 = vrot.slane %v4666_v58, 1  ;;  %v4659_v6 = vadd.f32 %v4658_v62, %v4657_v40 }
 0x32f   : > { %v4606_v3 = vrot.slane %v4592_v59, %v4598_v34  ;;  %v4673_v10 = vcombine.low %v4641_v61, %v4650_v0 }
 0x330   : > { %v4668_v7 = vadd.f32 %v4667_v2, %v4666_v58 }
 0x331   : > { %v4607_v11 = vcombine.low %v4599_v60, %v4606_v3  ;;  %v4681_v63 = vrot.slane %v4673_v10, %v4598_v34 }
 0x332   : > { %v4674_v47 = vcombine.low %v4659_v6, %v4668_v7 }
 0x333   : > { %v4614_v48 = vrot.slane %v4607_v11, %v4598_v34 }
 0x334   : > { %v4688_v57 = vrot.slane %v4674_v47, %v4598_v34 }
 0x335   : > { %4620 = vst.msk [vmem:[%s7220_s3] sm:$0xf] %vm4618_vm1, %v4614_v48 }
 0x336   : > { %v4689_v41 = vcombine.low %v4681_v63, %v4688_v57 }
 0x338   : > { %v4696_v53 = vrot.slane %v4689_v41, %v4598_v34 }
 0x33a   : > { %4698 = vst.msk [vmem:[%s7221_s4] sm:$0xf] %vm4618_vm1, %v4696_v53 }
 0x33b PF: > { %s15_s19 = sadd.s32 1, %s6391_s19   ;;  %s7222_s15 = smov %s6379_s16 }
 0x33c   : > { %p12_p12 = scmp.ge.s32.totalorder %s15_s19, 4   ;;  %s7223_s16 = smov %s6455_s23 }
 0x33d   : > { %s7224_s17 = smov %s6387_s18  ;;  %s7225_s18 = smov %s7227_s20 }
 0x33e   :  { %14 = sbr.rel (!%p12_p12) target bundleno = 3 (0x3), region = 121 }

// kernel: discriminator_up_forward.17
= control target key start
LH: loop header
LB: loop body
LE: loop exit
PB: predicated region body
PF: predicated region fallthrough
CT: control target
= control target key end

     0   :  { %s2357_s12 = smov 0   ;;  %s2359_s13 = smov 0   ;;  %s2542_s0 = inlined_call_operand.vmem [shape: bf16[8,8192], index: 0, kind: input, shape index: {}]   ;;  %s2543_s1 = inlined_call_operand.vmem [shape: bf16[8192,128], index: 1, kind: input, shape index: {}]   ;;  %s2544_s2 = inlined_call_operand.vmem [shape: f32[1,128], index: 2, kind: input, shape index: {}]   ;;  %s2545_s3 = inlined_call_operand.vmem [shape: f32[8,128], index: 3, kind: output, shape index: {}]  }
   0x1   :  { %s2361_s14 = smov 0  }
   0x2 LB: > { %s25_s15 = sadd.s32 1, %s2330_s13  ;;  %p1808_p0 = scmp.ge.s32.totalorder %s2334_s14, 1  ;;  %s2334_s14 = sphi %s2361_s14, %s13_s14   ;;  %s2330_s13 = sphi %s2359_s13, %s2547_s13   ;;  %s2326_s12 = sphi %s2357_s12, %s2546_s12  }
   0x3   : > { %p26_p1 = scmp.ge.s32.totalorder %s25_s15, 4  ;;  %p189_p2 = scmp.lt.s32.totalorder %s2334_s14, 5 }
   0x5   : > { %s2549_s15 = smov (%p26_p1, %s25_s15), 0  ;;  %p190_p3 = pnand %p1808_p0, %p189_p2 }
   0x6   : > { %s1809_s16 = sshll.u32 (!%p190_p3), %s2326_s12, 4  ;;  %s1811_s17 = sshll.u32 (!%p190_p3), %s2326_s12, 8 }
   0x7   : > { %193 = sbr.rel (%p190_p3) target bundleno = 418 (0x1a2), region = 32  ;;  %p233_p4 = scmp.lt.s32.totalorder (!%p190_p3), %s1809_s16, 63 }
   0x8   : > { %p241_p5 = scmp.lt.s32.totalorder (!%p190_p3), %s1811_s17, 1023  ;;  %p1813_p6 = scmp.ne.s32.totalorder (!%p190_p3), %s2326_s12, 0 }
   0xe   : > { %s2551_s16 = smov (!%p233_p4, %s1809_s16), 63  ;;  %s2553_s17 = smov (!%p241_p5, %s1811_s17), 1023 }
   0xf   : > { %s1810_s18 = sshll.u32 %s2551_s16, 2  ;;  %s1812_s22 = sshll.u32 %s2553_s17, 2  ;;  %v2336_v0 = vmov (!%p1813_p6), 0.0  }
  0x10   : > { %s2382_s21 = scalar_lea.vmem %s2542_s0, %s1810_s18  ;;  %s2387_s25 = scalar_lea.vmem %s2543_s1, %s1812_s22  ;;  %264 = vst [vmem:[#allocation2] sm:$0xff] (!%p1813_p6), %v2336_v0 }
  0x11   : > { %263 = sbr.rel (%p1813_p6) target bundleno = 24 (0x18), region = 36 }
  0x18 PF: > { %v2164_v1 = vld [vmem:[%s2387_s25 + $0x40] sm:$0xff]   ;;  %v2168_v5 = vld [vmem:[%s2387_s25 + $0x48] sm:$0xff]   ;;  %v2172_v9 = vld [vmem:[%s2387_s25 + $0x50] sm:$0xff]   ;;  %p1958_p7 = scmp.ne.s32.totalorder %s2326_s12, 3 }
  0x19   : > { %v2165_v2 = vld [vmem:[%s2387_s25 + $0xc0] sm:$0xff]   ;;  %1963 = vmatprep.subr.bf16.mxu0 %v2164_v1  ;;  %v2169_v6 = vld [vmem:[%s2387_s25 + $0xc8] sm:$0xff]   ;;  %v2173_v10 = vld [vmem:[%s2387_s25 + $0xd0] sm:$0xff]  }
  0x1a   : > { %v2166_v3 = vld [vmem:[%s2387_s25] sm:$0xff]   ;;  %1985 = vmatprep.subr.bf16.mxu1 %v2165_v2  ;;  %v2170_v7 = vld [vmem:[%s2387_s25 + $0x8] sm:$0xff]   ;;  %v2174_v11 = vld [vmem:[%s2387_s25 + $0x10] sm:$0xff]  }
  0x1b   : > { %v2167_v4 = vld [vmem:[%s2387_s25 + $0x80] sm:$0xff]   ;;  %1964 = vmatpush3.bf16.msra.mxu0 %v2166_v3  ;;  %v2171_v8 = vld [vmem:[%s2387_s25 + $0x88] sm:$0xff]   ;;  %v2175_v12 = vld [vmem:[%s2387_s25 + $0x90] sm:$0xff]  }
  0x1c   : > { %1986 = vmatpush3.bf16.msra.mxu1 %v2167_v4  ;;  %1965 = vmatprep.subr.bf16.mxu0 %v2168_v5  ;;  %v2176_v13 = vld [vmem:[%s2387_s25 + $0x58] sm:$0xff]   ;;  %v2180_v17 = vld [vmem:[%s2387_s25 + $0x60] sm:$0xff]   ;;  %v2184_v21 = vld [vmem:[%s2387_s25 + $0x68] sm:$0xff]  }
  0x1d   : > { %1987 = vmatprep.subr.bf16.mxu1 %v2169_v6  ;;  %v2177_v14 = vld [vmem:[%s2387_s25 + $0xd8] sm:$0xff]   ;;  %v2181_v18 = vld [vmem:[%s2387_s25 + $0xe0] sm:$0xff]   ;;  %v2185_v22 = vld [vmem:[%s2387_s25 + $0xe8] sm:$0xff]  }
  0x1e   : > { %v2178_v15 = vld [vmem:[%s2387_s25 + $0x18] sm:$0xff]   ;;  %v2182_v19 = vld [vmem:[%s2387_s25 + $0x20] sm:$0xff]   ;;  %v2186_v23 = vld [vmem:[%s2387_s25 + $0x28] sm:$0xff]  }
  0x1f   : > { %1966 = vmatpush3.bf16.msra.mxu0 %v2170_v7  ;;  %v2179_v16 = vld [vmem:[%s2387_s25 + $0x98] sm:$0xff]   ;;  %v2183_v20 = vld [vmem:[%s2387_s25 + $0xa0] sm:$0xff]   ;;  %v2187_v24 = vld [vmem:[%s2387_s25 + $0xa8] sm:$0xff]  }
  0x20   : > { %1988 = vmatpush3.bf16.msra.mxu1 %v2171_v8  ;;  %1967 = vmatprep.subr.bf16.mxu0 %v2172_v9  ;;  %v2188_v25 = vld [vmem:[%s2387_s25 + $0x70] sm:$0xff]   ;;  %v2192_v29 = vld [vmem:[%s2387_s25 + $0x78] sm:$0xff]   ;;  %v266_v33 = vld [vmem:[%s2382_s21] sm:$0xff] }
  0x21   : > { %1989 = vmatprep.subr.bf16.mxu1 %v2173_v10  ;;  %v2189_v26 = vld [vmem:[%s2387_s25 + $0xf0] sm:$0xff]   ;;  %v2193_v30 = vld [vmem:[%s2387_s25 + $0xf8] sm:$0xff]   ;;  %v267_v34 = vld [vmem:[%s2382_s21 + $0x8] sm:$0xff]  ;;  %v1814_v35 = vcombine.low %v266_v33, %v266_v33  ;;  %v1815_v36 = vcombine.high %v266_v33, %v266_v33 }
  0x22   : > { %v2190_v27 = vld [vmem:[%s2387_s25 + $0x30] sm:$0xff]   ;;  %v2194_v31 = vld [vmem:[%s2387_s25 + $0x38] sm:$0xff]   ;;  %v1816_v37 = vcombine.low %v267_v34, %v267_v34  ;;  %v1817_v38 = vcombine.high %v267_v34, %v267_v34  ;;  %v2200_v39 = vld [vmem:[%s2387_s25 + $0x140] sm:$0xff]  }
  0x23   : > { %1968 = vmatpush3.bf16.msra.mxu0 %v2174_v11  ;;  %v2191_v28 = vld [vmem:[%s2387_s25 + $0xb0] sm:$0xff]   ;;  %v2195_v32 = vld [vmem:[%s2387_s25 + $0xb8] sm:$0xff]   ;;  %v2201_v40 = vld [vmem:[%s2387_s25 + $0x1c0] sm:$0xff]   ;;  %1386 = vmatprep.mubr.bf16.mxu0 %v1815_v36 }
  0x24   : > { %1990 = vmatpush3.bf16.msra.mxu1 %v2175_v12  ;;  %1969 = vmatprep.subr.bf16.mxu0 %v2176_v13  ;;  %v2202_v41 = vld [vmem:[%s2387_s25 + $0x100] sm:$0xff]   ;;  %v2204_v43 = vld [vmem:[%s2387_s25 + $0x148] sm:$0xff]   ;;  %v2208_v47 = vld [vmem:[%s2387_s25 + $0x150] sm:$0xff]  }
  0x25   : > { %1991 = vmatprep.subr.bf16.mxu1 %v2177_v14  ;;  %1426 = vmatprep.mubr.bf16.mxu1 %v1817_v38  ;;  %v2203_v42 = vld [vmem:[%s2387_s25 + $0x180] sm:$0xff]   ;;  %v2205_v44 = vld [vmem:[%s2387_s25 + $0x1c8] sm:$0xff]   ;;  %v2209_v48 = vld [vmem:[%s2387_s25 + $0x1d0] sm:$0xff]  }
  0x26   : > { %v2206_v45 = vld [vmem:[%s2387_s25 + $0x108] sm:$0xff]   ;;  %v2210_v49 = vld [vmem:[%s2387_s25 + $0x110] sm:$0xff]   ;;  %v2212_v51 = vld [vmem:[%s2387_s25 + $0x158] sm:$0xff]  }
  0x27   : > { %1970 = vmatpush3.bf16.msra.mxu0 %v2178_v15  ;;  %v2207_v46 = vld [vmem:[%s2387_s25 + $0x188] sm:$0xff]   ;;  %v2211_v50 = vld [vmem:[%s2387_s25 + $0x190] sm:$0xff]   ;;  %v2213_v52 = vld [vmem:[%s2387_s25 + $0x1d8] sm:$0xff]  }
  0x28   : > { %1992 = vmatpush3.bf16.msra.mxu1 %v2179_v16  ;;  %1971 = vmatprep.subr.bf16.mxu0 %v2180_v17  ;;  %v2214_v53 = vld [vmem:[%s2387_s25 + $0x118] sm:$0xff]   ;;  %v2216_v55 = vld [vmem:[%s2387_s25 + $0x160] sm:$0xff]   ;;  %v2220_v59 = vld [vmem:[%s2387_s25 + $0x168] sm:$0xff]  }
  0x29   : > { %1993 = vmatprep.subr.bf16.mxu1 %v2181_v18  ;;  %v2215_v54 = vld [vmem:[%s2387_s25 + $0x198] sm:$0xff]   ;;  %v2217_v56 = vld [vmem:[%s2387_s25 + $0x1e0] sm:$0xff]   ;;  %v2221_v60 = vld [vmem:[%s2387_s25 + $0x1e8] sm:$0xff]  }
  0x2a   : > { %v2218_v57 = vld [vmem:[%s2387_s25 + $0x120] sm:$0xff]   ;;  %v2222_v61 = vld [vmem:[%s2387_s25 + $0x128] sm:$0xff]   ;;  %v2224_v63 = vld [vmem:[%s2387_s25 + $0x170] sm:$0xff]  }
  0x2b   : > { %1972 = vmatpush3.bf16.msra.mxu0 %v2182_v19  ;;  %v2219_v58 = vld [vmem:[%s2387_s25 + $0x1a0] sm:$0xff]   ;;  %v2223_v62 = vld [vmem:[%s2387_s25 + $0x1a8] sm:$0xff]   ;;  %v2225_v0 = vld [vmem:[%s2387_s25 + $0x1f0] sm:$0xff]  }
  0x2c   : > { %1994 = vmatpush3.bf16.msra.mxu1 %v2183_v20  ;;  %1973 = vmatprep.subr.bf16.mxu0 %v2184_v21  ;;  %v2226_v1 = vld [vmem:[%s2387_s25 + $0x130] sm:$0xff]   ;;  %v2228_v3 = vld [vmem:[%s2387_s25 + $0x178] sm:$0xff]   ;;  %v2236_v13 = vld [vmem:[%s2387_s25 + $0x240] sm:$0xff]  }
  0x2d   : > { %1995 = vmatprep.subr.bf16.mxu1 %v2185_v22  ;;  %v2227_v2 = vld [vmem:[%s2387_s25 + $0x1b0] sm:$0xff]   ;;  %v2229_v4 = vld [vmem:[%s2387_s25 + $0x1f8] sm:$0xff]   ;;  %v2237_v14 = vld [vmem:[%s2387_s25 + $0x2c0] sm:$0xff]  }
  0x2e   : > { %v2230_v5 = vld [vmem:[%s2387_s25 + $0x138] sm:$0xff]   ;;  %v268_v7 = vld [vmem:[%s2382_s21 + $0x10] sm:$0xff]  ;;  %v2238_v15 = vld [vmem:[%s2387_s25 + $0x200] sm:$0xff]  }
  0x2f   : > { %1974 = vmatpush3.bf16.msra.mxu0 %v2186_v23  ;;  %v2231_v6 = vld [vmem:[%s2387_s25 + $0x1b8] sm:$0xff]   ;;  %v1818_v8 = vcombine.low %v268_v7, %v268_v7  ;;  %v1819_v9 = vcombine.high %v268_v7, %v268_v7  ;;  %v2239_v16 = vld [vmem:[%s2387_s25 + $0x280] sm:$0xff]   ;;  %v2240_v17 = vld [vmem:[%s2387_s25 + $0x248] sm:$0xff]  }
  0x30   : > { %1996 = vmatpush3.bf16.msra.mxu1 %v2187_v24  ;;  %1975 = vmatprep.subr.bf16.mxu0 %v2188_v25  ;;  %v269_v10 = vld [vmem:[%s2382_s21 + $0x18] sm:$0xff]  ;;  %v2241_v18 = vld [vmem:[%s2387_s25 + $0x2c8] sm:$0xff]   ;;  %v2244_v21 = vld [vmem:[%s2387_s25 + $0x250] sm:$0xff]  }
  0x31   : > { %1997 = vmatprep.subr.bf16.mxu1 %v2189_v26  ;;  %v1820_v11 = vcombine.low %v269_v10, %v269_v10  ;;  %v1821_v12 = vcombine.high %v269_v10, %v269_v10  ;;  %v2242_v19 = vld [vmem:[%s2387_s25 + $0x208] sm:$0xff]   ;;  %v2245_v22 = vld [vmem:[%s2387_s25 + $0x2d0] sm:$0xff]   ;;  %v2248_v25 = vld [vmem:[%s2387_s25 + $0x258] sm:$0xff]  }
  0x32   : > { %v2243_v20 = vld [vmem:[%s2387_s25 + $0x288] sm:$0xff]   ;;  %v2246_v23 = vld [vmem:[%s2387_s25 + $0x210] sm:$0xff]   ;;  %v2249_v26 = vld [vmem:[%s2387_s25 + $0x2d8] sm:$0xff]  }
  0x33   : > { %1976 = vmatpush3.bf16.msra.mxu0 %v2190_v27  ;;  %v2247_v24 = vld [vmem:[%s2387_s25 + $0x290] sm:$0xff]   ;;  %v2250_v27 = vld [vmem:[%s2387_s25 + $0x218] sm:$0xff]   ;;  %v2256_v33 = vld [vmem:[%s2387_s25 + $0x268] sm:$0xff]  }
  0x34   : > { %1998 = vmatpush3.bf16.msra.mxu1 %v2191_v28  ;;  %1977 = vmatprep.subr.bf16.mxu0 %v2192_v29  ;;  %v2251_v28 = vld [vmem:[%s2387_s25 + $0x298] sm:$0xff]   ;;  %v2252_v29 = vld [vmem:[%s2387_s25 + $0x260] sm:$0xff]   ;;  %v2257_v34 = vld [vmem:[%s2387_s25 + $0x2e8] sm:$0xff]  }
  0x35   : > { %1999 = vmatprep.subr.bf16.mxu1 %v2193_v30  ;;  %v2253_v30 = vld [vmem:[%s2387_s25 + $0x2e0] sm:$0xff]   ;;  %v2259_v36 = vld [vmem:[%s2387_s25 + $0x2a8] sm:$0xff]   ;;  %v2261_v38 = vld [vmem:[%s2387_s25 + $0x2f0] sm:$0xff]  }
  0x36   : > { %v2292_v7 = vld [vmem:[%s2387_s25 + $0x368] sm:$0xff]  }
  0x37   : > { %1978 = vmatpush3.bf16.msra.mxu0 %v2194_v31  ;;  %v2254_v31 = vld [vmem:[%s2387_s25 + $0x220] sm:$0xff]   ;;  %v2295_v10 = vld [vmem:[%s2387_s25 + $0x3a8] sm:$0xff]  }
  0x38   : > { %2000 = vmatpush3.bf16.msra.mxu1 %v2195_v32  ;;  %2007 = vmatprep.subr.bf16.mxu0 %v2200_v39  ;;  %v2255_v32 = vld [vmem:[%s2387_s25 + $0x2a0] sm:$0xff]   ;;  %v2262_v39 = vld [vmem:[%s2387_s25 + $0x230] sm:$0xff]  }
  0x39   : > { %2029 = vmatprep.subr.bf16.mxu1 %v2201_v40  ;;  %v2263_v40 = vld [vmem:[%s2387_s25 + $0x2b0] sm:$0xff]  }
  0x3a   : > { %1387 = vmatmul.mubr.bf16.vlgmr.msra.gmra.mrb[0].mxu0 %v1814_v35  ;;  %v2258_v35 = vld [vmem:[%s2387_s25 + $0x228] sm:$0xff]  }
  0x3b   : > { %1427 = vmatmul.mubr.bf16.vlgmr.msra.gmra.mrb[0].mxu1 %v1816_v37  ;;  %2008 = vmatpush3.bf16.msra.mxu0 %v2202_v41  ;;  %v2260_v37 = vld [vmem:[%s2387_s25 + $0x270] sm:$0xff]   ;;  %v2264_v41 = vld [vmem:[%s2387_s25 + $0x278] sm:$0xff]  }
  0x3c   : > { %2030 = vmatpush3.bf16.msra.mxu1 %v2203_v42  ;;  %2009 = vmatprep.subr.bf16.mxu0 %v2204_v43  ;;  %v2265_v42 = vld [vmem:[%s2387_s25 + $0x2f8] sm:$0xff]  }
  0x3d   : > { %2031 = vmatprep.subr.bf16.mxu1 %v2205_v44  ;;  %1466 = vmatprep.mubr.bf16.mxu0 %v1819_v9  ;;  %v2266_v43 = vld [vmem:[%s2387_s25 + $0x238] sm:$0xff]   ;;  %v2294_v9 = vld [vmem:[%s2387_s25 + $0x328] sm:$0xff]  }
  0x3e   : > { %1506 = vmatprep.mubr.bf16.mxu1 %v1821_v12  ;;  %v2267_v44 = vld [vmem:[%s2387_s25 + $0x2b8] sm:$0xff]   ;;  %v2297_v12 = vld [vmem:[%s2387_s25 + $0x3f0] sm:$0xff]  }
  0x3f   : > { %2010 = vmatpush3.bf16.msra.mxu0 %v2206_v45  ;;  %v270_v45 = vld [vmem:[%s2382_s21 + $0x20] sm:$0xff] }
  0x40   : > { %2032 = vmatpush3.bf16.msra.mxu1 %v2207_v46  ;;  %2011 = vmatprep.subr.bf16.mxu0 %v2208_v47  ;;  %v271_v46 = vld [vmem:[%s2382_s21 + $0x28] sm:$0xff]  ;;  %v1822_v47 = vcombine.low %v270_v45, %v270_v45 }
  0x41   : > { %2033 = vmatprep.subr.bf16.mxu1 %v2209_v48  ;;  %v1823_v48 = vcombine.high %v270_v45, %v270_v45 }
  0x43   : > { %2012 = vmatpush3.bf16.msra.mxu0 %v2210_v49  ;;  %v1824_v49 = vcombine.low %v271_v46, %v271_v46 }
  0x44   : > { %2034 = vmatpush3.bf16.msra.mxu1 %v2211_v50  ;;  %2013 = vmatprep.subr.bf16.mxu0 %v2212_v51  ;;  %v1825_v50 = vcombine.high %v271_v46, %v271_v46  ;;  %v2272_v51 = vld [vmem:[%s2387_s25 + $0x340] sm:$0xff]  }
  0x45   : > { %2035 = vmatprep.subr.bf16.mxu1 %v2213_v52  ;;  %v2273_v52 = vld [vmem:[%s2387_s25 + $0x3c0] sm:$0xff]  }
  0x47   : > { %2014 = vmatpush3.bf16.msra.mxu0 %v2214_v53  ;;  %v2274_v53 = vld [vmem:[%s2387_s25 + $0x300] sm:$0xff]  }
  0x48   : > { %2036 = vmatpush3.bf16.msra.mxu1 %v2215_v54  ;;  %2015 = vmatprep.subr.bf16.mxu0 %v2216_v55  ;;  %v2275_v54 = vld [vmem:[%s2387_s25 + $0x380] sm:$0xff]   ;;  %v2276_v55 = vld [vmem:[%s2387_s25 + $0x348] sm:$0xff]  }
  0x49   : > { %2037 = vmatprep.subr.bf16.mxu1 %v2217_v56  ;;  %v2277_v56 = vld [vmem:[%s2387_s25 + $0x3c8] sm:$0xff]  }
  0x4b   : > { %2016 = vmatpush3.bf16.msra.mxu0 %v2218_v57  ;;  %v2278_v57 = vld [vmem:[%s2387_s25 + $0x308] sm:$0xff]  }
  0x4c   : > { %2038 = vmatpush3.bf16.msra.mxu1 %v2219_v58  ;;  %2017 = vmatprep.subr.bf16.mxu0 %v2220_v59  ;;  %v2279_v58 = vld [vmem:[%s2387_s25 + $0x388] sm:$0xff]   ;;  %v2280_v59 = vld [vmem:[%s2387_s25 + $0x350] sm:$0xff]  }
  0x4d   : > { %2039 = vmatprep.subr.bf16.mxu1 %v2221_v60  ;;  %v2281_v60 = vld [vmem:[%s2387_s25 + $0x3d0] sm:$0xff]  }
  0x4f   : > { %2018 = vmatpush3.bf16.msra.mxu0 %v2222_v61  ;;  %v2282_v61 = vld [vmem:[%s2387_s25 + $0x310] sm:$0xff]  }
  0x50   : > { %2040 = vmatpush3.bf16.msra.mxu1 %v2223_v62  ;;  %2019 = vmatprep.subr.bf16.mxu0 %v2224_v63  ;;  %v2283_v62 = vld [vmem:[%s2387_s25 + $0x390] sm:$0xff]   ;;  %v2284_v63 = vld [vmem:[%s2387_s25 + $0x358] sm:$0xff]  }
  0x51   : > { %2041 = vmatprep.subr.bf16.mxu1 %v2225_v0  ;;  %v2285_v0 = vld [vmem:[%s2387_s25 + $0x3d8] sm:$0xff]  }
  0x53   : > { %2020 = vmatpush3.bf16.msra.mxu0 %v2226_v1  ;;  %v2286_v1 = vld [vmem:[%s2387_s25 + $0x318] sm:$0xff]  }
  0x54   : > { %2042 = vmatpush3.bf16.msra.mxu1 %v2227_v2  ;;  %2021 = vmatprep.subr.bf16.mxu0 %v2228_v3  ;;  %v2287_v2 = vld [vmem:[%s2387_s25 + $0x398] sm:$0xff]   ;;  %v2288_v3 = vld [vmem:[%s2387_s25 + $0x360] sm:$0xff]  }
  0x55   : > { %2043 = vmatprep.subr.bf16.mxu1 %v2229_v4  ;;  %v2289_v4 = vld [vmem:[%s2387_s25 + $0x3e0] sm:$0xff]  }
  0x57   : > { %2022 = vmatpush3.bf16.msra.mxu0 %v2230_v5  ;;  %v2290_v5 = vld [vmem:[%s2387_s25 + $0x320] sm:$0xff]  }
  0x58   : > { %2044 = vmatpush3.bf16.msra.mxu1 %v2231_v6  ;;  %2051 = vmatprep.subr.bf16.mxu0 %v2236_v13  ;;  %v2291_v6 = vld [vmem:[%s2387_s25 + $0x3a0] sm:$0xff]   ;;  %v2298_v13 = vld [vmem:[%s2387_s25 + $0x330] sm:$0xff]  }
  0x59   : > { %2073 = vmatprep.subr.bf16.mxu1 %v2237_v14  ;;  %v2299_v14 = vld [vmem:[%s2387_s25 + $0x3b0] sm:$0xff]  }
  0x5a   : > { %1467 = vmatmul.mubr.bf16.vlgmr.msra.gmra.mrb[4].mxu0 %v1818_v8  ;;  %v2293_v8 = vld [vmem:[%s2387_s25 + $0x3e8] sm:$0xff]  }
  0x5b   : > { %1507 = vmatmul.mubr.bf16.vlgmr.msra.gmra.mrb[4].mxu1 %v1820_v11  ;;  %2052 = vmatpush3.bf16.msra.mxu0 %v2238_v15  ;;  %v2296_v11 = vld [vmem:[%s2387_s25 + $0x370] sm:$0xff]   ;;  %v2300_v15 = vld [vmem:[%s2387_s25 + $0x378] sm:$0xff]  }
  0x5c   : > { %2074 = vmatpush3.bf16.msra.mxu1 %v2239_v16  ;;  %2053 = vmatprep.subr.bf16.mxu0 %v2240_v17  ;;  %v2301_v16 = vld [vmem:[%s2387_s25 + $0x3f8] sm:$0xff]  }
  0x5d   : > { %2075 = vmatprep.subr.bf16.mxu1 %v2241_v18  ;;  %1546 = vmatprep.mubr.bf16.mxu0 %v1823_v48  ;;  %v2302_v17 = vld [vmem:[%s2387_s25 + $0x338] sm:$0xff]  }
  0x5e   : > { %1586 = vmatprep.mubr.bf16.mxu1 %v1825_v50  ;;  %v2303_v18 = vld [vmem:[%s2387_s25 + $0x3b8] sm:$0xff]  }
  0x5f   : > { %2054 = vmatpush3.bf16.msra.mxu0 %v2242_v19  ;;  %v272_v19 = vld [vmem:[%s2382_s21 + $0x30] sm:$0xff] }
  0x60   : > { %2076 = vmatpush3.bf16.msra.mxu1 %v2243_v20  ;;  %2055 = vmatprep.subr.bf16.mxu0 %v2244_v21  ;;  %v273_v20 = vld [vmem:[%s2382_s21 + $0x38] sm:$0xff]  ;;  %v1826_v21 = vcombine.low %v272_v19, %v272_v19 }
  0x61   : > { %2077 = vmatprep.subr.bf16.mxu1 %v2245_v22  ;;  %v1827_v22 = vcombine.high %v272_v19, %v272_v19 }
  0x63   : > { %2056 = vmatpush3.bf16.msra.mxu0 %v2246_v23  ;;  %v1828_v23 = vcombine.low %v273_v20, %v273_v20 }
  0x64   : > { %2078 = vmatpush3.bf16.msra.mxu1 %v2247_v24  ;;  %2057 = vmatprep.subr.bf16.mxu0 %v2248_v25  ;;  %v1829_v24 = vcombine.high %v273_v20, %v273_v20 }
  0x65   : > { %2079 = vmatprep.subr.bf16.mxu1 %v2249_v26 }
  0x67   : > { %2058 = vmatpush3.bf16.msra.mxu0 %v2250_v27 }
  0x68   : > { %2080 = vmatpush3.bf16.msra.mxu1 %v2251_v28  ;;  %2059 = vmatprep.subr.bf16.mxu0 %v2252_v29 }
  0x69   : > { %2081 = vmatprep.subr.bf16.mxu1 %v2253_v30 }
  0x6b   : > { %2060 = vmatpush3.bf16.msra.mxu0 %v2254_v31 }
  0x6c   : > { %2082 = vmatpush3.bf16.msra.mxu1 %v2255_v32  ;;  %2061 = vmatprep.subr.bf16.mxu0 %v2256_v33 }
  0x6d   : > { %2083 = vmatprep.subr.bf16.mxu1 %v2257_v34 }
  0x6f   : > { %2062 = vmatpush3.bf16.msra.mxu0 %v2258_v35 }
  0x70   : > { %2084 = vmatpush3.bf16.msra.mxu1 %v2259_v36  ;;  %2063 = vmatprep.subr.bf16.mxu0 %v2260_v37 }
  0x71   : > { %2085 = vmatprep.subr.bf16.mxu1 %v2261_v38 }
  0x73   : > { %2064 = vmatpush3.bf16.msra.mxu0 %v2262_v39 }
  0x74   : > { %2086 = vmatpush3.bf16.msra.mxu1 %v2263_v40  ;;  %2065 = vmatprep.subr.bf16.mxu0 %v2264_v41 }
  0x75   : > { %2087 = vmatprep.subr.bf16.mxu1 %v2265_v42 }
  0x77   : > { %2066 = vmatpush3.bf16.msra.mxu0 %v2266_v43 }
  0x78   : > { %2088 = vmatpush3.bf16.msra.mxu1 %v2267_v44  ;;  %2095 = vmatprep.subr.bf16.mxu0 %v2272_v51 }
  0x79   : > { %2117 = vmatprep.subr.bf16.mxu1 %v2273_v52 }
  0x7a   : > { %1547 = vmatmul.mubr.bf16.vlgmr.msra.gmra.mrb[8].mxu0 %v1822_v47 }
  0x7b   : > { %1587 = vmatmul.mubr.bf16.vlgmr.msra.gmra.mrb[8].mxu1 %v1824_v49  ;;  %2096 = vmatpush3.bf16.msra.mxu0 %v2274_v53 }
  0x7c   : > { %2118 = vmatpush3.bf16.msra.mxu1 %v2275_v54  ;;  %2097 = vmatprep.subr.bf16.mxu0 %v2276_v55 }
  0x7d   : > { %2119 = vmatprep.subr.bf16.mxu1 %v2277_v56  ;;  %1626 = vmatprep.mubr.bf16.mxu0 %v1827_v22 }
  0x7e   : > { %1666 = vmatprep.mubr.bf16.mxu1 %v1829_v24 }
  0x7f   : > { %2098 = vmatpush3.bf16.msra.mxu0 %v2278_v57 }
  0x80   : > { %2120 = vmatpush3.bf16.msra.mxu1 %v2279_v58  ;;  %2099 = vmatprep.subr.bf16.mxu0 %v2280_v59 }
  0x81   : > { %2121 = vmatprep.subr.bf16.mxu1 %v2281_v60 }
  0x83   : > { %2100 = vmatpush3.bf16.msra.mxu0 %v2282_v61 }
  0x84   : > { %2122 = vmatpush3.bf16.msra.mxu1 %v2283_v62  ;;  %2101 = vmatprep.subr.bf16.mxu0 %v2284_v63 }
  0x85   : > { %2123 = vmatprep.subr.bf16.mxu1 %v2285_v0 }
  0x87   : > { %2102 = vmatpush3.bf16.msra.mxu0 %v2286_v1 }
  0x88   : > { %2124 = vmatpush3.bf16.msra.mxu1 %v2287_v2  ;;  %2103 = vmatprep.subr.bf16.mxu0 %v2288_v3 }
  0x89   : > { %2125 = vmatprep.subr.bf16.mxu1 %v2289_v4 }
  0x8b   : > { %2104 = vmatpush3.bf16.msra.mxu0 %v2290_v5 }
  0x8c   : > { %2126 = vmatpush3.bf16.msra.mxu1 %v2291_v6  ;;  %2105 = vmatprep.subr.bf16.mxu0 %v2292_v7  ;;  %v265_v7 = vld [vmem:[#allocation2] sm:$0xff] }
  0x8d   : > { %2127 = vmatprep.subr.bf16.mxu1 %v2293_v8 }
  0x8f   : > { %2106 = vmatpush3.bf16.msra.mxu0 %v2294_v9 }
  0x90   : > { %2128 = vmatpush3.bf16.msra.mxu1 %v2295_v10  ;;  %2107 = vmatprep.subr.bf16.mxu0 %v2296_v11  ;;  %v1959_v11 = vld [vmem:[%s2544_s2] ss:$0 sm:$0xff] (!%p1958_p7) }
  0x91   : > { %2129 = vmatprep.subr.bf16.mxu1 %v2297_v12 }
  0x93   : > { %2108 = vmatpush3.bf16.msra.mxu0 %v2298_v13 }
  0x94   : > { %2130 = vmatpush3.bf16.msra.mxu1 %v2299_v14  ;;  %2109 = vmatprep.subr.bf16.mxu0 %v2300_v15 }
  0x95   : > { %2131 = vmatprep.subr.bf16.mxu1 %v2301_v16 }
  0x97   : > { %2110 = vmatpush3.bf16.msra.mxu0 %v2302_v17 }
  0x98   : > { %2132 = vmatpush3.bf16.msra.mxu1 %v2303_v18 }
  0x9a   : > { %1627 = vmatmul.mubr.bf16.vlgmr.msra.gmra.mrb[12].mxu0 %v1826_v21 }
  0x9b   : > { %1667 = vmatmul.mubr.bf16.vlgmr.msra.gmra.mrb[12].mxu1 %v1828_v23 }
 0x10d   : > { %v1979_v25 = vpop.f32.mrb[0].mxu0 }
 0x10e   : > { %v2001_v26 = vpop.f32.mrb[0].mxu1  ;;  %v1980_v27 = vpop.f32.mrb[1].mxu0 }
 0x10f   : > { %v2002_v28 = vpop.f32.mrb[1].mxu1  ;;  %v1981_v29 = vadd.f32 %v1980_v27, %v1979_v25  ;;  %v1982_v31 = vpop.f32.mrb[2].mxu0 }
 0x110   : > { %v2003_v30 = vadd.f32 %v2002_v28, %v2001_v26  ;;  %v2004_v32 = vpop.f32.mrb[2].mxu1  ;;  %v1983_v33 = vpop.f32.mrb[3].mxu0 }
 0x111   : > { %v2005_v34 = vpop.f32.mrb[3].mxu1 }
 0x112   : > { %v1429_v35 = vadd.f32 %v2003_v30, %v1981_v29 }
 0x12d   : > { %v2023_v36 = vpop.f32.mrb[4].mxu0 }
 0x12e   : > { %v2045_v37 = vpop.f32.mrb[4].mxu1  ;;  %v2024_v38 = vpop.f32.mrb[5].mxu0 }
 0x12f   : > { %v2046_v39 = vpop.f32.mrb[5].mxu1  ;;  %v2025_v40 = vadd.f32 %v2024_v38, %v2023_v36  ;;  %v2026_v42 = vpop.f32.mrb[6].mxu0 }
 0x130   : > { %v2047_v41 = vadd.f32 %v2046_v39, %v2045_v37  ;;  %v2048_v43 = vpop.f32.mrb[6].mxu1  ;;  %v2027_v44 = vpop.f32.mrb[7].mxu0 }
 0x131   : > { %v2049_v45 = vpop.f32.mrb[7].mxu1  ;;  %v1469_v46 = vadd.f32 %v2025_v40, %v1429_v35 }
 0x133   : > { %v1509_v47 = vadd.f32 %v2047_v41, %v1469_v46 }
 0x14d   : > { %v2067_v48 = vpop.f32.mrb[8].mxu0 }
 0x14e   : > { %v2089_v49 = vpop.f32.mrb[8].mxu1  ;;  %v2068_v50 = vpop.f32.mrb[9].mxu0 }
 0x14f   : > { %v2069_v51 = vadd.f32 %v2068_v50, %v2067_v48  ;;  %v2090_v52 = vpop.f32.mrb[9].mxu1  ;;  %v2070_v53 = vpop.f32.mrb[10].mxu0 }
 0x150   : > { %v2091_v54 = vadd.f32 %v2090_v52, %v2089_v49  ;;  %v2092_v55 = vpop.f32.mrb[10].mxu1  ;;  %v2071_v56 = vpop.f32.mrb[11].mxu0 }
 0x151   : > { %v1549_v57 = vadd.f32 %v2069_v51, %v1509_v47  ;;  %v2093_v58 = vpop.f32.mrb[11].mxu1 }
 0x153   : > { %v1589_v59 = vadd.f32 %v2091_v54, %v1549_v57 }
 0x16d   : > { %v2111_v60 = vpop.f32.mrb[12].mxu0 }
 0x16e   : > { %v2133_v61 = vpop.f32.mrb[12].mxu1  ;;  %v2112_v62 = vpop.f32.mrb[13].mxu0 }
 0x16f   : > { %v2113_v63 = vadd.f32 %v2112_v62, %v2111_v60  ;;  %v2134_v0 = vpop.f32.mrb[13].mxu1  ;;  %v2114_v1 = vpop.f32.mrb[14].mxu0 }
 0x170   : > { %v2135_v2 = vadd.f32 %v2134_v0, %v2133_v61  ;;  %v2136_v3 = vpop.f32.mrb[14].mxu1  ;;  %v2115_v4 = vpop.f32.mrb[15].mxu0 }
 0x171   : > { %v1629_v5 = vadd.f32 %v2113_v63, %v1589_v59  ;;  %v2137_v6 = vpop.f32.mrb[15].mxu1  ;;  %1679 = sbr.rel (%p1958_p7) target bundleno = 418 (0x1a2), region = 40 }
 0x173   : > { %v1669_v8 = vadd.f32 %v2135_v2, %v1629_v5 }
 0x175   : > { %v1674_v9 = vadd.f32 %v1669_v8, %v265_v7 }
 0x177   : > { %1675 = vst [vmem:[#allocation2] sm:$0xff] %v1674_v9 }
 0x17e   : > { %v1680_v10 = vld [vmem:[#allocation2] sm:$0xff] }
 0x17f   : > { %v1688_v12 = vadd.f32 %v1959_v11, %v1680_v10 }
 0x181   : > { %v1689_v13 = vand.u32 2147483647, %v1688_v12  ;;  %vm1693_vm0 = vcmp.ge.f32.partialorder %v1688_v12, 0.0 }
 0x183   : > { %v1690_v14 = vsub.f32 0.0, %v1689_v13 }
 0x185   : > { %v1691_v15 = vmul.f32 1.442695, %v1690_v14 }
 0x187   : > { %2308 = vpow2.f32 %v1691_v15 }
 0x191   : > { %v2309_v16 = vpop.eup %2308 }
 0x192   : > { %v1695_v17 = vadd.f32 1.0, %v2309_v16  ;;  %v1694_v18 = vsel %vm1693_vm0, 1.0, %v2309_v16 }
 0x194   : > { %2310 = vrcp.f32 %v1695_v17 }
 0x19e   : > { %v2311_v19 = vpop.eup %2310 }
 0x19f   : > { %v1697_v20 = vmul.f32 %v2311_v19, %v1694_v18 }
 0x1a1   : > { %1698 = vst [vmem:[%s2545_s3] sm:$0xff] %v1697_v20 }
 0x1a2 PF: > { %s13_s14 = sadd.s32 1, %s2334_s14   ;;  %s2546_s12 = smov %s2330_s13 }
 0x1a3   : > { %p10_p8 = scmp.ge.s32.totalorder %s13_s14, 6   ;;  %s2547_s13 = smov %s2549_s15 }
 0x1a5   :  { %12 = sbr.rel (!%p10_p8) target bundleno = 2 (0x2), region = 76 }

</bundles_post_ra>
